<compile_context>
chip_gen: v7x
topology: tpu7x:2x2x1
jax: 0.10.0
libtpu: 0.0.40
codegen_flags: <defaults>
</compile_context>

<pallas_src>
import functools

import numpy as np

import jax
import jax.numpy as jnp
from jax.experimental import pallas as pl
from jax.experimental.pallas import tpu as pltpu


# ----------------------------------------------------------------------------
# Fused Pallas kernel: the whole Inception-ResNet-C block for one row-tile.
# ----------------------------------------------------------------------------
def _inception_resnet_c_kernel(x_ref, w01_ref, b01_ref, shift_ref,
                               w1b_ref, b1b_ref, w1c_ref, b1c_ref,
                               wc_ref, bc_ref, o_ref, *, relu):
    f32 = jnp.float32
    bf16 = jnp.bfloat16

    c1 = w1b_ref.shape[0] // 3                    # 192: branch_1[1] in-channels
    c2 = w1c_ref.shape[0] // 3                    # 224: branch_1[2] in-channels
    n_b0 = wc_ref.shape[0] - w1c_ref.shape[1]     # 192: branch_0 out-channels

    x_f32 = x_ref[...]                            # (tm, 2080) f32, kept for residual
    x_bf = x_f32.astype(bf16)

    # --- merged branch_0 + branch_1[0]: 1x1 convs, BN scale folded into W ----
    y01 = jnp.dot(x_bf, w01_ref[...], preferred_element_type=f32)
    y01 = jnp.maximum(y01 + b01_ref[...], 0.0)
    x0 = y01[:, :n_b0].astype(bf16)               # branch_0 output   (tm, 192)
    y1 = y01[:, n_b0:].astype(bf16)               # branch_1[0] out   (tm, 192)

    # 0/1 shift matrices (bf16, exact): S @ y moves each row to its spatial
    # neighbour and zeroes rows that fall outside the image (the conv padding).
    s_wl = shift_ref[0]                           # y -> y[h, w-1]
    s_wr = shift_ref[1]                           # y -> y[h, w+1]
    s_hu = shift_ref[2]                           # y -> y[h-1, w]
    s_hd = shift_ref[3]                           # y -> y[h+1, w]

    def conv3(y, s_lo, s_hi, w_ref, b_ref, c):
        # 3-tap conv along one spatial axis as three MXU matmuls.
        # w_ref rows are tap-major: k = 0,1,2  <->  input offset d = -1,0,+1.
        acc = jnp.dot(y, w_ref[c:2 * c, :], preferred_element_type=f32)       # d = 0
        y_lo = jnp.dot(s_lo, y, preferred_element_type=f32).astype(bf16)
        acc += jnp.dot(y_lo, w_ref[:c, :], preferred_element_type=f32)        # d = -1
        y_hi = jnp.dot(s_hi, y, preferred_element_type=f32).astype(bf16)
        acc += jnp.dot(y_hi, w_ref[2 * c:, :], preferred_element_type=f32)    # d = +1
        return jnp.maximum(acc + b_ref[...], 0.0)

    # --- branch_1[1]: (1,3) conv, padding (0,1), 192 -> 224 ------------------
    y2 = conv3(y1, s_wl, s_wr, w1b_ref, b1b_ref, c1).astype(bf16)
    # --- branch_1[2]: (3,1) conv, padding (1,0), 224 -> 256 ------------------
    y3 = conv3(y2, s_hu, s_hd, w1c_ref, b1c_ref, c2).astype(bf16)

    # --- concat (implicit, via weight row-split) + final 1x1 conv ------------
    # (block `scale` and conv bias are pre-folded into wc / bc) + residual.
    r = jnp.dot(x0, wc_ref[:n_b0, :], preferred_element_type=f32)
    r = r + jnp.dot(y3, wc_ref[n_b0:, :], preferred_element_type=f32)
    out = x_f32 + r + bc_ref[...]
    if relu:
        out = jnp.maximum(out, 0.0)
    o_ref[...] = out.astype(o_ref.dtype)


def _fused_block(xf, w01, b01, shifts, w1b, b1b, w1c, b1c, wc, bc, *, relu, tm):
    M, C = xf.shape
    assert M % tm == 0, "row tile must divide N*H*W"
    return pl.pallas_call(
        functools.partial(_inception_resnet_c_kernel, relu=relu),
        out_shape=jax.ShapeDtypeStruct((M, C), xf.dtype),
        grid=(M // tm,),
        in_specs=[
            pl.BlockSpec((tm, C), lambda i: (i, 0)),            # activations (f32)
            pl.BlockSpec(w01.shape, lambda i: (0, 0)),          # merged 1x1 weights
            pl.BlockSpec(b01.shape, lambda i: (0, 0)),
            pl.BlockSpec(shifts.shape, lambda i: (0, 0, 0)),    # 4 shift matrices
            pl.BlockSpec(w1b.shape, lambda i: (0, 0)),          # (1,3) conv weights
            pl.BlockSpec(b1b.shape, lambda i: (0, 0)),
            pl.BlockSpec(w1c.shape, lambda i: (0, 0)),          # (3,1) conv weights
            pl.BlockSpec(b1c.shape, lambda i: (0, 0)),
            pl.BlockSpec(wc.shape, lambda i: (0, 0)),           # final conv weights
            pl.BlockSpec(bc.shape, lambda i: (0, 0)),
        ],
        out_specs=pl.BlockSpec((tm, C), lambda i: (i, 0)),
        compiler_params=pltpu.CompilerParams(
            dimension_semantics=("parallel",),
            vmem_limit_bytes=48 * 1024 * 1024,
        ),
    )(xf, w01, b01, shifts, w1b, b1b, w1c, b1c, wc, bc)


# ----------------------------------------------------------------------------
# Host-side glue: BN folding, weight layout, shift matrices.
# ----------------------------------------------------------------------------
def bn_fold(gamma, beta, mean, var, eps=1e-3):
    s = gamma / jnp.sqrt(var + eps)
    return s, beta - mean * s


def w1x1_to_mat(w):       # (Cout, Cin, 1, 1) -> (Cin, Cout)
    return jnp.transpose(w[:, :, 0, 0], (1, 0))


def w1x3_to_mat(w):       # (Cout, Cin, 1, 3) -> (3*Cin, Cout), kw-major rows
    return jnp.transpose(w[:, :, 0, :], (2, 1, 0)).reshape(-1, w.shape[0])


def w3x1_to_mat(w):       # (Cout, Cin, 3, 1) -> (3*Cin, Cout), kh-major rows
    return jnp.transpose(w[:, :, :, 0], (2, 1, 0)).reshape(-1, w.shape[0])


def make_shift_mats(n_img, H, W, dtype=jnp.bfloat16):
    """0/1 matrices S (dw=-1, dw=+1, dh=-1, dh=+1): (S @ y)[m] = y[neighbour(m)]
    with zero rows where the neighbour falls outside the image (conv padding)."""
    TM = n_img * H * W
    m = np.arange(TM)
    w = m % W
    h = (m // W) % H

    def mat(dm, valid):
        S = np.zeros((TM, TM), np.float32)
        rows = m[valid]
        S[rows, rows + dm] = 1.0
        return S

    mats = np.stack([
        mat(-1, w - 1 >= 0),    # (h, w-1)
        mat(+1, w + 1 < W),     # (h, w+1)
        mat(-W, h - 1 >= 0),    # (h-1, w)
        mat(+W, h + 1 < H),     # (h+1, w)
    ])
    return jnp.asarray(mats, dtype)


# ----------------------------------------------------------------------------
# Inception_ResNet_C forward (inference-mode BN, matching the PyTorch module)
# ----------------------------------------------------------------------------
def inception_resnet_c(x_nchw, params, scale=1.0, activation=True):
    N, C, H, W = x_nchw.shape
    assert C == 2080, "residual add requires in_channels == 2080"
    xf = jnp.transpose(x_nchw, (0, 2, 3, 1)).reshape(N * H * W, C)

    bf16, f32 = jnp.bfloat16, jnp.float32

    # Fold BN scale into weight columns; keep only the additive shift.
    s0, t0 = bn_fold(*params["b0_bn"])
    s1a, t1a = bn_fold(*params["b1a_bn"])
    s1b, t1b = bn_fold(*params["b1b_bn"])
    s1c, t1c = bn_fold(*params["b1c_bn"])

    w0 = w1x1_to_mat(params["b0_w"]) * s0[None, :]
    w1a = w1x1_to_mat(params["b1a_w"]) * s1a[None, :]
    w01 = jnp.concatenate([w0, w1a], axis=1).astype(bf16)          # (2080, 384)
    b01 = jnp.concatenate([t0, t1a]).reshape(1, -1).astype(f32)    # (1, 384)

    w1b = (w1x3_to_mat(params["b1b_w"]) * s1b[None, :]).astype(bf16)  # (576, 224)
    b1b = t1b.reshape(1, -1).astype(f32)
    w1c = (w3x1_to_mat(params["b1c_w"]) * s1c[None, :]).astype(bf16)  # (672, 256)
    b1c = t1c.reshape(1, -1).astype(f32)

    # Final 1x1 conv: fold the block `scale` into weight and bias.
    wc = (w1x1_to_mat(params["conv_w"]) * scale).astype(bf16)         # (448, 2080)
    bc = (params["conv_b"] * scale).reshape(1, -1).astype(f32)        # (1, 2080)

    # Row tile = whole images (so the (3,1) conv neighborhood is resident),
    # sized to fill the 128 MXU rows when the per-image spatial area is small.
    HW = H * W
    img_per_blk = min(N, max(1, -(-128 // HW)))     # ceil(128 / HW), capped at N
    while N % img_per_blk:
        img_per_blk -= 1
    tm = img_per_blk * HW

    shifts = make_shift_mats(img_per_blk, H, W)

    out = _fused_block(xf, w01, b01, shifts, w1b, b1b, w1c, b1c, wc, bc,
                       relu=activation, tm=tm)
    return jnp.transpose(out.reshape(N, H, W, C), (0, 3, 1, 2))


# ----------------------------------------------------------------------------
# Pure-JAX reference (f32 convs) for numerical validation.
# ----------------------------------------------------------------------------
def _conv2d_ref(x, w, padding, bias=None):
    y = jax.lax.conv_general_dilated(
        x, w, window_strides=(1, 1),
        padding=((padding[0], padding[0]), (padding[1], padding[1])),
        dimension_numbers=("NCHW", "OIHW", "NCHW"),
        precision=jax.lax.Precision.HIGHEST)
    if bias is not None:
        y = y + bias[None, :, None, None]
    return y


def _bn_relu_ref(y, bn):
    gamma, beta, mean, var = bn
    s = gamma / jnp.sqrt(var + 1e-3)
    return jnp.maximum(y * s[None, :, None, None]
                       + (beta - mean * s)[None, :, None, None], 0.0)


def inception_resnet_c_ref(x, params, scale=1.0, activation=True):
    x0 = _bn_relu_ref(_conv2d_ref(x, params["b0_w"], (0, 0)), params["b0_bn"])
    y = _bn_relu_ref(_conv2d_ref(x, params["b1a_w"], (0, 0)), params["b1a_bn"])
    y = _bn_relu_ref(_conv2d_ref(y, params["b1b_w"], (0, 1)), params["b1b_bn"])
    x1 = _bn_relu_ref(_conv2d_ref(y, params["b1c_w"], (1, 0)), params["b1c_bn"])
    x_res = _conv2d_ref(jnp.concatenate([x0, x1], axis=1), params["conv_w"], (0, 0),
                        bias=params["conv_b"])
    out = x + scale * x_res
    return jnp.maximum(out, 0.0) if activation else out


# ----------------------------------------------------------------------------
# Deterministic parameter init (shapes from the module __init__)
# ----------------------------------------------------------------------------
def make_params(key, in_channels=2080):
    ks = jax.random.split(key, 10)

    def conv_w(k, shape):
        return jax.random.normal(k, shape, jnp.float32) * 0.05

    def bn_params(k, c):
        k1, k2, k3, k4 = jax.random.split(k, 4)
        gamma = 1.0 + 0.1 * jax.random.normal(k1, (c,), jnp.float32)
        beta = 0.1 * jax.random.normal(k2, (c,), jnp.float32)
        mean = 0.1 * jax.random.normal(k3, (c,), jnp.float32)
        var = 0.5 + 0.1 * jnp.abs(jax.random.normal(k4, (c,), jnp.float32))
        return gamma, beta, mean, var

    return {
        "b0_w": conv_w(ks[0], (192, in_channels, 1, 1)),
        "b0_bn": bn_params(ks[1], 192),
        "b1a_w": conv_w(ks[2], (192, in_channels, 1, 1)),
        "b1a_bn": bn_params(ks[3], 192),
        "b1b_w": conv_w(ks[4], (224, 192, 1, 3)),
        "b1b_bn": bn_params(ks[5], 224),
        "b1c_w": conv_w(ks[6], (256, 224, 3, 1)),
        "b1c_bn": bn_params(ks[7], 256),
        "conv_w": conv_w(ks[8], (2080, 448, 1, 1)),
        "conv_b": 0.1 * jax.random.normal(ks[9], (2080,), jnp.float32),
    }


if __name__ == "__main__":
    key = jax.random.PRNGKey(0)
    k_x, k_p = jax.random.split(key)
    # batch=2, spatial=8x8; channels fixed at 2080 by the module's residual add.
    x = jax.random.normal(k_x, (2, 2080, 8, 8), jnp.float32)
    params = make_params(k_p, in_channels=2080)

    fwd = jax.jit(functools.partial(inception_resnet_c, scale=1.0, activation=True))
    out = jax.block_until_ready(fwd(x, params))

    assert out.shape == x.shape and out.dtype == x.dtype
    assert bool(jnp.all(jnp.isfinite(out)))
    assert bool(jnp.all(out >= 0.0))  # final ReLU

    # Numerical check vs. f32 reference (loose tolerance: matmuls use bf16 inputs).
    ref = jax.block_until_ready(
        jax.jit(functools.partial(inception_resnet_c_ref, scale=1.0,
                                  activation=True))(x, params))
    err = float(jnp.max(jnp.abs(out - ref)))
    lim = 0.05 * float(jnp.max(jnp.abs(ref))) + 0.05
    assert err <= lim, f"max abs err {err} exceeds tolerance {lim}"

    print("KERNEL_OK")
</pallas_src>

<mosaic_0001>
module attributes {stable_mosaic.version = 11 : i64} {
  func.func @_inception_resnet_c_kernel(%arg0: i32, %arg1: memref<128x2080xf32, #tpu.memory_space<vmem>>, %arg2: memref<2080x384xbf16, #tpu.memory_space<vmem>>, %arg3: memref<1x384xf32, #tpu.memory_space<vmem>>, %arg4: memref<4x128x128xbf16, #tpu.memory_space<vmem>>, %arg5: memref<576x224xbf16, #tpu.memory_space<vmem>>, %arg6: memref<1x224xf32, #tpu.memory_space<vmem>>, %arg7: memref<672x256xbf16, #tpu.memory_space<vmem>>, %arg8: memref<1x256xf32, #tpu.memory_space<vmem>>, %arg9: memref<448x2080xbf16, #tpu.memory_space<vmem>>, %arg10: memref<1x2080xf32, #tpu.memory_space<vmem>>, %arg11: memref<128x2080xf32, #tpu.memory_space<vmem>>) attributes {dimension_semantics = [#tpu.dimension_semantics<parallel>], iteration_bounds = array<i64: 1>, scalar_prefetch = 0 : i64, scratch_operands = 0 : i64, tpu.core_type = #tpu.core_type<tc>, window_params = [{transform_indices = @transform_0, window_bounds = array<i64: 128, 2080>}, {pipeline_mode = #tpu.pipeline_mode<synchronous>, transform_indices = @transform_1, window_bounds = array<i64: 2080, 384>}, {pipeline_mode = #tpu.pipeline_mode<synchronous>, transform_indices = @transform_2, window_bounds = array<i64: 1, 384>}, {pipeline_mode = #tpu.pipeline_mode<synchronous>, transform_indices = @transform_3, window_bounds = array<i64: 4, 128, 128>}, {pipeline_mode = #tpu.pipeline_mode<synchronous>, transform_indices = @transform_4, window_bounds = array<i64: 576, 224>}, {pipeline_mode = #tpu.pipeline_mode<synchronous>, transform_indices = @transform_5, window_bounds = array<i64: 1, 224>}, {pipeline_mode = #tpu.pipeline_mode<synchronous>, transform_indices = @transform_6, window_bounds = array<i64: 672, 256>}, {pipeline_mode = #tpu.pipeline_mode<synchronous>, transform_indices = @transform_7, window_bounds = array<i64: 1, 256>}, {pipeline_mode = #tpu.pipeline_mode<synchronous>, transform_indices = @transform_8, window_bounds = array<i64: 448, 2080>}, {pipeline_mode = #tpu.pipeline_mode<synchronous>, transform_indices = @transform_9, window_bounds = array<i64: 1, 2080>}, {transform_indices = @transform_10, window_bounds = array<i64: 128, 2080>}]} {
    %c0 = arith.constant 0 : index
    %c0_0 = arith.constant 0 : index
    %0 = vector.load %arg1[%c0, %c0_0] : memref<128x2080xf32, #tpu.memory_space<vmem>>, vector<128x2080xf32>
    %1 = arith.truncf %0 : vector<128x2080xf32> to vector<128x2080xbf16>
    %c0_1 = arith.constant 0 : index
    %c0_2 = arith.constant 0 : index
    %2 = vector.load %arg2[%c0_1, %c0_2] : memref<2080x384xbf16, #tpu.memory_space<vmem>>, vector<2080x384xbf16>
    %cst = arith.constant dense<0.000000e+00> : vector<128x384xf32>
    %3 = tpu.matmul %1, %2, %cst {dimension_numbers = #tpu.dot_dimension_numbers<[1], [0], [0], [1], [0, 0, 1, 1], [], []>} : vector<128x2080xbf16>, vector<2080x384xbf16>, vector<128x384xf32> -> vector<128x384xf32>
    %c0_3 = arith.constant 0 : index
    %c0_4 = arith.constant 0 : index
    %4 = vector.load %arg3[%c0_3, %c0_4] : memref<1x384xf32, #tpu.memory_space<vmem>>, vector<1x384xf32>
    %5 = vector.broadcast %4 : vector<1x384xf32> to vector<128x384xf32>
    %6 = arith.addf %3, %5 : vector<128x384xf32>
    %cst_5 = arith.constant 0.000000e+00 : f32
    %7 = vector.broadcast %cst_5 : f32 to vector<128x384xf32>
    %8 = arith.maximumf %6, %7 : vector<128x384xf32>
    %9 = vector.extract_strided_slice %8 {offsets = [0, 0], sizes = [128, 192], strides = [1, 1]} : vector<128x384xf32> to vector<128x192xf32>
    %10 = arith.truncf %9 : vector<128x192xf32> to vector<128x192xbf16>
    %11 = vector.extract_strided_slice %8 {offsets = [0, 192], sizes = [128, 192], strides = [1, 1]} : vector<128x384xf32> to vector<128x192xf32>
    %12 = arith.truncf %11 : vector<128x192xf32> to vector<128x192xbf16>
    %c0_6 = arith.constant 0 : index
    %c0_7 = arith.constant 0 : index
    %c0_8 = arith.constant 0 : index
    %13 = vector.load %arg4[%c0_6, %c0_7, %c0_8] : memref<4x128x128xbf16, #tpu.memory_space<vmem>>, vector<1x128x128xbf16>
    %14 = vector.shape_cast %13 : vector<1x128x128xbf16> to vector<128x128xbf16>
    %c1 = arith.constant 1 : index
    %c0_9 = arith.constant 0 : index
    %c0_10 = arith.constant 0 : index
    %15 = vector.load %arg4[%c1, %c0_9, %c0_10] : memref<4x128x128xbf16, #tpu.memory_space<vmem>>, vector<1x128x128xbf16>
    %16 = vector.shape_cast %15 : vector<1x128x128xbf16> to vector<128x128xbf16>
    %c2 = arith.constant 2 : index
    %c0_11 = arith.constant 0 : index
    %c0_12 = arith.constant 0 : index
    %17 = vector.load %arg4[%c2, %c0_11, %c0_12] : memref<4x128x128xbf16, #tpu.memory_space<vmem>>, vector<1x128x128xbf16>
    %18 = vector.shape_cast %17 : vector<1x128x128xbf16> to vector<128x128xbf16>
    %c3 = arith.constant 3 : index
    %c0_13 = arith.constant 0 : index
    %c0_14 = arith.constant 0 : index
    %19 = vector.load %arg4[%c3, %c0_13, %c0_14] : memref<4x128x128xbf16, #tpu.memory_space<vmem>>, vector<1x128x128xbf16>
    %20 = vector.shape_cast %19 : vector<1x128x128xbf16> to vector<128x128xbf16>
    %c192 = arith.constant 192 : index
    %c0_15 = arith.constant 0 : index
    %21 = vector.load %arg5[%c192, %c0_15] : memref<576x224xbf16, #tpu.memory_space<vmem>>, vector<192x224xbf16>
    %cst_16 = arith.constant dense<0.000000e+00> : vector<128x224xf32>
    %22 = tpu.matmul %12, %21, %cst_16 {dimension_numbers = #tpu.dot_dimension_numbers<[1], [0], [0], [1], [0, 0, 1, 1], [], []>} : vector<128x192xbf16>, vector<192x224xbf16>, vector<128x224xf32> -> vector<128x224xf32>
    %cst_17 = arith.constant dense<0.000000e+00> : vector<128x192xf32>
    %23 = tpu.matmul %14, %12, %cst_17 {dimension_numbers = #tpu.dot_dimension_numbers<[1], [0], [0], [1], [0, 0, 1, 1], [], []>} : vector<128x128xbf16>, vector<128x192xbf16>, vector<128x192xf32> -> vector<128x192xf32>
    %24 = arith.truncf %23 : vector<128x192xf32> to vector<128x192xbf16>
    %c0_18 = arith.constant 0 : index
    %c0_19 = arith.constant 0 : index
    %25 = vector.load %arg5[%c0_18, %c0_19] : memref<576x224xbf16, #tpu.memory_space<vmem>>, vector<192x224xbf16>
    %cst_20 = arith.constant dense<0.000000e+00> : vector<128x224xf32>
    %26 = tpu.matmul %24, %25, %cst_20 {dimension_numbers = #tpu.dot_dimension_numbers<[1], [0], [0], [1], [0, 0, 1, 1], [], []>} : vector<128x192xbf16>, vector<192x224xbf16>, vector<128x224xf32> -> vector<128x224xf32>
    %27 = arith.addf %22, %26 : vector<128x224xf32>
    %cst_21 = arith.constant dense<0.000000e+00> : vector<128x192xf32>
    %28 = tpu.matmul %16, %12, %cst_21 {dimension_numbers = #tpu.dot_dimension_numbers<[1], [0], [0], [1], [0, 0, 1, 1], [], []>} : vector<128x128xbf16>, vector<128x192xbf16>, vector<128x192xf32> -> vector<128x192xf32>
    %29 = arith.truncf %28 : vector<128x192xf32> to vector<128x192xbf16>
    %c384 = arith.constant 384 : index
    %c0_22 = arith.constant 0 : index
    %30 = vector.load %arg5[%c384, %c0_22] : memref<576x224xbf16, #tpu.memory_space<vmem>>, vector<192x224xbf16>
    %cst_23 = arith.constant dense<0.000000e+00> : vector<128x224xf32>
    %31 = tpu.matmul %29, %30, %cst_23 {dimension_numbers = #tpu.dot_dimension_numbers<[1], [0], [0], [1], [0, 0, 1, 1], [], []>} : vector<128x192xbf16>, vector<192x224xbf16>, vector<128x224xf32> -> vector<128x224xf32>
    %32 = arith.addf %27, %31 : vector<128x224xf32>
    %c0_24 = arith.constant 0 : index
    %c0_25 = arith.constant 0 : index
    %33 = vector.load %arg6[%c0_24, %c0_25] : memref<1x224xf32, #tpu.memory_space<vmem>>, vector<1x224xf32>
    %34 = vector.broadcast %33 : vector<1x224xf32> to vector<128x224xf32>
    %35 = arith.addf %32, %34 : vector<128x224xf32>
    %cst_26 = arith.constant 0.000000e+00 : f32
    %36 = vector.broadcast %cst_26 : f32 to vector<128x224xf32>
    %37 = arith.maximumf %35, %36 : vector<128x224xf32>
    %38 = arith.truncf %37 : vector<128x224xf32> to vector<128x224xbf16>
    %c224 = arith.constant 224 : index
    %c0_27 = arith.constant 0 : index
    %39 = vector.load %arg7[%c224, %c0_27] : memref<672x256xbf16, #tpu.memory_space<vmem>>, vector<224x256xbf16>
    %cst_28 = arith.constant dense<0.000000e+00> : vector<128x256xf32>
    %40 = tpu.matmul %38, %39, %cst_28 {dimension_numbers = #tpu.dot_dimension_numbers<[1], [0], [0], [1], [0, 0, 1, 1], [], []>} : vector<128x224xbf16>, vector<224x256xbf16>, vector<128x256xf32> -> vector<128x256xf32>
    %cst_29 = arith.constant dense<0.000000e+00> : vector<128x224xf32>
    %41 = tpu.matmul %18, %38, %cst_29 {dimension_numbers = #tpu.dot_dimension_numbers<[1], [0], [0], [1], [0, 0, 1, 1], [], []>} : vector<128x128xbf16>, vector<128x224xbf16>, vector<128x224xf32> -> vector<128x224xf32>
    %42 = arith.truncf %41 : vector<128x224xf32> to vector<128x224xbf16>
    %c0_30 = arith.constant 0 : index
    %c0_31 = arith.constant 0 : index
    %43 = vector.load %arg7[%c0_30, %c0_31] : memref<672x256xbf16, #tpu.memory_space<vmem>>, vector<224x256xbf16>
    %cst_32 = arith.constant dense<0.000000e+00> : vector<128x256xf32>
    %44 = tpu.matmul %42, %43, %cst_32 {dimension_numbers = #tpu.dot_dimension_numbers<[1], [0], [0], [1], [0, 0, 1, 1], [], []>} : vector<128x224xbf16>, vector<224x256xbf16>, vector<128x256xf32> -> vector<128x256xf32>
    %45 = arith.addf %40, %44 : vector<128x256xf32>
    %cst_33 = arith.constant dense<0.000000e+00> : vector<128x224xf32>
    %46 = tpu.matmul %20, %38, %cst_33 {dimension_numbers = #tpu.dot_dimension_numbers<[1], [0], [0], [1], [0, 0, 1, 1], [], []>} : vector<128x128xbf16>, vector<128x224xbf16>, vector<128x224xf32> -> vector<128x224xf32>
    %47 = arith.truncf %46 : vector<128x224xf32> to vector<128x224xbf16>
    %c448 = arith.constant 448 : index
    %c0_34 = arith.constant 0 : index
    %48 = vector.load %arg7[%c448, %c0_34] : memref<672x256xbf16, #tpu.memory_space<vmem>>, vector<224x256xbf16>
    %cst_35 = arith.constant dense<0.000000e+00> : vector<128x256xf32>
    %49 = tpu.matmul %47, %48, %cst_35 {dimension_numbers = #tpu.dot_dimension_numbers<[1], [0], [0], [1], [0, 0, 1, 1], [], []>} : vector<128x224xbf16>, vector<224x256xbf16>, vector<128x256xf32> -> vector<128x256xf32>
    %50 = arith.addf %45, %49 : vector<128x256xf32>
    %c0_36 = arith.constant 0 : index
    %c0_37 = arith.constant 0 : index
    %51 = vector.load %arg8[%c0_36, %c0_37] : memref<1x256xf32, #tpu.memory_space<vmem>>, vector<1x256xf32>
    %52 = vector.broadcast %51 : vector<1x256xf32> to vector<128x256xf32>
    %53 = arith.addf %50, %52 : vector<128x256xf32>
    %cst_38 = arith.constant 0.000000e+00 : f32
    %54 = vector.broadcast %cst_38 : f32 to vector<128x256xf32>
    %55 = arith.maximumf %53, %54 : vector<128x256xf32>
    %56 = arith.truncf %55 : vector<128x256xf32> to vector<128x256xbf16>
    %c0_39 = arith.constant 0 : index
    %c0_40 = arith.constant 0 : index
    %57 = vector.load %arg9[%c0_39, %c0_40] : memref<448x2080xbf16, #tpu.memory_space<vmem>>, vector<192x2080xbf16>
    %cst_41 = arith.constant dense<0.000000e+00> : vector<128x2080xf32>
    %58 = tpu.matmul %10, %57, %cst_41 {dimension_numbers = #tpu.dot_dimension_numbers<[1], [0], [0], [1], [0, 0, 1, 1], [], []>} : vector<128x192xbf16>, vector<192x2080xbf16>, vector<128x2080xf32> -> vector<128x2080xf32>
    %c192_42 = arith.constant 192 : index
    %c0_43 = arith.constant 0 : index
    %59 = vector.load %arg9[%c192_42, %c0_43] : memref<448x2080xbf16, #tpu.memory_space<vmem>>, vector<256x2080xbf16>
    %cst_44 = arith.constant dense<0.000000e+00> : vector<128x2080xf32>
    %60 = tpu.matmul %56, %59, %cst_44 {dimension_numbers = #tpu.dot_dimension_numbers<[1], [0], [0], [1], [0, 0, 1, 1], [], []>} : vector<128x256xbf16>, vector<256x2080xbf16>, vector<128x2080xf32> -> vector<128x2080xf32>
    %61 = arith.addf %58, %60 : vector<128x2080xf32>
    %62 = arith.addf %0, %61 : vector<128x2080xf32>
    %c0_45 = arith.constant 0 : index
    %c0_46 = arith.constant 0 : index
    %63 = vector.load %arg10[%c0_45, %c0_46] : memref<1x2080xf32, #tpu.memory_space<vmem>>, vector<1x2080xf32>
    %64 = vector.broadcast %63 : vector<1x2080xf32> to vector<128x2080xf32>
    %65 = arith.addf %62, %64 : vector<128x2080xf32>
    %cst_47 = arith.constant 0.000000e+00 : f32
    %66 = vector.broadcast %cst_47 : f32 to vector<128x2080xf32>
    %67 = arith.maximumf %65, %66 : vector<128x2080xf32>
    %c0_48 = arith.constant 0 : index
    %c0_49 = arith.constant 0 : index
    %68 = vector.load %arg11[%c0_48, %c0_49] : memref<128x2080xf32, #tpu.memory_space<vmem>>, vector<128x2080xf32>
    tpu.vector_store %arg11[%c0_48, %c0_49], %67 {strides = array<i32>} : memref<128x2080xf32, #tpu.memory_space<vmem>>, vector<128x2080xf32>,
    return
  }
  func.func @transform_0(%arg0: i32) -> (i32, i32) {
    %c0_i32 = arith.constant 0 : i32
    %c0_i32_0 = arith.constant 0 : i32
    return %arg0, %c0_i32 : i32, i32
  }
  func.func @transform_1(%arg0: i32) -> (i32, i32) {
    %c0_i32 = arith.constant 0 : i32
    %c0_i32_0 = arith.constant 0 : i32
    %c0_i32_1 = arith.constant 0 : i32
    return %c0_i32, %c0_i32_0 : i32, i32
  }
  func.func @transform_2(%arg0: i32) -> (i32, i32) {
    %c0_i32 = arith.constant 0 : i32
    %c0_i32_0 = arith.constant 0 : i32
    %c0_i32_1 = arith.constant 0 : i32
    return %c0_i32, %c0_i32_0 : i32, i32
  }
  func.func @transform_3(%arg0: i32) -> (i32, i32, i32) {
    %c0_i32 = arith.constant 0 : i32
    %c0_i32_0 = arith.constant 0 : i32
    %c0_i32_1 = arith.constant 0 : i32
    %c0_i32_2 = arith.constant 0 : i32
    return %c0_i32, %c0_i32_0, %c0_i32_1 : i32, i32, i32
  }
  func.func @transform_4(%arg0: i32) -> (i32, i32) {
    %c0_i32 = arith.constant 0 : i32
    %c0_i32_0 = arith.constant 0 : i32
    %c0_i32_1 = arith.constant 0 : i32
    return %c0_i32, %c0_i32_0 : i32, i32
  }
  func.func @transform_5(%arg0: i32) -> (i32, i32) {
    %c0_i32 = arith.constant 0 : i32
    %c0_i32_0 = arith.constant 0 : i32
    %c0_i32_1 = arith.constant 0 : i32
    return %c0_i32, %c0_i32_0 : i32, i32
  }
  func.func @transform_6(%arg0: i32) -> (i32, i32) {
    %c0_i32 = arith.constant 0 : i32
    %c0_i32_0 = arith.constant 0 : i32
    %c0_i32_1 = arith.constant 0 : i32
    return %c0_i32, %c0_i32_0 : i32, i32
  }
  func.func @transform_7(%arg0: i32) -> (i32, i32) {
    %c0_i32 = arith.constant 0 : i32
    %c0_i32_0 = arith.constant 0 : i32
    %c0_i32_1 = arith.constant 0 : i32
    return %c0_i32, %c0_i32_0 : i32, i32
  }
  func.func @transform_8(%arg0: i32) -> (i32, i32) {
    %c0_i32 = arith.constant 0 : i32
    %c0_i32_0 = arith.constant 0 : i32
    %c0_i32_1 = arith.constant 0 : i32
    return %c0_i32, %c0_i32_0 : i32, i32
  }
  func.func @transform_9(%arg0: i32) -> (i32, i32) {
    %c0_i32 = arith.constant 0 : i32
    %c0_i32_0 = arith.constant 0 : i32
    %c0_i32_1 = arith.constant 0 : i32
    return %c0_i32, %c0_i32_0 : i32, i32
  }
  func.func @transform_10(%arg0: i32) -> (i32, i32) {
    %c0_i32 = arith.constant 0 : i32
    %c0_i32_0 = arith.constant 0 : i32
    return %arg0, %c0_i32 : i32, i32
  }
}

</mosaic_0001>

<bundles_post_ra>
// kernel: inception_resnet_c.1
= control target key start
LH: loop header
LB: loop body
LE: loop exit
PB: predicated region body
PF: predicated region fallthrough
CT: control target
= control target key end

     0   :  { %vm3062_vm0 = vcmask 261120   ;;  %s25787_s0 = inlined_call_operand.vmem [shape: f32[128,2080], index: 0, kind: input, shape index: {}]   ;;  %s25788_s1 = inlined_call_operand.vmem [shape: bf16[2080,384], index: 1, kind: input, shape index: {}]   ;;  %s25789_s2 = inlined_call_operand.vmem [shape: f32[1,384], index: 2, kind: input, shape index: {}]   ;;  %s25790_s3 = inlined_call_operand.vmem [shape: bf16[4,128,128], index: 3, kind: input, shape index: {}]   ;;  %s25791_s4 = inlined_call_operand.vmem [shape: bf16[576,224], index: 4, kind: input, shape index: {}]   ;;  %s25792_s5 = inlined_call_operand.vmem [shape: f32[1,224], index: 5, kind: input, shape index: {}]   ;;  %s25793_s6 = inlined_call_operand.vmem [shape: bf16[672,256], index: 6, kind: input, shape index: {}]   ;;  %s25794_s7 = inlined_call_operand.vmem [shape: f32[1,256], index: 7, kind: input, shape index: {}]   ;;  %s25795_s8 = inlined_call_operand.vmem [shape: bf16[448,2080], index: 8, kind: input, shape index: {}]   ;;  %s25796_s9 = inlined_call_operand.vmem [shape: f32[1,2080], index: 9, kind: input, shape index: {}]   ;;  %s25797_s10 = inlined_call_operand.hbm [shape: f32[128,2080], index: 10, kind: output, shape index: {}]  }
   0x1   :  { %v16584_v0 = vld [vmem:[%s25788_s1 + $0x4] ss:$12 sps:$4 sm:$0xff]   ;;  %v16586_v1 = vld [vmem:[%s25788_s1 + $0xc8] ss:$12 sps:$4 sm:$0xff]   ;;  %v16587_v2 = vld [vmem:[%s25788_s1] ss:$12 sps:$4 sm:$0xff]  }
   0x2   :  { %3087 = vmatprep.subr.bf16.mxu0 %v16584_v0  ;;  %15277 = vmatprep.subr.bf16.mxu1 %v16586_v1  ;;  %v16588_v3 = vld [vmem:[%s25788_s1 + $0x8] ss:$12 sps:$4 sm:$0xff]   ;;  %v16591_v5 = vld [vmem:[%s25788_s1 + $0xe0] ss:$12 sps:$4 sm:$0xff]   ;;  %v16592_v6 = vld [vmem:[%s25788_s1 + $0x18] ss:$12 sps:$4 sm:$0xff]  }
   0x3   :  { %3088 = vmatpush1.bf16.msra.mxu0 %v16587_v2  ;;  %v16589_v4 = vld [vmem:[%s25788_s1 + $0x1c] ss:$12 sps:$4 sm:$0xff]   ;;  %15278 = vmatpush3.bf16.msra.mxu1 %v16588_v3  ;;  %v16593_v7 = vld [vmem:[%s25788_s1 + $0x20] ss:$12 sps:$4 sm:$0xff]   ;;  %v16596_v9 = vld [vmem:[%s25788_s1 + $0xf8] ss:$12 sps:$4 sm:$0xff]  }
   0x4   :  { %3089 = vmatprep.subr.bf16.mxu0 %v16589_v4  ;;  %15279 = vmatprep.subr.bf16.mxu1 %v16591_v5  ;;  %v16594_v8 = vld [vmem:[%s25788_s1 + $0x34] ss:$12 sps:$4 sm:$0xff]   ;;  %v16597_v10 = vld [vmem:[%s25788_s1 + $0x30] ss:$12 sps:$4 sm:$0xff]   ;;  %v16598_v11 = vld [vmem:[%s25788_s1 + $0x38] ss:$12 sps:$4 sm:$0xff]  }
   0x5   :  { %v16599_v12 = vld [vmem:[%s25788_s1 + $0x4c] ss:$12 sps:$4 sm:$0xff]   ;;  %v16601_v13 = vld [vmem:[%s25788_s1 + $0x110] ss:$12 sps:$4 sm:$0xff]   ;;  %v16602_v14 = vld [vmem:[%s25788_s1 + $0x48] ss:$12 sps:$4 sm:$0xff]  }
   0x6   :  { %v16603_v15 = vld [vmem:[%s25788_s1 + $0x50] ss:$12 sps:$4 sm:$0xff]   ;;  %v16606_v17 = vld [vmem:[%s25788_s1 + $0x128] ss:$12 sps:$4 sm:$0xff]   ;;  %v16607_v18 = vld [vmem:[%s25788_s1 + $0x60] ss:$12 sps:$4 sm:$0xff]  }
   0x7   :  { %3090 = vmatpush1.bf16.msra.mxu0 %v16592_v6  ;;  %15280 = vmatpush3.bf16.msra.mxu1 %v16593_v7  ;;  %v16604_v16 = vld [vmem:[%s25788_s1 + $0x64] ss:$12 sps:$4 sm:$0xff]   ;;  %v16608_v19 = vld [vmem:[%s25788_s1 + $0x68] ss:$12 sps:$4 sm:$0xff]   ;;  %v16611_v21 = vld [vmem:[%s25788_s1 + $0x140] ss:$12 sps:$4 sm:$0xff]  }
   0x8   :  { %3091 = vmatprep.subr.bf16.mxu0 %v16594_v8  ;;  %15281 = vmatprep.subr.bf16.mxu1 %v16596_v9  ;;  %v16609_v20 = vld [vmem:[%s25788_s1 + $0x7c] ss:$12 sps:$4 sm:$0xff]   ;;  %v16612_v22 = vld [vmem:[%s25788_s1 + $0x78] ss:$12 sps:$4 sm:$0xff]   ;;  %v16613_v23 = vld [vmem:[%s25788_s1 + $0x80] ss:$12 sps:$4 sm:$0xff]  }
   0x9   :  { %v16614_v24 = vld [vmem:[%s25788_s1 + $0x94] ss:$12 sps:$4 sm:$0xff]   ;;  %v16616_v25 = vld [vmem:[%s25788_s1 + $0x158] ss:$12 sps:$4 sm:$0xff]   ;;  %v16617_v26 = vld [vmem:[%s25788_s1 + $0x90] ss:$12 sps:$4 sm:$0xff]  }
   0xa   :  { %v16618_v27 = vld [vmem:[%s25788_s1 + $0x98] ss:$12 sps:$4 sm:$0xff]   ;;  %v16621_v29 = vld [vmem:[%s25788_s1 + $0x170] ss:$12 sps:$4 sm:$0xff]   ;;  %v16622_v30 = vld [vmem:[%s25788_s1 + $0xa8] ss:$12 sps:$4 sm:$0xff]  }
   0xb   :  { %3092 = vmatpush1.bf16.msra.mxu0 %v16597_v10  ;;  %15282 = vmatpush3.bf16.msra.mxu1 %v16598_v11  ;;  %v16619_v28 = vld [vmem:[%s25788_s1 + $0xac] ss:$12 sps:$4 sm:$0xff]   ;;  %v55_v32 = vld [vmem:[%s25787_s0 + $0x90] sm:$0xff]  ;;  %v37_v36 = vld [vmem:[%s25787_s0] sm:$0xff] }
   0xc   :  { %3093 = vmatprep.subr.bf16.mxu0 %v16599_v12  ;;  %15283 = vmatprep.subr.bf16.mxu1 %v16601_v13  ;;  %v38_v31 = vld [vmem:[%s25787_s0 + $0x8] sm:$0xff]  ;;  %v16623_v33 = vld [vmem:[%s25788_s1 + $0xb0] ss:$12 sps:$4 sm:$0xff]   ;;  %v89_v39 = vld [vmem:[%s25787_s0 + $0x1a0] sm:$0xff] }
   0xd   :  { %v310_v34 = vpack.c.bf16 %v55_v32, %v38_v31  ;;  %v16624_v35 = vld [vmem:[%s25788_s1 + $0xc4] ss:$12 sps:$4 sm:$0xff]   ;;  %v54_v37 = vld [vmem:[%s25787_s0 + $0x88] sm:$0xff]  ;;  %v72_v38 = vld [vmem:[%s25787_s0 + $0x118] sm:$0xff] }
   0xe   :  { %v18546_v40 = vpack.c.bf16 %v54_v37, %v37_v36  ;;  %v16626_v41 = vld [vmem:[%s25788_s1 + $0xc0] ss:$12 sps:$4 sm:$0xff]   ;;  %v16627_v42 = vld [vmem:[%s25788_s1 + $0xdc] ss:$12 sps:$4 sm:$0xff]   ;;  %v18554_v43 = vpack.c.bf16 %v89_v39, %v72_v38  ;;  %v16629_v44 = vld [vmem:[%s25788_s1 + $0xd8] ss:$12 sps:$4 sm:$0xff]  }
   0xf   :  { %3094 = vmatpush1.bf16.msra.mxu0 %v16602_v14  ;;  %15284 = vmatpush3.bf16.msra.mxu1 %v16603_v15  ;;  %v16630_v45 = vld [vmem:[%s25788_s1 + $0xf4] ss:$12 sps:$4 sm:$0xff]   ;;  %v88_v47 = vld [vmem:[%s25787_s0 + $0x198] sm:$0xff]  ;;  %v106_v48 = vld [vmem:[%s25787_s0 + $0x228] sm:$0xff] }
  0x10   :  { %3095 = vmatprep.subr.bf16.mxu0 %v16604_v16  ;;  %15285 = vmatprep.subr.bf16.mxu1 %v16606_v17  ;;  %v71_v46 = vld [vmem:[%s25787_s0 + $0x110] sm:$0xff]  ;;  %v16633_v52 = vld [vmem:[%s25788_s1 + $0x10c] ss:$12 sps:$4 sm:$0xff]   ;;  %v105_v56 = vld [vmem:[%s25787_s0 + $0x220] sm:$0xff] }
  0x11   :  { %4136 = vmatprep.mubr.bf16.mxu1 %v310_v34  ;;  %3119 = vmatprep.mubr.bf16.mxu0 %v310_v34  ;;  %v123_v49 = vld [vmem:[%s25787_s0 + $0x2b0] sm:$0xff]  ;;  %v18576_v50 = vpack.c.bf16 %v88_v47, %v71_v46  ;;  %v122_v57 = vld [vmem:[%s25787_s0 + $0x2a8] sm:$0xff]  ;;  %v140_v58 = vld [vmem:[%s25787_s0 + $0x338] sm:$0xff] }
  0x12   :  { %v16632_v51 = vld [vmem:[%s25788_s1 + $0xf0] ss:$12 sps:$4 sm:$0xff]   ;;  %v18584_v53 = vpack.c.bf16 %v123_v49, %v106_v48  ;;  %v16635_v54 = vld [vmem:[%s25788_s1 + $0x108] ss:$12 sps:$4 sm:$0xff]   ;;  %v157_v59 = vld [vmem:[%s25787_s0 + $0x3c0] sm:$0xff]  ;;  %v18612_v62 = vpack.c.bf16 %v122_v57, %v105_v56 }
  0x13   :  { %3096 = vmatpush1.bf16.msra.mxu0 %v16607_v18  ;;  %15286 = vmatpush3.bf16.msra.mxu1 %v16608_v19  ;;  %v16636_v55 = vld [vmem:[%s25788_s1 + $0x124] ss:$12 sps:$4 sm:$0xff]   ;;  %v16651_v60 = vld [vmem:[%s25788_s1 + $0x248] ss:$12 sps:$4 sm:$0xff]   ;;  %v16638_v63 = vld [vmem:[%s25788_s1 + $0x120] ss:$12 sps:$4 sm:$0xff]   ;;  %v18620_v1 = vpack.c.bf16 %v157_v59, %v140_v58 }
  0x14   :  { %3097 = vmatprep.subr.bf16.mxu0 %v16609_v20  ;;  %15287 = vmatprep.subr.bf16.mxu1 %v16611_v21  ;;  %v16652_v61 = vld [vmem:[%s25788_s1 + $0x188] ss:$12 sps:$4 sm:$0xff]   ;;  %v16656_v2 = vld [vmem:[%s25788_s1 + $0x260] ss:$12 sps:$4 sm:$0xff]   ;;  %v16641_v3 = vld [vmem:[%s25788_s1 + $0x138] ss:$12 sps:$4 sm:$0xff]  }
  0x15   :  { %v16639_v0 = vld [vmem:[%s25788_s1 + $0x13c] ss:$12 sps:$4 sm:$0xff]   ;;  %v16657_v4 = vld [vmem:[%s25788_s1 + $0x1a0] ss:$12 sps:$4 sm:$0xff]   ;;  %v139_v6 = vld [vmem:[%s25787_s0 + $0x330] sm:$0xff] }
  0x16   :  { %v16642_v5 = vld [vmem:[%s25788_s1 + $0x154] ss:$12 sps:$4 sm:$0xff]   ;;  %v156_v7 = vld [vmem:[%s25787_s0 + $0x3b8] sm:$0xff]  ;;  %v174_v8 = vld [vmem:[%s25787_s0 + $0x448] sm:$0xff] }
  0x17   :  { %3098 = vmatpush1.bf16.msra.mxu0 %v16612_v22  ;;  %15288 = vmatpush3.bf16.msra.mxu1 %v16613_v23  ;;  %v191_v9 = vld [vmem:[%s25787_s0 + $0x4d0] sm:$0xff]  ;;  %v16661_v10 = vld [vmem:[%s25788_s1 + $0x278] ss:$12 sps:$4 sm:$0xff]   ;;  %v18654_v12 = vpack.c.bf16 %v156_v7, %v139_v6  ;;  %v190_v21 = vld [vmem:[%s25787_s0 + $0x4c8] sm:$0xff] }
  0x18   :  { %3099 = vmatprep.subr.bf16.mxu0 %v16614_v24  ;;  %15289 = vmatprep.subr.bf16.mxu1 %v16616_v25  ;;  %v16662_v11 = vld [vmem:[%s25788_s1 + $0x1b8] ss:$12 sps:$4 sm:$0xff]   ;;  %v16644_v13 = vld [vmem:[%s25788_s1 + $0x150] ss:$12 sps:$4 sm:$0xff]   ;;  %v18662_v15 = vpack.c.bf16 %v191_v9, %v174_v8  ;;  %v16647_v18 = vld [vmem:[%s25788_s1 + $0x168] ss:$12 sps:$4 sm:$0xff]  }
  0x19   :  { %v16645_v14 = vld [vmem:[%s25788_s1 + $0x16c] ss:$12 sps:$4 sm:$0xff]   ;;  %v16666_v16 = vld [vmem:[%s25788_s1 + $0x290] ss:$12 sps:$4 sm:$0xff]   ;;  %v173_v20 = vld [vmem:[%s25787_s0 + $0x440] sm:$0xff] }
  0x1a   :  { %v16667_v17 = vld [vmem:[%s25788_s1 + $0x1d0] ss:$12 sps:$4 sm:$0xff]   ;;  %v225_v23 = vld [vmem:[%s25787_s0 + $0x5e0] sm:$0xff]  ;;  %v16671_v24 = vld [vmem:[%s25788_s1 + $0x2a8] ss:$12 sps:$4 sm:$0xff]  }
  0x1b   :  { %3100 = vmatpush1.bf16.msra.mxu0 %v16617_v26  ;;  %15290 = vmatpush3.bf16.msra.mxu1 %v16618_v27  ;;  %v16650_v19 = vld [vmem:[%s25788_s1 + $0x184] ss:$12 sps:$4 sm:$0xff]   ;;  %v208_v22 = vld [vmem:[%s25787_s0 + $0x558] sm:$0xff]  ;;  %v16672_v25 = vld [vmem:[%s25788_s1 + $0x1e8] ss:$12 sps:$4 sm:$0xff]   ;;  %v18699_v27 = vpack.c.bf16 %v190_v21, %v173_v20 }
  0x1c   :  { %3101 = vmatprep.subr.bf16.mxu0 %v16619_v28  ;;  %15291 = vmatprep.subr.bf16.mxu1 %v16621_v29  ;;  %v16648_v26 = vld [vmem:[%s25788_s1 + $0x180] ss:$12 sps:$4 sm:$0xff]   ;;  %v16655_v28 = vld [vmem:[%s25788_s1 + $0x19c] ss:$12 sps:$4 sm:$0xff]   ;;  %v16653_v32 = vld [vmem:[%s25788_s1 + $0x198] ss:$12 sps:$4 sm:$0xff]  }
  0x1d   :  { %v16676_v29 = vld [vmem:[%s25788_s1 + $0x2c0] ss:$12 sps:$4 sm:$0xff]   ;;  %v207_v34 = vld [vmem:[%s25787_s0 + $0x550] sm:$0xff]  ;;  %v16681_v38 = vld [vmem:[%s25788_s1 + $0x2d8] ss:$12 sps:$4 sm:$0xff]  }
  0x1e   :  { %v16677_v31 = vld [vmem:[%s25788_s1 + $0x200] ss:$12 sps:$4 sm:$0xff]   ;;  %v259_v37 = vld [vmem:[%s25787_s0 + $0x6f0] sm:$0xff]  ;;  %v16682_v39 = vld [vmem:[%s25788_s1 + $0x218] ss:$12 sps:$4 sm:$0xff]  }
  0x1f   :  { %3102 = vmatpush1.bf16.msra.mxu0 %v16622_v30  ;;  %15292 = vmatpush3.bf16.msra.mxu1 %v16623_v33  ;;  %v18707_v30 = vpack.c.bf16 %v225_v23, %v208_v22  ;;  %v16660_v33 = vld [vmem:[%s25788_s1 + $0x1b4] ss:$12 sps:$4 sm:$0xff]   ;;  %v242_v36 = vld [vmem:[%s25787_s0 + $0x668] sm:$0xff]  ;;  %v16670_v47 = vld [vmem:[%s25788_s1 + $0x1e4] ss:$12 sps:$4 sm:$0xff]  }
  0x20   :  { %3103 = vmatprep.subr.bf16.mxu0 %v16624_v35  ;;  %15341 = vmatprep.subr.bf16.mxu1 %v16651_v60  ;;  %v224_v35 = vld [vmem:[%s25787_s0 + $0x5d8] sm:$0xff]  ;;  %v16663_v46 = vld [vmem:[%s25788_s1 + $0x1c8] ss:$12 sps:$4 sm:$0xff]   ;;  %v241_v48 = vld [vmem:[%s25787_s0 + $0x660] sm:$0xff] }
  0x21   :  { %v258_v49 = vld [vmem:[%s25787_s0 + $0x6e8] sm:$0xff]  ;;  %v16673_v56 = vld [vmem:[%s25788_s1 + $0x1f8] ss:$12 sps:$4 sm:$0xff]   ;;  %v16680_v57 = vld [vmem:[%s25788_s1 + $0x214] ss:$12 sps:$4 sm:$0xff]  }
  0x22   :  { %4137 = vmatmul.mubr.bf16.vlgmr.msra.gmra.mrb[0].mxu1 %v18546_v40  ;;  %v275_v58 = vld [vmem:[%s25787_s0 + $0x770] sm:$0xff]  ;;  %v292_v59 = vld [vmem:[%s25787_s0 + $0x7f8] sm:$0xff]  ;;  %v74_v6 = vld [vmem:[%s25787_s0 + $0x128] sm:$0xff] }
  0x23   :  { %3104 = vmatpush1.bf16.msra.mxu0 %v16626_v41  ;;  %4144 = vmatprep.mubr.bf16.mxu1 %v18554_v43  ;;  %v18743_v41 = vpack.c.bf16 %v224_v35, %v207_v34  ;;  %v40_v60 = vld [vmem:[%s25787_s0 + $0x18] sm:$0xff]  ;;  %v16715_v7 = vld [vmem:[%s25788_s1 + $0x3c8] ss:$12 sps:$4 sm:$0xff]   ;;  %v16688_v9 = vld [vmem:[%s25788_s1 + $0x240] ss:$12 sps:$4 sm:$0xff]  }
  0x24   :  { %3105 = vmatprep.subr.bf16.mxu0 %v16627_v42  ;;  %15342 = vmatpush3.bf16.msra.mxu1 %v16652_v61  ;;  %v16665_v42 = vld [vmem:[%s25788_s1 + $0x1cc] ss:$12 sps:$4 sm:$0xff]   ;;  %v57_v61 = vld [vmem:[%s25787_s0 + $0xa0] sm:$0xff]  ;;  %v91_v8 = vld [vmem:[%s25787_s0 + $0x1b0] sm:$0xff] }
  0x25   :  { %15343 = vmatprep.subr.bf16.mxu1 %v16656_v2  ;;  %v16683_v2 = vld [vmem:[%s25788_s1 + $0x228] ss:$12 sps:$4 sm:$0xff]   ;;  %v125_v20 = vld [vmem:[%s25787_s0 + $0x2c0] sm:$0xff]  ;;  %v16694_v23 = vld [vmem:[%s25788_s1 + $0x270] ss:$12 sps:$4 sm:$0xff]  }
  0x26   :  { %v16721_v21 = vld [vmem:[%s25788_s1 + $0x320] ss:$12 sps:$4 sm:$0xff]   ;;  %v16725_v22 = vld [vmem:[%s25788_s1 + $0x3f8] ss:$12 sps:$4 sm:$0xff]   ;;  %v159_v34 = vld [vmem:[%s25787_s0 + $0x3d0] sm:$0xff] }
  0x27   :  { %3106 = vmatpush1.bf16.msra.mxu0 %v16629_v44  ;;  %v18751_v44 = vpack.c.bf16 %v259_v37, %v242_v36  ;;  %v16731_v35 = vld [vmem:[%s25788_s1 + $0x350] ss:$12 sps:$4 sm:$0xff]   ;;  %v16735_v36 = vld [vmem:[%s25788_s1 + $0x428] ss:$12 sps:$4 sm:$0xff]   ;;  %v16700_v37 = vld [vmem:[%s25788_s1 + $0x2a0] ss:$12 sps:$4 sm:$0xff]  }
  0x28   :  { %3107 = vmatprep.subr.bf16.mxu0 %v16630_v45  ;;  %15344 = vmatpush3.bf16.msra.mxu1 %v16657_v4  ;;  %v16687_v45 = vld [vmem:[%s25788_s1 + $0x230] ss:$12 sps:$4 sm:$0xff]  }
  0x29   :  { %15345 = vmatprep.subr.bf16.mxu1 %v16661_v10  ;;  %v39_v4 = vld [vmem:[%s25787_s0 + $0x10] sm:$0xff] }
  0x2a   :  { %4145 = vmatmul.mubr.bf16.gmra.mrb[4].mxu1 %v18576_v50 }
  0x2b   :  { %3108 = vmatpush1.bf16.msra.mxu0 %v16632_v51  ;;  %4152 = vmatprep.mubr.bf16.mxu1 %v18584_v53  ;;  %v293_v51 = vld [vmem:[%s25787_s0 + $0x800] sm:$0xff] }
  0x2c   :  { %3109 = vmatprep.subr.bf16.mxu0 %v16633_v52  ;;  %15346 = vmatpush3.bf16.msra.mxu1 %v16662_v11  ;;  %v16668_v52 = vld [vmem:[%s25788_s1 + $0x1e0] ss:$12 sps:$4 sm:$0xff]   ;;  %v16693_v11 = vld [vmem:[%s25788_s1 + $0x25c] ss:$12 sps:$4 sm:$0xff]  }
  0x2d   :  { %15347 = vmatprep.subr.bf16.mxu1 %v16666_v16  ;;  %v16696_v16 = vld [vmem:[%s25788_s1 + $0x274] ss:$12 sps:$4 sm:$0xff]  }
  0x2f   :  { %3110 = vmatpush1.bf16.msra.mxu0 %v16635_v54  ;;  %v16675_v54 = vld [vmem:[%s25788_s1 + $0x1fc] ss:$12 sps:$4 sm:$0xff]  }
  0x30   :  { %3111 = vmatprep.subr.bf16.mxu0 %v16636_v55  ;;  %15348 = vmatpush3.bf16.msra.mxu1 %v16667_v17  ;;  %v73_v17 = vld [vmem:[%s25787_s0 + $0x120] sm:$0xff] }
  0x31   :  { %15349 = vmatprep.subr.bf16.mxu1 %v16671_v24 }
  0x32   :  { %4153 = vmatmul.mubr.bf16.gmra.mrb[8].mxu1 %v18612_v62 }
  0x33   :  { %3112 = vmatpush1.bf16.msra.mxu0 %v16638_v63  ;;  %4160 = vmatprep.mubr.bf16.mxu1 %v18620_v1  ;;  %v18813_v63 = vpack.c.bf16 %v292_v59, %v275_v58  ;;  %v16714_v58 = vld [vmem:[%s25788_s1 + $0x304] ss:$12 sps:$4 sm:$0xff]  }
  0x34   :  { %3113 = vmatprep.subr.bf16.mxu0 %v16639_v0  ;;  %15350 = vmatpush3.bf16.msra.mxu1 %v16672_v25  ;;  %v16685_v0 = vld [vmem:[%s25788_s1 + $0x22c] ss:$12 sps:$4 sm:$0xff]   ;;  %v175_v59 = vld [vmem:[%s25787_s0 + $0x450] sm:$0xff] }
  0x35   :  { %15351 = vmatprep.subr.bf16.mxu1 %v16676_v29  ;;  %v16699_v25 = vld [vmem:[%s25788_s1 + $0x28c] ss:$12 sps:$4 sm:$0xff]   ;;  %v16730_v29 = vld [vmem:[%s25788_s1 + $0x410] ss:$12 sps:$4 sm:$0xff]  }
  0x37   :  { %3114 = vmatpush1.bf16.msra.mxu0 %v16641_v3  ;;  %v16690_v3 = vld [vmem:[%s25788_s1 + $0x244] ss:$12 sps:$4 sm:$0xff]  }
  0x38   :  { %3115 = vmatprep.subr.bf16.mxu0 %v16642_v5  ;;  %15352 = vmatpush3.bf16.msra.mxu1 %v16677_v31  ;;  %v56_v5 = vld [vmem:[%s25787_s0 + $0x98] sm:$0xff]  ;;  %v107_v31 = vld [vmem:[%s25787_s0 + $0x230] sm:$0xff] }
  0x39   :  { %15353 = vmatprep.subr.bf16.mxu1 %v16681_v38  ;;  %v18848_v10 = vpack.c.bf16 %v56_v5, %v39_v4  ;;  %v16717_v4 = vld [vmem:[%s25788_s1 + $0x318] ss:$12 sps:$4 sm:$0xff]   ;;  %v16724_v5 = vld [vmem:[%s25788_s1 + $0x334] ss:$12 sps:$4 sm:$0xff]  }
  0x3a   :  { %4161 = vmatmul.mubr.bf16.gmra.mrb[12].mxu1 %v18654_v12 }
  0x3b   :  { %3116 = vmatpush1.bf16.msra.mxu0 %v16644_v13  ;;  %4168 = vmatprep.mubr.bf16.mxu1 %v18662_v15  ;;  %v18856_v13 = vpack.c.bf16 %v91_v8, %v74_v6  ;;  %v209_v6 = vld [vmem:[%s25787_s0 + $0x560] sm:$0xff]  ;;  %v244_v8 = vld [vmem:[%s25787_s0 + $0x678] sm:$0xff] }
  0x3c   :  { %3117 = vmatprep.subr.bf16.mxu0 %v16645_v14  ;;  %15354 = vmatpush3.bf16.msra.mxu1 %v16682_v39  ;;  %v16716_v14 = vld [vmem:[%s25788_s1 + $0x308] ss:$12 sps:$4 sm:$0xff]  }
  0x3d   :  { %v16705_v39 = vld [vmem:[%s25788_s1 + $0x2bc] ss:$12 sps:$4 sm:$0xff]  }
  0x3f   :  { %3118 = vmatpush1.bf16.msra.mxu0 %v16647_v18  ;;  %v90_v18 = vld [vmem:[%s25787_s0 + $0x1a8] sm:$0xff] }
  0x40   :  { %3200 = vmatprep.subr.bf16.mxu0 %v16650_v19  ;;  %v108_v19 = vld [vmem:[%s25787_s0 + $0x238] sm:$0xff]  ;;  %v18892_v24 = vpack.c.bf16 %v90_v18, %v73_v17  ;;  %v278_v18 = vld [vmem:[%s25787_s0 + $0x788] sm:$0xff] }
  0x41   :  { %v260_v17 = vld [vmem:[%s25787_s0 + $0x6f8] sm:$0xff] }
  0x42   :  { %3120 = vmatmul.mubr.bf16.vlgmr.msra.gmra.mrb[0].mxu0 %v18546_v40  ;;  %4169 = vmatmul.mubr.bf16.gmra.mrb[16].mxu1 %v18699_v27  ;;  %v16658_v40 = vld [vmem:[%s25788_s1 + $0x1b0] ss:$12 sps:$4 sm:$0xff]  }
  0x43   :  { %3201 = vmatpush1.bf16.msra.mxu0 %v16648_v26  ;;  %3129 = vmatprep.mubr.bf16.mxu0 %v18554_v43  ;;  %v16686_v43 = vld [vmem:[%s25788_s1 + $0x2f0] ss:$12 sps:$4 sm:$0xff]   ;;  %v16697_v26 = vld [vmem:[%s25788_s1 + $0x288] ss:$12 sps:$4 sm:$0xff]  }
  0x44   :  { %3202 = vmatprep.subr.bf16.mxu0 %v16655_v28  ;;  %4176 = vmatprep.mubr.bf16.mxu1 %v18707_v30  ;;  %v16726_v28 = vld [vmem:[%s25788_s1 + $0x338] ss:$12 sps:$4 sm:$0xff]  }
  0x45   :  { %15355 = vmatprep.subr.bf16.mxu1 %v16686_v43  ;;  %v16740_v43 = vld [vmem:[%s25788_s1 + $0x440] ss:$12 sps:$4 sm:$0xff]  }
  0x46   :  { %15356 = vmatpush3.bf16.msra.mxu1 %v16687_v45  ;;  %v141_v45 = vld [vmem:[%s25787_s0 + $0x340] sm:$0xff] }
  0x47   :  { %3203 = vmatpush1.bf16.msra.mxu0 %v16653_v32  ;;  %15405 = vmatprep.subr.bf16.mxu1 %v16715_v7  ;;  %v124_v32 = vld [vmem:[%s25787_s0 + $0x2b8] sm:$0xff]  ;;  %v226_v7 = vld [vmem:[%s25787_s0 + $0x5e8] sm:$0xff] }
  0x48   :  { %3204 = vmatprep.subr.bf16.mxu0 %v16660_v33  ;;  %v142_v33 = vld [vmem:[%s25787_s0 + $0x348] sm:$0xff]  ;;  %v18936_v38 = vpack.c.bf16 %v124_v32, %v107_v31  ;;  %v16742_v31 = vld [vmem:[%s25788_s1 + $0x390] ss:$12 sps:$4 sm:$0xff]  }
  0x4a   :  { %3130 = vmatmul.mubr.bf16.gmra.mrb[4].mxu0 %v18576_v50  ;;  %4177 = vmatmul.mubr.bf16.gmra.mrb[20].mxu1 %v18743_v41  ;;  %v276_v50 = vld [vmem:[%s25787_s0 + $0x778] sm:$0xff] }
  0x4b   :  { %3205 = vmatpush1.bf16.msra.mxu0 %v16658_v40  ;;  %3139 = vmatprep.mubr.bf16.mxu0 %v18584_v53  ;;  %v18781_v53 = vpack.c.bf16 %v258_v49, %v241_v48  ;;  %v18786_v55 = vpack.c.bf16 %v293_v51, %v276_v50  ;;  %v16703_v40 = vld [vmem:[%s25788_s1 + $0x2b8] ss:$12 sps:$4 sm:$0xff]   ;;  %v16741_v49 = vld [vmem:[%s25788_s1 + $0x380] ss:$12 sps:$4 sm:$0xff]   ;;  %v16706_v51 = vld [vmem:[%s25788_s1 + $0x2d0] ss:$12 sps:$4 sm:$0xff]  }
  0x4c   :  { %3206 = vmatprep.subr.bf16.mxu0 %v16665_v42  ;;  %4184 = vmatprep.mubr.bf16.mxu1 %v18751_v44  ;;  %v16736_v42 = vld [vmem:[%s25788_s1 + $0x368] ss:$12 sps:$4 sm:$0xff]   ;;  %v193_v48 = vld [vmem:[%s25787_s0 + $0x4e0] sm:$0xff] }
  0x4d   :  { %v16745_v50 = vld [vmem:[%s25788_s1 + $0x458] ss:$12 sps:$4 sm:$0xff]  }
  0x4f   :  { %3207 = vmatpush1.bf16.msra.mxu0 %v16663_v46  ;;  %v158_v46 = vld [vmem:[%s25787_s0 + $0x3c8] sm:$0xff] }
  0x50   :  { %3208 = vmatprep.subr.bf16.mxu0 %v16670_v47  ;;  %v176_v47 = vld [vmem:[%s25787_s0 + $0x458] sm:$0xff] }
  0x52   :  { %3140 = vmatmul.mubr.bf16.gmra.mrb[8].mxu0 %v18612_v62  ;;  %4185 = vmatmul.mubr.bf16.gmra.mrb[24].mxu1 %v18781_v53  ;;  %v16678_v62 = vld [vmem:[%s25788_s1 + $0x210] ss:$12 sps:$4 sm:$0xff]  }
  0x53   :  { %3209 = vmatpush1.bf16.msra.mxu0 %v16668_v52  ;;  %3149 = vmatprep.mubr.bf16.mxu0 %v18620_v1  ;;  %v18818_v1 = vpack.c.bf16 %v57_v61, %v40_v60  ;;  %v18980_v52 = vpack.c.bf16 %v158_v46, %v141_v45  ;;  %v192_v60 = vld [vmem:[%s25787_s0 + $0x4d8] sm:$0xff]  ;;  %v210_v61 = vld [vmem:[%s25787_s0 + $0x568] sm:$0xff] }
  0x54   :  { %3210 = vmatprep.subr.bf16.mxu0 %v16675_v54  ;;  %4192 = vmatprep.mubr.bf16.mxu1 %v18786_v55  ;;  %v18985_v54 = vpack.c.bf16 %v193_v48, %v176_v47  ;;  %v16780_v46 = vld [vmem:[%s25788_s1 + $0x488] ss:$12 sps:$4 sm:$0xff]   ;;  %v16784_v47 = vld [vmem:[%s25788_s1 + $0x560] ss:$12 sps:$4 sm:$0xff]  }
  0x55   :  { %v16760_v48 = vld [vmem:[%s25788_s1 + $0x3f4] ss:$12 sps:$4 sm:$0xff]  }
  0x57   :  { %3211 = vmatpush1.bf16.msra.mxu0 %v16673_v56  ;;  %v16750_v56 = vld [vmem:[%s25788_s1 + $0x470] ss:$12 sps:$4 sm:$0xff]  }
  0x58   :  { %3212 = vmatprep.subr.bf16.mxu0 %v16680_v57  ;;  %v16709_v57 = vld [vmem:[%s25788_s1 + $0x2e8] ss:$12 sps:$4 sm:$0xff]  }
  0x5a   :  { %3150 = vmatmul.mubr.bf16.gmra.mrb[12].mxu0 %v18654_v12  ;;  %4193 = vmatmul.mubr.bf16.gmra.mrb[28].mxu1 %v18813_v63  ;;  %v16691_v12 = vld [vmem:[%s25788_s1 + $0x258] ss:$12 sps:$4 sm:$0xff]  }
  0x5b   :  { %3213 = vmatpush1.bf16.msra.mxu0 %v16678_v62  ;;  %3159 = vmatprep.mubr.bf16.mxu0 %v18662_v15  ;;  %v16720_v15 = vld [vmem:[%s25788_s1 + $0x3e0] ss:$12 sps:$4 sm:$0xff]   ;;  %v16751_v62 = vld [vmem:[%s25788_s1 + $0x3b0] ss:$12 sps:$4 sm:$0xff]  }
  0x5c   :  { %3214 = vmatprep.subr.bf16.mxu0 %v16685_v0  ;;  %4233 = vmatprep.mubr.bf16.mxu1 %v18818_v1  ;;  %v16712_v0 = vld [vmem:[%s25788_s1 + $0x300] ss:$12 sps:$4 sm:$0xff]  }
  0x5f   :  { %3215 = vmatpush1.bf16.msra.mxu0 %v16683_v2  ;;  %v16719_v2 = vld [vmem:[%s25788_s1 + $0x31c] ss:$12 sps:$4 sm:$0xff]  }
  0x60   :  { %3216 = vmatprep.subr.bf16.mxu0 %v16690_v3 }
  0x62   :  { %3160 = vmatmul.mubr.bf16.gmra.mrb[16].mxu0 %v18699_v27  ;;  %4234 = vmatmul.mubr.bf16.vlgmr.msra.gmra.mrb[32].mxu1 %v18848_v10  ;;  %v18900_v27 = vpack.c.bf16 %v125_v20, %v108_v19  ;;  %v16779_v19 = vld [vmem:[%s25788_s1 + $0x548] ss:$12 sps:$4 sm:$0xff]  }
  0x63   :  { %3217 = vmatpush1.bf16.msra.mxu0 %v16688_v9  ;;  %3169 = vmatprep.mubr.bf16.mxu0 %v18707_v30  ;;  %v16702_v30 = vld [vmem:[%s25788_s1 + $0x2a4] ss:$12 sps:$4 sm:$0xff]  }
  0x64   :  { %3218 = vmatprep.subr.bf16.mxu0 %v16693_v11  ;;  %4241 = vmatprep.mubr.bf16.mxu1 %v18856_v13  ;;  %v261_v9 = vld [vmem:[%s25787_s0 + $0x700] sm:$0xff]  ;;  %v19053_v11 = vpack.c.bf16 %v226_v7, %v209_v6  ;;  %v295_v20 = vld [vmem:[%s25787_s0 + $0x810] sm:$0xff]  ;;  %v16769_v7 = vld [vmem:[%s25788_s1 + $0x43c] ss:$12 sps:$4 sm:$0xff]  }
  0x65   :  { %15406 = vmatpush3.bf16.msra.mxu1 %v16716_v14  ;;  %v16727_v14 = vld [vmem:[%s25788_s1 + $0x348] ss:$12 sps:$4 sm:$0xff]  }
  0x66   :  { %15407 = vmatprep.subr.bf16.mxu1 %v16720_v15  ;;  %v16734_v15 = vld [vmem:[%s25788_s1 + $0x364] ss:$12 sps:$4 sm:$0xff]  }
  0x67   :  { %3219 = vmatpush1.bf16.msra.mxu0 %v16691_v12  ;;  %v16729_v12 = vld [vmem:[%s25788_s1 + $0x34c] ss:$12 sps:$4 sm:$0xff]  }
  0x68   :  { %3220 = vmatprep.subr.bf16.mxu0 %v16696_v16  ;;  %v243_v16 = vld [vmem:[%s25787_s0 + $0x670] sm:$0xff] }
  0x69   :  { %15408 = vmatpush3.bf16.msra.mxu1 %v16721_v21  ;;  %v16732_v21 = vld [vmem:[%s25788_s1 + $0x360] ss:$12 sps:$4 sm:$0xff]  }
  0x6a   :  { %3170 = vmatmul.mubr.bf16.gmra.mrb[20].mxu0 %v18743_v41  ;;  %15409 = vmatprep.subr.bf16.mxu1 %v16725_v22  ;;  %v18944_v41 = vpack.c.bf16 %v159_v34, %v142_v33  ;;  %v19088_v22 = vpack.c.bf16 %v260_v17, %v243_v16  ;;  %v16749_v33 = vld [vmem:[%s25788_s1 + $0x3ac] ss:$12 sps:$4 sm:$0xff]   ;;  %v195_v16 = vld [vmem:[%s25787_s0 + $0x4f0] sm:$0xff] }
  0x6b   :  { %4242 = vmatmul.mubr.bf16.gmra.mrb[36].mxu1 %v18892_v24  ;;  %3221 = vmatpush1.bf16.msra.mxu0 %v16694_v23  ;;  %v16739_v23 = vld [vmem:[%s25788_s1 + $0x37c] ss:$12 sps:$4 sm:$0xff]   ;;  %v16805_v17 = vld [vmem:[%s25788_s1 + $0x500] ss:$12 sps:$4 sm:$0xff]  }
  0x6c   :  { %3222 = vmatprep.subr.bf16.mxu0 %v16699_v25  ;;  %3179 = vmatprep.mubr.bf16.mxu0 %v18751_v44  ;;  %v16708_v44 = vld [vmem:[%s25788_s1 + $0x2d4] ss:$12 sps:$4 sm:$0xff]   ;;  %v16737_v25 = vld [vmem:[%s25788_s1 + $0x378] ss:$12 sps:$4 sm:$0xff]  }
  0x6d   :  { %4249 = vmatprep.mubr.bf16.mxu1 %v18900_v27  ;;  %15410 = vmatpush3.bf16.msra.mxu1 %v16726_v28  ;;  %v294_v28 = vld [vmem:[%s25787_s0 + $0x808] sm:$0xff] }
  0x6e   :  { %15411 = vmatprep.subr.bf16.mxu1 %v16730_v29  ;;  %v42_v29 = vld [vmem:[%s25787_s0 + $0x28] sm:$0xff] }
  0x6f   :  { %3223 = vmatpush1.bf16.msra.mxu0 %v16697_v26  ;;  %v16744_v26 = vld [vmem:[%s25788_s1 + $0x394] ss:$12 sps:$4 sm:$0xff]  }
  0x70   :  { %3224 = vmatprep.subr.bf16.mxu0 %v16702_v30  ;;  %v59_v30 = vld [vmem:[%s25787_s0 + $0xb0] sm:$0xff] }
  0x71   :  { %15412 = vmatpush3.bf16.msra.mxu1 %v16731_v35  ;;  %v19125_v34 = vpack.c.bf16 %v59_v30, %v42_v29  ;;  %v16747_v35 = vld [vmem:[%s25788_s1 + $0x3a8] ss:$12 sps:$4 sm:$0xff]   ;;  %v212_v29 = vld [vmem:[%s25787_s0 + $0x578] sm:$0xff]  ;;  %v229_v30 = vld [vmem:[%s25787_s0 + $0x600] sm:$0xff] }
  0x72   :  { %3180 = vmatmul.mubr.bf16.gmra.mrb[24].mxu0 %v18781_v53  ;;  %15413 = vmatprep.subr.bf16.mxu1 %v16735_v36  ;;  %v16711_v53 = vld [vmem:[%s25788_s1 + $0x2ec] ss:$12 sps:$4 sm:$0xff]   ;;  %v16754_v36 = vld [vmem:[%s25788_s1 + $0x3c4] ss:$12 sps:$4 sm:$0xff]  }
  0x73   :  { %4250 = vmatmul.mubr.bf16.gmra.mrb[40].mxu1 %v18936_v38  ;;  %3225 = vmatpush1.bf16.msra.mxu0 %v16700_v37  ;;  %v41_v37 = vld [vmem:[%s25787_s0 + $0x20] sm:$0xff] }
  0x74   :  { %3226 = vmatprep.subr.bf16.mxu0 %v16705_v39  ;;  %3189 = vmatprep.mubr.bf16.mxu0 %v18786_v55  ;;  %v16746_v55 = vld [vmem:[%s25788_s1 + $0x398] ss:$12 sps:$4 sm:$0xff]  }
  0x75   :  { %4257 = vmatprep.mubr.bf16.mxu1 %v18944_v41  ;;  %15414 = vmatpush3.bf16.msra.mxu1 %v16736_v42  ;;  %v76_v39 = vld [vmem:[%s25787_s0 + $0x138] sm:$0xff] }
  0x76   :  { %15415 = vmatprep.subr.bf16.mxu1 %v16740_v43  ;;  %v16757_v43 = vld [vmem:[%s25788_s1 + $0x3dc] ss:$12 sps:$4 sm:$0xff]  }
  0x77   :  { %3227 = vmatpush1.bf16.msra.mxu0 %v16703_v40  ;;  %v93_v40 = vld [vmem:[%s25787_s0 + $0x1c0] sm:$0xff] }
  0x78   :  { %3228 = vmatprep.subr.bf16.mxu0 %v16708_v44  ;;  %v16755_v44 = vld [vmem:[%s25788_s1 + $0x3d8] ss:$12 sps:$4 sm:$0xff]   ;;  %v19160_v45 = vpack.c.bf16 %v93_v40, %v76_v39  ;;  %v211_v39 = vld [vmem:[%s25787_s0 + $0x570] sm:$0xff] }
  0x79   :  { %15416 = vmatpush3.bf16.msra.mxu1 %v16741_v49  ;;  %v75_v49 = vld [vmem:[%s25787_s0 + $0x130] sm:$0xff]  ;;  %v228_v40 = vld [vmem:[%s25787_s0 + $0x5f8] sm:$0xff] }
  0x7a   :  { %3190 = vmatmul.mubr.bf16.gmra.mrb[28].mxu0 %v18813_v63  ;;  %15417 = vmatprep.subr.bf16.mxu1 %v16745_v50  ;;  %v227_v63 = vld [vmem:[%s25787_s0 + $0x5f0] sm:$0xff]  ;;  %v92_v50 = vld [vmem:[%s25787_s0 + $0x1b8] sm:$0xff] }
  0x7b   :  { %4258 = vmatmul.mubr.bf16.gmra.mrb[44].mxu1 %v18980_v52  ;;  %3229 = vmatpush1.bf16.msra.mxu0 %v16706_v51  ;;  %v19026_v3 = vpack.c.bf16 %v227_v63, %v210_v61  ;;  %v110_v51 = vld [vmem:[%s25787_s0 + $0x248] sm:$0xff]  ;;  %v109_v63 = vld [vmem:[%s25787_s0 + $0x240] sm:$0xff] }
  0x7c   :  { %3230 = vmatprep.subr.bf16.mxu0 %v16711_v53  ;;  %3232 = vmatprep.mubr.bf16.mxu0 %v18818_v1  ;;  %v19021_v1 = vpack.c.bf16 %v192_v60, %v175_v59  ;;  %v16785_v53 = vld [vmem:[%s25788_s1 + $0x4a0] ss:$12 sps:$4 sm:$0xff]   ;;  %v16790_v59 = vld [vmem:[%s25788_s1 + $0x4b8] ss:$12 sps:$4 sm:$0xff]   ;;  %v16794_v60 = vld [vmem:[%s25788_s1 + $0x590] ss:$12 sps:$4 sm:$0xff]  }
  0x7d   :  { %4265 = vmatprep.mubr.bf16.mxu1 %v18985_v54  ;;  %15418 = vmatpush3.bf16.msra.mxu1 %v16746_v55  ;;  %v16758_v55 = vld [vmem:[%s25788_s1 + $0x3f0] ss:$12 sps:$4 sm:$0xff]   ;;  %v16761_v61 = vld [vmem:[%s25788_s1 + $0x408] ss:$12 sps:$4 sm:$0xff]  }
  0x7e   :  { %15419 = vmatprep.subr.bf16.mxu1 %v16750_v56  ;;  %v19196_v56 = vpack.c.bf16 %v92_v50, %v75_v49  ;;  %v245_v49 = vld [vmem:[%s25787_s0 + $0x680] sm:$0xff]  ;;  %v262_v50 = vld [vmem:[%s25787_s0 + $0x708] sm:$0xff] }
  0x7f   :  { %3231 = vmatpush1.bf16.msra.mxu0 %v16709_v57  ;;  %v16763_v57 = vld [vmem:[%s25788_s1 + $0x40c] ss:$12 sps:$4 sm:$0xff]  }
  0x80   :  { %3313 = vmatprep.subr.bf16.mxu0 %v16714_v58 }
  0x81   :  { %15420 = vmatpush3.bf16.msra.mxu1 %v16751_v62  ;;  %v16766_v62 = vld [vmem:[%s25788_s1 + $0x424] ss:$12 sps:$4 sm:$0xff]  }
  0x82   :  { %3233 = vmatmul.mubr.bf16.vlgmr.msra.gmra.mrb[0].mxu0 %v18848_v10  ;;  %v16722_v10 = vld [vmem:[%s25788_s1 + $0x330] ss:$12 sps:$4 sm:$0xff]   ;;  %15469 = vmatprep.subr.bf16.mxu1 %v16779_v19 }
  0x83   :  { %4266 = vmatmul.mubr.bf16.gmra.mrb[48].mxu1 %v19021_v1  ;;  %3314 = vmatpush1.bf16.msra.mxu0 %v16712_v0  ;;  %v126_v0 = vld [vmem:[%s25787_s0 + $0x2c8] sm:$0xff]  ;;  %v16770_v19 = vld [vmem:[%s25788_s1 + $0x450] ss:$12 sps:$4 sm:$0xff]  }
  0x84   :  { %3315 = vmatprep.subr.bf16.mxu0 %v16719_v2  ;;  %3242 = vmatprep.mubr.bf16.mxu0 %v18856_v13  ;;  %v19058_v13 = vpack.c.bf16 %v261_v9, %v244_v8  ;;  %v161_v2 = vld [vmem:[%s25787_s0 + $0x3e0] sm:$0xff]  ;;  %v19240_v6 = vpack.c.bf16 %v126_v0, %v109_v63  ;;  %v16800_v9 = vld [vmem:[%s25788_s1 + $0x4e8] ss:$12 sps:$4 sm:$0xff]   ;;  %v16806_v63 = vld [vmem:[%s25788_s1 + $0x510] ss:$12 sps:$4 sm:$0xff]  }
  0x85   :  { %4273 = vmatprep.mubr.bf16.mxu1 %v19026_v3 }
  0x87   :  { %3316 = vmatpush1.bf16.msra.mxu0 %v16717_v4  ;;  %v16799_v4 = vld [vmem:[%s25788_s1 + $0x5a8] ss:$12 sps:$4 sm:$0xff]  }
  0x88   :  { %3317 = vmatprep.subr.bf16.mxu0 %v16724_v5  ;;  %v16764_v5 = vld [vmem:[%s25788_s1 + $0x420] ss:$12 sps:$4 sm:$0xff]  }
  0x8a   :  { %3243 = vmatmul.mubr.bf16.gmra.mrb[4].mxu0 %v18892_v24  ;;  %v19093_v24 = vpack.c.bf16 %v295_v20, %v278_v18  ;;  %v16809_v18 = vld [vmem:[%s25788_s1 + $0x5d8] ss:$12 sps:$4 sm:$0xff]  }
  0x8b   :  { %4274 = vmatmul.mubr.bf16.gmra.mrb[52].mxu1 %v19053_v11  ;;  %3318 = vmatpush1.bf16.msra.mxu0 %v16722_v10  ;;  %v16804_v10 = vld [vmem:[%s25788_s1 + $0x5c0] ss:$12 sps:$4 sm:$0xff]  }
  0x8c   :  { %3319 = vmatprep.subr.bf16.mxu0 %v16729_v12  ;;  %3252 = vmatprep.mubr.bf16.mxu0 %v18900_v27  ;;  %v277_v27 = vld [vmem:[%s25787_s0 + $0x780] sm:$0xff] }
  0x8d   :  { %4281 = vmatprep.mubr.bf16.mxu1 %v19058_v13  ;;  %v19120_v32 = vpack.c.bf16 %v294_v28, %v277_v27  ;;  %v16772_v12 = vld [vmem:[%s25788_s1 + $0x454] ss:$12 sps:$4 sm:$0xff]   ;;  %v194_v28 = vld [vmem:[%s25787_s0 + $0x4e8] sm:$0xff] }
  0x8e   :  { %v177_v27 = vld [vmem:[%s25787_s0 + $0x460] sm:$0xff] }
  0x8f   :  { %3320 = vmatpush1.bf16.msra.mxu0 %v16727_v14  ;;  %v160_v14 = vld [vmem:[%s25787_s0 + $0x3d8] sm:$0xff] }
  0x90   :  { %3321 = vmatprep.subr.bf16.mxu0 %v16734_v15  ;;  %v178_v15 = vld [vmem:[%s25787_s0 + $0x468] sm:$0xff] }
  0x92   :  { %3253 = vmatmul.mubr.bf16.gmra.mrb[8].mxu0 %v18936_v38  ;;  %v58_v38 = vld [vmem:[%s25787_s0 + $0xa8] sm:$0xff] }
  0x93   :  { %4282 = vmatmul.mubr.bf16.gmra.mrb[56].mxu1 %v19088_v22  ;;  %3322 = vmatpush1.bf16.msra.mxu0 %v16732_v21  ;;  %v19152_v42 = vpack.c.bf16 %v58_v38, %v41_v37  ;;  %v16775_v21 = vld [vmem:[%s25788_s1 + $0x46c] ss:$12 sps:$4 sm:$0xff]   ;;  %v16788_v38 = vld [vmem:[%s25788_s1 + $0x4b4] ss:$12 sps:$4 sm:$0xff]  }
  0x94   :  { %3323 = vmatprep.subr.bf16.mxu0 %v16739_v23  ;;  %3262 = vmatprep.mubr.bf16.mxu0 %v18944_v41  ;;  %v16752_v41 = vld [vmem:[%s25788_s1 + $0x3c0] ss:$12 sps:$4 sm:$0xff]   ;;  %v19292_v23 = vpack.c.bf16 %v195_v16, %v178_v15  ;;  %v16781_v37 = vld [vmem:[%s25788_s1 + $0x498] ss:$12 sps:$4 sm:$0xff]  }
  0x95   :  { %4289 = vmatprep.mubr.bf16.mxu1 %v19093_v24  ;;  %v16819_v15 = vld [vmem:[%s25788_s1 + $0x558] ss:$12 sps:$4 sm:$0xff]   ;;  %v16824_v16 = vld [vmem:[%s25788_s1 + $0x574] ss:$12 sps:$4 sm:$0xff]  }
  0x97   :  { %3324 = vmatpush1.bf16.msra.mxu0 %v16737_v25  ;;  %v16814_v25 = vld [vmem:[%s25788_s1 + $0x5f0] ss:$12 sps:$4 sm:$0xff]  }
  0x98   :  { %3325 = vmatprep.subr.bf16.mxu0 %v16744_v26  ;;  %v16778_v26 = vld [vmem:[%s25788_s1 + $0x484] ss:$12 sps:$4 sm:$0xff]  }
  0x9a   :  { %3263 = vmatmul.mubr.bf16.gmra.mrb[12].mxu0 %v18980_v52  ;;  %v127_v52 = vld [vmem:[%s25787_s0 + $0x2d0] sm:$0xff] }
  0x9b   :  { %4290 = vmatmul.mubr.bf16.gmra.mrb[60].mxu1 %v19120_v32  ;;  %3326 = vmatpush1.bf16.msra.mxu0 %v16742_v31  ;;  %v19201_v58 = vpack.c.bf16 %v127_v52, %v110_v51  ;;  %v16815_v31 = vld [vmem:[%s25788_s1 + $0x530] ss:$12 sps:$4 sm:$0xff]   ;;  %v297_v52 = vld [vmem:[%s25787_s0 + $0x820] sm:$0xff] }
  0x9c   :  { %3327 = vmatprep.subr.bf16.mxu0 %v16749_v33  ;;  %3272 = vmatprep.mubr.bf16.mxu0 %v18985_v54  ;;  %v16789_v54 = vld [vmem:[%s25788_s1 + $0x578] ss:$12 sps:$4 sm:$0xff]   ;;  %v16776_v33 = vld [vmem:[%s25788_s1 + $0x480] ss:$12 sps:$4 sm:$0xff]  }
  0x9d   :  { %4330 = vmatprep.mubr.bf16.mxu1 %v19125_v34  ;;  %v280_v51 = vld [vmem:[%s25787_s0 + $0x798] sm:$0xff] }
  0x9f   :  { %3328 = vmatpush1.bf16.msra.mxu0 %v16747_v35  ;;  %v16783_v35 = vld [vmem:[%s25788_s1 + $0x49c] ss:$12 sps:$4 sm:$0xff]  }
  0xa0   :  { %3329 = vmatprep.subr.bf16.mxu0 %v16754_v36  ;;  %v19333_v36 = vpack.c.bf16 %v229_v30, %v212_v29  ;;  %v16830_v29 = vld [vmem:[%s25788_s1 + $0x5a4] ss:$12 sps:$4 sm:$0xff]  }
  0xa1   :  { %v16858_v30 = vld [vmem:[%s25788_s1 + $0x710] ss:$12 sps:$4 sm:$0xff]  }
  0xa2   :  { %3273 = vmatmul.mubr.bf16.gmra.mrb[16].mxu0 %v19021_v1  ;;  %v144_v1 = vld [vmem:[%s25787_s0 + $0x358] sm:$0xff] }
  0xa3   :  { %4331 = vmatmul.mubr.bf16.vlgmr.msra.gmra.mrb[64].mxu1 %v19152_v42  ;;  %3330 = vmatpush1.bf16.msra.mxu0 %v16752_v41  ;;  %v19245_v8 = vpack.c.bf16 %v161_v2, %v144_v1  ;;  %v246_v41 = vld [vmem:[%s25787_s0 + $0x688] sm:$0xff] }
  0xa4   :  { %3331 = vmatprep.subr.bf16.mxu0 %v16757_v43  ;;  %3282 = vmatprep.mubr.bf16.mxu0 %v19026_v3  ;;  %v16795_v3 = vld [vmem:[%s25788_s1 + $0x4d0] ss:$12 sps:$4 sm:$0xff]   ;;  %v16813_v1 = vld [vmem:[%s25788_s1 + $0x52c] ss:$12 sps:$4 sm:$0xff]  }
  0xa5   :  { %4338 = vmatprep.mubr.bf16.mxu1 %v19160_v45  ;;  %15470 = vmatpush3.bf16.msra.mxu1 %v16780_v46  ;;  %v16786_v43 = vld [vmem:[%s25788_s1 + $0x4b0] ss:$12 sps:$4 sm:$0xff]  }
  0xa6   :  { %15471 = vmatprep.subr.bf16.mxu1 %v16784_v47  ;;  %v16791_v47 = vld [vmem:[%s25788_s1 + $0x4c8] ss:$12 sps:$4 sm:$0xff]  }
  0xa7   :  { %3332 = vmatpush1.bf16.msra.mxu0 %v16755_v44  ;;  %v19360_v44 = vpack.c.bf16 %v228_v40, %v211_v39  ;;  %v16833_v39 = vld [vmem:[%s25788_s1 + $0x5bc] ss:$12 sps:$4 sm:$0xff]   ;;  %v16831_v40 = vld [vmem:[%s25788_s1 + $0x5b8] ss:$12 sps:$4 sm:$0xff]  }
  0xa8   :  { %3333 = vmatprep.subr.bf16.mxu0 %v16760_v48  ;;  %v16798_v48 = vld [vmem:[%s25788_s1 + $0x4e4] ss:$12 sps:$4 sm:$0xff]  }
  0xa9   :  { %15472 = vmatpush3.bf16.msra.mxu1 %v16785_v53  ;;  %v16796_v53 = vld [vmem:[%s25788_s1 + $0x4e0] ss:$12 sps:$4 sm:$0xff]  }
  0xaa   :  { %3283 = vmatmul.mubr.bf16.gmra.mrb[20].mxu0 %v19053_v11  ;;  %15473 = vmatprep.subr.bf16.mxu1 %v16789_v54  ;;  %v16767_v11 = vld [vmem:[%s25788_s1 + $0x438] ss:$12 sps:$4 sm:$0xff]   ;;  %v19392_v54 = vpack.c.bf16 %v262_v50, %v245_v49  ;;  %v16869_v49 = vld [vmem:[%s25788_s1 + $0x680] ss:$12 sps:$4 sm:$0xff]  }
  0xab   :  { %4339 = vmatmul.mubr.bf16.gmra.mrb[68].mxu1 %v19196_v56  ;;  %3334 = vmatpush1.bf16.msra.mxu0 %v16758_v55  ;;  %v16803_v55 = vld [vmem:[%s25788_s1 + $0x4fc] ss:$12 sps:$4 sm:$0xff]  }
  0xac   :  { %3335 = vmatprep.subr.bf16.mxu0 %v16763_v57  ;;  %3292 = vmatprep.mubr.bf16.mxu0 %v19058_v13  ;;  %v143_v13 = vld [vmem:[%s25787_s0 + $0x350] sm:$0xff]  ;;  %v16801_v57 = vld [vmem:[%s25788_s1 + $0x4f8] ss:$12 sps:$4 sm:$0xff]  }
  0xad   :  { %4346 = vmatprep.mubr.bf16.mxu1 %v19201_v58  ;;  %15474 = vmatpush3.bf16.msra.mxu1 %v16790_v59  ;;  %v19284_v20 = vpack.c.bf16 %v160_v14, %v143_v13  ;;  %v279_v59 = vld [vmem:[%s25787_s0 + $0x790] sm:$0xff]  ;;  %v16848_v14 = vld [vmem:[%s25788_s1 + $0x6e0] ss:$12 sps:$4 sm:$0xff]  }
  0xae   :  { %15475 = vmatprep.subr.bf16.mxu1 %v16794_v60  ;;  %v296_v60 = vld [vmem:[%s25787_s0 + $0x818] sm:$0xff]  ;;  %v16844_v13 = vld [vmem:[%s25788_s1 + $0x608] ss:$12 sps:$4 sm:$0xff]  }
  0xaf   :  { %3336 = vmatpush1.bf16.msra.mxu0 %v16761_v61  ;;  %v44_v61 = vld [vmem:[%s25787_s0 + $0x38] sm:$0xff]  ;;  %v19424_v0 = vpack.c.bf16 %v296_v60, %v279_v59 }
  0xb0   :  { %3337 = vmatprep.subr.bf16.mxu0 %v16766_v62  ;;  %v61_v62 = vld [vmem:[%s25787_s0 + $0xc0] sm:$0xff] }
  0xb1   :  { %15476 = vmatpush3.bf16.msra.mxu1 %v16795_v3  ;;  %v19429_v2 = vpack.c.bf16 %v61_v62, %v44_v61  ;;  %v16811_v3 = vld [vmem:[%s25788_s1 + $0x528] ss:$12 sps:$4 sm:$0xff]   ;;  %v16874_v61 = vld [vmem:[%s25788_s1 + $0x698] ss:$12 sps:$4 sm:$0xff]  }
  0xb2   :  { %3293 = vmatmul.mubr.bf16.gmra.mrb[24].mxu0 %v19088_v22  ;;  %15477 = vmatprep.subr.bf16.mxu1 %v16799_v4  ;;  %v16773_v22 = vld [vmem:[%s25788_s1 + $0x468] ss:$12 sps:$4 sm:$0xff]   ;;  %v16818_v4 = vld [vmem:[%s25788_s1 + $0x544] ss:$12 sps:$4 sm:$0xff]  }
  0xb3   :  { %4347 = vmatmul.mubr.bf16.gmra.mrb[72].mxu1 %v19240_v6  ;;  %3338 = vmatpush1.bf16.msra.mxu0 %v16764_v5  ;;  %v43_v5 = vld [vmem:[%s25787_s0 + $0x30] sm:$0xff] }
  0xb4   :  { %3339 = vmatprep.subr.bf16.mxu0 %v16769_v7  ;;  %3302 = vmatprep.mubr.bf16.mxu0 %v19093_v24  ;;  %v16810_v24 = vld [vmem:[%s25788_s1 + $0x518] ss:$12 sps:$4 sm:$0xff]   ;;  %v78_v7 = vld [vmem:[%s25787_s0 + $0x148] sm:$0xff] }
  0xb5   :  { %4354 = vmatprep.mubr.bf16.mxu1 %v19245_v8  ;;  %15478 = vmatpush3.bf16.msra.mxu1 %v16800_v9  ;;  %v16816_v9 = vld [vmem:[%s25788_s1 + $0x540] ss:$12 sps:$4 sm:$0xff]   ;;  %v16842_v62 = vld [vmem:[%s25788_s1 + $0x604] ss:$12 sps:$4 sm:$0xff]  }
  0xb6   :  { %15479 = vmatprep.subr.bf16.mxu1 %v16804_v10 }
  0xb7   :  { %3340 = vmatpush1.bf16.msra.mxu0 %v16767_v11  ;;  %v16821_v11 = vld [vmem:[%s25788_s1 + $0x55c] ss:$12 sps:$4 sm:$0xff]  }
  0xb8   :  { %3341 = vmatprep.subr.bf16.mxu0 %v16772_v12 }
  0xb9   :  { %15480 = vmatpush3.bf16.msra.mxu1 %v16805_v17  ;;  %v77_v17 = vld [vmem:[%s25787_s0 + $0x140] sm:$0xff] }
  0xba   :  { %3303 = vmatmul.mubr.bf16.gmra.mrb[28].mxu0 %v19120_v32  ;;  %15481 = vmatprep.subr.bf16.mxu1 %v16809_v18  ;;  %v16843_v32 = vld [vmem:[%s25788_s1 + $0x6c8] ss:$12 sps:$4 sm:$0xff]  }
  0xbb   :  { %4355 = vmatmul.mubr.bf16.gmra.mrb[76].mxu1 %v19284_v20  ;;  %3342 = vmatpush1.bf16.msra.mxu0 %v16770_v19  ;;  %v94_v18 = vld [vmem:[%s25787_s0 + $0x1c8] sm:$0xff]  ;;  %v112_v19 = vld [vmem:[%s25787_s0 + $0x258] sm:$0xff] }
  0xbc   :  { %3343 = vmatprep.subr.bf16.mxu0 %v16775_v21  ;;  %3345 = vmatprep.mubr.bf16.mxu0 %v19125_v34  ;;  %v19328_v34 = vpack.c.bf16 %v194_v28, %v177_v27  ;;  %v129_v21 = vld [vmem:[%s25787_s0 + $0x2e0] sm:$0xff] }
  0xbd   :  { %4362 = vmatprep.mubr.bf16.mxu1 %v19292_v23  ;;  %15482 = vmatpush3.bf16.msra.mxu1 %v16810_v24  ;;  %v19500_v24 = vpack.c.bf16 %v94_v18, %v77_v17  ;;  %v19508_v27 = vpack.c.bf16 %v129_v21, %v112_v19  ;;  %v16854_v28 = vld [vmem:[%s25788_s1 + $0x638] ss:$12 sps:$4 sm:$0xff]   ;;  %v230_v21 = vld [vmem:[%s25787_s0 + $0x608] sm:$0xff] }
  0xbe   :  { %15483 = vmatprep.subr.bf16.mxu1 %v16814_v25  ;;  %v16827_v25 = vld [vmem:[%s25788_s1 + $0x58c] ss:$12 sps:$4 sm:$0xff]  }
  0xbf   :  { %3344 = vmatpush1.bf16.msra.mxu0 %v16773_v22  ;;  %v16853_v22 = vld [vmem:[%s25788_s1 + $0x6f8] ss:$12 sps:$4 sm:$0xff]  }
  0xc0   :  { %3426 = vmatprep.subr.bf16.mxu0 %v16778_v26  ;;  %v16825_v26 = vld [vmem:[%s25788_s1 + $0x588] ss:$12 sps:$4 sm:$0xff]   ;;  %v16845_v19 = vld [vmem:[%s25788_s1 + $0x618] ss:$12 sps:$4 sm:$0xff]  }
  0xc1   :  { %15484 = vmatpush3.bf16.msra.mxu1 %v16815_v31  ;;  %v111_v31 = vld [vmem:[%s25787_s0 + $0x250] sm:$0xff] }
  0xc2   :  { %3346 = vmatmul.mubr.bf16.vlgmr.msra.gmra.mrb[0].mxu0 %v19152_v42  ;;  %15533 = vmatprep.subr.bf16.mxu1 %v16843_v32  ;;  %v263_v42 = vld [vmem:[%s25787_s0 + $0x710] sm:$0xff]  ;;  %v128_v32 = vld [vmem:[%s25787_s0 + $0x2d8] sm:$0xff] }
  0xc3   :  { %4363 = vmatmul.mubr.bf16.gmra.mrb[80].mxu1 %v19328_v34  ;;  %3427 = vmatpush1.bf16.msra.mxu0 %v16776_v33  ;;  %v19365_v46 = vpack.c.bf16 %v263_v42, %v246_v41  ;;  %v146_v33 = vld [vmem:[%s25787_s0 + $0x368] sm:$0xff] }
  0xc4   :  { %3428 = vmatprep.subr.bf16.mxu0 %v16783_v35  ;;  %3355 = vmatprep.mubr.bf16.mxu0 %v19160_v45  ;;  %v16793_v45 = vld [vmem:[%s25788_s1 + $0x4cc] ss:$12 sps:$4 sm:$0xff]   ;;  %v16859_v35 = vld [vmem:[%s25788_s1 + $0x650] ss:$12 sps:$4 sm:$0xff]   ;;  %v16864_v42 = vld [vmem:[%s25788_s1 + $0x668] ss:$12 sps:$4 sm:$0xff]  }
  0xc5   :  { %4370 = vmatprep.mubr.bf16.mxu1 %v19333_v36 }
  0xc7   :  { %3429 = vmatpush1.bf16.msra.mxu0 %v16781_v37  ;;  %v16828_v37 = vld [vmem:[%s25788_s1 + $0x5a0] ss:$12 sps:$4 sm:$0xff]  }
  0xc8   :  { %3430 = vmatprep.subr.bf16.mxu0 %v16788_v38  ;;  %v19544_v38 = vpack.c.bf16 %v128_v32, %v111_v31 }
  0xca   :  { %3356 = vmatmul.mubr.bf16.gmra.mrb[4].mxu0 %v19196_v56  ;;  %v19397_v56 = vpack.c.bf16 %v297_v52, %v280_v51  ;;  %v16873_v51 = vld [vmem:[%s25788_s1 + $0x758] ss:$12 sps:$4 sm:$0xff]   ;;  %v16834_v52 = vld [vmem:[%s25788_s1 + $0x5d0] ss:$12 sps:$4 sm:$0xff]  }
  0xcb   :  { %4371 = vmatmul.mubr.bf16.gmra.mrb[84].mxu1 %v19360_v44  ;;  %3431 = vmatpush1.bf16.msra.mxu0 %v16786_v43  ;;  %v16836_v43 = vld [vmem:[%s25788_s1 + $0x5d4] ss:$12 sps:$4 sm:$0xff]  }
  0xcc   :  { %3432 = vmatprep.subr.bf16.mxu0 %v16793_v45  ;;  %3365 = vmatprep.mubr.bf16.mxu0 %v19201_v58  ;;  %v16808_v58 = vld [vmem:[%s25788_s1 + $0x514] ss:$12 sps:$4 sm:$0xff]  }
  0xcd   :  { %4378 = vmatprep.mubr.bf16.mxu1 %v19365_v46  ;;  %v145_v45 = vld [vmem:[%s25787_s0 + $0x360] sm:$0xff] }
  0xcf   :  { %3433 = vmatpush1.bf16.msra.mxu0 %v16791_v47  ;;  %v180_v47 = vld [vmem:[%s25787_s0 + $0x478] sm:$0xff] }
  0xd0   :  { %3434 = vmatprep.subr.bf16.mxu0 %v16798_v48  ;;  %v197_v48 = vld [vmem:[%s25787_s0 + $0x500] sm:$0xff] }
  0xd1   :  { %v19598_v59 = vpack.c.bf16 %v197_v48, %v180_v47 }
  0xd2   :  { %3366 = vmatmul.mubr.bf16.gmra.mrb[8].mxu0 %v19240_v6  ;;  %v60_v6 = vld [vmem:[%s25787_s0 + $0xb8] sm:$0xff] }
  0xd3   :  { %4379 = vmatmul.mubr.bf16.gmra.mrb[88].mxu1 %v19392_v54  ;;  %3435 = vmatpush1.bf16.msra.mxu0 %v16796_v53  ;;  %v19456_v10 = vpack.c.bf16 %v60_v6, %v43_v5  ;;  %v231_v5 = vld [vmem:[%s25787_s0 + $0x610] sm:$0xff] }
  0xd4   :  { %3436 = vmatprep.subr.bf16.mxu0 %v16803_v55  ;;  %3375 = vmatprep.mubr.bf16.mxu0 %v19245_v8  ;;  %v95_v8 = vld [vmem:[%s25787_s0 + $0x1d0] sm:$0xff] }
  0xd5   :  { %4386 = vmatprep.mubr.bf16.mxu1 %v19397_v56  ;;  %v19461_v12 = vpack.c.bf16 %v95_v8, %v78_v7  ;;  %v16879_v6 = vld [vmem:[%s25788_s1 + $0x6b0] ss:$12 sps:$4 sm:$0xff]   ;;  %v16840_v8 = vld [vmem:[%s25788_s1 + $0x600] ss:$12 sps:$4 sm:$0xff]  }
  0xd7   :  { %3437 = vmatpush1.bf16.msra.mxu0 %v16801_v57 }
  0xd8   :  { %3438 = vmatprep.subr.bf16.mxu0 %v16808_v58  ;;  %v16837_v58 = vld [vmem:[%s25788_s1 + $0x5e8] ss:$12 sps:$4 sm:$0xff]  }
  0xda   :  { %3376 = vmatmul.mubr.bf16.gmra.mrb[12].mxu0 %v19284_v20  ;;  %v16849_v20 = vld [vmem:[%s25788_s1 + $0x620] ss:$12 sps:$4 sm:$0xff]  }
  0xdb   :  { %4387 = vmatmul.mubr.bf16.gmra.mrb[92].mxu1 %v19424_v0  ;;  %3439 = vmatpush1.bf16.msra.mxu0 %v16806_v63 }
  0xdc   :  { %3440 = vmatprep.subr.bf16.mxu0 %v16813_v1  ;;  %3385 = vmatprep.mubr.bf16.mxu0 %v19292_v23  ;;  %v16822_v23 = vld [vmem:[%s25788_s1 + $0x570] ss:$12 sps:$4 sm:$0xff]  }
  0xdd   :  { %4427 = vmatprep.mubr.bf16.mxu1 %v19429_v2  ;;  %v16878_v1 = vld [vmem:[%s25788_s1 + $0x770] ss:$12 sps:$4 sm:$0xff]  }
  0xdf   :  { %3441 = vmatpush1.bf16.msra.mxu0 %v16811_v3  ;;  %v179_v3 = vld [vmem:[%s25787_s0 + $0x470] sm:$0xff] }
  0xe0   :  { %3442 = vmatprep.subr.bf16.mxu0 %v16818_v4  ;;  %v214_v4 = vld [vmem:[%s25787_s0 + $0x588] sm:$0xff] }
  0xe2   :  { %3386 = vmatmul.mubr.bf16.gmra.mrb[16].mxu0 %v19328_v34  ;;  %v163_v34 = vld [vmem:[%s25787_s0 + $0x3f0] sm:$0xff] }
  0xe3   :  { %4428 = vmatmul.mubr.bf16.vlgmr.msra.gmra.mrb[96].mxu1 %v19456_v10  ;;  %3443 = vmatpush1.bf16.msra.mxu0 %v16816_v9  ;;  %v19552_v41 = vpack.c.bf16 %v163_v34, %v146_v33 }
  0xe4   :  { %3444 = vmatprep.subr.bf16.mxu0 %v16821_v11  ;;  %3395 = vmatprep.mubr.bf16.mxu0 %v19333_v36  ;;  %v16863_v36 = vld [vmem:[%s25788_s1 + $0x728] ss:$12 sps:$4 sm:$0xff]  }
  0xe5   :  { %4435 = vmatprep.mubr.bf16.mxu1 %v19461_v12  ;;  %15534 = vmatpush3.bf16.msra.mxu1 %v16844_v13  ;;  %v16847_v11 = vld [vmem:[%s25788_s1 + $0x61c] ss:$12 sps:$4 sm:$0xff]  }
  0xe6   :  { %15535 = vmatprep.subr.bf16.mxu1 %v16848_v14 }
  0xe7   :  { %3445 = vmatpush1.bf16.msra.mxu0 %v16819_v15 }
  0xe8   :  { %3446 = vmatprep.subr.bf16.mxu0 %v16824_v16  ;;  %v19643_v16 = vpack.c.bf16 %v231_v5, %v214_v4 }
  0xe9   :  { %15536 = vmatpush3.bf16.msra.mxu1 %v16849_v20  ;;  %v16852_v20 = vld [vmem:[%s25788_s1 + $0x634] ss:$12 sps:$4 sm:$0xff]  }
  0xea   :  { %3396 = vmatmul.mubr.bf16.gmra.mrb[20].mxu0 %v19360_v44  ;;  %15537 = vmatprep.subr.bf16.mxu1 %v16853_v22  ;;  %v16868_v44 = vld [vmem:[%s25788_s1 + $0x740] ss:$12 sps:$4 sm:$0xff]   ;;  %v248_v22 = vld [vmem:[%s25787_s0 + $0x698] sm:$0xff] }
  0xeb   :  { %4436 = vmatmul.mubr.bf16.gmra.mrb[100].mxu1 %v19500_v24  ;;  %3447 = vmatpush1.bf16.msra.mxu0 %v16822_v23  ;;  %v265_v23 = vld [vmem:[%s25787_s0 + $0x720] sm:$0xff] }
  0xec   :  { %3448 = vmatprep.subr.bf16.mxu0 %v16827_v25  ;;  %3405 = vmatprep.mubr.bf16.mxu0 %v19365_v46  ;;  %v162_v46 = vld [vmem:[%s25787_s0 + $0x3e8] sm:$0xff]  ;;  %v19679_v32 = vpack.c.bf16 %v265_v23, %v248_v22 }
  0xed   :  { %4443 = vmatprep.mubr.bf16.mxu1 %v19508_v27  ;;  %15538 = vmatpush3.bf16.msra.mxu1 %v16854_v28  ;;  %v19588_v53 = vpack.c.bf16 %v162_v46, %v145_v45  ;;  %v16857_v28 = vld [vmem:[%s25788_s1 + $0x64c] ss:$12 sps:$4 sm:$0xff]   ;;  %v16867_v45 = vld [vmem:[%s25788_s1 + $0x67c] ss:$12 sps:$4 sm:$0xff]  }
  0xee   :  { %15539 = vmatprep.subr.bf16.mxu1 %v16858_v30 }
  0xef   :  { %3449 = vmatpush1.bf16.msra.mxu0 %v16825_v26 }
  0xf0   :  { %3450 = vmatprep.subr.bf16.mxu0 %v16830_v29 }
  0xf1   :  { %15540 = vmatpush3.bf16.msra.mxu1 %v16859_v35  ;;  %v16855_v35 = vld [vmem:[%s25788_s1 + $0x648] ss:$12 sps:$4 sm:$0xff]  }
  0xf2   :  { %3406 = vmatmul.mubr.bf16.gmra.mrb[24].mxu0 %v19392_v54  ;;  %15541 = vmatprep.subr.bf16.mxu1 %v16863_v36  ;;  %v16839_v54 = vld [vmem:[%s25788_s1 + $0x5ec] ss:$12 sps:$4 sm:$0xff]   ;;  %v16862_v36 = vld [vmem:[%s25788_s1 + $0x664] ss:$12 sps:$4 sm:$0xff]  }
  0xf3   :  { %4444 = vmatmul.mubr.bf16.gmra.mrb[104].mxu1 %v19544_v38  ;;  %3451 = vmatpush1.bf16.msra.mxu0 %v16828_v37  ;;  %v264_v37 = vld [vmem:[%s25787_s0 + $0x718] sm:$0xff] }
  0xf4   :  { %3452 = vmatprep.subr.bf16.mxu0 %v16833_v39  ;;  %3415 = vmatprep.mubr.bf16.mxu0 %v19397_v56  ;;  %v282_v39 = vld [vmem:[%s25787_s0 + $0x7a8] sm:$0xff] }
  0xf5   :  { %4451 = vmatprep.mubr.bf16.mxu1 %v19552_v41  ;;  %15542 = vmatpush3.bf16.msra.mxu1 %v16864_v42  ;;  %v15293_v50 = vpop.f32.mrb[0].mxu1 }
  0xf6   :  { %15543 = vmatprep.subr.bf16.mxu1 %v16868_v44  ;;  %v15294_v55 = vpop.f32.mrb[1].mxu1 }
  0xf7   :  { %3453 = vmatpush1.bf16.msra.mxu0 %v16831_v40  ;;  %v19593_v56 = vadd.f32 %v15294_v55, %v15293_v50  ;;  %v15296_v57 = vpop.f32.mrb[2].mxu1  ;;  %v299_v40 = vld [vmem:[%s25787_s0 + $0x830] sm:$0xff]  ;;  %v46_v55 = vld [vmem:[%s25787_s0 + $0x48] sm:$0xff] }
  0xf8   :  { %3454 = vmatprep.subr.bf16.mxu0 %v16836_v43  ;;  %v15297_v60 = vpop.f32.mrb[3].mxu1  ;;  %v19715_v48 = vpack.c.bf16 %v299_v40, %v282_v39  ;;  %v16886_v39 = vld [vmem:[%s25788_s1 + $0x6f0] ss:$12 sps:$4 sm:$0xff]  }
  0xf9   :  { %15544 = vmatpush3.bf16.msra.mxu1 %v16869_v49  ;;  %v19607_v63 = vadd.f32 %v15297_v60, %v15296_v57  ;;  %v63_v57 = vld [vmem:[%s25787_s0 + $0xd0] sm:$0xff] }
  0xfa   :  { %3416 = vmatmul.mubr.bf16.gmra.mrb[28].mxu0 %v19424_v0  ;;  %15545 = vmatprep.subr.bf16.mxu1 %v16873_v51  ;;  %v196_v0 = vld [vmem:[%s25787_s0 + $0x4f8] sm:$0xff] }
  0xfb   :  { %4452 = vmatmul.mubr.bf16.gmra.mrb[108].mxu1 %v19588_v53  ;;  %3455 = vmatpush1.bf16.msra.mxu0 %v16834_v52  ;;  %v19636_v9 = vpack.c.bf16 %v196_v0, %v179_v3  ;;  %v16865_v51 = vld [vmem:[%s25788_s1 + $0x678] ss:$12 sps:$4 sm:$0xff]   ;;  %v16872_v52 = vld [vmem:[%s25788_s1 + $0x694] ss:$12 sps:$4 sm:$0xff]   ;;  %v19751_v0 = vpack.c.bf16 %v63_v57, %v46_v55  ;;  %v16922_v57 = vld [vmem:[%s25788_s1 + $0x890] ss:$12 sps:$4 sm:$0xff]  }
  0xfc   :  { %3456 = vmatprep.subr.bf16.mxu0 %v16839_v54  ;;  %3458 = vmatprep.mubr.bf16.mxu0 %v19429_v2  ;;  %v16907_v2 = vld [vmem:[%s25788_s1 + $0x848] ss:$12 sps:$4 sm:$0xff]   ;;  %v16894_v55 = vld [vmem:[%s25788_s1 + $0x724] ss:$12 sps:$4 sm:$0xff]  }
  0xfd   :  { %4459 = vmatprep.mubr.bf16.mxu1 %v19598_v59  ;;  %15546 = vmatpush3.bf16.msra.mxu1 %v16874_v61  ;;  %v15299_v7 = vpop.f32.mrb[4].mxu1  ;;  %v298_v54 = vld [vmem:[%s25787_s0 + $0x828] sm:$0xff] }
  0xfe   :  { %15547 = vmatprep.subr.bf16.mxu1 %v16878_v1  ;;  %v15300_v13 = vpop.f32.mrb[5].mxu1 }
  0xff   :  { %3457 = vmatpush1.bf16.msra.mxu0 %v16837_v58  ;;  %v19641_v14 = vadd.f32 %v15300_v13, %v15299_v7  ;;  %v15302_v15 = vpop.f32.mrb[6].mxu1  ;;  %v16882_v7 = vld [vmem:[%s25788_s1 + $0x6c4] ss:$12 sps:$4 sm:$0xff]  }
 0x100   :  { %3539 = vmatprep.subr.bf16.mxu0 %v16842_v62  ;;  %v15303_v17 = vpop.f32.mrb[7].mxu1  ;;  %v16877_v62 = vld [vmem:[%s25788_s1 + $0x6ac] ss:$12 sps:$4 sm:$0xff]   ;;  %v97_v13 = vld [vmem:[%s25787_s0 + $0x1e0] sm:$0xff] }
 0x101   :  { %15548 = vmatpush3.bf16.msra.mxu1 %v16879_v6  ;;  %v19646_v18 = vadd.f32 %v15303_v17, %v15302_v15  ;;  %v16875_v6 = vld [vmem:[%s25788_s1 + $0x6a8] ss:$12 sps:$4 sm:$0xff]  }
 0x102   :  { %3459 = vmatmul.mubr.bf16.vlgmr.msra.gmra.mrb[0].mxu0 %v19456_v10  ;;  %15597 = vmatprep.subr.bf16.mxu1 %v16907_v2  ;;  %v213_v10 = vld [vmem:[%s25787_s0 + $0x580] sm:$0xff]  ;;  %v62_v2 = vld [vmem:[%s25787_s0 + $0xc8] sm:$0xff] }
 0x103   :  { %4460 = vmatmul.mubr.bf16.gmra.mrb[112].mxu1 %v19636_v9  ;;  %3540 = vmatpush1.bf16.msra.mxu0 %v16840_v8  ;;  %v19672_v26 = vpack.c.bf16 %v230_v21, %v213_v10  ;;  %v80_v8 = vld [vmem:[%s25787_s0 + $0x158] sm:$0xff] }
 0x104   :  { %3541 = vmatprep.subr.bf16.mxu0 %v16847_v11  ;;  %3468 = vmatprep.mubr.bf16.mxu0 %v19461_v12  ;;  %v16850_v12 = vld [vmem:[%s25788_s1 + $0x630] ss:$12 sps:$4 sm:$0xff]   ;;  %v16883_v21 = vld [vmem:[%s25788_s1 + $0x6d8] ss:$12 sps:$4 sm:$0xff]   ;;  %v19790_v22 = vpack.c.bf16 %v97_v13, %v80_v8 }
 0x105   :  { %4467 = vmatprep.mubr.bf16.mxu1 %v19643_v16  ;;  %v15305_v25 = vpop.f32.mrb[8].mxu1  ;;  %v16885_v17 = vld [vmem:[%s25788_s1 + $0x6dc] ss:$12 sps:$4 sm:$0xff]  }
 0x106   :  { %v15306_v29 = vpop.f32.mrb[9].mxu1  ;;  %v16897_v8 = vld [vmem:[%s25788_s1 + $0x73c] ss:$12 sps:$4 sm:$0xff]  }
 0x107   :  { %3542 = vmatpush1.bf16.msra.mxu0 %v16845_v19  ;;  %v19677_v30 = vadd.f32 %v15306_v29, %v15305_v25  ;;  %v15308_v31 = vpop.f32.mrb[10].mxu1  ;;  %v16908_v25 = vld [vmem:[%s25788_s1 + $0x788] ss:$12 sps:$4 sm:$0xff]   ;;  %v16912_v29 = vld [vmem:[%s25788_s1 + $0x860] ss:$12 sps:$4 sm:$0xff]  }
 0x108   :  { %3543 = vmatprep.subr.bf16.mxu0 %v16852_v20  ;;  %v15309_v33 = vpop.f32.mrb[11].mxu1 }
 0x109   :  { %v19682_v34 = vadd.f32 %v15309_v33, %v15308_v31  ;;  %v79_v31 = vld [vmem:[%s25787_s0 + $0x150] sm:$0xff]  ;;  %v967_v33 = vlaneseq }
 0x10a   :  { %3469 = vmatmul.mubr.bf16.gmra.mrb[4].mxu0 %v19500_v24  ;;  %v247_v24 = vld [vmem:[%s25787_s0 + $0x690] sm:$0xff] }
 0x10b   :  { %4468 = vmatmul.mubr.bf16.gmra.mrb[116].mxu1 %v19672_v26  ;;  %3544 = vmatpush1.bf16.msra.mxu0 %v16850_v12  ;;  %v19708_v43 = vpack.c.bf16 %v264_v37, %v247_v24  ;;  %v16888_v12 = vld [vmem:[%s25788_s1 + $0x6f4] ss:$12 sps:$4 sm:$0xff]  }
 0x10c   :  { %3545 = vmatprep.subr.bf16.mxu0 %v16857_v28  ;;  %3478 = vmatprep.mubr.bf16.mxu0 %v19508_v27  ;;  %v16860_v27 = vld [vmem:[%s25788_s1 + $0x660] ss:$12 sps:$4 sm:$0xff]  }
 0x10d   :  { %4475 = vmatprep.mubr.bf16.mxu1 %v19679_v32  ;;  %v15311_v42 = vpop.f32.mrb[12].mxu1  ;;  %v16913_v24 = vld [vmem:[%s25788_s1 + $0x7a0] ss:$12 sps:$4 sm:$0xff]  }
 0x10e   :  { %v15312_v44 = vpop.f32.mrb[13].mxu1 }
 0x10f   :  { %3546 = vmatpush1.bf16.msra.mxu0 %v16855_v35  ;;  %v19713_v46 = vadd.f32 %v15312_v44, %v15311_v42  ;;  %v15314_v47 = vpop.f32.mrb[14].mxu1  ;;  %v114_v35 = vld [vmem:[%s25787_s0 + $0x268] sm:$0xff]  ;;  %v19833_v44 = vshrl.u32 %v967_v33, 7 }
 0x110   :  { %3547 = vmatprep.subr.bf16.mxu0 %v16862_v36  ;;  %v15315_v49 = vpop.f32.mrb[15].mxu1  ;;  %v131_v36 = vld [vmem:[%s25787_s0 + $0x2f0] sm:$0xff]  ;;  %v16891_v42 = vld [vmem:[%s25788_s1 + $0x70c] ss:$12 sps:$4 sm:$0xff]  }
 0x111   :  { %v19718_v50 = vadd.f32 %v15315_v49, %v15314_v47  ;;  %25824 = vst [vmem:[#allocation5_spill] sm:$0xff] %v19833_v44  ;;  %v16889_v49 = vld [vmem:[%s25788_s1 + $0x708] ss:$12 sps:$4 sm:$0xff]  }
 0x112   :  { %3479 = vmatmul.mubr.bf16.gmra.mrb[8].mxu0 %v19544_v38  ;;  %v281_v38 = vld [vmem:[%s25787_s0 + $0x7a0] sm:$0xff]  ;;  %v182_v33 = vld [vmem:[%s25787_s0 + $0x488] sm:$0xff] }
 0x113   :  { %4476 = vmatmul.mubr.bf16.gmra.mrb[120].mxu1 %v19708_v43  ;;  %3548 = vmatpush1.bf16.msra.mxu0 %v16860_v27  ;;  %v19744_v60 = vpack.c.bf16 %v298_v54, %v281_v38  ;;  %v16918_v38 = vld [vmem:[%s25788_s1 + $0x7b8] ss:$12 sps:$4 sm:$0xff]  }
 0x114   :  { %3549 = vmatprep.subr.bf16.mxu0 %v16867_v45  ;;  %3488 = vmatprep.mubr.bf16.mxu0 %v19552_v41  ;;  %v16870_v41 = vld [vmem:[%s25788_s1 + $0x690] ss:$12 sps:$4 sm:$0xff]  }
 0x115   :  { %4483 = vmatprep.mubr.bf16.mxu1 %v19715_v48  ;;  %v15317_v58 = vpop.f32.mrb[16].mxu1 }
 0x116   :  { %v15318_v61 = vpop.f32.mrb[17].mxu1 }
 0x117   :  { %3550 = vmatpush1.bf16.msra.mxu0 %v16865_v51  ;;  %v19749_v1 = vadd.f32 %v15318_v61, %v15317_v58  ;;  %v15320_v3 = vpop.f32.mrb[18].mxu1  ;;  %v965_v58 = vld [vmem:[%s25789_s2] sm:$0x7]  ;;  %v19865_v61 = vsub.s32 2, %v19833_v44 }
 0x118   :  { %3551 = vmatprep.subr.bf16.mxu0 %v16872_v52  ;;  %v15321_v4 = vpop.f32.mrb[19].mxu1  ;;  %v19840_v52 = vpack.c.bf16 %v131_v36, %v114_v35  ;;  %v199_v35 = vld [vmem:[%s25787_s0 + $0x510] sm:$0xff]  ;;  %v16933_v36 = vld [vmem:[%s25788_s1 + $0x800] ss:$12 sps:$4 sm:$0xff]  }
 0x119   :  { %v19754_v5 = vadd.f32 %v15321_v4, %v15320_v3  ;;  %25825 = vst [vmem:[#allocation6_spill] sm:$0xff] %v19865_v61  ;;  %v165_v3 = vld [vmem:[%s25787_s0 + $0x400] sm:$0xff]  ;;  %v16923_v4 = vld [vmem:[%s25788_s1 + $0x7d0] ss:$12 sps:$4 sm:$0xff]  }
 0x11a   :  { %3489 = vmatmul.mubr.bf16.gmra.mrb[12].mxu0 %v19588_v53  ;;  %v45_v53 = vld [vmem:[%s25787_s0 + $0x40] sm:$0xff] }
 0x11b   :  { %4484 = vmatmul.mubr.bf16.gmra.mrb[124].mxu1 %v19744_v60  ;;  %3552 = vmatpush1.bf16.msra.mxu0 %v16870_v41  ;;  %v19780_v15 = vpack.c.bf16 %v62_v2, %v45_v53  ;;  %v130_v41 = vld [vmem:[%s25787_s0 + $0x2e8] sm:$0xff] }
 0x11c   :  { %3553 = vmatprep.subr.bf16.mxu0 %v16877_v62  ;;  %3498 = vmatprep.mubr.bf16.mxu0 %v19598_v59  ;;  %v16880_v59 = vld [vmem:[%s25788_s1 + $0x6c0] ss:$12 sps:$4 sm:$0xff]   ;;  %v148_v62 = vld [vmem:[%s25787_s0 + $0x378] sm:$0xff] }
 0x11d   :  { %4524 = vmatprep.mubr.bf16.mxu1 %v19751_v0  ;;  %v15323_v11 = vpop.f32.mrb[20].mxu1 }
 0x11e   :  { %v15324_v19 = vpop.f32.mrb[21].mxu1 }
 0x11f   :  { %3554 = vmatpush1.bf16.msra.mxu0 %v16875_v6  ;;  %v19785_v20 = vadd.f32 %v15324_v19, %v15323_v11  ;;  %v15326_v10 = vpop.f32.mrb[22].mxu1  ;;  %v19890_v11 = vrot.slane %v965_v58, %v19865_v61  ;;  %v16895_v19 = vld [vmem:[%s25788_s1 + $0x738] ss:$12 sps:$4 sm:$0xff]  }
 0x120   :  { %3555 = vmatprep.subr.bf16.mxu0 %v16882_v7  ;;  %v15327_v23 = vpop.f32.mrb[23].mxu1  ;;  %v16892_v7 = vld [vmem:[%s25788_s1 + $0x720] ss:$12 sps:$4 sm:$0xff]  }
 0x121   :  { %v19799_v28 = vadd.f32 %v15327_v23, %v15326_v10  ;;  %v19895_v10 = vpack.c.bf16 %v165_v3, %v148_v62  ;;  %v198_v3 = vld [vmem:[%s25787_s0 + $0x508] sm:$0xff] }
 0x122   :  { %3499 = vmatmul.mubr.bf16.gmra.mrb[16].mxu0 %v19636_v9  ;;  %v96_v9 = vld [vmem:[%s25787_s0 + $0x1d8] sm:$0xff] }
 0x123   :  { %4525 = vmatmul.mubr.bf16.vlgmr.msra.gmra.mrb[128].mxu1 %v19780_v15  ;;  %3556 = vmatpush1.bf16.msra.mxu0 %v16880_v59  ;;  %v19828_v40 = vpack.c.bf16 %v96_v9, %v79_v31  ;;  %v164_v31 = vld [vmem:[%s25787_s0 + $0x3f8] sm:$0xff] }
 0x124   :  { %3557 = vmatprep.subr.bf16.mxu0 %v16885_v17  ;;  %3508 = vmatprep.mubr.bf16.mxu0 %v19643_v16  ;;  %v16917_v16 = vld [vmem:[%s25788_s1 + $0x878] ss:$12 sps:$4 sm:$0xff]  }
 0x125   :  { %4532 = vmatprep.mubr.bf16.mxu1 %v19790_v22  ;;  %15598 = vmatpush3.bf16.msra.mxu1 %v16908_v25  ;;  %v15329_v37 = vpop.f32.mrb[24].mxu1 }
 0x126   :  { %15599 = vmatprep.subr.bf16.mxu1 %v16912_v29  ;;  %v15330_v27 = vpop.f32.mrb[25].mxu1  ;;  %v16932_v29 = vld [vmem:[%s25788_s1 + $0x8c0] ss:$12 sps:$4 sm:$0xff]  }
 0x127   :  { %3558 = vmatpush1.bf16.msra.mxu0 %v16883_v21  ;;  %v19835_v45 = vadd.f32 %v15330_v27, %v15329_v37  ;;  %v15332_v47 = vpop.f32.mrb[26].mxu1  ;;  %v16928_v21 = vld [vmem:[%s25788_s1 + $0x7e8] ss:$12 sps:$4 sm:$0xff]   ;;  %v4139_v27 = vadd.f32 %v19593_v56, %v19890_v11  ;;  %v16942_v56 = vld [vmem:[%s25788_s1 + $0x8f0] ss:$12 sps:$4 sm:$0xff]  }
 0x128   :  { %3559 = vmatprep.subr.bf16.mxu0 %v16888_v12  ;;  %v15333_v51 = vpop.f32.mrb[27].mxu1  ;;  %v16900_v12 = vld [vmem:[%s25788_s1 + $0x754] ss:$12 sps:$4 sm:$0xff]  }
 0x129   :  { %15600 = vmatpush3.bf16.msra.mxu1 %v16913_v24  ;;  %v19846_v54 = vadd.f32 %v15333_v51, %v15332_v47 }
 0x12a   :  { %3509 = vmatmul.mubr.bf16.gmra.mrb[20].mxu0 %v19672_v26  ;;  %15601 = vmatprep.subr.bf16.mxu1 %v16917_v16  ;;  %v113_v26 = vld [vmem:[%s25787_s0 + $0x260] sm:$0xff]  ;;  %v16898_v16 = vld [vmem:[%s25788_s1 + $0x750] ss:$12 sps:$4 sm:$0xff]  }
 0x12b   :  { %4533 = vmatmul.mubr.bf16.gmra.mrb[132].mxu1 %v19828_v40  ;;  %3560 = vmatpush1.bf16.msra.mxu0 %v16886_v39  ;;  %v19884_v2 = vpack.c.bf16 %v130_v41, %v113_v26  ;;  %v16901_v41 = vld [vmem:[%s25788_s1 + $0x768] ss:$12 sps:$4 sm:$0xff]  }
 0x12c   :  { %3561 = vmatprep.subr.bf16.mxu0 %v16891_v42  ;;  %3518 = vmatprep.mubr.bf16.mxu0 %v19679_v32  ;;  %v16927_v32 = vld [vmem:[%s25788_s1 + $0x8a8] ss:$12 sps:$4 sm:$0xff]   ;;  %v16903_v42 = vld [vmem:[%s25788_s1 + $0x76c] ss:$12 sps:$4 sm:$0xff]  }
 0x12d   :  { %4540 = vmatprep.mubr.bf16.mxu1 %v19840_v52  ;;  %15602 = vmatpush3.bf16.msra.mxu1 %v16918_v38  ;;  %v15335_v6 = vpop.f32.mrb[28].mxu1  ;;  %v19944_v38 = vpack.c.bf16 %v199_v35, %v182_v33  ;;  %v16916_v33 = vld [vmem:[%s25788_s1 + $0x7b4] ss:$12 sps:$4 sm:$0xff]  }
 0x12e   :  { %15603 = vmatprep.subr.bf16.mxu1 %v16922_v57  ;;  %v15336_v53 = vpop.f32.mrb[29].mxu1  ;;  %v4142_v57 = vadd.f32 %v19607_v63, %v19890_v11  ;;  %v16906_v63 = vld [vmem:[%s25788_s1 + $0x784] ss:$12 sps:$4 sm:$0xff]  }
 0x12f   :  { %3562 = vmatpush1.bf16.msra.mxu0 %v16889_v49  ;;  %v15337_v13 = vadd.f32 %v15336_v53, %v15335_v6  ;;  %v15338_v59 = vpop.f32.mrb[30].mxu1  ;;  %v16943_v6 = vld [vmem:[%s25788_s1 + $0x830] ss:$12 sps:$4 sm:$0xff]  }
 0x130   :  { %3563 = vmatprep.subr.bf16.mxu0 %v16894_v55  ;;  %v15339_v17 = vpop.f32.mrb[31].mxu1  ;;  %v16938_v55 = vld [vmem:[%s25788_s1 + $0x818] ss:$12 sps:$4 sm:$0xff]  }
 0x131   :  { %15604 = vmatpush3.bf16.msra.mxu1 %v16923_v4  ;;  %v19902_v23 = vadd.f32 %v15337_v13, %v19890_v11  ;;  %v15340_v25 = vadd.f32 %v15339_v17, %v15338_v59  ;;  %v216_v4 = vld [vmem:[%s25787_s0 + $0x598] sm:$0xff]  ;;  %v4147_v59 = vadd.f32 %v19641_v14, %v19890_v11 }
 0x132   :  { %3519 = vmatmul.mubr.bf16.gmra.mrb[24].mxu0 %v19708_v43  ;;  %15605 = vmatprep.subr.bf16.mxu1 %v16927_v32  ;;  %v147_v43 = vld [vmem:[%s25787_s0 + $0x370] sm:$0xff]  ;;  %v233_v32 = vld [vmem:[%s25787_s0 + $0x620] sm:$0xff] }
 0x133   :  { %4541 = vmatmul.mubr.bf16.gmra.mrb[136].mxu1 %v19884_v2  ;;  %3564 = vmatpush1.bf16.msra.mxu0 %v16892_v7  ;;  %v19918_v9 = vadd.f32 %v15340_v25, %v19890_v11  ;;  %v19937_v39 = vpack.c.bf16 %v164_v31, %v147_v43  ;;  %v16971_v7 = vld [vmem:[%s25788_s1 + $0x9c8] ss:$12 sps:$4 sm:$0xff]   ;;  %v16909_v14 = vld [vmem:[%s25788_s1 + $0x798] ss:$12 sps:$4 sm:$0xff]  }
 0x134   :  { %3565 = vmatprep.subr.bf16.mxu0 %v16897_v8  ;;  %3528 = vmatprep.mubr.bf16.mxu0 %v19715_v48  ;;  %v16937_v48 = vld [vmem:[%s25788_s1 + $0x8d8] ss:$12 sps:$4 sm:$0xff]   ;;  %v16904_v8 = vld [vmem:[%s25788_s1 + $0x780] ss:$12 sps:$4 sm:$0xff]  }
 0x135   :  { %4548 = vmatprep.mubr.bf16.mxu1 %v19895_v10  ;;  %15606 = vmatpush3.bf16.msra.mxu1 %v16928_v21  ;;  %v15357_v24 = vpop.f32.mrb[32].mxu1  ;;  %v16911_v21 = vld [vmem:[%s25788_s1 + $0x79c] ss:$12 sps:$4 sm:$0xff]  }
 0x136   :  { %15607 = vmatprep.subr.bf16.mxu1 %v16932_v29  ;;  %v15358_v37 = vpop.f32.mrb[33].mxu1  ;;  %v4150_v29 = vadd.f32 %v19646_v18, %v19890_v11  ;;  %v215_v18 = vld [vmem:[%s25787_s0 + $0x590] sm:$0xff] }
 0x137   :  { %3566 = vmatpush1.bf16.msra.mxu0 %v16895_v19  ;;  %v15359_v47 = vadd.f32 %v15358_v37, %v15357_v24  ;;  %v15360_v49 = vpop.f32.mrb[34].mxu1  ;;  %v250_v24 = vld [vmem:[%s25787_s0 + $0x6a8] sm:$0xff]  ;;  %v16914_v37 = vld [vmem:[%s25788_s1 + $0x7b0] ss:$12 sps:$4 sm:$0xff]  }
 0x138   :  { %3567 = vmatprep.subr.bf16.mxu0 %v16900_v12  ;;  %v15361_v51 = vpop.f32.mrb[35].mxu1  ;;  %v19996_v12 = vpack.c.bf16 %v233_v32, %v216_v4  ;;  %v301_v4 = vld [vmem:[%s25787_s0 + $0x840] sm:$0xff]  ;;  %v16931_v32 = vld [vmem:[%s25788_s1 + $0x7fc] ss:$12 sps:$4 sm:$0xff]  }
 0x139   :  { %15608 = vmatpush3.bf16.msra.mxu1 %v16933_v36  ;;  %v19951_v58 = vadd.f32 %v15359_v47, %v4139_v27  ;;  %v15362_v26 = vadd.f32 %v15361_v51, %v15360_v49  ;;  %v16921_v49 = vld [vmem:[%s25788_s1 + $0x7cc] ss:$12 sps:$4 sm:$0xff]  }
 0x13a   :  { %3529 = vmatmul.mubr.bf16.gmra.mrb[28].mxu0 %v19744_v60  ;;  %15609 = vmatprep.subr.bf16.mxu1 %v16937_v48  ;;  %v181_v60 = vld [vmem:[%s25787_s0 + $0x480] sm:$0xff]  ;;  %v267_v48 = vld [vmem:[%s25787_s0 + $0x730] sm:$0xff] }
 0x13b   :  { %4549 = vmatmul.mubr.bf16.gmra.mrb[140].mxu1 %v19937_v39  ;;  %3568 = vmatpush1.bf16.msra.mxu0 %v16898_v16  ;;  %v19964_v62 = vadd.f32 %v15362_v26, %v4142_v57  ;;  %v19989_v13 = vpack.c.bf16 %v198_v3, %v181_v60  ;;  %v4158_v57 = vadd.f32 %v19682_v34, %v19890_v11  ;;  %v249_v34 = vld [vmem:[%s25787_s0 + $0x6a0] sm:$0xff]  ;;  %v284_v60 = vld [vmem:[%s25787_s0 + $0x7b8] sm:$0xff] }
 0x13c   :  { %3569 = vmatprep.subr.bf16.mxu0 %v16903_v42  ;;  %3571 = vmatprep.mubr.bf16.mxu0 %v19751_v0  ;;  %v4155_v42 = vadd.f32 %v19677_v30, %v19890_v11  ;;  %v16919_v30 = vld [vmem:[%s25788_s1 + $0x7c8] ss:$12 sps:$4 sm:$0xff]  }
 0x13d   :  { %4556 = vmatprep.mubr.bf16.mxu1 %v19944_v38  ;;  %15610 = vmatpush3.bf16.msra.mxu1 %v16938_v55  ;;  %v20036_v55 = vpack.c.bf16 %v267_v48, %v250_v24  ;;  %v16941_v24 = vld [vmem:[%s25788_s1 + $0x82c] ss:$12 sps:$4 sm:$0xff]   ;;  %v4171_v48 = vadd.f32 %v19749_v1, %v19890_v11  ;;  %v16939_v1 = vld [vmem:[%s25788_s1 + $0x828] ss:$12 sps:$4 sm:$0xff]  }
 0x13e   :  { %v15363_v0 = vpop.f32.mrb[36].mxu1  ;;  %15611 = vmatprep.subr.bf16.mxu1 %v16942_v56 }
 0x13f   :  { %v15364_v53 = vpop.f32.mrb[37].mxu1  ;;  %3570 = vmatpush1.bf16.msra.mxu0 %v16901_v41  ;;  %v16926_v41 = vld [vmem:[%s25788_s1 + $0x7e4] ss:$12 sps:$4 sm:$0xff]  }
 0x140   :  { %v15365_v17 = vadd.f32 %v15364_v53, %v15363_v0  ;;  %v15366_v19 = vpop.f32.mrb[38].mxu1  ;;  %3652 = vmatprep.subr.bf16.mxu0 %v16906_v63 }
 0x141   :  { %v15367_v25 = vpop.f32.mrb[39].mxu1  ;;  %15612 = vmatpush3.bf16.msra.mxu1 %v16943_v6  ;;  %v16924_v6 = vld [vmem:[%s25788_s1 + $0x7e0] ss:$12 sps:$4 sm:$0xff]  }
 0x142   :  { %v20000_v43 = vadd.f32 %v15365_v17, %v4147_v59  ;;  %v15368_v31 = vadd.f32 %v15367_v25, %v15366_v19  ;;  %3572 = vmatmul.mubr.bf16.vlgmr.msra.gmra.mrb[0].mxu0 %v19780_v15  ;;  %15661 = vmatprep.subr.bf16.mxu1 %v16971_v7  ;;  %v232_v15 = vld [vmem:[%s25787_s0 + $0x618] sm:$0xff]  ;;  %v4163_v7 = vadd.f32 %v19713_v46, %v19890_v11 }
 0x143   :  { %4557 = vmatmul.mubr.bf16.gmra.mrb[144].mxu1 %v19989_v13  ;;  %3653 = vmatpush1.bf16.msra.mxu0 %v16904_v8  ;;  %v20029_v16 = vpack.c.bf16 %v232_v15, %v215_v18  ;;  %v20076_v17 = vpack.c.bf16 %v301_v4, %v284_v60  ;;  %v4166_v19 = vadd.f32 %v19718_v50, %v19890_v11  ;;  %v16929_v46 = vld [vmem:[%s25788_s1 + $0x7f8] ss:$12 sps:$4 sm:$0xff]   ;;  %v283_v50 = vld [vmem:[%s25787_s0 + $0x7b0] sm:$0xff] }
 0x144   :  { %v20010_v35 = vadd.f32 %v15368_v31, %v4150_v29  ;;  %3654 = vmatprep.subr.bf16.mxu0 %v16911_v21  ;;  %3581 = vmatprep.mubr.bf16.mxu0 %v19790_v22  ;;  %v16936_v29 = vld [vmem:[%s25788_s1 + $0x814] ss:$12 sps:$4 sm:$0xff]   ;;  %v16934_v15 = vld [vmem:[%s25788_s1 + $0x810] ss:$12 sps:$4 sm:$0xff]   ;;  %v4179_v4 = vadd.f32 %v19785_v20, %v19890_v11 }
 0x145   :  { %4564 = vmatprep.mubr.bf16.mxu1 %v19996_v12  ;;  %v65_v18 = vld [vmem:[%s25787_s0 + $0xe0] sm:$0xff] }
 0x146   :  { %v15369_v36 = vpop.f32.mrb[40].mxu1 }
 0x147   :  { %v15370_v22 = vpop.f32.mrb[41].mxu1  ;;  %3655 = vmatpush1.bf16.msra.mxu0 %v16909_v14  ;;  %v48_v14 = vld [vmem:[%s25787_s0 + $0x58] sm:$0xff] }
 0x148   :  { %v15371_v27 = vadd.f32 %v15370_v22, %v15369_v36  ;;  %v15372_v47 = vpop.f32.mrb[42].mxu1  ;;  %3656 = vmatprep.subr.bf16.mxu0 %v16916_v33 }
 0x149   :  { %v15373_v51 = vpop.f32.mrb[43].mxu1 }
 0x14a   :  { %v20040_v26 = vadd.f32 %v15371_v27, %v4155_v42  ;;  %v15374_v56 = vadd.f32 %v15373_v51, %v15372_v47  ;;  %3582 = vmatmul.mubr.bf16.gmra.mrb[4].mxu0 %v19828_v40  ;;  %v266_v40 = vld [vmem:[%s25787_s0 + $0x728] sm:$0xff]  ;;  %v20116_v27 = vpack.c.bf16 %v65_v18, %v48_v14  ;;  %v4174_v47 = vadd.f32 %v19754_v5, %v19890_v11  ;;  %v47_v5 = vld [vmem:[%s25787_s0 + $0x50] sm:$0xff] }
 0x14b   :  { %4565 = vmatmul.mubr.bf16.gmra.mrb[148].mxu1 %v20029_v16  ;;  %3657 = vmatpush1.bf16.msra.mxu0 %v16914_v37  ;;  %v20069_v0 = vpack.c.bf16 %v266_v40, %v249_v34  ;;  %v99_v34 = vld [vmem:[%s25787_s0 + $0x1f0] sm:$0xff]  ;;  %v16944_v40 = vld [vmem:[%s25788_s1 + $0x840] ss:$12 sps:$4 sm:$0xff]  }
 0x14c   :  { %v20050_v63 = vadd.f32 %v15374_v56, %v4158_v57  ;;  %3658 = vmatprep.subr.bf16.mxu0 %v16921_v49  ;;  %3591 = vmatprep.mubr.bf16.mxu0 %v19840_v52  ;;  %v16946_v57 = vld [vmem:[%s25788_s1 + $0x844] ss:$12 sps:$4 sm:$0xff]   ;;  %v16977_v14 = vld [vmem:[%s25788_s1 + $0x920] ss:$12 sps:$4 sm:$0xff]  }
 0x14d   :  { %4572 = vmatprep.mubr.bf16.mxu1 %v20036_v55 }
 0x14e   :  { %v15375_v3 = vpop.f32.mrb[44].mxu1 }
 0x14f   :  { %v15376_v52 = vpop.f32.mrb[45].mxu1  ;;  %3659 = vmatpush1.bf16.msra.mxu0 %v16919_v30  ;;  %v82_v30 = vld [vmem:[%s25787_s0 + $0x168] sm:$0xff] }
 0x150   :  { %v15377_v53 = vadd.f32 %v15376_v52, %v15375_v3  ;;  %v15378_v8 = vpop.f32.mrb[46].mxu1  ;;  %3660 = vmatprep.subr.bf16.mxu0 %v16926_v41  ;;  %v16949_v3 = vld [vmem:[%s25788_s1 + $0x85c] ss:$12 sps:$4 sm:$0xff]  }
 0x151   :  { %v15379_v59 = vpop.f32.mrb[47].mxu1 }
 0x152   :  { %v20080_v21 = vadd.f32 %v15377_v53, %v4163_v7  ;;  %v15380_v25 = vadd.f32 %v15379_v59, %v15378_v8  ;;  %3592 = vmatmul.mubr.bf16.gmra.mrb[8].mxu0 %v19884_v2  ;;  %v300_v2 = vld [vmem:[%s25787_s0 + $0x838] sm:$0xff]  ;;  %v20159_v53 = vpack.c.bf16 %v99_v34, %v82_v30  ;;  %v16972_v8 = vld [vmem:[%s25788_s1 + $0x908] ss:$12 sps:$4 sm:$0xff]   ;;  %v4182_v59 = vadd.f32 %v19799_v28, %v19890_v11  ;;  %v81_v28 = vld [vmem:[%s25787_s0 + $0x160] sm:$0xff] }
 0x153   :  { %4573 = vmatmul.mubr.bf16.gmra.mrb[152].mxu1 %v20069_v0  ;;  %3661 = vmatpush1.bf16.msra.mxu0 %v16924_v6  ;;  %v20109_v36 = vpack.c.bf16 %v300_v2, %v283_v50  ;;  %v16947_v7 = vld [vmem:[%s25788_s1 + $0x858] ss:$12 sps:$4 sm:$0xff]   ;;  %v16987_v34 = vld [vmem:[%s25788_s1 + $0x950] ss:$12 sps:$4 sm:$0xff]  }
 0x154   :  { %v20090_v31 = vadd.f32 %v15380_v25, %v4166_v19  ;;  %3662 = vmatprep.subr.bf16.mxu0 %v16931_v32  ;;  %3601 = vmatprep.mubr.bf16.mxu0 %v19895_v10  ;;  %v16952_v25 = vld [vmem:[%s25788_s1 + $0x874] ss:$12 sps:$4 sm:$0xff]   ;;  %v116_v50 = vld [vmem:[%s25787_s0 + $0x278] sm:$0xff] }
 0x155   :  { %4580 = vmatprep.mubr.bf16.mxu1 %v20076_v17  ;;  %v133_v2 = vld [vmem:[%s25787_s0 + $0x300] sm:$0xff]  ;;  %v132_v30 = vld [vmem:[%s25787_s0 + $0x2f8] sm:$0xff] }
 0x156   :  { %v15381_v33 = vpop.f32.mrb[48].mxu1 }
 0x157   :  { %v15382_v10 = vpop.f32.mrb[49].mxu1  ;;  %3663 = vmatpush1.bf16.msra.mxu0 %v16929_v46  ;;  %v16976_v46 = vld [vmem:[%s25788_s1 + $0x9e0] ss:$12 sps:$4 sm:$0xff]  }
 0x158   :  { %v15383_v22 = vadd.f32 %v15382_v10, %v15381_v33  ;;  %v15384_v37 = vpop.f32.mrb[50].mxu1  ;;  %3664 = vmatprep.subr.bf16.mxu0 %v16936_v29  ;;  %v98_v29 = vld [vmem:[%s25787_s0 + $0x1e8] sm:$0xff]  ;;  %v16950_v10 = vld [vmem:[%s25788_s1 + $0x870] ss:$12 sps:$4 sm:$0xff]  }
 0x159   :  { %v15385_v42 = vpop.f32.mrb[51].mxu1 }
 0x15a   :  { %v20120_v49 = vadd.f32 %v15383_v22, %v4171_v48  ;;  %v15386_v51 = vadd.f32 %v15385_v42, %v15384_v37  ;;  %3602 = vmatmul.mubr.bf16.gmra.mrb[12].mxu0 %v19937_v39  ;;  %v64_v39 = vld [vmem:[%s25787_s0 + $0xd8] sm:$0xff]  ;;  %v4187_v48 = vadd.f32 %v19835_v45, %v19890_v11 }
 0x15b   :  { %4581 = vmatmul.mubr.bf16.gmra.mrb[156].mxu1 %v20109_v36  ;;  %3665 = vmatpush1.bf16.msra.mxu0 %v16934_v15  ;;  %v20149_v60 = vpack.c.bf16 %v64_v39, %v47_v5  ;;  %v20201_v15 = vpack.c.bf16 %v98_v29, %v81_v28  ;;  %v16986_v45 = vld [vmem:[%s25788_s1 + $0xa10] ss:$12 sps:$4 sm:$0xff]   ;;  %v16953_v39 = vld [vmem:[%s25788_s1 + $0x888] ss:$12 sps:$4 sm:$0xff]  }
 0x15c   :  { %v20130_v56 = vadd.f32 %v15386_v51, %v4174_v47  ;;  %3666 = vmatprep.subr.bf16.mxu0 %v16941_v24  ;;  %3611 = vmatprep.mubr.bf16.mxu0 %v19944_v38  ;;  %v16955_v24 = vld [vmem:[%s25788_s1 + $0x88c] ss:$12 sps:$4 sm:$0xff]   ;;  %v20208_v47 = vpack.c.bf16 %v133_v2, %v116_v50  ;;  %v16964_v29 = vld [vmem:[%s25788_s1 + $0x8d4] ss:$12 sps:$4 sm:$0xff]  }
 0x15d   :  { %4621 = vmatprep.mubr.bf16.mxu1 %v20116_v27  ;;  %v16982_v51 = vld [vmem:[%s25788_s1 + $0x938] ss:$12 sps:$4 sm:$0xff]   ;;  %v16996_v50 = vld [vmem:[%s25788_s1 + $0xa40] ss:$12 sps:$4 sm:$0xff]  }
 0x15e   :  { %v15387_v41 = vpop.f32.mrb[52].mxu1 }
 0x15f   :  { %v15388_v38 = vpop.f32.mrb[53].mxu1  ;;  %3667 = vmatpush1.bf16.msra.mxu0 %v16939_v1  ;;  %v4190_v1 = vadd.f32 %v19846_v54, %v19890_v11  ;;  %v16958_v54 = vld [vmem:[%s25788_s1 + $0x8a4] ss:$12 sps:$4 sm:$0xff]  }
 0x160   :  { %v15389_v52 = vadd.f32 %v15388_v38, %v15387_v41  ;;  %v15390_v6 = vpop.f32.mrb[54].mxu1  ;;  %3668 = vmatprep.subr.bf16.mxu0 %v16946_v57  ;;  %v150_v41 = vld [vmem:[%s25787_s0 + $0x388] sm:$0xff]  ;;  %v167_v38 = vld [vmem:[%s25787_s0 + $0x410] sm:$0xff] }
 0x161   :  { %v15391_v32 = vpop.f32.mrb[55].mxu1 }
 0x162   :  { %v20166_v19 = vadd.f32 %v15389_v52, %v4179_v4  ;;  %v15392_v20 = vadd.f32 %v15391_v32, %v15390_v6  ;;  %3612 = vmatmul.mubr.bf16.gmra.mrb[16].mxu0 %v19989_v13  ;;  %v16956_v4 = vld [vmem:[%s25788_s1 + $0x8a0] ss:$12 sps:$4 sm:$0xff]  }
 0x163   :  { %4622 = vmatmul.mubr.bf16.vlgmr.msra.gmra.mrb[160].mxu1 %v20149_v60  ;;  %3669 = vmatpush1.bf16.msra.mxu0 %v16944_v40  ;;  %v16991_v40 = vld [vmem:[%s25788_s1 + $0xa28] ss:$12 sps:$4 sm:$0xff]  }
 0x164   :  { %v20182_v13 = vadd.f32 %v15392_v20, %v4182_v59  ;;  %3670 = vmatprep.subr.bf16.mxu0 %v16949_v3  ;;  %3621 = vmatprep.mubr.bf16.mxu0 %v19996_v12  ;;  %v16981_v12 = vld [vmem:[%s25788_s1 + $0x9f8] ss:$12 sps:$4 sm:$0xff]   ;;  %v20261_v20 = vpack.c.bf16 %v167_v38, %v150_v41  ;;  %v218_v41 = vld [vmem:[%s25787_s0 + $0x5a8] sm:$0xff] }
 0x165   :  { %4629 = vmatprep.mubr.bf16.mxu1 %v20159_v53  ;;  %15662 = vmatpush3.bf16.msra.mxu1 %v16972_v8  ;;  %v16959_v59 = vld [vmem:[%s25788_s1 + $0x8b8] ss:$12 sps:$4 sm:$0xff]  }
 0x166   :  { %v15393_v33 = vpop.f32.mrb[56].mxu1  ;;  %15663 = vmatprep.subr.bf16.mxu1 %v16976_v46 }
 0x167   :  { %v15394_v18 = vpop.f32.mrb[57].mxu1  ;;  %3671 = vmatpush1.bf16.msra.mxu0 %v16947_v7  ;;  %v16961_v7 = vld [vmem:[%s25788_s1 + $0x8bc] ss:$12 sps:$4 sm:$0xff]  }
 0x168   :  { %v15395_v22 = vadd.f32 %v15394_v18, %v15393_v33  ;;  %v15396_v37 = vpop.f32.mrb[58].mxu1  ;;  %3672 = vmatprep.subr.bf16.mxu0 %v16952_v25  ;;  %v16992_v25 = vld [vmem:[%s25788_s1 + $0x968] ss:$12 sps:$4 sm:$0xff]   ;;  %v201_v33 = vld [vmem:[%s25787_s0 + $0x520] sm:$0xff] }
 0x169   :  { %v15397_v42 = vpop.f32.mrb[59].mxu1  ;;  %15664 = vmatpush3.bf16.msra.mxu1 %v16977_v14  ;;  %v184_v14 = vld [vmem:[%s25787_s0 + $0x498] sm:$0xff] }
 0x16a   :  { %v20215_v57 = vadd.f32 %v15395_v22, %v4187_v48  ;;  %v15398_v5 = vadd.f32 %v15397_v42, %v15396_v37  ;;  %3622 = vmatmul.mubr.bf16.gmra.mrb[20].mxu0 %v20029_v16  ;;  %15665 = vmatprep.subr.bf16.mxu1 %v16981_v12  ;;  %v115_v16 = vld [vmem:[%s25787_s0 + $0x270] sm:$0xff]  ;;  %v16997_v12 = vld [vmem:[%s25788_s1 + $0x980] ss:$12 sps:$4 sm:$0xff]  }
 0x16b   :  { %4630 = vmatmul.mubr.bf16.gmra.mrb[164].mxu1 %v20201_v15  ;;  %3673 = vmatpush1.bf16.msra.mxu0 %v16950_v10  ;;  %v20253_v52 = vpack.c.bf16 %v132_v30, %v115_v16  ;;  %v16962_v10 = vld [vmem:[%s25788_s1 + $0x8d0] ss:$12 sps:$4 sm:$0xff]   ;;  %v16967_v37 = vld [vmem:[%s25788_s1 + $0x8ec] ss:$12 sps:$4 sm:$0xff]  }
 0x16c   :  { %v20228_v11 = vadd.f32 %v15398_v5, %v4190_v1  ;;  %3674 = vmatprep.subr.bf16.mxu0 %v16955_v24  ;;  %3631 = vmatprep.mubr.bf16.mxu0 %v20036_v55  ;;  %v20311_v1 = vpack.c.bf16 %v201_v33, %v184_v14  ;;  %v17002_v5 = vld [vmem:[%s25788_s1 + $0x998] ss:$12 sps:$4 sm:$0xff]   ;;  %v183_v16 = vld [vmem:[%s25787_s0 + $0x490] sm:$0xff] }
 0x16d   :  { %4637 = vmatprep.mubr.bf16.mxu1 %v20208_v47  ;;  %15666 = vmatpush3.bf16.msra.mxu1 %v16982_v51  ;;  %v16965_v51 = vld [vmem:[%s25788_s1 + $0x8e8] ss:$12 sps:$4 sm:$0xff]   ;;  %v200_v30 = vld [vmem:[%s25787_s0 + $0x518] sm:$0xff] }
 0x16e   :  { %v15399_v55 = vpop.f32.mrb[60].mxu1  ;;  %15667 = vmatprep.subr.bf16.mxu1 %v16986_v45 }
 0x16f   :  { %v15400_v3 = vpop.f32.mrb[61].mxu1  ;;  %3675 = vmatpush1.bf16.msra.mxu0 %v16953_v39 }
 0x170   :  { %v15401_v6 = vadd.f32 %v15400_v3, %v15399_v55  ;;  %v15402_v32 = vpop.f32.mrb[62].mxu1  ;;  %3676 = vmatprep.subr.bf16.mxu0 %v16958_v54  ;;  %v16970_v54 = vld [vmem:[%s25788_s1 + $0x904] ss:$12 sps:$4 sm:$0xff]   ;;  %v20353_v3 = vpack.c.bf16 %v200_v30, %v183_v16 }
 0x171   :  { %v15403_v8 = vpop.f32.mrb[63].mxu1  ;;  %15668 = vmatpush3.bf16.msra.mxu1 %v16987_v34  ;;  %v235_v34 = vld [vmem:[%s25787_s0 + $0x630] sm:$0xff] }
 0x172   :  { %v20267_v46 = vadd.f32 %v15401_v6, %v19902_v23  ;;  %v15404_v28 = vadd.f32 %v15403_v8, %v15402_v32  ;;  %3632 = vmatmul.mubr.bf16.gmra.mrb[24].mxu0 %v20069_v0  ;;  %15669 = vmatprep.subr.bf16.mxu1 %v16991_v40  ;;  %v149_v23 = vld [vmem:[%s25787_s0 + $0x380] sm:$0xff]  ;;  %v166_v0 = vld [vmem:[%s25787_s0 + $0x408] sm:$0xff]  ;;  %v17007_v55 = vld [vmem:[%s25788_s1 + $0x9b0] ss:$12 sps:$4 sm:$0xff]  }
 0x173   :  { %4638 = vmatmul.mubr.bf16.gmra.mrb[168].mxu1 %v20253_v52  ;;  %3677 = vmatpush1.bf16.msra.mxu0 %v16956_v4  ;;  %v20303_v24 = vpack.c.bf16 %v166_v0, %v149_v23  ;;  %v16968_v40 = vld [vmem:[%s25788_s1 + $0x900] ss:$12 sps:$4 sm:$0xff]   ;;  %v16975_v32 = vld [vmem:[%s25788_s1 + $0x91c] ss:$12 sps:$4 sm:$0xff]   ;;  %v16973_v8 = vld [vmem:[%s25788_s1 + $0x918] ss:$12 sps:$4 sm:$0xff]  }
 0x174   :  { %v20284_v2 = vadd.f32 %v15404_v28, %v19918_v9  ;;  %3678 = vmatprep.subr.bf16.mxu0 %v16961_v7  ;;  %3641 = vmatprep.mubr.bf16.mxu0 %v20076_v17  ;;  %v17001_v17 = vld [vmem:[%s25788_s1 + $0xa58] ss:$12 sps:$4 sm:$0xff]   ;;  %v234_v23 = vld [vmem:[%s25787_s0 + $0x628] sm:$0xff] }
 0x175   :  { %4645 = vmatprep.mubr.bf16.mxu1 %v20261_v20  ;;  %15670 = vmatpush3.bf16.msra.mxu1 %v16992_v25  ;;  %v269_v0 = vld [vmem:[%s25787_s0 + $0x740] sm:$0xff] }
 0x176   :  { %v15421_v9 = vpop.f32.mrb[64].mxu1  ;;  %15671 = vmatprep.subr.bf16.mxu1 %v16996_v50  ;;  %v217_v50 = vld [vmem:[%s25787_s0 + $0x5a0] sm:$0xff] }
 0x177   :  { %v15422_v18 = vpop.f32.mrb[65].mxu1  ;;  %3679 = vmatpush1.bf16.msra.mxu0 %v16959_v59  ;;  %v20361_v59 = vpack.c.bf16 %v235_v34, %v218_v41  ;;  %v16995_v41 = vld [vmem:[%s25788_s1 + $0x97c] ss:$12 sps:$4 sm:$0xff]  }
 0x178   :  { %v15423_v48 = vadd.f32 %v15422_v18, %v15421_v9  ;;  %v15424_v22 = vpop.f32.mrb[66].mxu1  ;;  %3680 = vmatprep.subr.bf16.mxu0 %v16964_v29  ;;  %v16980_v29 = vld [vmem:[%s25788_s1 + $0x934] ss:$12 sps:$4 sm:$0xff]  }
 0x179   :  { %v15425_v42 = vpop.f32.mrb[67].mxu1  ;;  %15672 = vmatpush3.bf16.msra.mxu1 %v16997_v12  ;;  %v20391_v12 = vpack.c.bf16 %v234_v23, %v217_v50  ;;  %v17005_v50 = vld [vmem:[%s25788_s1 + $0x9ac] ss:$12 sps:$4 sm:$0xff]  }
 0x17a   :  { %v20317_v45 = vadd.f32 %v15423_v48, %v19951_v58  ;;  %v15426_v39 = vadd.f32 %v15425_v42, %v15424_v22  ;;  %3642 = vmatmul.mubr.bf16.gmra.mrb[28].mxu0 %v20109_v36  ;;  %15673 = vmatprep.subr.bf16.mxu1 %v17001_v17  ;;  %v17006_v58 = vld [vmem:[%s25788_s1 + $0xa70] ss:$12 sps:$4 sm:$0xff]   ;;  %v16985_v17 = vld [vmem:[%s25788_s1 + $0x94c] ss:$12 sps:$4 sm:$0xff]  }
 0x17b   :  { %4646 = vmatmul.mubr.bf16.gmra.mrb[172].mxu1 %v20303_v24  ;;  %3681 = vmatpush1.bf16.msra.mxu0 %v16962_v10  ;;  %v16983_v10 = vld [vmem:[%s25788_s1 + $0x948] ss:$12 sps:$4 sm:$0xff]   ;;  %v16990_v42 = vld [vmem:[%s25788_s1 + $0x964] ss:$12 sps:$4 sm:$0xff]  }
 0x17c   :  { %v20334_v36 = vadd.f32 %v15426_v39, %v19964_v62  ;;  %3682 = vmatprep.subr.bf16.mxu0 %v16967_v37  ;;  %3684 = vmatprep.mubr.bf16.mxu0 %v20116_v27  ;;  %v17035_v27 = vld [vmem:[%s25788_s1 + $0xb48] ss:$12 sps:$4 sm:$0xff]  }
 0x17d   :  { %4653 = vmatprep.mubr.bf16.mxu1 %v20311_v1  ;;  %15674 = vmatpush3.bf16.msra.mxu1 %v17002_v5  ;;  %v268_v5 = vld [vmem:[%s25787_s0 + $0x738] sm:$0xff]  ;;  %v303_v39 = vld [vmem:[%s25787_s0 + $0x850] sm:$0xff] }
 0x17e   :  { %v15427_v62 = vpop.f32.mrb[68].mxu1  ;;  %15675 = vmatprep.subr.bf16.mxu1 %v17006_v58 }
 0x17f   :  { %v15428_v38 = vpop.f32.mrb[69].mxu1  ;;  %3683 = vmatpush1.bf16.msra.mxu0 %v16965_v51  ;;  %v251_v51 = vld [vmem:[%s25787_s0 + $0x6b0] sm:$0xff] }
 0x180   :  { %v15429_v4 = vadd.f32 %v15428_v38, %v15427_v62  ;;  %v15430_v6 = vpop.f32.mrb[70].mxu1  ;;  %3765 = vmatprep.subr.bf16.mxu0 %v16970_v54  ;;  %v20429_v30 = vpack.c.bf16 %v268_v5, %v251_v51  ;;  %v17013_v51 = vld [vmem:[%s25788_s1 + $0x9dc] ss:$12 sps:$4 sm:$0xff]  }
 0x181   :  { %v15431_v7 = vpop.f32.mrb[71].mxu1  ;;  %15676 = vmatpush3.bf16.msra.mxu1 %v17007_v55  ;;  %v16993_v55 = vld [vmem:[%s25788_s1 + $0x978] ss:$12 sps:$4 sm:$0xff]   ;;  %v17036_v5 = vld [vmem:[%s25788_s1 + $0xa88] ss:$12 sps:$4 sm:$0xff]  }
 0x182   :  { %v20364_v25 = vadd.f32 %v15429_v4, %v20000_v43  ;;  %v15432_v28 = vadd.f32 %v15431_v7, %v15430_v6  ;;  %3685 = vmatmul.mubr.bf16.vlgmr.msra.gmra.mrb[0].mxu0 %v20149_v60  ;;  %15725 = vmatprep.subr.bf16.mxu1 %v17035_v27  ;;  %v252_v60 = vld [vmem:[%s25787_s0 + $0x6b8] sm:$0xff]  ;;  %v285_v4 = vld [vmem:[%s25787_s0 + $0x7c0] sm:$0xff]  ;;  %v302_v6 = vld [vmem:[%s25787_s0 + $0x848] sm:$0xff] }
 0x183   :  { %4654 = vmatmul.mubr.bf16.gmra.mrb[176].mxu1 %v20353_v3  ;;  %3766 = vmatpush1.bf16.msra.mxu0 %v16968_v40  ;;  %v20399_v48 = vpack.c.bf16 %v269_v0, %v252_v60  ;;  %v17000_v40 = vld [vmem:[%s25788_s1 + $0x994] ss:$12 sps:$4 sm:$0xff]  }
 0x184   :  { %v20378_v43 = vadd.f32 %v15432_v28, %v20010_v35  ;;  %3767 = vmatprep.subr.bf16.mxu0 %v16975_v32  ;;  %3694 = vmatprep.mubr.bf16.mxu0 %v20159_v53  ;;  %v16978_v35 = vld [vmem:[%s25788_s1 + $0x930] ss:$12 sps:$4 sm:$0xff]   ;;  %v20467_v28 = vpack.c.bf16 %v302_v6, %v285_v4  ;;  %v17003_v60 = vld [vmem:[%s25788_s1 + $0x9a8] ss:$12 sps:$4 sm:$0xff]  }
 0x185   :  { %4661 = vmatprep.mubr.bf16.mxu1 %v20361_v59  ;;  %v67_v32 = vld [vmem:[%s25787_s0 + $0xf0] sm:$0xff] }
 0x186   :  { %v15433_v14 = vpop.f32.mrb[72].mxu1 }
 0x187   :  { %v15434_v33 = vpop.f32.mrb[73].mxu1  ;;  %3768 = vmatpush1.bf16.msra.mxu0 %v16973_v8 }
 0x188   :  { %v15435_v53 = vadd.f32 %v15434_v33, %v15433_v14  ;;  %v15436_v9 = vpop.f32.mrb[74].mxu1  ;;  %3769 = vmatprep.subr.bf16.mxu0 %v16980_v29 }
 0x189   :  { %v15437_v18 = vpop.f32.mrb[75].mxu1 }
 0x18a   :  { %v20402_v22 = vadd.f32 %v15435_v53, %v20040_v26  ;;  %v15438_v37 = vadd.f32 %v15437_v18, %v15436_v9  ;;  %3695 = vmatmul.mubr.bf16.gmra.mrb[4].mxu0 %v20201_v15  ;;  %v286_v15 = vld [vmem:[%s25787_s0 + $0x7c8] sm:$0xff]  ;;  %v49_v53 = vld [vmem:[%s25787_s0 + $0x60] sm:$0xff] }
 0x18b   :  { %4662 = vmatmul.mubr.bf16.gmra.mrb[180].mxu1 %v20391_v12  ;;  %3770 = vmatpush1.bf16.msra.mxu0 %v16978_v35  ;;  %v20437_v62 = vpack.c.bf16 %v303_v39, %v286_v15  ;;  %v17010_v35 = vld [vmem:[%s25788_s1 + $0x9c4] ss:$12 sps:$4 sm:$0xff]   ;;  %v66_v9 = vld [vmem:[%s25787_s0 + $0xe8] sm:$0xff] }
 0x18c   :  { %v20416_v26 = vadd.f32 %v15438_v37, %v20050_v63  ;;  %3771 = vmatprep.subr.bf16.mxu0 %v16985_v17  ;;  %3704 = vmatprep.mubr.bf16.mxu0 %v20208_v47  ;;  %v16988_v63 = vld [vmem:[%s25788_s1 + $0x960] ss:$12 sps:$4 sm:$0xff]   ;;  %v20505_v37 = vpack.c.bf16 %v66_v9, %v49_v53  ;;  %v17011_v39 = vld [vmem:[%s25788_s1 + $0x9d8] ss:$12 sps:$4 sm:$0xff]  }
 0x18d   :  { %4669 = vmatprep.mubr.bf16.mxu1 %v20399_v48  ;;  %v101_v17 = vld [vmem:[%s25787_s0 + $0x200] sm:$0xff]  ;;  %v134_v53 = vld [vmem:[%s25787_s0 + $0x308] sm:$0xff]  ;;  %v152_v9 = vld [vmem:[%s25787_s0 + $0x398] sm:$0xff] }
 0x18e   :  { %v15439_v54 = vpop.f32.mrb[76].mxu1 }
 0x18f   :  { %v15440_v16 = vpop.f32.mrb[77].mxu1  ;;  %3772 = vmatpush1.bf16.msra.mxu0 %v16983_v10 }
 0x190   :  { %v15441_v47 = vadd.f32 %v15440_v16, %v15439_v54  ;;  %v15442_v58 = vpop.f32.mrb[78].mxu1  ;;  %3773 = vmatprep.subr.bf16.mxu0 %v16990_v42 }
 0x191   :  { %v15443_v34 = vpop.f32.mrb[79].mxu1 }
 0x192   :  { %v20440_v27 = vadd.f32 %v15441_v47, %v20080_v21  ;;  %v15444_v38 = vadd.f32 %v15443_v34, %v15442_v58  ;;  %3705 = vmatmul.mubr.bf16.gmra.mrb[8].mxu0 %v20253_v52  ;;  %v50_v52 = vld [vmem:[%s25787_s0 + $0x68] sm:$0xff]  ;;  %v17016_v47 = vld [vmem:[%s25788_s1 + $0x9f4] ss:$12 sps:$4 sm:$0xff]  }
 0x193   :  { %4670 = vmatmul.mubr.bf16.gmra.mrb[184].mxu1 %v20429_v30  ;;  %3774 = vmatpush1.bf16.msra.mxu0 %v16988_v63  ;;  %v20475_v0 = vpack.c.bf16 %v67_v32, %v50_v52  ;;  %v83_v58 = vld [vmem:[%s25787_s0 + $0x170] sm:$0xff]  ;;  %v17019_v52 = vld [vmem:[%s25788_s1 + $0xa0c] ss:$12 sps:$4 sm:$0xff]  }
 0x194   :  { %v20454_v21 = vadd.f32 %v15444_v38, %v20090_v31  ;;  %3775 = vmatprep.subr.bf16.mxu0 %v16995_v41  ;;  %3714 = vmatprep.mubr.bf16.mxu0 %v20261_v20  ;;  %v16998_v31 = vld [vmem:[%s25788_s1 + $0x990] ss:$12 sps:$4 sm:$0xff]  }
 0x195   :  { %4677 = vmatprep.mubr.bf16.mxu1 %v20437_v62  ;;  %v100_v41 = vld [vmem:[%s25787_s0 + $0x1f8] sm:$0xff]  ;;  %v135_v38 = vld [vmem:[%s25787_s0 + $0x310] sm:$0xff] }
 0x196   :  { %v15445_v7 = vpop.f32.mrb[80].mxu1  ;;  %v20555_v6 = vpack.c.bf16 %v100_v41, %v83_v58  ;;  %v17028_v41 = vld [vmem:[%s25788_s1 + $0xa54] ss:$12 sps:$4 sm:$0xff]  }
 0x197   :  { %v15446_v8 = vpop.f32.mrb[81].mxu1  ;;  %3776 = vmatpush1.bf16.msra.mxu0 %v16993_v55  ;;  %v118_v55 = vld [vmem:[%s25787_s0 + $0x288] sm:$0xff] }
 0x198   :  { %v15447_v20 = vadd.f32 %v15446_v8, %v15445_v7  ;;  %v15448_v29 = vpop.f32.mrb[82].mxu1  ;;  %3777 = vmatprep.subr.bf16.mxu0 %v17000_v40  ;;  %v17045_v40 = vld [vmem:[%s25788_s1 + $0xb78] ss:$12 sps:$4 sm:$0xff]  }
 0x199   :  { %v15449_v23 = vpop.f32.mrb[83].mxu1  ;;  %v17046_v8 = vld [vmem:[%s25788_s1 + $0xab8] ss:$12 sps:$4 sm:$0xff]  }
 0x19a   :  { %v20478_v14 = vadd.f32 %v15447_v20, %v20120_v49  ;;  %v15450_v33 = vadd.f32 %v15449_v23, %v15448_v29  ;;  %3715 = vmatmul.mubr.bf16.gmra.mrb[12].mxu0 %v20303_v24  ;;  %v84_v24 = vld [vmem:[%s25787_s0 + $0x178] sm:$0xff]  ;;  %v17017_v29 = vld [vmem:[%s25788_s1 + $0xa08] ss:$12 sps:$4 sm:$0xff]  }
 0x19b   :  { %4678 = vmatmul.mubr.bf16.gmra.mrb[188].mxu1 %v20467_v28  ;;  %3778 = vmatpush1.bf16.msra.mxu0 %v16998_v31  ;;  %v20516_v54 = vpack.c.bf16 %v101_v17, %v84_v24  ;;  %v17050_v31 = vld [vmem:[%s25788_s1 + $0xb90] ss:$12 sps:$4 sm:$0xff]   ;;  %v169_v24 = vld [vmem:[%s25787_s0 + $0x420] sm:$0xff]  ;;  %v17055_v17 = vld [vmem:[%s25788_s1 + $0xba8] ss:$12 sps:$4 sm:$0xff]  }
 0x19c   :  { %v20492_v49 = vadd.f32 %v15450_v33, %v20130_v56  ;;  %3779 = vmatprep.subr.bf16.mxu0 %v17005_v50  ;;  %3724 = vmatprep.mubr.bf16.mxu0 %v20311_v1  ;;  %v17008_v56 = vld [vmem:[%s25788_s1 + $0x9c0] ss:$12 sps:$4 sm:$0xff]   ;;  %v20569_v50 = vpack.c.bf16 %v135_v38, %v118_v55  ;;  %v17022_v33 = vld [vmem:[%s25788_s1 + $0xa24] ss:$12 sps:$4 sm:$0xff]  }
 0x19d   :  { %4718 = vmatprep.mubr.bf16.mxu1 %v20475_v0  ;;  %v186_v55 = vld [vmem:[%s25787_s0 + $0x4a8] sm:$0xff]  ;;  %v203_v38 = vld [vmem:[%s25787_s0 + $0x530] sm:$0xff] }
 0x19e   :  { %v15451_v18 = vpop.f32.mrb[84].mxu1 }
 0x19f   :  { %v15452_v10 = vpop.f32.mrb[85].mxu1  ;;  %3780 = vmatpush1.bf16.msra.mxu0 %v17003_v60 }
 0x1a0   :  { %v15453_v1 = vadd.f32 %v15452_v10, %v15451_v18  ;;  %v15454_v42 = vpop.f32.mrb[86].mxu1  ;;  %3781 = vmatprep.subr.bf16.mxu0 %v17010_v35  ;;  %v117_v35 = vld [vmem:[%s25787_s0 + $0x280] sm:$0xff]  ;;  %v17025_v18 = vld [vmem:[%s25788_s1 + $0xa3c] ss:$12 sps:$4 sm:$0xff]  }
 0x1a1   :  { %v15455_v15 = vpop.f32.mrb[87].mxu1 }
 0x1a2   :  { %v20519_v16 = vadd.f32 %v15453_v1, %v20166_v19  ;;  %v15456_v63 = vadd.f32 %v15455_v15, %v15454_v42  ;;  %3725 = vmatmul.mubr.bf16.gmra.mrb[16].mxu0 %v20353_v3  ;;  %v17040_v19 = vld [vmem:[%s25788_s1 + $0xb60] ss:$12 sps:$4 sm:$0xff]   ;;  %v17056_v1 = vld [vmem:[%s25788_s1 + $0xae8] ss:$12 sps:$4 sm:$0xff]  }
 0x1a3   :  { %4719 = vmatmul.mubr.bf16.vlgmr.msra.gmra.mrb[192].mxu1 %v20505_v37  ;;  %3782 = vmatpush1.bf16.msra.mxu0 %v17008_v56  ;;  %v17041_v3 = vld [vmem:[%s25788_s1 + $0xaa0] ss:$12 sps:$4 sm:$0xff]   ;;  %v20608_v56 = vpack.c.bf16 %v134_v53, %v117_v35  ;;  %v17034_v35 = vld [vmem:[%s25788_s1 + $0xa84] ss:$12 sps:$4 sm:$0xff]  }
 0x1a4   :  { %v20539_v34 = vadd.f32 %v15456_v63, %v20182_v13  ;;  %3783 = vmatprep.subr.bf16.mxu0 %v17013_v51  ;;  %3734 = vmatprep.mubr.bf16.mxu0 %v20361_v59  ;;  %v17014_v59 = vld [vmem:[%s25788_s1 + $0x9f0] ss:$12 sps:$4 sm:$0xff]   ;;  %v20619_v63 = vpack.c.bf16 %v169_v24, %v152_v9  ;;  %v185_v53 = vld [vmem:[%s25787_s0 + $0x4a0] sm:$0xff] }
 0x1a5   :  { %4726 = vmatprep.mubr.bf16.mxu1 %v20516_v54  ;;  %15726 = vmatpush3.bf16.msra.mxu1 %v17036_v5  ;;  %v17060_v5 = vld [vmem:[%s25788_s1 + $0xbc0] ss:$12 sps:$4 sm:$0xff]   ;;  %v220_v9 = vld [vmem:[%s25787_s0 + $0x5b8] sm:$0xff] }
 0x1a6   :  { %v15457_v13 = vpop.f32.mrb[88].mxu1  ;;  %15727 = vmatprep.subr.bf16.mxu1 %v17040_v19  ;;  %v151_v19 = vld [vmem:[%s25787_s0 + $0x390] sm:$0xff]  ;;  %v237_v24 = vld [vmem:[%s25787_s0 + $0x640] sm:$0xff] }
 0x1a7   :  { %v15458_v4 = vpop.f32.mrb[89].mxu1  ;;  %3784 = vmatpush1.bf16.msra.mxu0 %v17011_v39  ;;  %v17023_v39 = vld [vmem:[%s25788_s1 + $0xa38] ss:$12 sps:$4 sm:$0xff]  }
 0x1a8   :  { %v15459_v32 = vadd.f32 %v15458_v4, %v15457_v13  ;;  %v15460_v7 = vpop.f32.mrb[90].mxu1  ;;  %3785 = vmatprep.subr.bf16.mxu0 %v17016_v47 }
 0x1a9   :  { %v15461_v20 = vpop.f32.mrb[91].mxu1  ;;  %15728 = vmatpush3.bf16.msra.mxu1 %v17041_v3  ;;  %v168_v3 = vld [vmem:[%s25787_s0 + $0x418] sm:$0xff] }
 0x1aa   :  { %v20572_v23 = vadd.f32 %v15459_v32, %v20215_v57  ;;  %v15462_v60 = vadd.f32 %v15461_v20, %v15460_v7  ;;  %3735 = vmatmul.mubr.bf16.gmra.mrb[20].mxu0 %v20391_v12  ;;  %15729 = vmatprep.subr.bf16.mxu1 %v17045_v40  ;;  %v17051_v57 = vld [vmem:[%s25788_s1 + $0xad0] ss:$12 sps:$4 sm:$0xff]   ;;  %v17065_v40 = vld [vmem:[%s25788_s1 + $0xbd8] ss:$12 sps:$4 sm:$0xff]   ;;  %v20655_v4 = vpack.c.bf16 %v168_v3, %v151_v19  ;;  %v17029_v20 = vld [vmem:[%s25788_s1 + $0xa68] ss:$12 sps:$4 sm:$0xff]  }
 0x1ab   :  { %4727 = vmatmul.mubr.bf16.gmra.mrb[196].mxu1 %v20555_v6  ;;  %3786 = vmatpush1.bf16.msra.mxu0 %v17014_v59  ;;  %v17031_v59 = vld [vmem:[%s25788_s1 + $0xa6c] ss:$12 sps:$4 sm:$0xff]   ;;  %v271_v3 = vld [vmem:[%s25787_s0 + $0x750] sm:$0xff] }
 0x1ac   :  { %v20589_v12 = vadd.f32 %v15462_v60, %v20228_v11  ;;  %3787 = vmatprep.subr.bf16.mxu0 %v17019_v52  ;;  %3744 = vmatprep.mubr.bf16.mxu0 %v20399_v48  ;;  %v17020_v11 = vld [vmem:[%s25788_s1 + $0xa20] ss:$12 sps:$4 sm:$0xff]   ;;  %v17066_v52 = vld [vmem:[%s25788_s1 + $0xb18] ss:$12 sps:$4 sm:$0xff]  }
 0x1ad   :  { %4734 = vmatprep.mubr.bf16.mxu1 %v20569_v50  ;;  %15730 = vmatpush3.bf16.msra.mxu1 %v17046_v8  ;;  %v17070_v8 = vld [vmem:[%s25788_s1 + $0xbf0] ss:$12 sps:$4 sm:$0xff]  }
 0x1ae   :  { %v15463_v48 = vpop.f32.mrb[92].mxu1  ;;  %15731 = vmatprep.subr.bf16.mxu1 %v17050_v31  ;;  %v236_v19 = vld [vmem:[%s25787_s0 + $0x638] sm:$0xff] }
 0x1af   :  { %v15464_v10 = vpop.f32.mrb[93].mxu1  ;;  %3788 = vmatpush1.bf16.msra.mxu0 %v17017_v29  ;;  %v20669_v29 = vpack.c.bf16 %v203_v38, %v186_v55 }
 0x1b0   :  { %v15465_v42 = vadd.f32 %v15464_v10, %v15463_v48  ;;  %v15466_v51 = vpop.f32.mrb[94].mxu1  ;;  %3789 = vmatprep.subr.bf16.mxu0 %v17022_v33 }
 0x1b1   :  { %v15467_v15 = vpop.f32.mrb[95].mxu1  ;;  %15732 = vmatpush3.bf16.msra.mxu1 %v17051_v57  ;;  %v202_v57 = vld [vmem:[%s25787_s0 + $0x528] sm:$0xff] }
 0x1b2   :  { %v20622_v47 = vadd.f32 %v15465_v42, %v20267_v46  ;;  %v15468_v58 = vadd.f32 %v15467_v15, %v15466_v51  ;;  %3745 = vmatmul.mubr.bf16.gmra.mrb[24].mxu0 %v20429_v30  ;;  %15733 = vmatprep.subr.bf16.mxu1 %v17055_v17  ;;  %v17061_v46 = vld [vmem:[%s25788_s1 + $0xb00] ss:$12 sps:$4 sm:$0xff]   ;;  %v20701_v17 = vld [vmem:[%s25788_s1 + $0xc08] ss:$12 sps:$4 sm:$0xff]   ;;  %v17037_v51 = vld [vmem:[%s25788_s1 + $0xa98] ss:$12 sps:$4 sm:$0xff]  }
 0x1b3   :  { %4735 = vmatmul.mubr.bf16.gmra.mrb[200].mxu1 %v20608_v56  ;;  %3790 = vmatpush1.bf16.msra.mxu0 %v17020_v11  ;;  %v17039_v11 = vld [vmem:[%s25788_s1 + $0xa9c] ss:$12 sps:$4 sm:$0xff]  }
 0x1b4   :  { %v20639_v30 = vadd.f32 %v15468_v58, %v20284_v2  ;;  %3791 = vmatprep.subr.bf16.mxu0 %v17025_v18  ;;  %3754 = vmatprep.mubr.bf16.mxu0 %v20437_v62  ;;  %v17026_v2 = vld [vmem:[%s25788_s1 + $0xa50] ss:$12 sps:$4 sm:$0xff]   ;;  %v20710_v18 = vpack.c.bf16 %v202_v57, %v185_v53  ;;  %v17044_v58 = vld [vmem:[%s25788_s1 + $0xab4] ss:$12 sps:$4 sm:$0xff]  }
 0x1b5   :  { %4742 = vmatprep.mubr.bf16.mxu1 %v20619_v63  ;;  %15734 = vmatpush3.bf16.msra.mxu1 %v17056_v1 }
 0x1b6   :  { %v15485_v62 = vpop.f32.mrb[96].mxu1  ;;  %15735 = vmatprep.subr.bf16.mxu1 %v17060_v5  ;;  %v20715_v5 = vpack.c.bf16 %v237_v24, %v220_v9  ;;  %v17057_v24 = vld [vmem:[%s25788_s1 + $0xaf8] ss:$12 sps:$4 sm:$0xff]  }
 0x1b7   :  { %v15486_v13 = vpop.f32.mrb[97].mxu1  ;;  %3792 = vmatpush1.bf16.msra.mxu0 %v17023_v39 }
 0x1b8   :  { %v15487_v32 = vadd.f32 %v15486_v13, %v15485_v62  ;;  %v15488_v7 = vpop.f32.mrb[98].mxu1  ;;  %3793 = vmatprep.subr.bf16.mxu0 %v17028_v41  ;;  %v219_v41 = vld [vmem:[%s25787_s0 + $0x5b0] sm:$0xff] }
 0x1b9   :  { %v15489_v31 = vpop.f32.mrb[99].mxu1  ;;  %15736 = vmatpush3.bf16.msra.mxu1 %v17061_v46  ;;  %v17042_v46 = vld [vmem:[%s25788_s1 + $0xab0] ss:$12 sps:$4 sm:$0xff]   ;;  %v20749_v38 = vpack.c.bf16 %v236_v19, %v219_v41  ;;  %v17047_v13 = vld [vmem:[%s25788_s1 + $0xac8] ss:$12 sps:$4 sm:$0xff]  }
 0x1ba   :  { %v20672_v60 = vadd.f32 %v15487_v32, %v20317_v45  ;;  %v15490_v33 = vadd.f32 %v15489_v31, %v15488_v7  ;;  %3755 = vmatmul.mubr.bf16.gmra.mrb[28].mxu0 %v20467_v28  ;;  %15737 = vmatprep.subr.bf16.mxu1 %v17065_v40  ;;  %v17071_v45 = vld [vmem:[%s25788_s1 + $0xb30] ss:$12 sps:$4 sm:$0xff]   ;;  %v270_v31 = vld [vmem:[%s25787_s0 + $0x748] sm:$0xff] }
 0x1bb   :  { %4743 = vmatmul.mubr.bf16.gmra.mrb[204].mxu1 %v20655_v4  ;;  %3794 = vmatpush1.bf16.msra.mxu0 %v17026_v2  ;;  %v17054_v7 = vld [vmem:[%s25788_s1 + $0xae4] ss:$12 sps:$4 sm:$0xff]  }
 0x1bc   :  { %v20689_v28 = vadd.f32 %v15490_v33, %v20334_v36  ;;  %3795 = vmatprep.subr.bf16.mxu0 %v17031_v59  ;;  %3797 = vmatprep.mubr.bf16.mxu0 %v20475_v0  ;;  %v17032_v36 = vld [vmem:[%s25788_s1 + $0xa80] ss:$12 sps:$4 sm:$0xff]  }
 0x1bd   :  { %4750 = vmatprep.mubr.bf16.mxu1 %v20669_v29  ;;  %15738 = vmatpush3.bf16.msra.mxu1 %v17066_v52  ;;  %v17052_v33 = vld [vmem:[%s25788_s1 + $0xae0] ss:$12 sps:$4 sm:$0xff]  }
 0x1be   :  { %v15491_v0 = vpop.f32.mrb[100].mxu1  ;;  %15739 = vmatprep.subr.bf16.mxu1 %v17070_v8  ;;  %v253_v8 = vld [vmem:[%s25787_s0 + $0x6c0] sm:$0xff] }
 0x1bf   :  { %v15492_v48 = vpop.f32.mrb[101].mxu1  ;;  %3796 = vmatpush1.bf16.msra.mxu0 %v17029_v20  ;;  %v305_v20 = vld [vmem:[%s25787_s0 + $0x860] sm:$0xff]  ;;  %v20787_v53 = vpack.c.bf16 %v270_v31, %v253_v8 }
 0x1c0   :  { %v15493_v10 = vadd.f32 %v15492_v48, %v15491_v0  ;;  %v15494_v1 = vpop.f32.mrb[102].mxu1  ;;  %3878 = vmatprep.subr.bf16.mxu0 %v17034_v35  ;;  %v17064_v48 = vld [vmem:[%s25788_s1 + $0xb14] ss:$12 sps:$4 sm:$0xff]  }
 0x1c1   :  { %v15495_v42 = vpop.f32.mrb[103].mxu1  ;;  %15740 = vmatpush3.bf16.msra.mxu1 %v17071_v45 }
 0x1c2   :  { %v20718_v15 = vadd.f32 %v15493_v10, %v20364_v25  ;;  %v15496_v39 = vadd.f32 %v15495_v42, %v15494_v1  ;;  %3798 = vmatmul.mubr.bf16.vlgmr.msra.gmra.mrb[0].mxu0 %v20505_v37  ;;  %15863 = vmatprep.subr.bf16.mxu1 %v20701_v17  ;;  %v254_v37 = vld [vmem:[%s25787_s0 + $0x6c8] sm:$0xff]  ;;  %v287_v10 = vld [vmem:[%s25787_s0 + $0x7d0] sm:$0xff]  ;;  %v304_v1 = vld [vmem:[%s25787_s0 + $0x858] sm:$0xff] }
 0x1c3   :  { %4751 = vmatmul.mubr.bf16.gmra.mrb[208].mxu1 %v20710_v18  ;;  %3879 = vmatpush1.bf16.msra.mxu0 %v17032_v36  ;;  %v20754_v59 = vpack.c.bf16 %v271_v3, %v254_v37  ;;  %v69_v42 = vld [vmem:[%s25787_s0 + $0x100] sm:$0xff]  ;;  %v17067_v3 = vld [vmem:[%s25788_s1 + $0xb28] ss:$12 sps:$4 sm:$0xff]  }
 0x1c4   :  { %v20733_v25 = vadd.f32 %v15496_v39, %v20378_v43  ;;  %3880 = vmatprep.subr.bf16.mxu0 %v17039_v11  ;;  %3807 = vmatprep.mubr.bf16.mxu0 %v20516_v54  ;;  %v17049_v43 = vld [vmem:[%s25788_s1 + $0xacc] ss:$12 sps:$4 sm:$0xff]  }
 0x1c5   :  { %4758 = vmatprep.mubr.bf16.mxu1 %v20715_v5 }
 0x1c6   :  { %v15497_v55 = vpop.f32.mrb[104].mxu1 }
 0x1c7   :  { %v15498_v54 = vpop.f32.mrb[105].mxu1  ;;  %3881 = vmatpush1.bf16.msra.mxu0 %v17037_v51  ;;  %v17062_v51 = vld [vmem:[%s25788_s1 + $0xb10] ss:$12 sps:$4 sm:$0xff]  }
 0x1c8   :  { %v15499_v40 = vadd.f32 %v15498_v54, %v15497_v55  ;;  %v15500_v2 = vpop.f32.mrb[106].mxu1  ;;  %3882 = vmatprep.subr.bf16.mxu0 %v17044_v58  ;;  %v20825_v58 = vpack.c.bf16 %v304_v1, %v287_v10  ;;  %v17074_v54 = vld [vmem:[%s25788_s1 + $0xb44] ss:$12 sps:$4 sm:$0xff]  }
 0x1c9   :  { %v15501_v62 = vpop.f32.mrb[107].mxu1 }
 0x1ca   :  { %v20757_v52 = vadd.f32 %v15499_v40, %v20402_v22  ;;  %v15502_v32 = vadd.f32 %v15501_v62, %v15500_v2  ;;  %3808 = vmatmul.mubr.bf16.gmra.mrb[4].mxu0 %v20555_v6  ;;  %v288_v6 = vld [vmem:[%s25787_s0 + $0x7d8] sm:$0xff]  ;;  %v51_v40 = vld [vmem:[%s25787_s0 + $0x70] sm:$0xff] }
 0x1cb   :  { %4759 = vmatmul.mubr.bf16.gmra.mrb[212].mxu1 %v20749_v38  ;;  %3883 = vmatpush1.bf16.msra.mxu0 %v17042_v46  ;;  %v20792_v36 = vpack.c.bf16 %v305_v20, %v288_v6  ;;  %v68_v2 = vld [vmem:[%s25787_s0 + $0xf8] sm:$0xff]  ;;  %v103_v62 = vld [vmem:[%s25787_s0 + $0x210] sm:$0xff]  ;;  %v17100_v6 = vld [vmem:[%s25788_s1 + $0xc20] ss:$12 sps:$4 sm:$0xff]  }
 0x1cc   :  { %v20771_v22 = vadd.f32 %v15502_v32, %v20416_v26  ;;  %3884 = vmatprep.subr.bf16.mxu0 %v17049_v43  ;;  %3817 = vmatprep.mubr.bf16.mxu0 %v20569_v50  ;;  %v17059_v26 = vld [vmem:[%s25788_s1 + $0xafc] ss:$12 sps:$4 sm:$0xff]  }
 0x1cd   :  { %4766 = vmatprep.mubr.bf16.mxu1 %v20754_v59 }
 0x1ce   :  { %v15503_v35 = vpop.f32.mrb[108].mxu1 }
 0x1cf   :  { %v15504_v50 = vpop.f32.mrb[109].mxu1  ;;  %3885 = vmatpush1.bf16.msra.mxu0 %v17047_v13  ;;  %v17072_v13 = vld [vmem:[%s25788_s1 + $0xb40] ss:$12 sps:$4 sm:$0xff]  }
 0x1d0   :  { %v15505_v57 = vadd.f32 %v15504_v50, %v15503_v35  ;;  %v15506_v45 = vpop.f32.mrb[110].mxu1  ;;  %3886 = vmatprep.subr.bf16.mxu0 %v17054_v7  ;;  %v20863_v7 = vpack.c.bf16 %v68_v2, %v51_v40 }
 0x1d1   :  { %v15507_v9 = vpop.f32.mrb[111].mxu1 }
 0x1d2   :  { %v20795_v0 = vadd.f32 %v15505_v57, %v20440_v27  ;;  %v15508_v11 = vadd.f32 %v15507_v9, %v15506_v45  ;;  %3818 = vmatmul.mubr.bf16.gmra.mrb[8].mxu0 %v20608_v56  ;;  %v52_v56 = vld [vmem:[%s25787_s0 + $0x78] sm:$0xff]  ;;  %v17080_v57 = vld [vmem:[%s25788_s1 + $0xb74] ss:$12 sps:$4 sm:$0xff]   ;;  %v102_v9 = vld [vmem:[%s25787_s0 + $0x208] sm:$0xff] }
 0x1d3   :  { %4767 = vmatmul.mubr.bf16.gmra.mrb[216].mxu1 %v20787_v53  ;;  %3887 = vmatpush1.bf16.msra.mxu0 %v17052_v33  ;;  %v20830_v46 = vpack.c.bf16 %v69_v42, %v52_v56  ;;  %v17075_v33 = vld [vmem:[%s25788_s1 + $0xb58] ss:$12 sps:$4 sm:$0xff]  }
 0x1d4   :  { %v20809_v27 = vadd.f32 %v15508_v11, %v20454_v21  ;;  %3888 = vmatprep.subr.bf16.mxu0 %v17059_v26  ;;  %3827 = vmatprep.mubr.bf16.mxu0 %v20619_v63  ;;  %v17069_v21 = vld [vmem:[%s25788_s1 + $0xb2c] ss:$12 sps:$4 sm:$0xff]   ;;  %v85_v45 = vld [vmem:[%s25787_s0 + $0x180] sm:$0xff]  ;;  %v17078_v11 = vld [vmem:[%s25788_s1 + $0xb70] ss:$12 sps:$4 sm:$0xff]  }
 0x1d5   :  { %4774 = vmatprep.mubr.bf16.mxu1 %v20792_v36  ;;  %v20905_v10 = vpack.c.bf16 %v102_v9, %v85_v45 }
 0x1d6   :  { %v15509_v39 = vpop.f32.mrb[112].mxu1 }
 0x1d7   :  { %v15510_v63 = vpop.f32.mrb[113].mxu1  ;;  %3889 = vmatpush1.bf16.msra.mxu0 %v17057_v24  ;;  %v137_v24 = vld [vmem:[%s25787_s0 + $0x320] sm:$0xff] }
 0x1d8   :  { %v15511_v41 = vadd.f32 %v15510_v63, %v15509_v39  ;;  %v15512_v19 = vpop.f32.mrb[114].mxu1  ;;  %3890 = vmatprep.subr.bf16.mxu0 %v17064_v48  ;;  %v17086_v63 = vld [vmem:[%s25788_s1 + $0xba4] ss:$12 sps:$4 sm:$0xff]  }
 0x1d9   :  { %v15513_v37 = vpop.f32.mrb[115].mxu1 }
 0x1da   :  { %v20833_v55 = vadd.f32 %v15511_v41, %v20478_v14  ;;  %v15514_v43 = vadd.f32 %v15513_v37, %v15512_v19  ;;  %3828 = vmatmul.mubr.bf16.gmra.mrb[12].mxu0 %v20655_v4  ;;  %v86_v4 = vld [vmem:[%s25787_s0 + $0x188] sm:$0xff]  ;;  %v119_v41 = vld [vmem:[%s25787_s0 + $0x290] sm:$0xff]  ;;  %v136_v19 = vld [vmem:[%s25787_s0 + $0x318] sm:$0xff] }
 0x1db   :  { %4775 = vmatmul.mubr.bf16.gmra.mrb[220].mxu1 %v20825_v58  ;;  %3891 = vmatpush1.bf16.msra.mxu0 %v17062_v51  ;;  %v20871_v35 = vpack.c.bf16 %v103_v62, %v86_v4  ;;  %v17081_v51 = vld [vmem:[%s25788_s1 + $0xb88] ss:$12 sps:$4 sm:$0xff]   ;;  %v17087_v62 = vld [vmem:[%s25788_s1 + $0xbb8] ss:$12 sps:$4 sm:$0xff]  }
 0x1dc   :  { %v20847_v14 = vadd.f32 %v15514_v43, %v20492_v49  ;;  %3892 = vmatprep.subr.bf16.mxu0 %v17069_v21  ;;  %3837 = vmatprep.mubr.bf16.mxu0 %v20669_v29  ;;  %v17077_v49 = vld [vmem:[%s25788_s1 + $0xb5c] ss:$12 sps:$4 sm:$0xff]   ;;  %v171_v37 = vld [vmem:[%s25787_s0 + $0x430] sm:$0xff] }
 0x1dd   :  { %4815 = vmatprep.mubr.bf16.mxu1 %v20830_v46 }
 0x1de   :  { %v15515_v32 = vpop.f32.mrb[116].mxu1 }
 0x1df   :  { %v15516_v29 = vpop.f32.mrb[117].mxu1  ;;  %3893 = vmatpush1.bf16.msra.mxu0 %v17067_v3  ;;  %v17084_v3 = vld [vmem:[%s25788_s1 + $0xba0] ss:$12 sps:$4 sm:$0xff]  }
 0x1e0   :  { %v15517_v8 = vadd.f32 %v15516_v29, %v15515_v32  ;;  %v15518_v31 = vpop.f32.mrb[118].mxu1  ;;  %3894 = vmatprep.subr.bf16.mxu0 %v17074_v54  ;;  %v20943_v54 = vpack.c.bf16 %v136_v19, %v119_v41  ;;  %v17092_v29 = vld [vmem:[%s25788_s1 + $0xbd4] ss:$12 sps:$4 sm:$0xff]   ;;  %v17103_v41 = vld [vmem:[%s25788_s1 + $0xc1c] ss:$12 sps:$4 sm:$0xff]  }
 0x1e1   :  { %v15519_v20 = vpop.f32.mrb[119].mxu1 }
 0x1e2   :  { %v20874_v26 = vadd.f32 %v15517_v8, %v20519_v16  ;;  %v15520_v50 = vadd.f32 %v15519_v20, %v15518_v31  ;;  %3838 = vmatmul.mubr.bf16.gmra.mrb[16].mxu0 %v20710_v18  ;;  %v120_v18 = vld [vmem:[%s25787_s0 + $0x298] sm:$0xff]  ;;  %v153_v8 = vld [vmem:[%s25787_s0 + $0x3a0] sm:$0xff]  ;;  %v170_v31 = vld [vmem:[%s25787_s0 + $0x428] sm:$0xff] }
 0x1e3   :  { %4816 = vmatmul.mubr.bf16.vlgmr.msra.gmra.mrb[224].mxu1 %v20863_v7  ;;  %3895 = vmatpush1.bf16.msra.mxu0 %v17072_v13  ;;  %v20910_v39 = vpack.c.bf16 %v137_v24, %v120_v18  ;;  %v17090_v20 = vld [vmem:[%s25788_s1 + $0xbd0] ss:$12 sps:$4 sm:$0xff]   ;;  %v17093_v18 = vld [vmem:[%s25788_s1 + $0xbe8] ss:$12 sps:$4 sm:$0xff]  }
 0x1e4   :  { %v20888_v16 = vadd.f32 %v15520_v50, %v20539_v34  ;;  %3896 = vmatprep.subr.bf16.mxu0 %v17077_v49  ;;  %3847 = vmatprep.mubr.bf16.mxu0 %v20715_v5  ;;  %v17083_v5 = vld [vmem:[%s25788_s1 + $0xb8c] ss:$12 sps:$4 sm:$0xff]   ;;  %v20981_v50 = vpack.c.bf16 %v170_v31, %v153_v8 }
 0x1e5   :  { %4823 = vmatprep.mubr.bf16.mxu1 %v20871_v35  ;;  %15864 = vmatpush3.bf16.msra.mxu1 %v20701_v17 }
 0x1e6   :  { %v15521_v34 = vpop.f32.mrb[120].mxu1  ;;  %15865 = vmatprep.subr.bf16.mxu1 %v17100_v6 }
 0x1e7   :  { %v15522_v48 = vpop.f32.mrb[121].mxu1  ;;  %3897 = vmatpush1.bf16.msra.mxu0 %v17075_v33 }
 0x1e8   :  { %v15523_v1 = vadd.f32 %v15522_v48, %v15521_v34  ;;  %v15524_v56 = vpop.f32.mrb[122].mxu1  ;;  %3898 = vmatprep.subr.bf16.mxu0 %v17080_v57  ;;  %v17098_v34 = vld [vmem:[%s25788_s1 + $0xc04] ss:$12 sps:$4 sm:$0xff]   ;;  %v204_v48 = vld [vmem:[%s25787_s0 + $0x538] sm:$0xff] }
 0x1e9   :  { %v15525_v42 = vpop.f32.mrb[123].mxu1  ;;  %15866 = vmatpush3.bf16.msra.mxu1 %v17100_v6  ;;  %v205_v6 = vld [vmem:[%s25787_s0 + $0x540] sm:$0xff] }
 0x1ea   :  { %v20913_v17 = vadd.f32 %v15523_v1, %v20572_v23  ;;  %v15526_v21 = vadd.f32 %v15525_v42, %v15524_v56  ;;  %3848 = vmatmul.mubr.bf16.gmra.mrb[20].mxu0 %v20749_v38  ;;  %v154_v38 = vld [vmem:[%s25787_s0 + $0x3a8] sm:$0xff]  ;;  %v239_v56 = vld [vmem:[%s25787_s0 + $0x650] sm:$0xff] }
 0x1eb   :  { %4824 = vmatmul.mubr.bf16.gmra.mrb[228].mxu1 %v20905_v10  ;;  %3899 = vmatpush1.bf16.msra.mxu0 %v17078_v11  ;;  %v20948_v13 = vpack.c.bf16 %v171_v37, %v154_v38  ;;  %v17101_v37 = vld [vmem:[%s25788_s1 + $0xc18] ss:$12 sps:$4 sm:$0xff]  }
 0x1ec   :  { %v20927_v23 = vadd.f32 %v15526_v21, %v20589_v12  ;;  %3900 = vmatprep.subr.bf16.mxu0 %v17083_v5  ;;  %3857 = vmatprep.mubr.bf16.mxu0 %v20754_v59  ;;  %v17089_v12 = vld [vmem:[%s25788_s1 + $0xbbc] ss:$12 sps:$4 sm:$0xff]   ;;  %v187_v5 = vld [vmem:[%s25787_s0 + $0x4b0] sm:$0xff] }
 0x1ed   :  { %4831 = vmatprep.mubr.bf16.mxu1 %v20910_v39 }
 0x1ee   :  { %v15527_v43 = vpop.f32.mrb[124].mxu1 }
 0x1ef   :  { %v15528_v59 = vpop.f32.mrb[125].mxu1  ;;  %3901 = vmatpush1.bf16.msra.mxu0 %v17081_v51 }
 0x1f0   :  { %v15529_v40 = vadd.f32 %v15528_v59, %v15527_v43  ;;  %v15530_v2 = vpop.f32.mrb[126].mxu1  ;;  %3902 = vmatprep.subr.bf16.mxu0 %v17086_v63  ;;  %v21016_v63 = vpack.c.bf16 %v204_v48, %v187_v5  ;;  %v221_v43 = vld [vmem:[%s25787_s0 + $0x5c0] sm:$0xff] }
 0x1f1   :  { %v15531_v4 = vpop.f32.mrb[127].mxu1  ;;  %v53_v5 = vld [vmem:[%s25787_s0 + $0x80] sm:$0xff] }
 0x1f2   :  { %v20951_v32 = vadd.f32 %v15529_v40, %v20622_v47  ;;  %v15532_v49 = vadd.f32 %v15531_v4, %v15530_v2  ;;  %3858 = vmatmul.mubr.bf16.gmra.mrb[24].mxu0 %v20787_v53  ;;  %v188_v53 = vld [vmem:[%s25787_s0 + $0x4b8] sm:$0xff] }
 0x1f3   :  { %4832 = vmatmul.mubr.bf16.gmra.mrb[232].mxu1 %v20943_v54  ;;  %3903 = vmatpush1.bf16.msra.mxu0 %v17084_v3  ;;  %v20986_v24 = vpack.c.bf16 %v205_v6, %v188_v53  ;;  %v256_v40 = vld [vmem:[%s25787_s0 + $0x6d8] sm:$0xff] }
 0x1f4   :  { %v20965_v47 = vadd.f32 %v15532_v49, %v20639_v30  ;;  %3904 = vmatprep.subr.bf16.mxu0 %v17089_v12  ;;  %3867 = vmatprep.mubr.bf16.mxu0 %v20792_v36  ;;  %v17095_v30 = vld [vmem:[%s25788_s1 + $0xbec] ss:$12 sps:$4 sm:$0xff]  }
 0x1f5   :  { %4839 = vmatprep.mubr.bf16.mxu1 %v20948_v13  ;;  %v238_v12 = vld [vmem:[%s25787_s0 + $0x648] sm:$0xff] }
 0x1f6   :  { %v15549_v33 = vpop.f32.mrb[128].mxu1 }
 0x1f7   :  { %v15550_v36 = vpop.f32.mrb[129].mxu1  ;;  %3905 = vmatpush1.bf16.msra.mxu0 %v17087_v62  ;;  %v21048_v62 = vpack.c.bf16 %v238_v12, %v221_v43 }
 0x1f8   :  { %v15551_v57 = vadd.f32 %v15550_v36, %v15549_v33  ;;  %v15552_v45 = vpop.f32.mrb[130].mxu1  ;;  %3906 = vmatprep.subr.bf16.mxu0 %v17092_v29 }
 0x1f9   :  { %v15553_v9 = vpop.f32.mrb[131].mxu1 }
 0x1fa   :  { %v15554_v11 = vadd.f32 %v15553_v9, %v15552_v45  ;;  %3868 = vmatmul.mubr.bf16.gmra.mrb[28].mxu0 %v20825_v58  ;;  %v20999_v1 = vadd.f32 %v15551_v57, %v20672_v60  ;;  %v222_v58 = vld [vmem:[%s25787_s0 + $0x5c8] sm:$0xff] }
 0x1fb   :  { %4840 = vmatmul.mubr.bf16.gmra.mrb[236].mxu1 %v20981_v50  ;;  %3907 = vmatpush1.bf16.msra.mxu0 %v17090_v20  ;;  %v17096_v60 = vld [vmem:[%s25788_s1 + $0xc00] ss:$12 sps:$4 sm:$0xff]  }
 0x1fc   :  { %3908 = vmatprep.subr.bf16.mxu0 %v17095_v30  ;;  %3910 = vmatprep.mubr.bf16.mxu0 %v20830_v46  ;;  %v21010_v42 = vadd.f32 %v15554_v11, %v20689_v28  ;;  %v21021_v28 = vpack.c.bf16 %v239_v56, %v222_v58  ;;  %v290_v20 = vld [vmem:[%s25787_s0 + $0x7e8] sm:$0xff]  ;;  %v289_v11 = vld [vmem:[%s25787_s0 + $0x7e0] sm:$0xff] }
 0x1fd   :  { %4847 = vmatprep.mubr.bf16.mxu1 %v20986_v24 }
 0x1fe   :  { %v15555_v51 = vpop.f32.mrb[132].mxu1 }
 0x1ff   :  { %v15556_v21 = vpop.f32.mrb[133].mxu1  ;;  %3909 = vmatpush1.bf16.msra.mxu0 %v17093_v18 }
 0x200   :  { %v15557_v19 = vadd.f32 %v15556_v21, %v15555_v51  ;;  %v15558_v46 = vpop.f32.mrb[134].mxu1  ;;  %3991 = vmatprep.subr.bf16.mxu0 %v17098_v34 }
 0x201   :  { %v15559_v38 = vpop.f32.mrb[135].mxu1 }
 0x202   :  { %v15560_v3 = vadd.f32 %v15559_v38, %v15558_v46  ;;  %3911 = vmatmul.mubr.bf16.vlgmr.msra.gmra.mrb[0].mxu0 %v20863_v7  ;;  %v21034_v59 = vadd.f32 %v15557_v19, %v20718_v15  ;;  %v273_v7 = vld [vmem:[%s25787_s0 + $0x760] sm:$0xff]  ;;  %v87_v19 = vld [vmem:[%s25787_s0 + $0x190] sm:$0xff] }
 0x203   :  { %4848 = vmatmul.mubr.bf16.gmra.mrb[240].mxu1 %v21016_v63  ;;  %3992 = vmatpush1.bf16.msra.mxu0 %v17096_v60  ;;  %v21050_v8 = vpack.c.bf16 %v273_v7, %v256_v40  ;;  %v121_v38 = vld [vmem:[%s25787_s0 + $0x2a0] sm:$0xff] }
 0x204   :  { %3920 = vmatprep.mubr.bf16.mxu0 %v20871_v35  ;;  %4855 = vmatprep.mubr.bf16.mxu1 %v21021_v28  ;;  %v21046_v2 = vadd.f32 %v15560_v3, %v20733_v25  ;;  %v255_v35 = vld [vmem:[%s25787_s0 + $0x6d0] sm:$0xff]  ;;  %v272_v25 = vld [vmem:[%s25787_s0 + $0x758] sm:$0xff] }
 0x205   :  { %3993 = vmatprep.subr.bf16.mxu0 %v17103_v41  ;;  %v21074_v36 = vpack.c.bf16 %v272_v25, %v255_v35 }
 0x206   :  { %v15561_v15 = vpop.f32.mrb[136].mxu1 }
 0x207   :  { %v15562_v4 = vpop.f32.mrb[137].mxu1  ;;  %3994 = vmatpush1.bf16.msra.mxu0 %v17101_v37 }
 0x208   :  { %v15563_v49 = vadd.f32 %v15562_v4, %v15561_v15  ;;  %v15564_v29 = vpop.f32.mrb[138].mxu1  ;;  %v155_v4 = vld [vmem:[%s25787_s0 + $0x3b0] sm:$0xff] }
 0x209   :  { %v15565_v31 = vpop.f32.mrb[139].mxu1 }
 0x20a   :  { %v15566_v53 = vadd.f32 %v15565_v31, %v15564_v29  ;;  %3921 = vmatmul.mubr.bf16.gmra.mrb[4].mxu0 %v20905_v10  ;;  %v21060_v6 = vadd.f32 %v15563_v49, %v20757_v52  ;;  %v307_v10 = vld [vmem:[%s25787_s0 + $0x870] sm:$0xff]  ;;  %v206_v29 = vld [vmem:[%s25787_s0 + $0x548] sm:$0xff] }
 0x20b   :  { %4856 = vmatmul.mubr.bf16.gmra.mrb[244].mxu1 %v21048_v62  ;;  %3930 = vmatprep.mubr.bf16.mxu0 %v20910_v39  ;;  %v21076_v39 = vpack.c.bf16 %v307_v10, %v290_v20 }
 0x20c   :  { %4863 = vmatprep.mubr.bf16.mxu1 %v21050_v8  ;;  %v21072_v33 = vadd.f32 %v15566_v53, %v20771_v22  ;;  %v306_v22 = vld [vmem:[%s25787_s0 + $0x868] sm:$0xff] }
 0x20d   :  { %v21100_v56 = vpack.c.bf16 %v306_v22, %v289_v11 }
 0x20e   :  { %v15567_v30 = vpop.f32.mrb[140].mxu1 }
 0x20f   :  { %v15568_v52 = vpop.f32.mrb[141].mxu1 }
 0x210   :  { %v15569_v57 = vadd.f32 %v15568_v52, %v15567_v30  ;;  %v15570_v45 = vpop.f32.mrb[142].mxu1  ;;  %v223_v52 = vld [vmem:[%s25787_s0 + $0x5d0] sm:$0xff] }
 0x211   :  { %v15571_v9 = vpop.f32.mrb[143].mxu1 }
 0x212   :  { %v15572_v18 = vadd.f32 %v15571_v9, %v15570_v45  ;;  %3931 = vmatmul.mubr.bf16.gmra.mrb[8].mxu0 %v20943_v54  ;;  %v21086_v34 = vadd.f32 %v15569_v57, %v20795_v0  ;;  %v70_v54 = vld [vmem:[%s25787_s0 + $0x108] sm:$0xff] }
 0x213   :  { %4864 = vmatmul.mubr.bf16.gmra.mrb[248].mxu1 %v21074_v36  ;;  %3940 = vmatprep.mubr.bf16.mxu0 %v20948_v13  ;;  %v21102_v13 = vpack.c.bf16 %v70_v54, %v53_v5  ;;  %v274_v45 = vld [vmem:[%s25787_s0 + $0x768] sm:$0xff] }
 0x214   :  { %4871 = vmatprep.mubr.bf16.mxu1 %v21076_v39  ;;  %v21098_v48 = vadd.f32 %v15572_v18, %v20809_v27  ;;  %v104_v27 = vld [vmem:[%s25787_s0 + $0x218] sm:$0xff] }
 0x215   :  { %v21127_v43 = vpack.c.bf16 %v104_v27, %v87_v19 }
 0x216   :  { %v15573_v58 = vpop.f32.mrb[144].mxu1 }
 0x217   :  { %v15574_v0 = vpop.f32.mrb[145].mxu1 }
 0x218   :  { %v15575_v60 = vadd.f32 %v15574_v0, %v15573_v58  ;;  %v15576_v51 = vpop.f32.mrb[146].mxu1  ;;  %v291_v0 = vld [vmem:[%s25787_s0 + $0x7f0] sm:$0xff] }
 0x219   :  { %v15577_v21 = vpop.f32.mrb[147].mxu1 }
 0x21a   :  { %v15578_v41 = vadd.f32 %v15577_v21, %v15576_v51  ;;  %3941 = vmatmul.mubr.bf16.gmra.mrb[12].mxu0 %v20981_v50  ;;  %v21112_v46 = vadd.f32 %v15575_v60, %v20833_v55  ;;  %v138_v50 = vld [vmem:[%s25787_s0 + $0x328] sm:$0xff] }
 0x21b   :  { %4872 = vmatmul.mubr.bf16.gmra.mrb[252].mxu1 %v21100_v56  ;;  %3950 = vmatprep.mubr.bf16.mxu0 %v20986_v24  ;;  %v21129_v40 = vpack.c.bf16 %v138_v50, %v121_v38 }
 0x21c   :  { %15867 = vmatprep.mubr.msk.bf16.mxu1 %vm3062_vm0, %v21102_v13  ;;  %v21125_v37 = vadd.f32 %v15578_v41, %v20847_v14  ;;  %v172_v14 = vld [vmem:[%s25787_s0 + $0x438] sm:$0xff] }
 0x21d   :  { %v21155_v35 = vpack.c.bf16 %v172_v14, %v155_v4 }
 0x21e   :  { %v15579_v55 = vpop.f32.mrb[148].mxu1 }
 0x21f   :  { %v15580_v3 = vpop.f32.mrb[149].mxu1 }
 0x220   :  { %v15581_v12 = vadd.f32 %v15580_v3, %v15579_v55  ;;  %v15582_v24 = vpop.f32.mrb[150].mxu1 }
 0x221   :  { %v15583_v7 = vpop.f32.mrb[151].mxu1 }
 0x222   :  { %v15584_v15 = vadd.f32 %v15583_v7, %v15582_v24  ;;  %3951 = vmatmul.mubr.bf16.gmra.mrb[16].mxu0 %v21016_v63  ;;  %v21139_v49 = vadd.f32 %v15581_v12, %v20874_v26  ;;  %v189_v63 = vld [vmem:[%s25787_s0 + $0x4c0] sm:$0xff] }
 0x223   :  { %15868 = vmatmul.mubr.msk.bf16.vlgmr.msra.gmra.mrb[0].mxu1 %vm3062_vm0, %v21127_v43  ;;  %3960 = vmatprep.mubr.bf16.mxu0 %v21021_v28  ;;  %v21157_v20 = vpack.c.bf16 %v206_v29, %v189_v63 }
 0x224   :  { %15871 = vmatprep.mubr.msk.bf16.mxu1 %vm3062_vm0, %v21129_v40  ;;  %v21153_v31 = vadd.f32 %v15584_v15, %v20888_v16  ;;  %v240_v16 = vld [vmem:[%s25787_s0 + $0x658] sm:$0xff] }
 0x225   :  { %v21183_v11 = vpack.c.bf16 %v240_v16, %v223_v52 }
 0x226   :  { %v15585_v26 = vpop.f32.mrb[152].mxu1 }
 0x227   :  { %v15586_v53 = vpop.f32.mrb[153].mxu1 }
 0x228   :  { %v15587_v25 = vadd.f32 %v15586_v53, %v15585_v26  ;;  %v15588_v28 = vpop.f32.mrb[154].mxu1 }
 0x229   :  { %v15589_v10 = vpop.f32.mrb[155].mxu1 }
 0x22a   :  { %v15590_v30 = vadd.f32 %v15589_v10, %v15588_v28  ;;  %3961 = vmatmul.mubr.bf16.gmra.mrb[20].mxu0 %v21048_v62  ;;  %v21167_v57 = vadd.f32 %v15587_v25, %v20913_v17  ;;  %v257_v62 = vld [vmem:[%s25787_s0 + $0x6e0] sm:$0xff] }
 0x22b   :  { %15872 = vmatmul.mubr.msk.bf16.gmra.mrb[4].mxu1 %vm3062_vm0, %v21155_v35  ;;  %3970 = vmatprep.mubr.bf16.mxu0 %v21050_v8  ;;  %v21185_v5 = vpack.c.bf16 %v274_v45, %v257_v62 }
 0x22c   :  { %15875 = vmatprep.mubr.msk.bf16.mxu1 %vm3062_vm0, %v21157_v20  ;;  %v21181_v9 = vadd.f32 %v15590_v30, %v20927_v23  ;;  %v308_v23 = vld [vmem:[%s25787_s0 + $0x878] sm:$0xff] }
 0x22d   :  { %v21205_v41 = vpack.c.bf16 %v308_v23, %v291_v0 }
 0x22e   :  { %v15591_v17 = vpop.f32.mrb[156].mxu1 }
 0x22f   :  { %v15592_v18 = vpop.f32.mrb[157].mxu1 }
 0x230   :  { %v15593_v22 = vadd.f32 %v15592_v18, %v15591_v17  ;;  %v15594_v8 = vpop.f32.mrb[158].mxu1 }
 0x231   :  { %v15595_v54 = vpop.f32.mrb[159].mxu1 }
 0x232   :  { %v15596_v58 = vadd.f32 %v15595_v54, %v15594_v8  ;;  %3971 = vmatmul.mubr.bf16.gmra.mrb[24].mxu0 %v21074_v36  ;;  %v21195_v60 = vadd.f32 %v15593_v22, %v20951_v32 }
 0x233   :  { %15876 = vmatmul.mubr.msk.bf16.gmra.mrb[8].mxu1 %vm3062_vm0, %v21183_v11  ;;  %3980 = vmatprep.mubr.bf16.mxu0 %v21076_v39  ;;  %v25798_v39 = vmov 0  }
 0x234   :  { %15879 = vmatprep.mubr.msk.bf16.mxu1 %vm3062_vm0, %v21185_v5  ;;  %v21203_v36 = vadd.f32 %v15596_v58, %v20965_v47 }
 0x236   :  { %v15613_v51 = vpop.f32.mrb[160].mxu1 }
 0x237   :  { %v15614_v21 = vpop.f32.mrb[161].mxu1 }
 0x238   :  { %v15615_v19 = vadd.f32 %v15614_v21, %v15613_v51  ;;  %v15616_v27 = vpop.f32.mrb[162].mxu1 }
 0x239   :  { %v15617_v38 = vpop.f32.mrb[163].mxu1 }
 0x23a   :  { %v21208_v32 = vadd.f32 %v15615_v19, %v20999_v1  ;;  %v15618_v50 = vadd.f32 %v15617_v38, %v15616_v27  ;;  %3981 = vmatmul.mubr.bf16.gmra.mrb[28].mxu0 %v21100_v56 }
 0x23b   :  { %15880 = vmatmul.mubr.msk.bf16.gmra.mrb[12].mxu1 %vm3062_vm0, %v21205_v41  ;;  %4023 = vmatprep.mubr.bf16.mxu0 %v25798_v39 }
 0x23c   :  { %v21215_v47 = vadd.f32 %v15618_v50, %v21010_v42  ;;  %5293 = vmatprep.mubr.bf16.mxu1 %v25798_v39 }
 0x23e   :  { %v15619_v55 = vpop.f32.mrb[164].mxu1 }
 0x23f   :  { %v15620_v3 = vpop.f32.mrb[165].mxu1 }
 0x240   :  { %v15621_v12 = vadd.f32 %v15620_v3, %v15619_v55  ;;  %v15622_v24 = vpop.f32.mrb[166].mxu1 }
 0x241   :  { %v15623_v1 = vpop.f32.mrb[167].mxu1 }
 0x242   :  { %v21219_v7 = vadd.f32 %v15621_v12, %v21034_v59  ;;  %v15624_v56 = vadd.f32 %v15623_v1, %v15622_v24  ;;  %14428 = vmatmul.mubr.msk.bf16.vlgmr.msra.gmra.mrb[0].mxu0 %vm3062_vm0, %v21102_v13 }
 0x243   :  { %4033 = vmatprep.mubr.bf16.mxu0 %v25798_v39 }
 0x244   :  { %v21225_v15 = vadd.f32 %v15624_v56, %v21046_v2 }
 0x246   :  { %v15625_v42 = vpop.f32.mrb[168].mxu1 }
 0x247   :  { %v15626_v4 = vpop.f32.mrb[169].mxu1 }
 0x248   :  { %v15627_v14 = vadd.f32 %v15626_v4, %v15625_v42  ;;  %v15628_v63 = vpop.f32.mrb[170].mxu1 }
 0x249   :  { %v15629_v29 = vpop.f32.mrb[171].mxu1 }
 0x24a   :  { %v21228_v26 = vadd.f32 %v15627_v14, %v21060_v6  ;;  %v15630_v53 = vadd.f32 %v15629_v29, %v15628_v63  ;;  %14429 = vmatmul.mubr.msk.bf16.gmra.mrb[4].mxu0 %vm3062_vm0, %v21127_v43 }
 0x24b   :  { %4043 = vmatprep.mubr.bf16.mxu0 %v25798_v39 }
 0x24c   :  { %v21234_v59 = vadd.f32 %v15630_v53, %v21072_v33 }
 0x24e   :  { %v15631_v13 = vpop.f32.mrb[172].mxu1 }
 0x24f   :  { %v15632_v2 = vpop.f32.mrb[173].mxu1 }
 0x250   :  { %v15633_v25 = vadd.f32 %v15632_v2, %v15631_v13  ;;  %v15634_v28 = vpop.f32.mrb[174].mxu1 }
 0x251   :  { %v15635_v10 = vpop.f32.mrb[175].mxu1 }
 0x252   :  { %v21237_v30 = vadd.f32 %v15633_v25, %v21086_v34  ;;  %v15636_v52 = vadd.f32 %v15635_v10, %v15634_v28  ;;  %14430 = vmatmul.mubr.msk.bf16.gmra.mrb[8].mxu0 %vm3062_vm0, %v21129_v40 }
 0x253   :  { %4053 = vmatprep.mubr.bf16.mxu0 %v25798_v39 }
 0x254   :  { %v21243_v6 = vadd.f32 %v15636_v52, %v21098_v48 }
 0x256   :  { %v15637_v43 = vpop.f32.mrb[176].mxu1 }
 0x257   :  { %v15638_v33 = vpop.f32.mrb[177].mxu1 }
 0x258   :  { %v15639_v16 = vadd.f32 %v15638_v33, %v15637_v43  ;;  %v15640_v62 = vpop.f32.mrb[178].mxu1 }
 0x259   :  { %v15641_v45 = vpop.f32.mrb[179].mxu1 }
 0x25a   :  { %v21246_v17 = vadd.f32 %v15639_v16, %v21112_v46  ;;  %v15642_v18 = vadd.f32 %v15641_v45, %v15640_v62  ;;  %14431 = vmatmul.mubr.msk.bf16.gmra.mrb[12].mxu0 %vm3062_vm0, %v21155_v35 }
 0x25b   :  { %4063 = vmatprep.mubr.bf16.mxu0 %v25798_v39 }
 0x25c   :  { %v21252_v34 = vadd.f32 %v15642_v18, %v21125_v37 }
 0x25e   :  { %v15643_v40 = vpop.f32.mrb[180].mxu1 }
 0x25f   :  { %v15644_v48 = vpop.f32.mrb[181].mxu1 }
 0x260   :  { %v15645_v22 = vadd.f32 %v15644_v48, %v15643_v40  ;;  %v15646_v8 = vpop.f32.mrb[182].mxu1 }
 0x261   :  { %v15647_v54 = vpop.f32.mrb[183].mxu1 }
 0x262   :  { %v21255_v58 = vadd.f32 %v15645_v22, %v21139_v49  ;;  %v15648_v0 = vadd.f32 %v15647_v54, %v15646_v8  ;;  %14432 = vmatmul.mubr.msk.bf16.gmra.mrb[16].mxu0 %vm3062_vm0, %v21157_v20 }
 0x263   :  { %4073 = vmatprep.mubr.bf16.mxu0 %v25798_v39 }
 0x264   :  { %v21261_v46 = vadd.f32 %v15648_v0, %v21153_v31 }
 0x266   :  { %v15649_v35 = vpop.f32.mrb[184].mxu1 }
 0x267   :  { %v15650_v37 = vpop.f32.mrb[185].mxu1 }
 0x268   :  { %v15651_v23 = vadd.f32 %v15650_v37, %v15649_v35  ;;  %v15652_v51 = vpop.f32.mrb[186].mxu1 }
 0x269   :  { %v15653_v21 = vpop.f32.mrb[187].mxu1 }
 0x26a   :  { %v21264_v19 = vadd.f32 %v15651_v23, %v21167_v57  ;;  %v15654_v27 = vadd.f32 %v15653_v21, %v15652_v51  ;;  %14433 = vmatmul.mubr.msk.bf16.gmra.mrb[20].mxu0 %vm3062_vm0, %v21183_v11 }
 0x26b   :  { %4083 = vmatprep.mubr.bf16.mxu0 %v25798_v39 }
 0x26c   :  { %v21270_v49 = vadd.f32 %v15654_v27, %v21181_v9 }
 0x26e   :  { %v15655_v20 = vpop.f32.mrb[188].mxu1 }
 0x26f   :  { %v15656_v31 = vpop.f32.mrb[189].mxu1 }
 0x270   :  { %v15657_v38 = vadd.f32 %v15656_v31, %v15655_v20  ;;  %v15658_v50 = vpop.f32.mrb[190].mxu1 }
 0x271   :  { %v15659_v55 = vpop.f32.mrb[191].mxu1 }
 0x272   :  { %v21273_v3 = vadd.f32 %v15657_v38, %v21195_v60  ;;  %v15660_v12 = vadd.f32 %v15659_v55, %v15658_v50  ;;  %14434 = vmatmul.mubr.msk.bf16.gmra.mrb[24].mxu0 %vm3062_vm0, %v21185_v5 }
 0x273   :  { %4093 = vmatprep.mubr.bf16.mxu0 %v25798_v39 }
 0x274   :  { %v21279_v57 = vadd.f32 %v15660_v12, %v21203_v36 }
 0x276   :  { %v15677_v11 = vpop.f32.mrb[192].mxu1 }
 0x277   :  { %v15678_v9 = vpop.f32.mrb[193].mxu1 }
 0x278   :  { %v15679_v24 = vadd.f32 %v15678_v9, %v15677_v11  ;;  %v15680_v1 = vpop.f32.mrb[194].mxu1 }
 0x279   :  { %v15681_v56 = vpop.f32.mrb[195].mxu1 }
 0x27a   :  { %v15682_v42 = vadd.f32 %v15681_v56, %v15680_v1  ;;  %14435 = vmatmul.mubr.msk.bf16.gmra.mrb[28].mxu0 %vm3062_vm0, %v21205_v41  ;;  %v21284_v60 = vadd.f32 %v15679_v24, %v21208_v32 }
 0x27b   :  { %15 = vsyncpa [#allocation3], 0  ;;  %s18370_s16 = smov 64   ;;  %vm5236_vm1 = vcmask 523264   ;;  %vm6884_vm2 = vcmask 785408   ;;  %s18371_s29 = smov [#allocation2]  }
 0x27c   :  { %v21287_v5 = vadd.f32 %v15682_v42, %v21215_v47  ;;  %s14027_s30 = sshll.u32 %s18371_s29, 4  ;;  %s14028_s30 = int_to_ptr.vmem [resolvable:$true] %s14027_s30 }
 0x27d   :  { %s18345_s11 = scalar_lea.vmem %s14028_s30, 34816  ;;  %p18350_p1 = scmp.lt.s32.totalorder %s14028_s30, %s14028_s30 }
 0x27e   :  { %v15683_v4 = vpop.f32.mrb[196].mxu1  ;;  %p18346_p0 = scmp.ne.s32.totalorder %s14028_s30, %s18345_s11  ;;  %p18351_p2 = scmp.lt.s32.totalorder %s18345_s11, %s18345_s11 }
 0x27f   :  { %v15684_v14 = vpop.f32.mrb[197].mxu1 }
 0x280   :  { %v15685_v36 = vadd.f32 %v15684_v14, %v15683_v4  ;;  %v15686_v63 = vpop.f32.mrb[198].mxu1  ;;  %p18352_p3 = por %p18351_p2, %p18350_p1 }
 0x281   :  { %v15687_v29 = vpop.f32.mrb[199].mxu1 }
 0x282   :  { %v15688_v53 = vadd.f32 %v15687_v29, %v15686_v63  ;;  %v21290_v13 = vadd.f32 %v15685_v36, %v21219_v7  ;;  %p18353_p4 = pnand %p18352_p3, %p18346_p0 }
 0x284   :  { %v21293_v2 = vadd.f32 %v15688_v53, %v21225_v15 }
 0x286   :  { %v15689_v41 = vpop.f32.mrb[200].mxu1 }
 0x287   :  { %v15690_v25 = vpop.f32.mrb[201].mxu1 }
 0x288   :  { %v15691_v32 = vadd.f32 %v15690_v25, %v15689_v41  ;;  %v15692_v28 = vpop.f32.mrb[202].mxu1 }
 0x289   :  { %v15693_v10 = vpop.f32.mrb[203].mxu1 }
 0x28a   :  { %v15694_v52 = vadd.f32 %v15693_v10, %v15692_v28  ;;  %v21296_v47 = vadd.f32 %v15691_v32, %v21228_v26 }
 0x28c   :  { %v21299_v43 = vadd.f32 %v15694_v52, %v21234_v59 }
 0x28e   :  { %v15695_v33 = vpop.f32.mrb[204].mxu1 }
 0x28f   :  { %v15696_v16 = vpop.f32.mrb[205].mxu1 }
 0x290   :  { %v15697_v62 = vadd.f32 %v15696_v16, %v15695_v33  ;;  %v15698_v7 = vpop.f32.mrb[206].mxu1 }
 0x291   :  { %v15699_v45 = vpop.f32.mrb[207].mxu1 }
 0x292   :  { %v15700_v18 = vadd.f32 %v15699_v45, %v15698_v7  ;;  %v21302_v15 = vadd.f32 %v15697_v62, %v21237_v30 }
 0x294   :  { %v21305_v40 = vadd.f32 %v15700_v18, %v21243_v6 }
 0x296   :  { %v15701_v48 = vpop.f32.mrb[208].mxu1 }
 0x297   :  { %v15702_v22 = vpop.f32.mrb[209].mxu1 }
 0x298   :  { %v15703_v8 = vadd.f32 %v15702_v22, %v15701_v48  ;;  %v15704_v26 = vpop.f32.mrb[210].mxu1 }
 0x299   :  { %v15705_v54 = vpop.f32.mrb[211].mxu1 }
 0x29a   :  { %v15706_v0 = vadd.f32 %v15705_v54, %v15704_v26  ;;  %v21308_v59 = vadd.f32 %v15703_v8, %v21246_v17 }
 0x29c   :  { %v21311_v35 = vadd.f32 %v15706_v0, %v21252_v34 }
 0x29e   :  { %v15707_v37 = vpop.f32.mrb[212].mxu1 }
 0x29f   :  { %v15708_v23 = vpop.f32.mrb[213].mxu1 }
 0x2a0   :  { %v15709_v51 = vadd.f32 %v15708_v23, %v15707_v37  ;;  %v15710_v30 = vpop.f32.mrb[214].mxu1 }
 0x2a1   :  { %v15711_v21 = vpop.f32.mrb[215].mxu1 }
 0x2a2   :  { %v15712_v27 = vadd.f32 %v15711_v21, %v15710_v30  ;;  %v21314_v6 = vadd.f32 %v15709_v51, %v21255_v58 }
 0x2a4   :  { %v21317_v20 = vadd.f32 %v15712_v27, %v21261_v46 }
 0x2a6   :  { %v15713_v31 = vpop.f32.mrb[216].mxu1 }
 0x2a7   :  { %v15714_v38 = vpop.f32.mrb[217].mxu1 }
 0x2a8   :  { %v15715_v50 = vadd.f32 %v15714_v38, %v15713_v31  ;;  %v15716_v17 = vpop.f32.mrb[218].mxu1 }
 0x2a9   :  { %v15717_v55 = vpop.f32.mrb[219].mxu1 }
 0x2aa   :  { %v15718_v12 = vadd.f32 %v15717_v55, %v15716_v17  ;;  %v21320_v34 = vadd.f32 %v15715_v50, %v21264_v19 }
 0x2ac   :  { %v21323_v11 = vadd.f32 %v15718_v12, %v21270_v49 }
 0x2ae   :  { %v15719_v9 = vpop.f32.mrb[220].mxu1 }
 0x2af   :  { %v15720_v24 = vpop.f32.mrb[221].mxu1 }
 0x2b0   :  { %v15721_v1 = vadd.f32 %v15720_v24, %v15719_v9  ;;  %v15722_v58 = vpop.f32.mrb[222].mxu1 }
 0x2b1   :  { %v15723_v56 = vpop.f32.mrb[223].mxu1 }
 0x2b2   :  { %v15724_v42 = vadd.f32 %v15723_v56, %v15722_v58  ;;  %v21326_v46 = vadd.f32 %v15721_v1, %v21273_v3 }
 0x2b4   :  { %v21329_v4 = vadd.f32 %v15724_v42, %v21279_v57 }
 0x2b6   :  { %v15741_v14 = vpop.f32.mrb[224].mxu1 }
 0x2b7   :  { %v15742_v36 = vpop.f32.mrb[225].mxu1 }
 0x2b8   :  { %v15743_v63 = vadd.f32 %v15742_v36, %v15741_v14  ;;  %v15744_v19 = vpop.f32.mrb[226].mxu1 }
 0x2b9   :  { %v15745_v29 = vpop.f32.mrb[227].mxu1 }
 0x2ba   :  { %v15746_v53 = vadd.f32 %v15745_v29, %v15744_v19  ;;  %v4818_v49 = vadd.f32 %v15743_v63, %v21284_v60 }
 0x2bc   :  { %v21333_v41 = vadd.f32 %v15746_v53, %v21287_v5 }
 0x2be   :  { %v15747_v25 = vpop.f32.mrb[228].mxu1 }
 0x2bf   :  { %v15748_v32 = vpop.f32.mrb[229].mxu1 }
 0x2c0   :  { %v15749_v28 = vadd.f32 %v15748_v32, %v15747_v25  ;;  %v15750_v10 = vpop.f32.mrb[230].mxu1 }
 0x2c1   :  { %v15751_v3 = vpop.f32.mrb[231].mxu1 }
 0x2c2   :  { %v15752_v52 = vadd.f32 %v15751_v3, %v15750_v10  ;;  %v4826_v57 = vadd.f32 %v15749_v28, %v21290_v13 }
 0x2c4   :  { %v4829_v33 = vadd.f32 %v15752_v52, %v21293_v2 }
 0x2c6   :  { %v15753_v16 = vpop.f32.mrb[232].mxu1 }
 0x2c7   :  { %v15754_v62 = vpop.f32.mrb[233].mxu1 }
 0x2c8   :  { %v15755_v7 = vadd.f32 %v15754_v62, %v15753_v16  ;;  %v15756_v45 = vpop.f32.mrb[234].mxu1 }
 0x2c9   :  { %v15757_v18 = vpop.f32.mrb[235].mxu1 }
 0x2ca   :  { %v15758_v48 = vadd.f32 %v15757_v18, %v15756_v45  ;;  %v4834_v60 = vadd.f32 %v15755_v7, %v21296_v47 }
 0x2cc   :  { %v21339_v5 = vadd.f32 %v15758_v48, %v21299_v43 }
 0x2ce   :  { %v15759_v22 = vpop.f32.mrb[236].mxu1 }
 0x2cf   :  { %v15760_v8 = vpop.f32.mrb[237].mxu1 }
 0x2d0   :  { %v15761_v26 = vadd.f32 %v15760_v8, %v15759_v22  ;;  %v15762_v54 = vpop.f32.mrb[238].mxu1 }
 0x2d1   :  { %v15763_v0 = vpop.f32.mrb[239].mxu1 }
 0x2d2   :  { %v15764_v37 = vadd.f32 %v15763_v0, %v15762_v54  ;;  %v4842_v13 = vadd.f32 %v15761_v26, %v21302_v15 }
 0x2d4   :  { %v4845_v2 = vadd.f32 %v15764_v37, %v21305_v40 }
 0x2d6   :  { %v15765_v23 = vpop.f32.mrb[240].mxu1 }
 0x2d7   :  { %v15766_v51 = vpop.f32.mrb[241].mxu1 }
 0x2d8   :  { %v15767_v30 = vadd.f32 %v15766_v51, %v15765_v23  ;;  %v15768_v21 = vpop.f32.mrb[242].mxu1 }
 0x2d9   :  { %v15769_v27 = vpop.f32.mrb[243].mxu1 }
 0x2da   :  { %v15770_v31 = vadd.f32 %v15769_v27, %v15768_v21  ;;  %v4850_v47 = vadd.f32 %v15767_v30, %v21308_v59 }
 0x2dc   :  { %v4853_v43 = vadd.f32 %v15770_v31, %v21311_v35 }
 0x2de   :  { %v15771_v38 = vpop.f32.mrb[244].mxu1 }
 0x2df   :  { %v15772_v50 = vpop.f32.mrb[245].mxu1 }
 0x2e0   :  { %v15773_v17 = vadd.f32 %v15772_v50, %v15771_v38  ;;  %v15774_v55 = vpop.f32.mrb[246].mxu1 }
 0x2e1   :  { %v15775_v12 = vpop.f32.mrb[247].mxu1 }
 0x2e2   :  { %v15776_v9 = vadd.f32 %v15775_v12, %v15774_v55  ;;  %v4858_v15 = vadd.f32 %v15773_v17, %v21314_v6 }
 0x2e4   :  { %v4861_v40 = vadd.f32 %v15776_v9, %v21317_v20 }
 0x2e6   :  { %v15777_v24 = vpop.f32.mrb[248].mxu1 }
 0x2e7   :  { %v15778_v1 = vpop.f32.mrb[249].mxu1 }
 0x2e8   :  { %v15779_v58 = vadd.f32 %v15778_v1, %v15777_v24  ;;  %v15780_v56 = vpop.f32.mrb[250].mxu1  ;;  %v21363_v1 = vsub.s32 0, %v19833_v44 }
 0x2e9   :  { %v15781_v42 = vpop.f32.mrb[251].mxu1 }
 0x2ea   :  { %v15782_v14 = vadd.f32 %v15781_v42, %v15780_v56  ;;  %v4866_v59 = vadd.f32 %v15779_v58, %v21320_v34 }
 0x2ec   :  { %v4869_v35 = vadd.f32 %v15782_v14, %v21323_v11 }
 0x2ee   :  { %v15783_v36 = vpop.f32.mrb[252].mxu1 }
 0x2ef   :  { %v15784_v63 = vpop.f32.mrb[253].mxu1 }
 0x2f0   :  { %v15785_v19 = vadd.f32 %v15784_v63, %v15783_v36  ;;  %v15786_v29 = vpop.f32.mrb[254].mxu1  ;;  %v18070_v63 = vld [vmem:[%s25789_s2] sm:$0x7] }
 0x2f1   :  { %v15787_v53 = vpop.f32.mrb[255].mxu1 }
 0x2f2   :  { %v15788_v25 = vadd.f32 %v15787_v53, %v15786_v29  ;;  %v4874_v6 = vadd.f32 %v15785_v19, %v21326_v46  ;;  %v21374_v19 = vrot.slane %v18070_v63, %v21363_v1 }
 0x2f4   :  { %v4877_v20 = vadd.f32 %v15788_v25, %v21329_v4 }
 0x2f6   :  { %v15869_v32 = vpop.f32.mrb[0].mxu1 }
 0x2f7   :  { %v4923_v28 = vadd.f32 %v15869_v32, %v4826_v57  ;;  %v4914_v10 = vpop.f32.mrb[1].mxu1 }
 0x2f8   :  { %v4915_v3 = vadd.f32 %v4914_v10, %v4818_v49  ;;  %v15870_v52 = vpop.f32.mrb[2].mxu1 }
 0x2f9   :  { %v4926_v16 = vadd.f32 %v15870_v52, %v4829_v33  ;;  %v4917_v62 = vpop.f32.mrb[3].mxu1  ;;  %v4985_v11 = vmax.f32 %v4923_v28, 0.0 }
 0x2fa   :  { %v4918_v34 = vadd.f32 %v4917_v62, %v21333_v41  ;;  %v4979_v45 = vmax.f32 %v4915_v3, 0.0 }
 0x2fb   :  { %v4988_v7 = vmax.f32 %v4926_v16, 0.0 }
 0x2fc   :  { %v4982_v18 = vmax.f32 %v4918_v34, 0.0 }
 0x2fd   :  { %v5042_v48 = vpack.c.bf16 %v4988_v7, %v4985_v11 }
 0x2fe   :  { %v15873_v22 = vpop.f32.mrb[4].mxu1  ;;  %v21352_v8 = vpack.c.bf16 %v4982_v18, %v4979_v45 }
 0x2ff   :  { %v4939_v46 = vadd.f32 %v15873_v22, %v4842_v13  ;;  %v4930_v26 = vpop.f32.mrb[5].mxu1  ;;  %5210 = vrot.lane.b32.xlu1 %v5042_v48, %s18370_s16 }
 0x300   :  { %v4931_v4 = vadd.f32 %v4930_v26, %v4834_v60  ;;  %v15874_v49 = vpop.f32.mrb[6].mxu1 }
 0x301   :  { %v4942_v57 = vadd.f32 %v15874_v49, %v4845_v2  ;;  %v4933_v33 = vpop.f32.mrb[7].mxu1  ;;  %v4997_v41 = vmax.f32 %v4939_v46, 0.0 }
 0x302   :  { %v4934_v54 = vadd.f32 %v4933_v33, %v21339_v5  ;;  %v4991_v37 = vmax.f32 %v4931_v4, 0.0 }
 0x303   :  { %v5000_v0 = vmax.f32 %v4942_v57, 0.0 }
 0x304   :  { %v4994_v23 = vmax.f32 %v4934_v54, 0.0 }
 0x305   :  { %v21356_v51 = vpack.c.bf16 %v5000_v0, %v4997_v41 }
 0x306   :  { %v15877_v30 = vpop.f32.mrb[8].mxu1  ;;  %v21358_v21 = vpack.c.bf16 %v4994_v23, %v4991_v37 }
 0x307   :  { %v4955_v13 = vadd.f32 %v15877_v30, %v4858_v15  ;;  %v4946_v27 = vpop.f32.mrb[9].mxu1 }
 0x308   :  { %v4947_v31 = vadd.f32 %v4946_v27, %v4850_v47  ;;  %v15878_v38 = vpop.f32.mrb[10].mxu1  ;;  %v21368_v47 = vsub.s32 1, %v19833_v44 }
 0x309   :  { %v4958_v50 = vadd.f32 %v15878_v38, %v4861_v40  ;;  %v4949_v60 = vpop.f32.mrb[11].mxu1  ;;  %v5009_v2 = vmax.f32 %v4955_v13, 0.0 }
 0x30a   :  { %v4950_v17 = vadd.f32 %v4949_v60, %v4853_v43  ;;  %v5003_v12 = vmax.f32 %v4947_v31, 0.0  ;;  %v21377_v25 = vrot.slane %v18070_v63, %v21368_v47 }
 0x30b   :  { %v5012_v55 = vmax.f32 %v4958_v50, 0.0 }
 0x30c   :  { %v5006_v5 = vmax.f32 %v4950_v17, 0.0 }
 0x30d   :  { %v21360_v9 = vpack.c.bf16 %v5012_v55, %v5009_v2 }
 0x30e   :  { %v15881_v24 = vpop.f32.mrb[12].mxu1  ;;  %v21365_v58 = vpack.c.bf16 %v5006_v5, %v5003_v12 }
 0x30f   :  { %v4971_v56 = vadd.f32 %v15881_v24, %v4874_v6  ;;  %v4962_v15 = vpop.f32.mrb[13].mxu1 }
 0x310   :  { %v4963_v40 = vadd.f32 %v4962_v15, %v4866_v59  ;;  %v15882_v42 = vpop.f32.mrb[14].mxu1 }
 0x311   :  { %v4974_v43 = vadd.f32 %v15882_v42, %v4877_v20  ;;  %v4965_v14 = vpop.f32.mrb[15].mxu1  ;;  %v5021_v29 = vmax.f32 %v4971_v56, 0.0 }
 0x312   :  { %v4966_v36 = vadd.f32 %v4965_v14, %v4869_v35  ;;  %v5015_v6 = vmax.f32 %v4963_v40, 0.0 }
 0x313   :  { %v5024_v53 = vmax.f32 %v4974_v43, 0.0 }
 0x314   :  { %v5018_v32 = vmax.f32 %v4966_v36, 0.0 }
 0x315   :  { %v4025_v28 = vpop.f32.mrb[0].mxu0  ;;  %v21379_v59 = vpack.c.bf16 %v5024_v53, %v5021_v29 }
 0x316   :  { %v15907_v20 = vadd.f32 %v4025_v28, %v21374_v19  ;;  %v4027_v35 = vpop.f32.mrb[1].mxu0  ;;  %v21382_v10 = vpack.c.bf16 %v5018_v32, %v5015_v6 }
 0x317   :  { %v15908_v3 = vadd.f32 %v4027_v35, %v21377_v25  ;;  %v4029_v52 = vpop.f32.mrb[2].mxu0 }
 0x318   :  { %v15909_v16 = vadd.f32 %v4029_v52, %v21374_v19  ;;  %v4031_v62 = vpop.f32.mrb[3].mxu0  ;;  %v4977_v11 = vmax.f32 %v15907_v20, 0.0 }
 0x319   :  { %v15910_v34 = vadd.f32 %v4031_v62, %v21377_v25  ;;  %v4978_v45 = vmax.f32 %v15908_v3, 0.0 }
 0x31a   :  { %v4980_v7 = vmax.f32 %v15909_v16, 0.0 }
 0x31b   :  { %v4981_v18 = vmax.f32 %v15910_v34, 0.0 }
 0x31c   :  { %v21387_v48 = vpack.c.bf16 %v4980_v7, %v4977_v11 }
 0x31d   :  { %v21389_v22 = vpack.c.bf16 %v4981_v18, %v4978_v45  ;;  %v4035_v46 = vpop.f32.mrb[4].mxu0 }
 0x31e   :  { %v15911_v26 = vadd.f32 %v4035_v46, %v21374_v19  ;;  %v4037_v4 = vpop.f32.mrb[5].mxu0 }
 0x31f   :  { %v15912_v49 = vadd.f32 %v4037_v4, %v21377_v25  ;;  %v4039_v57 = vpop.f32.mrb[6].mxu0  ;;  %5204 = vrot.lane.b32.xlu0 %v21389_v22, %s18370_s16 }
 0x320   :  { %v15913_v33 = vadd.f32 %v4039_v57, %v21374_v19  ;;  %v4041_v54 = vpop.f32.mrb[7].mxu0  ;;  %v4983_v0 = vmax.f32 %v15911_v26, 0.0 }
 0x321   :  { %v15914_v41 = vadd.f32 %v4041_v54, %v21377_v25  ;;  %v4984_v23 = vmax.f32 %v15912_v49, 0.0 }
 0x322   :  { %v4986_v37 = vmax.f32 %v15913_v33, 0.0 }
 0x323   :  { %v4987_v30 = vmax.f32 %v15914_v41, 0.0  ;;  %5206 = vrot.lane.b32.xlu0 %v21352_v8, %s18370_s16 }
 0x324   :  { %v21399_v13 = vpack.c.bf16 %v4986_v37, %v4983_v0 }
 0x325   :  { %v21401_v27 = vpack.c.bf16 %v4987_v30, %v4984_v23  ;;  %v4045_v31 = vpop.f32.mrb[8].mxu0 }
 0x326   :  { %25826 = vst [vmem:[#allocation7_spill] sm:$0xff] %v21399_v13  ;;  %v15915_v38 = vadd.f32 %v4045_v31, %v21374_v19  ;;  %v4047_v50 = vpop.f32.mrb[9].mxu0  ;;  %v17370_v13 = vld [vmem:[%s25795_s8 + $0x660] ss:$68 sps:$4 sm:$0xff]  }
 0x327   :  { %v15916_v60 = vadd.f32 %v4047_v50, %v21377_v25  ;;  %v4049_v17 = vpop.f32.mrb[10].mxu0  ;;  %5208 = vrot.lane.b32.xlu1 %v21401_v27, %s18370_s16 }
 0x328   :  { %v15917_v2 = vadd.f32 %v4049_v17, %v21374_v19  ;;  %v4051_v55 = vpop.f32.mrb[11].mxu0  ;;  %v4989_v8 = vmax.f32 %v15915_v38, 0.0 }
 0x329   :  { %v15918_v12 = vadd.f32 %v4051_v55, %v21377_v25  ;;  %v4990_v24 = vmax.f32 %v15916_v60, 0.0 }
 0x32a   :  { %v4992_v5 = vmax.f32 %v15917_v2, 0.0 }
 0x32b   :  { %v4993_v56 = vmax.f32 %v15918_v12, 0.0  ;;  %5214 = vrot.lane.b32.xlu1 %v21358_v21, %s18370_s16 }
 0x32c   :  { %v21411_v15 = vpack.c.bf16 %v4992_v5, %v4989_v8 }
 0x32d   :  { %v21413_v40 = vpack.c.bf16 %v4993_v56, %v4990_v24  ;;  %v4055_v42 = vpop.f32.mrb[12].mxu0 }
 0x32e   :  { %25827 = vst [vmem:[#allocation8_spill] sm:$0xff] %v21411_v15  ;;  %v15919_v43 = vadd.f32 %v4055_v42, %v21374_v19  ;;  %v4057_v14 = vpop.f32.mrb[13].mxu0 }
 0x32f   :  { %25828 = vst [vmem:[#allocation9_spill] sm:$0xff] %v21413_v40  ;;  %v15920_v36 = vadd.f32 %v4057_v14, %v21377_v25  ;;  %v4059_v63 = vpop.f32.mrb[14].mxu0  ;;  %5218 = vrot.lane.b32.xlu1 %v21356_v51, %s18370_s16  ;;  %5212 = vrot.lane.b32.xlu0 %v21413_v40, %s18370_s16 }
 0x330   :  { %v15921_v29 = vadd.f32 %v4059_v63, %v21374_v19  ;;  %v4061_v21 = vpop.f32.mrb[15].mxu0  ;;  %v4995_v6 = vmax.f32 %v15919_v43, 0.0 }
 0x331   :  { %v15922_v53 = vadd.f32 %v4061_v21, %v21377_v25  ;;  %v4996_v28 = vmax.f32 %v15920_v36, 0.0 }
 0x332   :  { %v4998_v32 = vmax.f32 %v15921_v29, 0.0 }
 0x333   :  { %v4999_v20 = vmax.f32 %v15922_v53, 0.0  ;;  %5222 = vrot.lane.b32.xlu1 %v21365_v58, %s18370_s16 }
 0x334   :  { %v21425_v35 = vpack.c.bf16 %v4998_v32, %v4995_v6 }
 0x335   :  { %v21427_v3 = vpack.c.bf16 %v4999_v20, %v4996_v28  ;;  %v4065_v51 = vpop.f32.mrb[16].mxu0 }
 0x336   :  { %25829 = vst [vmem:[#allocation10_spill] sm:$0xff] %v21425_v35  ;;  %v15923_v52 = vadd.f32 %v4065_v51, %v21374_v19  ;;  %v4067_v16 = vpop.f32.mrb[17].mxu0 }
 0x337   :  { %25830 = vst [vmem:[#allocation11_spill] sm:$0xff] %v21427_v3  ;;  %v15924_v62 = vadd.f32 %v4067_v16, %v21377_v25  ;;  %v4069_v34 = vpop.f32.mrb[18].mxu0  ;;  %5226 = vrot.lane.b32.xlu1 %v21360_v9, %s18370_s16  ;;  %5216 = vrot.lane.b32.xlu0 %v21427_v3, %s18370_s16 }
 0x338   :  { %v15925_v11 = vadd.f32 %v4069_v34, %v21374_v19  ;;  %v4071_v58 = vpop.f32.mrb[19].mxu0  ;;  %v5001_v45 = vmax.f32 %v15923_v52, 0.0 }
 0x339   :  { %v15926_v7 = vadd.f32 %v4071_v58, %v21377_v25  ;;  %v5002_v46 = vmax.f32 %v15924_v62, 0.0 }
 0x33a   :  { %v5004_v18 = vmax.f32 %v15925_v11, 0.0 }
 0x33b   :  { %v5005_v26 = vmax.f32 %v15926_v7, 0.0  ;;  %5230 = vrot.lane.b32.xlu1 %v21382_v10, %s18370_s16 }
 0x33c   :  { %v21439_v4 = vpack.c.bf16 %v5004_v18, %v5001_v45 }
 0x33d   :  { %v21441_v49 = vpack.c.bf16 %v5005_v26, %v5002_v46  ;;  %v4075_v9 = vpop.f32.mrb[20].mxu0 }
 0x33e   :  { %25831 = vst [vmem:[#allocation12_spill] sm:$0xff] %v21439_v4  ;;  %v15927_v57 = vadd.f32 %v4075_v9, %v21374_v19  ;;  %v4077_v33 = vpop.f32.mrb[21].mxu0 }
 0x33f   :  { %25832 = vst [vmem:[#allocation13_spill] sm:$0xff] %v21441_v49  ;;  %v15928_v54 = vadd.f32 %v4077_v33, %v21377_v25  ;;  %v4079_v41 = vpop.f32.mrb[22].mxu0  ;;  %5234 = vrot.lane.b32.xlu1 %v21379_v59, %s18370_s16  ;;  %5220 = vrot.lane.b32.xlu0 %v21441_v49, %s18370_s16 }
 0x340   :  { %v15929_v0 = vadd.f32 %v4079_v41, %v21374_v19  ;;  %v4081_v10 = vpop.f32.mrb[23].mxu0  ;;  %v5007_v23 = vmax.f32 %v15927_v57, 0.0 }
 0x341   :  { %v15930_v37 = vadd.f32 %v4081_v10, %v21377_v25  ;;  %v5008_v31 = vmax.f32 %v15928_v54, 0.0 }
 0x342   :  { %v5010_v30 = vmax.f32 %v15929_v0, 0.0 }
 0x343   :  { %v5011_v38 = vmax.f32 %v15930_v37, 0.0 }
 0x344   :  { %v21451_v50 = vpack.c.bf16 %v5010_v30, %v5007_v23 }
 0x345   :  { %v21453_v60 = vpack.c.bf16 %v5011_v38, %v5008_v31  ;;  %v4085_v17 = vpop.f32.mrb[24].mxu0 }
 0x346   :  { %25833 = vst [vmem:[#allocation14_spill] sm:$0xff] %v21451_v50  ;;  %v15931_v2 = vadd.f32 %v4085_v17, %v21374_v19  ;;  %v4087_v59 = vpop.f32.mrb[25].mxu0 }
 0x347   :  { %25834 = vst [vmem:[#allocation15_spill] sm:$0xff] %v21453_v60  ;;  %v15932_v55 = vadd.f32 %v4087_v59, %v21377_v25  ;;  %v4089_v12 = vpop.f32.mrb[26].mxu0  ;;  %5224 = vrot.lane.b32.xlu0 %v21453_v60, %s18370_s16 }
 0x348   :  { %v15933_v8 = vadd.f32 %v4089_v12, %v21374_v19  ;;  %v4091_v5 = vpop.f32.mrb[27].mxu0  ;;  %v5013_v56 = vmax.f32 %v15931_v2, 0.0  ;;  %v17122_v12 = vld [vmem:[%s25791_s4 + $0x4] ss:$8 sps:$4 sm:$0xff]  }
 0x349   :  { %v15934_v24 = vadd.f32 %v4091_v5, %v21377_v25  ;;  %v5014_v43 = vmax.f32 %v15932_v55, 0.0  ;;  %v17120_v55 = vld [vmem:[%s25791_s4] ss:$8 sps:$4 sm:$0xff]   ;;  %5559 = vmatprep.subr.bf16.mxu0 %v17122_v12 }
 0x34a   :  { %v5016_v42 = vmax.f32 %v15933_v8, 0.0  ;;  %v17125_v8 = vld [vmem:[%s25791_s4 + $0x14] ss:$8 sps:$4 sm:$0xff]   ;;  %5560 = vmatpush1.bf16.msra.mxu0 %v17120_v55  ;;  %v17150_v55 = vld [vmem:[%s25791_s4 + $0xa0] ss:$8 sps:$4 sm:$0xff]  }
 0x34b   :  { %v5017_v14 = vmax.f32 %v15934_v24, 0.0  ;;  %v17123_v24 = vld [vmem:[%s25791_s4 + $0x10] ss:$8 sps:$4 sm:$0xff]   ;;  %5561 = vmatprep.subr.bf16.mxu0 %v17125_v8  ;;  %v17109_v12 = vld [vmem:[%s25790_s3 + $0x28] sm:$0xff]  }
 0x34c   :  { %v21461_v36 = vpack.c.bf16 %v5016_v42, %v5013_v56  ;;  %v17104_v42 = vld [vmem:[%s25790_s3] sm:$0xff]   ;;  %v17110_v8 = vld [vmem:[%s25790_s3 + $0x30] sm:$0xff]  }
 0x34d   :  { %v21463_v63 = vpack.c.bf16 %v5017_v14, %v5014_v43  ;;  %v4095_v29 = vpop.f32.mrb[28].mxu0  ;;  %v17128_v43 = vld [vmem:[%s25791_s4 + $0x24] ss:$8 sps:$4 sm:$0xff]   ;;  %v17126_v14 = vld [vmem:[%s25791_s4 + $0x20] ss:$8 sps:$4 sm:$0xff]  }
 0x34e   :  { %25835 = vst [vmem:[#allocation16_spill] sm:$0xff] %v21461_v36  ;;  %v15935_v21 = vadd.f32 %v4095_v29, %v21374_v19  ;;  %v4097_v53 = vpop.f32.mrb[29].mxu0  ;;  %5562 = vmatpush1.bf16.msra.mxu0 %v17123_v24  ;;  %v17131_v29 = vld [vmem:[%s25791_s4 + $0x34] ss:$8 sps:$4 sm:$0xff]   ;;  %v17112_v24 = vld [vmem:[%s25790_s3 + $0x40] sm:$0xff]  }
 0x34f   :  { %25836 = vst [vmem:[#allocation17_spill] sm:$0xff] %v21463_v63  ;;  %v15936_v6 = vadd.f32 %v4097_v53, %v21377_v25  ;;  %v4099_v32 = vpop.f32.mrb[30].mxu0  ;;  %5228 = vrot.lane.b32.xlu0 %v21463_v63, %s18370_s16  ;;  %5563 = vmatprep.subr.bf16.mxu0 %v17128_v43  ;;  %v17105_v53 = vld [vmem:[%s25790_s3 + $0x8] sm:$0xff]   ;;  %v17114_v43 = vld [vmem:[%s25790_s3 + $0x50] sm:$0xff]  }
 0x350   :  { %v15937_v28 = vadd.f32 %v4099_v32, %v21374_v19  ;;  %v4101_v20 = vpop.f32.mrb[31].mxu0  ;;  %v5019_v52 = vmax.f32 %v15935_v21, 0.0  ;;  %v17129_v21 = vld [vmem:[%s25791_s4 + $0x30] ss:$8 sps:$4 sm:$0xff]   ;;  %v17132_v32 = vld [vmem:[%s25791_s4 + $0x40] ss:$8 sps:$4 sm:$0xff]  }
 0x351   :  { %v15938_v51 = vadd.f32 %v4101_v20, %v21377_v25  ;;  %v5020_v62 = vmax.f32 %v15936_v6, 0.0  ;;  %v17134_v6 = vld [vmem:[%s25791_s4 + $0x44] ss:$8 sps:$4 sm:$0xff]   ;;  %v17135_v20 = vld [vmem:[%s25791_s4 + $0x50] ss:$8 sps:$4 sm:$0xff]  }
 0x352   :  { %v5022_v16 = vmax.f32 %v15937_v28, 0.0  ;;  %5564 = vmatpush1.bf16.msra.mxu0 %v17126_v14  ;;  %v17137_v28 = vld [vmem:[%s25791_s4 + $0x54] ss:$8 sps:$4 sm:$0xff]   ;;  %v17159_v63 = vld [vmem:[%s25791_s4 + $0xd0] ss:$8 sps:$4 sm:$0xff]  }
 0x353   :  { %v5023_v34 = vmax.f32 %v15938_v51, 0.0  ;;  %5565 = vmatprep.subr.bf16.mxu0 %v17131_v29  ;;  %v17106_v51 = vld [vmem:[%s25790_s3 + $0x10] sm:$0xff]   ;;  %v17115_v14 = vld [vmem:[%s25790_s3 + $0x58] sm:$0xff]  }
 0x354   :  { %v21471_v11 = vpack.c.bf16 %v5022_v16, %v5019_v52  ;;  %v17140_v52 = vld [vmem:[%s25791_s4 + $0x64] ss:$8 sps:$4 sm:$0xff]   ;;  %v17138_v16 = vld [vmem:[%s25791_s4 + $0x60] ss:$8 sps:$4 sm:$0xff]   ;;  %v17155_v29 = vld [vmem:[%s25791_s4 + $0xb4] ss:$8 sps:$4 sm:$0xff]  }
 0x355   :  { %v21473_v58 = vpack.c.bf16 %v5023_v34, %v5020_v62  ;;  %v17143_v62 = vld [vmem:[%s25791_s4 + $0x74] ss:$8 sps:$4 sm:$0xff]   ;;  %v17141_v34 = vld [vmem:[%s25791_s4 + $0x70] ss:$8 sps:$4 sm:$0xff]  }
 0x356   :  { %25837 = vst [vmem:[#allocation18_spill] sm:$0xff] %v21471_v11  ;;  %5566 = vmatpush1.bf16.msra.mxu0 %v17129_v21  ;;  %v17153_v21 = vld [vmem:[%s25791_s4 + $0xb0] ss:$8 sps:$4 sm:$0xff]   ;;  %v17156_v11 = vld [vmem:[%s25791_s4 + $0xc0] ss:$8 sps:$4 sm:$0xff]  }
 0x357   :  { %25838 = vst [vmem:[#allocation19_spill] sm:$0xff] %v21473_v58  ;;  %5232 = vrot.lane.b32.xlu0 %v21473_v58, %s18370_s16  ;;  %5567 = vmatprep.subr.bf16.mxu0 %v17134_v6  ;;  %v17116_v6 = vld [vmem:[%s25790_s3 + $0x60] sm:$0xff]   ;;  %v17161_v58 = vld [vmem:[%s25791_s4 + $0xd4] ss:$8 sps:$4 sm:$0xff]  }
 0x35a   :  { %5568 = vmatpush1.bf16.msra.mxu0 %v17132_v32  ;;  %v17117_v32 = vld [vmem:[%s25790_s3 + $0x68] sm:$0xff]  }
 0x35b   :  { %5569 = vmatprep.subr.bf16.mxu0 %v17137_v28  ;;  %v17118_v28 = vld [vmem:[%s25790_s3 + $0x70] sm:$0xff]  }
 0x35e   :  { %5570 = vmatpush1.bf16.msra.mxu0 %v17135_v20  ;;  %v17119_v20 = vld [vmem:[%s25790_s3 + $0x78] sm:$0xff]  }
 0x35f   :  { %5571 = vmatprep.subr.bf16.mxu0 %v17140_v52  ;;  %v21703_v52 = vld [vmem:[%s25791_s4 + $0x180] ss:$8 sps:$4 sm:$0xff]  }
 0x362   :  { %5572 = vmatpush1.bf16.msra.mxu0 %v17138_v16  ;;  %v21710_v16 = vld [vmem:[%s25791_s4 + $0x194] ss:$8 sps:$4 sm:$0xff]  }
 0x363   :  { %5573 = vmatprep.subr.bf16.mxu0 %v17143_v62  ;;  %v21715_v62 = vld [vmem:[%s25791_s4 + $0x190] ss:$8 sps:$4 sm:$0xff]  }
 0x366   :  { %5574 = vmatpush1.bf16.msra.mxu0 %v17141_v34  ;;  %v21722_v34 = vld [vmem:[%s25791_s4 + $0x1a4] ss:$8 sps:$4 sm:$0xff]  }
 0x371   :  { %v21477_v45 = vpop.permute.xlu1 %5210 }
 0x391   :  { %v5205_v7 = vpop.permute.xlu0 %5204 }
 0x395   :  { %v21479_v18 = vpop.permute.xlu0 %5206 }
 0x396   :  { %5261 = vmatprep.subr.bf16.mxu1 %v21479_v18  ;;  %v21484_v19 = vsel %vm5236_vm1, %v5205_v7, %v21479_v18  ;;  %v17107_v7 = vld [vmem:[%s25790_s3 + $0x18] sm:$0xff]  }
 0x397   :  { %5262 = vmatpush1.bf16.msra.mxu1 %v21484_v19 }
 0x398   :  { %5263 = vmatprep.subr.bf16.mxu1 %v21477_v45 }
 0x399   :  { %v5209_v25 = vpop.permute.xlu1 %5208 }
 0x39a   :  { %v21490_v46 = vsel %vm5236_vm1, %v5209_v25, %v21477_v45  ;;  %v17146_v25 = vld [vmem:[%s25791_s4 + $0x84] ss:$8 sps:$4 sm:$0xff]  }
 0x39b   :  { %5264 = vmatpush1.bf16.msra.mxu1 %v21490_v46  ;;  %5575 = vmatprep.subr.bf16.mxu0 %v17146_v25  ;;  %v21734_v25 = vld [vmem:[%s25791_s4 + $0x1b0] ss:$8 sps:$4 sm:$0xff]  }
 0x39d   :  { %v21493_v26 = vpop.permute.xlu1 %5214 }
 0x39e   :  { %5265 = vmatprep.subr.bf16.mxu1 %v21493_v26 }
 0x3a1   :  { %v5213_v9 = vpop.permute.xlu0 %5212  ;;  %v21500_v33 = vpop.permute.xlu1 %5218 }
 0x3a2   :  { %v21498_v57 = vsel %vm5236_vm1, %v5213_v9, %v21493_v26  ;;  %v17144_v9 = vld [vmem:[%s25791_s4 + $0x80] ss:$8 sps:$4 sm:$0xff]  }
 0x3a3   :  { %5266 = vmatpush1.bf16.msra.mxu1 %v21498_v57  ;;  %5576 = vmatpush1.bf16.msra.mxu0 %v17144_v9  ;;  %v21739_v9 = vld [vmem:[%s25791_s4 + $0x1b4] ss:$8 sps:$4 sm:$0xff]  }
 0x3a4   :  { %5267 = vmatprep.subr.bf16.mxu1 %v21500_v33 }
 0x3a5   :  { %v21508_v0 = vpop.permute.xlu1 %5222 }
 0x3a9   :  { %v5217_v54 = vpop.permute.xlu0 %5216  ;;  %v21516_v23 = vpop.permute.xlu1 %5226 }
 0x3aa   :  { %v21506_v41 = vsel %vm5236_vm1, %v5217_v54, %v21500_v33  ;;  %v17149_v54 = vld [vmem:[%s25791_s4 + $0x94] ss:$8 sps:$4 sm:$0xff]  }
 0x3ab   :  { %5268 = vmatpush1.bf16.msra.mxu1 %v21506_v41  ;;  %5577 = vmatprep.subr.bf16.mxu0 %v17149_v54  ;;  %v21746_v54 = vld [vmem:[%s25791_s4 + $0x1c4] ss:$8 sps:$4 sm:$0xff]  }
 0x3ac   :  { %5269 = vmatprep.subr.bf16.mxu1 %v21508_v0 }
 0x3ad   :  { %v21524_v38 = vpop.permute.xlu1 %5230 }
 0x3b1   :  { %v5221_v10 = vpop.permute.xlu0 %5220  ;;  %v21532_v59 = vpop.permute.xlu1 %5234 }
 0x3b2   :  { %v21514_v37 = vsel %vm5236_vm1, %v5221_v10, %v21508_v0  ;;  %v17147_v10 = vld [vmem:[%s25791_s4 + $0x90] ss:$8 sps:$4 sm:$0xff]  }
 0x3b3   :  { %5270 = vmatpush1.bf16.msra.mxu1 %v21514_v37  ;;  %5578 = vmatpush1.bf16.msra.mxu0 %v17147_v10  ;;  %v21751_v10 = vld [vmem:[%s25791_s4 + $0x1c0] ss:$8 sps:$4 sm:$0xff]  }
 0x3b4   :  { %5271 = vmatprep.subr.bf16.mxu1 %v21516_v23 }
 0x3b9   :  { %v5225_v30 = vpop.permute.xlu0 %5224 }
 0x3ba   :  { %v21522_v31 = vsel %vm5236_vm1, %v5225_v30, %v21516_v23  ;;  %v17108_v30 = vld [vmem:[%s25790_s3 + $0x20] sm:$0xff]  }
 0x3bb   :  { %5272 = vmatpush1.bf16.msra.mxu1 %v21522_v31 }
 0x3bc   :  { %5273 = vmatprep.subr.bf16.mxu1 %v21524_v38 }
 0x3c1   :  { %v5229_v17 = vpop.permute.xlu0 %5228 }
 0x3c2   :  { %v21530_v2 = vsel %vm5236_vm1, %v5229_v17, %v21524_v38  ;;  %v17152_v17 = vld [vmem:[%s25791_s4 + $0xa4] ss:$8 sps:$4 sm:$0xff]  }
 0x3c3   :  { %5274 = vmatpush1.bf16.msra.mxu1 %v21530_v2  ;;  %5579 = vmatprep.subr.bf16.mxu0 %v17152_v17  ;;  %v21763_v17 = vld [vmem:[%s25791_s4 + $0x1d0] ss:$8 sps:$4 sm:$0xff]  }
 0x3c4   :  { %5275 = vmatprep.subr.bf16.mxu1 %v21532_v59  ;;  %5580 = vmatpush1.bf16.msra.mxu0 %v17150_v55  ;;  %v21770_v55 = vld [vmem:[%s25791_s4 + $0x1e4] ss:$8 sps:$4 sm:$0xff]  }
 0x3c5   :  { %5581 = vmatprep.subr.bf16.mxu0 %v17155_v29  ;;  %v21818_v29 = vld [vmem:[%s25791_s4 + $0x224] ss:$8 sps:$4 sm:$0xff]  }
 0x3c8   :  { %5582 = vmatpush1.bf16.msra.mxu0 %v17153_v21  ;;  %v21823_v21 = vld [vmem:[%s25791_s4 + $0x220] ss:$8 sps:$4 sm:$0xff]  }
 0x3c9   :  { %v5233_v5 = vpop.permute.xlu0 %5232 }
 0x3ca   :  { %v21550_v56 = vsel %vm5236_vm1, %v5233_v5, %v21532_v59  ;;  %v17111_v5 = vld [vmem:[%s25790_s3 + $0x38] sm:$0xff]  }
 0x3cb   :  { %5276 = vmatpush1.bf16.msra.mxu1 %v21550_v56 }
 0x3cc   :  { %5977 = vmatprep.subr.bf16.mxu1 %v21479_v18 }
 0x3ce   :  { %5294 = vmatmul.mubr.bf16.vlgmr.msra.gmra.mrb[16].mxu1 %v17104_v42  ;;  %v17113_v42 = vld [vmem:[%s25790_s3 + $0x48] sm:$0xff]  }
 0x3cf   :  { %5978 = vmatpush1.bf16.msra.mxu1 %v21484_v19  ;;  %5303 = vmatprep.mubr.bf16.mxu1 %v25798_v39 }
 0x3d0   :  { %5979 = vmatprep.subr.bf16.mxu1 %v21477_v45 }
 0x3d3   :  { %5980 = vmatpush1.bf16.msra.mxu1 %v21490_v46 }
 0x3d4   :  { %5981 = vmatprep.subr.bf16.mxu1 %v21493_v26 }
 0x3d6   :  { %5304 = vmatmul.mubr.bf16.gmra.mrb[20].mxu1 %v17105_v53  ;;  %v17158_v53 = vld [vmem:[%s25791_s4 + $0xc4] ss:$8 sps:$4 sm:$0xff]  }
 0x3d7   :  { %5982 = vmatpush1.bf16.msra.mxu1 %v21498_v57  ;;  %5313 = vmatprep.mubr.bf16.mxu1 %v25798_v39 }
 0x3d8   :  { %5983 = vmatprep.subr.bf16.mxu1 %v21500_v33  ;;  %5816 = vmatprep.subr.bf16.mxu0 %v17158_v53  ;;  %v21830_v53 = vld [vmem:[%s25791_s4 + $0x234] ss:$8 sps:$4 sm:$0xff]  }
 0x3db   :  { %5984 = vmatpush1.bf16.msra.mxu1 %v21506_v41 }
 0x3dc   :  { %5985 = vmatprep.subr.bf16.mxu1 %v21508_v0 }
 0x3de   :  { %5314 = vmatmul.mubr.bf16.gmra.mrb[24].mxu1 %v17106_v51  ;;  %v21698_v51 = vld [vmem:[%s25791_s4 + $0x184] ss:$8 sps:$4 sm:$0xff]  }
 0x3df   :  { %5986 = vmatpush1.bf16.msra.mxu1 %v21514_v37  ;;  %5323 = vmatprep.mubr.bf16.mxu1 %v25798_v39 }
 0x3e0   :  { %5987 = vmatprep.subr.bf16.mxu1 %v21516_v23 }
 0x3e3   :  { %5988 = vmatpush1.bf16.msra.mxu1 %v21522_v31 }
 0x3e4   :  { %5989 = vmatprep.subr.bf16.mxu1 %v21524_v38 }
 0x3e6   :  { %5324 = vmatmul.mubr.bf16.gmra.mrb[28].mxu1 %v17107_v7  ;;  %v21727_v7 = vld [vmem:[%s25791_s4 + $0x1a0] ss:$8 sps:$4 sm:$0xff]  }
 0x3e7   :  { %5990 = vmatpush1.bf16.msra.mxu1 %v21530_v2  ;;  %5333 = vmatprep.mubr.bf16.mxu1 %v25798_v39 }
 0x3e8   :  { %5991 = vmatprep.subr.bf16.mxu1 %v21532_v59 }
 0x3eb   :  { %5992 = vmatpush1.bf16.msra.mxu1 %v21550_v56 }
 0x3ec   :  { %15883 = vmatprep.subr.bf16.mxu1 %v21698_v51 }
 0x3ee   :  { %5334 = vmatmul.mubr.bf16.gmra.mrb[32].mxu1 %v17108_v30  ;;  %v21757_v30 = vld [vmem:[%s25791_s4 + $0x1d4] ss:$8 sps:$4 sm:$0xff]  }
 0x3ef   :  { %5343 = vmatprep.mubr.bf16.mxu1 %v25798_v39 }
 0x3f6   :  { %5344 = vmatmul.mubr.bf16.gmra.mrb[36].mxu1 %v17109_v12  ;;  %v21775_v12 = vld [vmem:[%s25791_s4 + $0x1e0] ss:$8 sps:$4 sm:$0xff]  }
 0x3f7   :  { %5353 = vmatprep.mubr.bf16.mxu1 %v25798_v39 }
 0x3fe   :  { %5354 = vmatmul.mubr.bf16.gmra.mrb[40].mxu1 %v17110_v8  ;;  %v21781_v8 = vld [vmem:[%s25791_s4 + $0x1f4] ss:$8 sps:$4 sm:$0xff]  }
 0x3ff   :  { %5363 = vmatprep.mubr.bf16.mxu1 %v25798_v39 }
 0x406   :  { %5364 = vmatmul.mubr.bf16.gmra.mrb[44].mxu1 %v17111_v5  ;;  %v21787_v5 = vld [vmem:[%s25791_s4 + $0x1f0] ss:$8 sps:$4 sm:$0xff]  }
 0x407   :  { %6009 = vmatprep.mubr.bf16.mxu1 %v25798_v39 }
 0x40e   :  { %6010 = vmatmul.mubr.bf16.vlgmr.msra.gmra.mrb[48].mxu1 %v17112_v24  ;;  %v21794_v24 = vld [vmem:[%s25791_s4 + $0x204] ss:$8 sps:$4 sm:$0xff]  }
 0x40f   :  { %6019 = vmatprep.mubr.bf16.mxu1 %v25798_v39  ;;  %15895 = vmatpush1.bf16.msra.mxu1 %v21703_v52 }
 0x410   :  { %15884 = vmatprep.subr.bf16.mxu1 %v21710_v16 }
 0x413   :  { %15896 = vmatpush1.bf16.msra.mxu1 %v21715_v62 }
 0x414   :  { %15885 = vmatprep.subr.bf16.mxu1 %v21722_v34 }
 0x416   :  { %6020 = vmatmul.mubr.bf16.gmra.mrb[52].mxu1 %v17113_v42  ;;  %v21799_v42 = vld [vmem:[%s25791_s4 + $0x200] ss:$8 sps:$4 sm:$0xff]  }
 0x417   :  { %6029 = vmatprep.mubr.bf16.mxu1 %v25798_v39  ;;  %15897 = vmatpush1.bf16.msra.mxu1 %v21727_v7 }
 0x418   :  { %15886 = vmatprep.subr.bf16.mxu1 %v21739_v9 }
 0x41b   :  { %15898 = vmatpush1.bf16.msra.mxu1 %v21734_v25 }
 0x41c   :  { %15887 = vmatprep.subr.bf16.mxu1 %v21746_v54 }
 0x41e   :  { %6030 = vmatmul.mubr.bf16.gmra.mrb[56].mxu1 %v17114_v43  ;;  %v21805_v43 = vld [vmem:[%s25791_s4 + $0x214] ss:$8 sps:$4 sm:$0xff]  }
 0x41f   :  { %6039 = vmatprep.mubr.bf16.mxu1 %v25798_v39  ;;  %15899 = vmatpush1.bf16.msra.mxu1 %v21751_v10 }
 0x420   :  { %15888 = vmatprep.subr.bf16.mxu1 %v21757_v30 }
 0x423   :  { %15900 = vmatpush1.bf16.msra.mxu1 %v21763_v17 }
 0x424   :  { %15889 = vmatprep.subr.bf16.mxu1 %v21770_v55 }
 0x426   :  { %6040 = vmatmul.mubr.bf16.gmra.mrb[60].mxu1 %v17115_v14  ;;  %v21811_v14 = vld [vmem:[%s25791_s4 + $0x210] ss:$8 sps:$4 sm:$0xff]  }
 0x427   :  { %6049 = vmatprep.mubr.bf16.mxu1 %v25798_v39  ;;  %15901 = vmatpush1.bf16.msra.mxu1 %v21775_v12 }
 0x428   :  { %15890 = vmatprep.subr.bf16.mxu1 %v21781_v8 }
 0x42b   :  { %15902 = vmatpush1.bf16.msra.mxu1 %v21787_v5 }
 0x42c   :  { %15891 = vmatprep.subr.bf16.mxu1 %v21794_v24 }
 0x42e   :  { %6050 = vmatmul.mubr.bf16.gmra.mrb[64].mxu1 %v17116_v6  ;;  %v21835_v6 = vld [vmem:[%s25791_s4 + $0x230] ss:$8 sps:$4 sm:$0xff]  }
 0x42f   :  { %6059 = vmatprep.mubr.bf16.mxu1 %v25798_v39  ;;  %15903 = vmatpush1.bf16.msra.mxu1 %v21799_v42 }
 0x430   :  { %15892 = vmatprep.subr.bf16.mxu1 %v21805_v43 }
 0x433   :  { %15904 = vmatpush1.bf16.msra.mxu1 %v21811_v14 }
 0x434   :  { %15893 = vmatprep.subr.bf16.mxu1 %v21818_v29 }
 0x436   :  { %6060 = vmatmul.mubr.bf16.gmra.mrb[68].mxu1 %v17117_v32 }
 0x437   :  { %6069 = vmatprep.mubr.bf16.mxu1 %v25798_v39  ;;  %15905 = vmatpush1.bf16.msra.mxu1 %v21823_v21 }
 0x438   :  { %15894 = vmatprep.subr.bf16.mxu1 %v21830_v53 }
 0x43b   :  { %15906 = vmatpush1.bf16.msra.mxu1 %v21835_v6 }
 0x43e   :  { %6070 = vmatmul.mubr.bf16.gmra.mrb[72].mxu1 %v17118_v28 }
 0x43f   :  { %6079 = vmatprep.mubr.bf16.mxu1 %v25798_v39 }
 0x446   :  { %6080 = vmatmul.mubr.bf16.gmra.mrb[76].mxu1 %v17119_v20 }
 0x4a1   :  { %v5295_v32 = vpop.f32.mrb[16].mxu1 }
 0x4a2   :  { %v5297_v28 = vpop.f32.mrb[17].mxu1 }
 0x4a3   :  { %v5299_v20 = vpop.f32.mrb[18].mxu1 }
 0x4a4   :  { %v5374_v39 = vpack.c.bf16 %v5299_v20, %v5295_v32  ;;  %v5301_v61 = vpop.f32.mrb[19].mxu1 }
 0x4a5   :  { %v5375_v44 = vpack.c.bf16 %v5301_v61, %v5297_v28  ;;  %v17164_v61 = vld [vmem:[%s25791_s4 + $0xe4] ss:$8 sps:$4 sm:$0xff]  }
 0x4a7   :  { %14524 = vmatprep.mubr.msk.bf16.mxu0 %vm5236_vm1, %v5375_v44  ;;  %v17162_v44 = vld [vmem:[%s25791_s4 + $0xe0] ss:$8 sps:$4 sm:$0xff]  }
 0x4a8   :  { %5592 = vmatmul.mubr.bf16.vlgmr.msra.gmra.mrb[32].mxu0 %v5374_v39  ;;  %v17167_v39 = vld [vmem:[%s25791_s4 + $0xf4] ss:$8 sps:$4 sm:$0xff]  }
 0x4a9   :  { %v5305_v36 = vpop.f32.mrb[20].mxu1  ;;  %5817 = vmatpush1.bf16.msra.mxu0 %v17156_v11 }
 0x4aa   :  { %v5307_v32 = vpop.f32.mrb[21].mxu1  ;;  %5818 = vmatprep.subr.bf16.mxu0 %v17161_v58 }
 0x4ab   :  { %v5309_v28 = vpop.f32.mrb[22].mxu1 }
 0x4ac   :  { %v5376_v20 = vpack.c.bf16 %v5309_v28, %v5305_v36  ;;  %v5311_v50 = vpop.f32.mrb[23].mxu1  ;;  %v17165_v36 = vld [vmem:[%s25791_s4 + $0xf0] ss:$8 sps:$4 sm:$0xff]  }
 0x4ad   :  { %v5377_v60 = vpack.c.bf16 %v5311_v50, %v5307_v32  ;;  %5819 = vmatpush1.bf16.msra.mxu0 %v17159_v63  ;;  %v17170_v63 = vld [vmem:[%s25791_s4 + $0x104] ss:$8 sps:$4 sm:$0xff]  }
 0x4ae   :  { %5820 = vmatprep.subr.bf16.mxu0 %v17164_v61 }
 0x4af   :  { %14525 = vmatprep.mubr.msk.bf16.mxu0 %vm5236_vm1, %v5377_v60  ;;  %v17168_v60 = vld [vmem:[%s25791_s4 + $0x100] ss:$8 sps:$4 sm:$0xff]  }
 0x4b0   :  { %5602 = vmatmul.mubr.bf16.gmra.mrb[36].mxu0 %v5376_v20  ;;  %v17173_v20 = vld [vmem:[%s25791_s4 + $0x114] ss:$8 sps:$4 sm:$0xff]  }
 0x4b1   :  { %v5315_v11 = vpop.f32.mrb[24].mxu1  ;;  %5821 = vmatpush1.bf16.msra.mxu0 %v17162_v44 }
 0x4b2   :  { %v5317_v50 = vpop.f32.mrb[25].mxu1  ;;  %5822 = vmatprep.subr.bf16.mxu0 %v17167_v39  ;;  %v17171_v39 = vld [vmem:[%s25791_s4 + $0x110] ss:$8 sps:$4 sm:$0xff]  }
 0x4b3   :  { %v5319_v58 = vpop.f32.mrb[26].mxu1 }
 0x4b4   :  { %v5378_v32 = vpack.c.bf16 %v5319_v58, %v5315_v11  ;;  %v5321_v61 = vpop.f32.mrb[27].mxu1 }
 0x4b5   :  { %v5379_v28 = vpack.c.bf16 %v5321_v61, %v5317_v50  ;;  %5823 = vmatpush1.bf16.msra.mxu0 %v17165_v36  ;;  %v17176_v36 = vld [vmem:[%s25791_s4 + $0x124] ss:$8 sps:$4 sm:$0xff]  }
 0x4b6   :  { %5824 = vmatprep.subr.bf16.mxu0 %v17170_v63 }
 0x4b7   :  { %14526 = vmatprep.mubr.msk.bf16.mxu0 %vm5236_vm1, %v5379_v28  ;;  %v17179_v28 = vld [vmem:[%s25791_s4 + $0x134] ss:$8 sps:$4 sm:$0xff]  }
 0x4b8   :  { %5612 = vmatmul.mubr.bf16.gmra.mrb[40].mxu0 %v5378_v32  ;;  %v17174_v32 = vld [vmem:[%s25791_s4 + $0x120] ss:$8 sps:$4 sm:$0xff]  }
 0x4b9   :  { %v5325_v44 = vpop.f32.mrb[28].mxu1  ;;  %5825 = vmatpush1.bf16.msra.mxu0 %v17168_v60 }
 0x4ba   :  { %v5327_v11 = vpop.f32.mrb[29].mxu1  ;;  %5826 = vmatprep.subr.bf16.mxu0 %v17173_v20  ;;  %v17177_v20 = vld [vmem:[%s25791_s4 + $0x130] ss:$8 sps:$4 sm:$0xff]  }
 0x4bb   :  { %v5329_v50 = vpop.f32.mrb[30].mxu1 }
 0x4bc   :  { %v5380_v63 = vpack.c.bf16 %v5329_v50, %v5325_v44  ;;  %v5331_v58 = vpop.f32.mrb[31].mxu1 }
 0x4bd   :  { %v5381_v61 = vpack.c.bf16 %v5331_v58, %v5327_v11  ;;  %5827 = vmatpush1.bf16.msra.mxu0 %v17171_v39  ;;  %v17182_v39 = vld [vmem:[%s25791_s4 + $0x144] ss:$8 sps:$4 sm:$0xff]  }
 0x4be   :  { %5828 = vmatprep.subr.bf16.mxu0 %v17176_v36 }
 0x4bf   :  { %14527 = vmatprep.mubr.msk.bf16.mxu0 %vm5236_vm1, %v5381_v61  ;;  %v17185_v61 = vld [vmem:[%s25791_s4 + $0x154] ss:$8 sps:$4 sm:$0xff]  }
 0x4c0   :  { %5622 = vmatmul.mubr.bf16.gmra.mrb[44].mxu0 %v5380_v63  ;;  %v17180_v63 = vld [vmem:[%s25791_s4 + $0x140] ss:$8 sps:$4 sm:$0xff]  }
 0x4c1   :  { %v5335_v60 = vpop.f32.mrb[32].mxu1  ;;  %5829 = vmatpush1.bf16.msra.mxu0 %v17174_v32 }
 0x4c2   :  { %v5337_v44 = vpop.f32.mrb[33].mxu1  ;;  %5830 = vmatprep.subr.bf16.mxu0 %v17179_v28  ;;  %v17183_v28 = vld [vmem:[%s25791_s4 + $0x150] ss:$8 sps:$4 sm:$0xff]  }
 0x4c3   :  { %v5339_v11 = vpop.f32.mrb[34].mxu1 }
 0x4c4   :  { %v5382_v36 = vpack.c.bf16 %v5339_v11, %v5335_v60  ;;  %v5341_v50 = vpop.f32.mrb[35].mxu1 }
 0x4c5   :  { %v5383_v58 = vpack.c.bf16 %v5341_v50, %v5337_v44  ;;  %5831 = vmatpush1.bf16.msra.mxu0 %v17177_v20  ;;  %v17194_v20 = vld [vmem:[%s25791_s4 + $0x164] ss:$8 sps:$4 sm:$0xff]  }
 0x4c6   :  { %5832 = vmatprep.subr.bf16.mxu0 %v17182_v39 }
 0x4c7   :  { %14528 = vmatprep.mubr.msk.bf16.mxu0 %vm5236_vm1, %v5383_v58  ;;  %v17200_v58 = vld [vmem:[%s25791_s4 + $0x174] ss:$8 sps:$4 sm:$0xff]  }
 0x4c8   :  { %5632 = vmatmul.mubr.bf16.gmra.mrb[48].mxu0 %v5382_v36  ;;  %v17192_v36 = vld [vmem:[%s25791_s4 + $0x160] ss:$8 sps:$4 sm:$0xff]  }
 0x4c9   :  { %v5345_v32 = vpop.f32.mrb[36].mxu1  ;;  %5833 = vmatpush1.bf16.msra.mxu0 %v17180_v63 }
 0x4ca   :  { %v5347_v60 = vpop.f32.mrb[37].mxu1  ;;  %5834 = vmatprep.subr.bf16.mxu0 %v17185_v61  ;;  %v17198_v61 = vld [vmem:[%s25791_s4 + $0x170] ss:$8 sps:$4 sm:$0xff]  }
 0x4cb   :  { %v5349_v44 = vpop.f32.mrb[38].mxu1 }
 0x4cc   :  { %v5384_v39 = vpack.c.bf16 %v5349_v44, %v5345_v32  ;;  %v5351_v11 = vpop.f32.mrb[39].mxu1 }
 0x4cd   :  { %v5385_v50 = vpack.c.bf16 %v5351_v11, %v5347_v60  ;;  %5835 = vmatpush1.bf16.msra.mxu0 %v17183_v28 }
 0x4ce   :  { %5836 = vmatprep.subr.bf16.mxu0 %v17194_v20 }
 0x4cf   :  { %14529 = vmatprep.mubr.msk.bf16.mxu0 %vm5236_vm1, %v5385_v50 }
 0x4d0   :  { %5642 = vmatmul.mubr.bf16.gmra.mrb[52].mxu0 %v5384_v39 }
 0x4d1   :  { %v5355_v63 = vpop.f32.mrb[40].mxu1  ;;  %5837 = vmatpush1.bf16.msra.mxu0 %v17192_v36 }
 0x4d2   :  { %v5357_v32 = vpop.f32.mrb[41].mxu1  ;;  %5838 = vmatprep.subr.bf16.mxu0 %v17200_v58 }
 0x4d3   :  { %v5359_v28 = vpop.f32.mrb[42].mxu1 }
 0x4d4   :  { %v5386_v60 = vpack.c.bf16 %v5359_v28, %v5355_v63  ;;  %v5361_v44 = vpop.f32.mrb[43].mxu1 }
 0x4d5   :  { %v5387_v11 = vpack.c.bf16 %v5361_v44, %v5357_v32  ;;  %5839 = vmatpush1.bf16.msra.mxu0 %v17198_v61 }
 0x4d6   :  { %6274 = vmatprep.subr.bf16.mxu0 %v21698_v51 }
 0x4d7   :  { %14530 = vmatprep.mubr.msk.bf16.mxu0 %vm5236_vm1, %v5387_v11 }
 0x4d8   :  { %5652 = vmatmul.mubr.bf16.gmra.mrb[56].mxu0 %v5386_v60 }
 0x4d9   :  { %v5365_v20 = vpop.f32.mrb[44].mxu1 }
 0x4da   :  { %v5367_v39 = vpop.f32.mrb[45].mxu1 }
 0x4db   :  { %v5369_v50 = vpop.f32.mrb[46].mxu1 }
 0x4dc   :  { %v5388_v36 = vpack.c.bf16 %v5369_v50, %v5365_v20  ;;  %v5371_v4 = vpop.f32.mrb[47].mxu1 }
 0x4dd   :  { %v5389_v49 = vpack.c.bf16 %v5371_v4, %v5367_v39 }
 0x4df   :  { %14531 = vmatprep.mubr.msk.bf16.mxu0 %vm5236_vm1, %v5389_v49 }
 0x4e0   :  { %5662 = vmatmul.mubr.bf16.gmra.mrb[60].mxu0 %v5388_v36 }
 0x4e1   :  { %14556 = vmatprep.mubr.msk.bf16.mxu0 %vm5236_vm1, %v21479_v18  ;;  %v21919_v58 = vpop.f32.mrb[48].mxu1 }
 0x4e2   :  { %v21921_v63 = vpop.f32.mrb[49].mxu1 }
 0x4e3   :  { %v21923_v51 = vpop.f32.mrb[50].mxu1 }
 0x4e4   :  { %v6090_v61 = vpack.c.bf16 %v21923_v51, %v21919_v58  ;;  %v21927_v32 = vpop.f32.mrb[51].mxu1 }
 0x4e5   :  { %v6091_v4 = vpack.c.bf16 %v21927_v32, %v21921_v63 }
 0x4e8   :  { %5849 = vmatmul.mubr.bf16.vlgmr.msra.gmra.mrb[32].mxu0 %v21484_v19 }
 0x4e9   :  { %14557 = vmatprep.mubr.msk.bf16.mxu0 %vm5236_vm1, %v21477_v45  ;;  %6275 = vmatpush1.bf16.msra.mxu0 %v21703_v52  ;;  %v21935_v49 = vpop.f32.mrb[52].mxu1 }
 0x4ea   :  { %6276 = vmatprep.subr.bf16.mxu0 %v21710_v16  ;;  %v21938_v18 = vpop.f32.mrb[53].mxu1 }
 0x4eb   :  { %v21940_v28 = vpop.f32.mrb[54].mxu1 }
 0x4ec   :  { %v6092_v60 = vpack.c.bf16 %v21940_v28, %v21935_v49  ;;  %v21944_v44 = vpop.f32.mrb[55].mxu1 }
 0x4ed   :  { %6277 = vmatpush1.bf16.msra.mxu0 %v21715_v62  ;;  %v6093_v45 = vpack.c.bf16 %v21944_v44, %v21938_v18 }
 0x4ee   :  { %6278 = vmatprep.subr.bf16.mxu0 %v21722_v34 }
 0x4f0   :  { %5859 = vmatmul.mubr.bf16.gmra.mrb[36].mxu0 %v21490_v46 }
 0x4f1   :  { %14558 = vmatprep.mubr.msk.bf16.mxu0 %vm5236_vm1, %v21493_v26  ;;  %6279 = vmatpush1.bf16.msra.mxu0 %v21727_v7  ;;  %v21954_v19 = vpop.f32.mrb[56].mxu1 }
 0x4f2   :  { %6280 = vmatprep.subr.bf16.mxu0 %v21739_v9  ;;  %v21957_v52 = vpop.f32.mrb[57].mxu1 }
 0x4f3   :  { %v21959_v16 = vpop.f32.mrb[58].mxu1 }
 0x4f4   :  { %v6094_v62 = vpack.c.bf16 %v21959_v16, %v21954_v19  ;;  %v21963_v11 = vpop.f32.mrb[59].mxu1 }
 0x4f5   :  { %6281 = vmatpush1.bf16.msra.mxu0 %v21734_v25  ;;  %v6095_v46 = vpack.c.bf16 %v21963_v11, %v21957_v52 }
 0x4f6   :  { %6282 = vmatprep.subr.bf16.mxu0 %v21746_v54 }
 0x4f8   :  { %5869 = vmatmul.mubr.bf16.gmra.mrb[40].mxu0 %v21498_v57 }
 0x4f9   :  { %14559 = vmatprep.mubr.msk.bf16.mxu0 %vm5236_vm1, %v21500_v33  ;;  %v21972_v26 = vpop.f32.mrb[60].mxu1  ;;  %6283 = vmatpush1.bf16.msra.mxu0 %v21751_v10 }
 0x4fa   :  { %v21975_v34 = vpop.f32.mrb[61].mxu1  ;;  %6284 = vmatprep.subr.bf16.mxu0 %v21757_v30 }
 0x4fb   :  { %v21978_v7 = vpop.f32.mrb[62].mxu1 }
 0x4fc   :  { %v6096_v25 = vpack.c.bf16 %v21978_v7, %v21972_v26  ;;  %v21982_v9 = vpop.f32.mrb[63].mxu1 }
 0x4fd   :  { %v6097_v57 = vpack.c.bf16 %v21982_v9, %v21975_v34  ;;  %6285 = vmatpush1.bf16.msra.mxu0 %v21763_v17 }
 0x4fe   :  { %6286 = vmatprep.subr.bf16.mxu0 %v21770_v55 }
 0x500   :  { %5879 = vmatmul.mubr.bf16.gmra.mrb[44].mxu0 %v21506_v41 }
 0x501   :  { %14560 = vmatprep.mubr.msk.bf16.mxu0 %vm5236_vm1, %v21508_v0  ;;  %v6051_v33 = vpop.f32.mrb[64].mxu1  ;;  %6287 = vmatpush1.bf16.msra.mxu0 %v21775_v12 }
 0x502   :  { %v6053_v54 = vpop.f32.mrb[65].mxu1  ;;  %6288 = vmatprep.subr.bf16.mxu0 %v21781_v8 }
 0x503   :  { %v6055_v10 = vpop.f32.mrb[66].mxu1 }
 0x504   :  { %v6098_v30 = vpack.c.bf16 %v6055_v10, %v6051_v33  ;;  %v6057_v20 = vpop.f32.mrb[67].mxu1 }
 0x505   :  { %v6099_v39 = vpack.c.bf16 %v6057_v20, %v6053_v54  ;;  %6289 = vmatpush1.bf16.msra.mxu0 %v21787_v5 }
 0x506   :  { %6290 = vmatprep.subr.bf16.mxu0 %v21794_v24 }
 0x507   :  { %14600 = vmatprep.mubr.msk.bf16.mxu1 %vm5236_vm1, %v6099_v39 }
 0x508   :  { %5889 = vmatmul.mubr.bf16.gmra.mrb[48].mxu0 %v21514_v37  ;;  %6347 = vmatmul.mubr.bf16.vlgmr.msra.gmra.mrb[80].mxu1 %v6098_v30 }
 0x509   :  { %14561 = vmatprep.mubr.msk.bf16.mxu0 %vm5236_vm1, %v21516_v23  ;;  %v6061_v41 = vpop.f32.mrb[68].mxu1  ;;  %6291 = vmatpush1.bf16.msra.mxu0 %v21799_v42 }
 0x50a   :  { %v6063_v0 = vpop.f32.mrb[69].mxu1  ;;  %6292 = vmatprep.subr.bf16.mxu0 %v21805_v43 }
 0x50b   :  { %v6065_v17 = vpop.f32.mrb[70].mxu1 }
 0x50c   :  { %v6100_v55 = vpack.c.bf16 %v6065_v17, %v6061_v41  ;;  %v6067_v12 = vpop.f32.mrb[71].mxu1 }
 0x50d   :  { %v6101_v8 = vpack.c.bf16 %v6067_v12, %v6063_v0  ;;  %6293 = vmatpush1.bf16.msra.mxu0 %v21811_v14 }
 0x50e   :  { %6294 = vmatprep.subr.bf16.mxu0 %v21818_v29 }
 0x50f   :  { %14601 = vmatprep.mubr.msk.bf16.mxu1 %vm5236_vm1, %v6101_v8 }
 0x510   :  { %5899 = vmatmul.mubr.bf16.gmra.mrb[52].mxu0 %v21522_v31  ;;  %6357 = vmatmul.mubr.bf16.gmra.mrb[84].mxu1 %v6100_v55 }
 0x511   :  { %14562 = vmatprep.mubr.msk.bf16.mxu0 %vm5236_vm1, %v21524_v38  ;;  %v6071_v37 = vpop.f32.mrb[72].mxu1  ;;  %6295 = vmatpush1.bf16.msra.mxu0 %v21823_v21 }
 0x512   :  { %v6073_v23 = vpop.f32.mrb[73].mxu1  ;;  %6296 = vmatprep.subr.bf16.mxu0 %v21830_v53 }
 0x513   :  { %v6075_v5 = vpop.f32.mrb[74].mxu1 }
 0x514   :  { %v6102_v24 = vpack.c.bf16 %v6075_v5, %v6071_v37  ;;  %v6077_v42 = vpop.f32.mrb[75].mxu1 }
 0x515   :  { %v6103_v43 = vpack.c.bf16 %v6077_v42, %v6073_v23  ;;  %6297 = vmatpush1.bf16.msra.mxu0 %v21835_v6 }
 0x517   :  { %14602 = vmatprep.mubr.msk.bf16.mxu1 %vm5236_vm1, %v6103_v43 }
 0x518   :  { %5909 = vmatmul.mubr.bf16.gmra.mrb[56].mxu0 %v21530_v2  ;;  %6367 = vmatmul.mubr.bf16.gmra.mrb[88].mxu1 %v6102_v24  ;;  %v25839_v2 = vmov 0  }
 0x519   :  { %14563 = vmatprep.mubr.msk.bf16.mxu0 %vm5236_vm1, %v21532_v59  ;;  %v6081_v31 = vpop.f32.mrb[76].mxu1  ;;  %v6419_v59 = vld [vmem:[%s25792_s5] sm:$0x3] }
 0x51a   :  { %v6083_v38 = vpop.f32.mrb[77].mxu1  ;;  %v22050_v36 = vrot.slane %v6419_v59, %v21368_v47 }
 0x51b   :  { %v6085_v14 = vpop.f32.mrb[78].mxu1 }
 0x51c   :  { %v6104_v29 = vpack.c.bf16 %v6085_v14, %v6081_v31  ;;  %v6087_v21 = vpop.f32.mrb[79].mxu1 }
 0x51d   :  { %v6105_v53 = vpack.c.bf16 %v6087_v21, %v6083_v38 }
 0x51f   :  { %14603 = vmatprep.mubr.msk.bf16.mxu1 %vm5236_vm1, %v6105_v53 }
 0x520   :  { %5919 = vmatmul.mubr.bf16.gmra.mrb[60].mxu0 %v21550_v56  ;;  %6377 = vmatmul.mubr.bf16.gmra.mrb[92].mxu1 %v6104_v29  ;;  %v22047_v56 = vrot.slane %v6419_v59, %v21363_v1 }
 0x521   :  { %14596 = vmatprep.mubr.msk.bf16.mxu0 %vm5236_vm1, %v6091_v4  ;;  %6619 = vmatprep.mubr.bf16.mxu1 %v25839_v2 }
 0x528   :  { %6307 = vmatmul.mubr.bf16.vlgmr.msra.gmra.mrb[32].mxu0 %v6090_v61 }
 0x529   :  { %14597 = vmatprep.mubr.msk.bf16.mxu0 %vm5236_vm1, %v6093_v45 }
 0x530   :  { %6317 = vmatmul.mubr.bf16.gmra.mrb[36].mxu0 %v6092_v60 }
 0x531   :  { %14598 = vmatprep.mubr.msk.bf16.mxu0 %vm5236_vm1, %v6095_v46 }
 0x538   :  { %6327 = vmatmul.mubr.bf16.gmra.mrb[40].mxu0 %v6094_v62 }
 0x539   :  { %14599 = vmatprep.mubr.msk.bf16.mxu0 %vm5236_vm1, %v6097_v57 }
 0x540   :  { %6337 = vmatmul.mubr.bf16.gmra.mrb[44].mxu0 %v6096_v25 }
 0x541   :  { %7379 = vmatprep.mubr.bf16.mxu0 %v25839_v2 }
 0x5db   :  { %v5890_v6 = vpop.f32.mrb[48].mxu0  ;;  %v6348_v50 = vpop.f32.mrb[80].mxu1 }
 0x5dc   :  { %v15939_v58 = vadd.f32 %v6348_v50, %v5890_v6  ;;  %v5892_v63 = vpop.f32.mrb[49].mxu0  ;;  %v6350_v51 = vpop.f32.mrb[81].mxu1 }
 0x5dd   :  { %v15940_v61 = vadd.f32 %v6350_v51, %v5892_v63  ;;  %v5894_v32 = vpop.f32.mrb[50].mxu0  ;;  %v6352_v4 = vpop.f32.mrb[82].mxu1 }
 0x5de   :  { %v6447_v49 = vadd.f32 %v15939_v58, %v22047_v56  ;;  %v15941_v18 = vadd.f32 %v6352_v4, %v5894_v32  ;;  %v5896_v28 = vpop.f32.mrb[51].mxu0  ;;  %v6354_v60 = vpop.f32.mrb[83].mxu1 }
 0x5df   :  { %v6448_v44 = vadd.f32 %v15940_v61, %v22050_v36  ;;  %v15942_v45 = vadd.f32 %v6354_v60, %v5896_v28 }
 0x5e0   :  { %v6449_v19 = vadd.f32 %v15941_v18, %v22047_v56  ;;  %v6479_v16 = vmax.f32 %v6447_v49, 0.0 }
 0x5e1   :  { %v6450_v52 = vadd.f32 %v15942_v45, %v22050_v36  ;;  %v6480_v11 = vmax.f32 %v6448_v44, 0.0 }
 0x5e2   :  { %v6481_v62 = vmax.f32 %v6449_v19, 0.0 }
 0x5e3   :  { %v6482_v46 = vmax.f32 %v6450_v52, 0.0  ;;  %v5900_v26 = vpop.f32.mrb[52].mxu0  ;;  %v6358_v34 = vpop.f32.mrb[84].mxu1 }
 0x5e4   :  { %v22056_v7 = vpack.c.bf16 %v6481_v62, %v6479_v16  ;;  %v15943_v25 = vadd.f32 %v6358_v34, %v5900_v26  ;;  %v5902_v9 = vpop.f32.mrb[53].mxu0  ;;  %v6360_v57 = vpop.f32.mrb[85].mxu1 }
 0x5e5   :  { %v15944_v33 = vadd.f32 %v6360_v57, %v5902_v9  ;;  %v5904_v54 = vpop.f32.mrb[54].mxu0  ;;  %v6362_v10 = vpop.f32.mrb[86].mxu1  ;;  %v22058_v30 = vpack.c.bf16 %v6482_v46, %v6480_v11 }
 0x5e6   :  { %v6451_v20 = vadd.f32 %v15943_v25, %v22047_v56  ;;  %v15945_v39 = vadd.f32 %v6362_v10, %v5904_v54  ;;  %v5906_v41 = vpop.f32.mrb[55].mxu0  ;;  %v6364_v0 = vpop.f32.mrb[87].mxu1 }
 0x5e7   :  { %v6452_v17 = vadd.f32 %v15944_v33, %v22050_v36  ;;  %v15946_v55 = vadd.f32 %v6364_v0, %v5906_v41 }
 0x5e8   :  { %v6453_v12 = vadd.f32 %v15945_v39, %v22047_v56  ;;  %v6483_v37 = vmax.f32 %v6451_v20, 0.0 }
 0x5e9   :  { %v6454_v8 = vadd.f32 %v15946_v55, %v22050_v36  ;;  %v6484_v5 = vmax.f32 %v6452_v17, 0.0 }
 0x5ea   :  { %v6485_v23 = vmax.f32 %v6453_v12, 0.0 }
 0x5eb   :  { %v6486_v24 = vmax.f32 %v6454_v8, 0.0  ;;  %v5910_v42 = vpop.f32.mrb[56].mxu0  ;;  %v6368_v43 = vpop.f32.mrb[88].mxu1 }
 0x5ec   :  { %v22064_v31 = vpack.c.bf16 %v6485_v23, %v6483_v37  ;;  %v15947_v38 = vadd.f32 %v6368_v43, %v5910_v42  ;;  %v5912_v14 = vpop.f32.mrb[57].mxu0  ;;  %v6370_v29 = vpop.f32.mrb[89].mxu1 }
 0x5ed   :  { %v15948_v21 = vadd.f32 %v6370_v29, %v5912_v14  ;;  %v5914_v53 = vpop.f32.mrb[58].mxu0  ;;  %v6372_v59 = vpop.f32.mrb[90].mxu1  ;;  %v22066_v6 = vpack.c.bf16 %v6486_v24, %v6484_v5 }
 0x5ee   :  { %v6455_v50 = vadd.f32 %v15947_v38, %v22047_v56  ;;  %v15949_v58 = vadd.f32 %v6372_v59, %v5914_v53  ;;  %v5916_v63 = vpop.f32.mrb[59].mxu0  ;;  %v6374_v51 = vpop.f32.mrb[91].mxu1 }
 0x5ef   :  { %v6456_v61 = vadd.f32 %v15948_v21, %v22050_v36  ;;  %v15950_v32 = vadd.f32 %v6374_v51, %v5916_v63 }
 0x5f0   :  { %v6457_v4 = vadd.f32 %v15949_v58, %v22047_v56  ;;  %v6487_v18 = vmax.f32 %v6455_v50, 0.0 }
 0x5f1   :  { %v6458_v49 = vadd.f32 %v15950_v32, %v22050_v36  ;;  %v6488_v60 = vmax.f32 %v6456_v61, 0.0 }
 0x5f2   :  { %v6489_v28 = vmax.f32 %v6457_v4, 0.0 }
 0x5f3   :  { %v6490_v44 = vmax.f32 %v6458_v49, 0.0  ;;  %v5920_v45 = vpop.f32.mrb[60].mxu0  ;;  %v6378_v19 = vpop.f32.mrb[92].mxu1 }
 0x5f4   :  { %v22072_v52 = vpack.c.bf16 %v6489_v28, %v6487_v18  ;;  %v15951_v16 = vadd.f32 %v6378_v19, %v5920_v45  ;;  %v5922_v62 = vpop.f32.mrb[61].mxu0  ;;  %v6380_v11 = vpop.f32.mrb[93].mxu1 }
 0x5f5   :  { %v15952_v46 = vadd.f32 %v6380_v11, %v5922_v62  ;;  %v5924_v26 = vpop.f32.mrb[62].mxu0  ;;  %v6382_v34 = vpop.f32.mrb[94].mxu1  ;;  %v22074_v25 = vpack.c.bf16 %v6490_v44, %v6488_v60 }
 0x5f6   :  { %v6459_v9 = vadd.f32 %v15951_v16, %v22047_v56  ;;  %v15953_v57 = vadd.f32 %v6382_v34, %v5924_v26  ;;  %v5926_v33 = vpop.f32.mrb[63].mxu0  ;;  %v6384_v54 = vpop.f32.mrb[95].mxu1 }
 0x5f7   :  { %v6460_v10 = vadd.f32 %v15952_v46, %v22050_v36  ;;  %v15954_v20 = vadd.f32 %v6384_v54, %v5926_v33 }
 0x5f8   :  { %v6461_v39 = vadd.f32 %v15953_v57, %v22047_v56  ;;  %v6491_v0 = vmax.f32 %v6459_v9, 0.0 }
 0x5f9   :  { %v6462_v41 = vadd.f32 %v15954_v20, %v22050_v36  ;;  %v6492_v55 = vmax.f32 %v6460_v10, 0.0 }
 0x5fa   :  { %v6493_v17 = vmax.f32 %v6461_v39, 0.0 }
 0x5fb   :  { %v6494_v12 = vmax.f32 %v6462_v41, 0.0  ;;  %v6308_v8 = vpop.f32.mrb[32].mxu0 }
 0x5fc   :  { %v22080_v37 = vpack.c.bf16 %v6493_v17, %v6491_v0  ;;  %v6431_v23 = vadd.f32 %v22047_v56, %v6308_v8  ;;  %v6310_v5 = vpop.f32.mrb[33].mxu0 }
 0x5fd   :  { %v6432_v24 = vadd.f32 %v22050_v36, %v6310_v5  ;;  %v6312_v42 = vpop.f32.mrb[34].mxu0  ;;  %v22084_v43 = vpack.c.bf16 %v6494_v12, %v6492_v55 }
 0x5fe   :  { %v6433_v38 = vadd.f32 %v22047_v56, %v6312_v42  ;;  %v6314_v14 = vpop.f32.mrb[35].mxu0  ;;  %v6463_v21 = vmax.f32 %v6431_v23, 0.0 }
 0x5ff   :  { %v6434_v29 = vadd.f32 %v22050_v36, %v6314_v14  ;;  %v6464_v59 = vmax.f32 %v6432_v24, 0.0 }
 0x600   :  { %v6465_v53 = vmax.f32 %v6433_v38, 0.0 }
 0x601   :  { %v6466_v50 = vmax.f32 %v6434_v29, 0.0 }
 0x602   :  { %v22088_v58 = vpack.c.bf16 %v6465_v53, %v6463_v21 }
 0x603   :  { %v22090_v63 = vpack.c.bf16 %v6466_v50, %v6464_v59  ;;  %v6318_v51 = vpop.f32.mrb[36].mxu0 }
 0x604   :  { %v6435_v61 = vadd.f32 %v22047_v56, %v6318_v51  ;;  %v6320_v32 = vpop.f32.mrb[37].mxu0 }
 0x605   :  { %v6436_v4 = vadd.f32 %v22050_v36, %v6320_v32  ;;  %v6322_v49 = vpop.f32.mrb[38].mxu0  ;;  %6587 = vmatprep.subr.bf16.mxu1 %v22090_v63  ;;  %7347 = vmatprep.subr.bf16.mxu0 %v22090_v63  ;;  %v17240_v32 = vld [vmem:[%s25793_s6] ss:$8 sps:$4 sm:$0xff]  }
 0x606   :  { %v6437_v18 = vadd.f32 %v22047_v56, %v6322_v49  ;;  %v6324_v28 = vpop.f32.mrb[39].mxu0  ;;  %6588 = vmatpush1.bf16.msra.mxu1 %v22088_v58  ;;  %7348 = vmatpush1.bf16.msra.mxu0 %v22088_v58  ;;  %v6467_v44 = vmax.f32 %v6435_v61, 0.0  ;;  %v17236_v61 = vld [vmem:[%s25790_s3 + $0xc0] sm:$0xff]   ;;  %v17244_v49 = vld [vmem:[%s25793_s6 + $0x10] ss:$8 sps:$4 sm:$0xff]  }
 0x607   :  { %v6438_v60 = vadd.f32 %v22050_v36, %v6324_v28  ;;  %v6468_v19 = vmax.f32 %v6436_v4, 0.0  ;;  %v17246_v4 = vld [vmem:[%s25793_s6 + $0x14] ss:$8 sps:$4 sm:$0xff]   ;;  %v17229_v28 = vld [vmem:[%s25790_s3 + $0x88] sm:$0xff]  }
 0x608   :  { %v6469_v45 = vmax.f32 %v6437_v18, 0.0  ;;  %v17249_v18 = vld [vmem:[%s25793_s6 + $0x24] ss:$8 sps:$4 sm:$0xff]  }
 0x609   :  { %v6470_v16 = vmax.f32 %v6438_v60, 0.0  ;;  %v17237_v60 = vld [vmem:[%s25790_s3 + $0xc8] sm:$0xff]  }
 0x60a   :  { %v22100_v62 = vpack.c.bf16 %v6469_v45, %v6467_v44  ;;  %v17247_v44 = vld [vmem:[%s25793_s6 + $0x20] ss:$8 sps:$4 sm:$0xff]   ;;  %v17253_v45 = vld [vmem:[%s25793_s6 + $0x34] ss:$8 sps:$4 sm:$0xff]  }
 0x60b   :  { %v22102_v11 = vpack.c.bf16 %v6470_v16, %v6468_v19  ;;  %v6328_v46 = vpop.f32.mrb[40].mxu0  ;;  %v17251_v19 = vld [vmem:[%s25793_s6 + $0x30] ss:$8 sps:$4 sm:$0xff]   ;;  %v17256_v16 = vld [vmem:[%s25793_s6 + $0x44] ss:$8 sps:$4 sm:$0xff]  }
 0x60c   :  { %v6439_v26 = vadd.f32 %v22047_v56, %v6328_v46  ;;  %v6330_v34 = vpop.f32.mrb[41].mxu0  ;;  %v17230_v46 = vld [vmem:[%s25790_s3 + $0x90] sm:$0xff]  }
 0x60d   :  { %v6440_v9 = vadd.f32 %v22050_v36, %v6330_v34  ;;  %v6332_v57 = vpop.f32.mrb[42].mxu0  ;;  %6589 = vmatprep.subr.bf16.mxu1 %v22102_v11  ;;  %7349 = vmatprep.subr.bf16.mxu0 %v22102_v11  ;;  %v17254_v34 = vld [vmem:[%s25793_s6 + $0x40] ss:$8 sps:$4 sm:$0xff]  }
 0x60e   :  { %v6441_v33 = vadd.f32 %v22047_v56, %v6332_v57  ;;  %v6334_v54 = vpop.f32.mrb[43].mxu0  ;;  %6590 = vmatpush1.bf16.msra.mxu1 %v22100_v62  ;;  %7350 = vmatpush1.bf16.msra.mxu0 %v22100_v62  ;;  %v6471_v20 = vmax.f32 %v6439_v26, 0.0  ;;  %v17238_v26 = vld [vmem:[%s25790_s3 + $0xd0] sm:$0xff]  }
 0x60f   :  { %v6442_v10 = vadd.f32 %v22050_v36, %v6334_v54  ;;  %v6472_v41 = vmax.f32 %v6440_v9, 0.0  ;;  %v17260_v9 = vld [vmem:[%s25793_s6 + $0x54] ss:$8 sps:$4 sm:$0xff]   ;;  %v17258_v57 = vld [vmem:[%s25793_s6 + $0x50] ss:$8 sps:$4 sm:$0xff]  }
 0x610   :  { %v6473_v39 = vmax.f32 %v6441_v33, 0.0  ;;  %v17263_v33 = vld [vmem:[%s25793_s6 + $0x64] ss:$8 sps:$4 sm:$0xff]   ;;  %v17231_v54 = vld [vmem:[%s25790_s3 + $0x98] sm:$0xff]  }
 0x611   :  { %v6474_v0 = vmax.f32 %v6442_v10, 0.0  ;;  %v17239_v10 = vld [vmem:[%s25790_s3 + $0xd8] sm:$0xff]  }
 0x612   :  { %v22112_v17 = vpack.c.bf16 %v6473_v39, %v6471_v20  ;;  %v17261_v20 = vld [vmem:[%s25793_s6 + $0x60] ss:$8 sps:$4 sm:$0xff]   ;;  %v17267_v39 = vld [vmem:[%s25793_s6 + $0x74] ss:$8 sps:$4 sm:$0xff]  }
 0x613   :  { %v22114_v55 = vpack.c.bf16 %v6474_v0, %v6472_v41  ;;  %v6338_v12 = vpop.f32.mrb[44].mxu0  ;;  %v17265_v41 = vld [vmem:[%s25793_s6 + $0x70] ss:$8 sps:$4 sm:$0xff]   ;;  %v17270_v0 = vld [vmem:[%s25793_s6 + $0x84] ss:$8 sps:$4 sm:$0xff]  }
 0x614   :  { %v6443_v8 = vadd.f32 %v22047_v56, %v6338_v12  ;;  %v6340_v23 = vpop.f32.mrb[45].mxu0  ;;  %v17232_v12 = vld [vmem:[%s25790_s3 + $0xa0] sm:$0xff]  }
 0x615   :  { %v6444_v5 = vadd.f32 %v22050_v36, %v6340_v23  ;;  %v6342_v24 = vpop.f32.mrb[46].mxu0  ;;  %6591 = vmatprep.subr.bf16.mxu1 %v22114_v55  ;;  %7351 = vmatprep.subr.bf16.mxu0 %v22114_v55  ;;  %v17268_v23 = vld [vmem:[%s25793_s6 + $0x80] ss:$8 sps:$4 sm:$0xff]  }
 0x616   :  { %v6445_v42 = vadd.f32 %v22047_v56, %v6342_v24  ;;  %v6344_v38 = vpop.f32.mrb[47].mxu0  ;;  %6592 = vmatpush1.bf16.msra.mxu1 %v22112_v17  ;;  %7352 = vmatpush1.bf16.msra.mxu0 %v22112_v17  ;;  %v6475_v29 = vmax.f32 %v6443_v8, 0.0  ;;  %v17242_v56 = vld [vmem:[%s25793_s6 + $0x4] ss:$8 sps:$4 sm:$0xff]   ;;  %v17271_v24 = vld [vmem:[%s25793_s6 + $0x90] ss:$8 sps:$4 sm:$0xff]  }
 0x617   :  { %v6446_v14 = vadd.f32 %v22050_v36, %v6344_v38  ;;  %v6476_v53 = vmax.f32 %v6444_v5, 0.0  ;;  %v17228_v36 = vld [vmem:[%s25790_s3 + $0x80] sm:$0xff]   ;;  %v17273_v5 = vld [vmem:[%s25793_s6 + $0x94] ss:$8 sps:$4 sm:$0xff]   ;;  %v17233_v38 = vld [vmem:[%s25790_s3 + $0xa8] sm:$0xff]  }
 0x618   :  { %v6477_v21 = vmax.f32 %v6445_v42, 0.0  ;;  %v17243_v8 = vld [vmem:[%s25790_s3 + $0xe0] sm:$0xff]  }
 0x619   :  { %v6478_v59 = vmax.f32 %v6446_v14, 0.0  ;;  %v17276_v42 = vld [vmem:[%s25793_s6 + $0xa4] ss:$8 sps:$4 sm:$0xff]  }
 0x61a   :  { %v22124_v50 = vpack.c.bf16 %v6477_v21, %v6475_v29  ;;  %v17250_v14 = vld [vmem:[%s25790_s3 + $0xe8] sm:$0xff]   ;;  %v17279_v21 = vld [vmem:[%s25793_s6 + $0xb4] ss:$8 sps:$4 sm:$0xff]  }
 0x61b   :  { %v22126_v51 = vpack.c.bf16 %v6478_v59, %v6476_v53  ;;  %v17274_v29 = vld [vmem:[%s25793_s6 + $0xa0] ss:$8 sps:$4 sm:$0xff]   ;;  %v17277_v53 = vld [vmem:[%s25793_s6 + $0xb0] ss:$8 sps:$4 sm:$0xff]   ;;  %v17282_v59 = vld [vmem:[%s25793_s6 + $0xc4] ss:$8 sps:$4 sm:$0xff]  }
 0x61d   :  { %6593 = vmatprep.subr.bf16.mxu1 %v22126_v51  ;;  %7353 = vmatprep.subr.bf16.mxu0 %v22126_v51 }
 0x61e   :  { %6594 = vmatpush1.bf16.msra.mxu1 %v22124_v50  ;;  %7354 = vmatpush1.bf16.msra.mxu0 %v22124_v50 }
 0x61f   :  { %6595 = vmatprep.subr.bf16.mxu1 %v22058_v30  ;;  %7355 = vmatprep.subr.bf16.mxu0 %v22058_v30 }
 0x622   :  { %6596 = vmatpush1.bf16.msra.mxu1 %v22056_v7  ;;  %7356 = vmatpush1.bf16.msra.mxu0 %v22056_v7 }
 0x623   :  { %6597 = vmatprep.subr.bf16.mxu1 %v22066_v6  ;;  %7357 = vmatprep.subr.bf16.mxu0 %v22066_v6 }
 0x626   :  { %6598 = vmatpush1.bf16.msra.mxu1 %v22064_v31  ;;  %7358 = vmatpush1.bf16.msra.mxu0 %v22064_v31 }
 0x627   :  { %6599 = vmatprep.subr.bf16.mxu1 %v22074_v25  ;;  %7359 = vmatprep.subr.bf16.mxu0 %v22074_v25 }
 0x62a   :  { %6600 = vmatpush1.bf16.msra.mxu1 %v22072_v52  ;;  %7360 = vmatpush1.bf16.msra.mxu0 %v22072_v52 }
 0x62b   :  { %6601 = vmatprep.subr.bf16.mxu1 %v22084_v43  ;;  %7361 = vmatprep.subr.bf16.mxu0 %v22084_v43 }
 0x62e   :  { %6602 = vmatpush1.bf16.msra.mxu1 %v22080_v37  ;;  %7362 = vmatpush1.bf16.msra.mxu0 %v22080_v37 }
 0x62f   :  { %6909 = vmatprep.subr.bf16.mxu1 %v17242_v56  ;;  %v17234_v56 = vld [vmem:[%s25790_s3 + $0xb0] sm:$0xff]  }
 0x631   :  { %6620 = vmatmul.mubr.bf16.vlgmr.msra.gmra.mrb[96].mxu1 %v17228_v36  ;;  %7380 = vmatmul.mubr.bf16.vlgmr.msra.gmra.mrb[64].mxu0 %v17236_v61  ;;  %v17257_v36 = vld [vmem:[%s25790_s3 + $0xf0] sm:$0xff]   ;;  %v17280_v61 = vld [vmem:[%s25793_s6 + $0xc0] ss:$8 sps:$4 sm:$0xff]  }
 0x632   :  { %6629 = vmatprep.mubr.bf16.mxu1 %v25839_v2  ;;  %7389 = vmatprep.mubr.bf16.mxu0 %v25839_v2 }
 0x633   :  { %6910 = vmatpush1.bf16.msra.mxu1 %v17240_v32  ;;  %v17235_v32 = vld [vmem:[%s25790_s3 + $0xb8] sm:$0xff]  }
 0x634   :  { %6911 = vmatprep.subr.bf16.mxu1 %v17246_v4  ;;  %v17264_v4 = vld [vmem:[%s25790_s3 + $0xf8] sm:$0xff]  }
 0x637   :  { %6912 = vmatpush1.bf16.msra.mxu1 %v17244_v49  ;;  %v17285_v49 = vld [vmem:[%s25793_s6 + $0xd4] ss:$8 sps:$4 sm:$0xff]  }
 0x638   :  { %6913 = vmatprep.subr.bf16.mxu1 %v17249_v18  ;;  %v17283_v18 = vld [vmem:[%s25793_s6 + $0xd0] ss:$8 sps:$4 sm:$0xff]  }
 0x639   :  { %6630 = vmatmul.mubr.bf16.gmra.mrb[100].mxu1 %v17229_v28  ;;  %7390 = vmatmul.mubr.bf16.gmra.mrb[68].mxu0 %v17237_v60  ;;  %v17288_v28 = vld [vmem:[%s25793_s6 + $0xe4] ss:$8 sps:$4 sm:$0xff]  }
 0x63a   :  { %6639 = vmatprep.mubr.bf16.mxu1 %v25839_v2  ;;  %7399 = vmatprep.mubr.bf16.mxu0 %v25839_v2 }
 0x63b   :  { %6914 = vmatpush1.bf16.msra.mxu1 %v17247_v44 }
 0x63c   :  { %6915 = vmatprep.subr.bf16.mxu1 %v17253_v45 }
 0x63f   :  { %6916 = vmatpush1.bf16.msra.mxu1 %v17251_v19 }
 0x640   :  { %6917 = vmatprep.subr.bf16.mxu1 %v17256_v16 }
 0x641   :  { %6640 = vmatmul.mubr.bf16.gmra.mrb[104].mxu1 %v17230_v46  ;;  %7400 = vmatmul.mubr.bf16.gmra.mrb[72].mxu0 %v17238_v26 }
 0x642   :  { %6649 = vmatprep.mubr.bf16.mxu1 %v25839_v2  ;;  %7409 = vmatprep.mubr.bf16.mxu0 %v25839_v2 }
 0x643   :  { %6918 = vmatpush1.bf16.msra.mxu1 %v17254_v34 }
 0x644   :  { %6919 = vmatprep.subr.bf16.mxu1 %v17260_v9 }
 0x647   :  { %6920 = vmatpush1.bf16.msra.mxu1 %v17258_v57 }
 0x648   :  { %6921 = vmatprep.subr.bf16.mxu1 %v17263_v33 }
 0x649   :  { %6650 = vmatmul.mubr.bf16.gmra.mrb[108].mxu1 %v17231_v54  ;;  %7410 = vmatmul.mubr.bf16.gmra.mrb[76].mxu0 %v17239_v10  ;;  %v17286_v54 = vld [vmem:[%s25793_s6 + $0xe0] ss:$8 sps:$4 sm:$0xff]  }
 0x64a   :  { %6659 = vmatprep.mubr.bf16.mxu1 %v25839_v2  ;;  %7419 = vmatprep.mubr.bf16.mxu0 %v25839_v2 }
 0x64b   :  { %6922 = vmatpush1.bf16.msra.mxu1 %v17261_v20  ;;  %v17291_v20 = vld [vmem:[%s25793_s6 + $0xf4] ss:$8 sps:$4 sm:$0xff]  }
 0x64c   :  { %6923 = vmatprep.subr.bf16.mxu1 %v17267_v39 }
 0x64f   :  { %6924 = vmatpush1.bf16.msra.mxu1 %v17265_v41  ;;  %v17289_v41 = vld [vmem:[%s25793_s6 + $0xf0] ss:$8 sps:$4 sm:$0xff]  }
 0x650   :  { %6925 = vmatprep.subr.bf16.mxu1 %v17270_v0 }
 0x651   :  { %6660 = vmatmul.mubr.bf16.gmra.mrb[112].mxu1 %v17232_v12  ;;  %7420 = vmatmul.mubr.bf16.gmra.mrb[80].mxu0 %v17243_v8  ;;  %v17294_v8 = vld [vmem:[%s25793_s6 + $0x104] ss:$8 sps:$4 sm:$0xff]  }
 0x652   :  { %6669 = vmatprep.mubr.bf16.mxu1 %v25839_v2  ;;  %7429 = vmatprep.mubr.bf16.mxu0 %v25839_v2 }
 0x653   :  { %6926 = vmatpush1.bf16.msra.mxu1 %v17268_v23 }
 0x654   :  { %6927 = vmatprep.subr.bf16.mxu1 %v17273_v5 }
 0x657   :  { %6928 = vmatpush1.bf16.msra.mxu1 %v17271_v24 }
 0x658   :  { %6929 = vmatprep.subr.bf16.mxu1 %v17276_v42 }
 0x659   :  { %6670 = vmatmul.mubr.bf16.gmra.mrb[116].mxu1 %v17233_v38  ;;  %7430 = vmatmul.mubr.bf16.gmra.mrb[84].mxu0 %v17250_v14 }
 0x65a   :  { %6679 = vmatprep.mubr.bf16.mxu1 %v25839_v2  ;;  %7439 = vmatprep.mubr.bf16.mxu0 %v25839_v2 }
 0x65b   :  { %6930 = vmatpush1.bf16.msra.mxu1 %v17274_v29 }
 0x65c   :  { %6931 = vmatprep.subr.bf16.mxu1 %v17279_v21 }
 0x65f   :  { %6932 = vmatpush1.bf16.msra.mxu1 %v17277_v53  ;;  %v17292_v53 = vld [vmem:[%s25793_s6 + $0x100] ss:$8 sps:$4 sm:$0xff]  }
 0x660   :  { %6933 = vmatprep.subr.bf16.mxu1 %v17282_v59 }
 0x661   :  { %6680 = vmatmul.mubr.bf16.gmra.mrb[120].mxu1 %v17234_v56  ;;  %7440 = vmatmul.mubr.bf16.gmra.mrb[88].mxu0 %v17257_v36  ;;  %v17297_v56 = vld [vmem:[%s25793_s6 + $0x114] ss:$8 sps:$4 sm:$0xff]  }
 0x662   :  { %6689 = vmatprep.mubr.bf16.mxu1 %v25839_v2  ;;  %7449 = vmatprep.mubr.bf16.mxu0 %v25839_v2 }
 0x663   :  { %6934 = vmatpush1.bf16.msra.mxu1 %v17280_v61  ;;  %v17295_v61 = vld [vmem:[%s25793_s6 + $0x110] ss:$8 sps:$4 sm:$0xff]  }
 0x664   :  { %6935 = vmatprep.subr.bf16.mxu1 %v17285_v49  ;;  %v17300_v49 = vld [vmem:[%s25793_s6 + $0x124] ss:$8 sps:$4 sm:$0xff]  }
 0x667   :  { %6936 = vmatpush1.bf16.msra.mxu1 %v17283_v18 }
 0x668   :  { %7186 = vmatprep.subr.bf16.mxu1 %v17288_v28 }
 0x669   :  { %6690 = vmatmul.mubr.bf16.gmra.mrb[124].mxu1 %v17235_v32  ;;  %7450 = vmatmul.mubr.bf16.gmra.mrb[92].mxu0 %v17264_v4 }
 0x704   :  { %v6621_v60 = vpop.f32.mrb[96].mxu1  ;;  %v22297_v44 = vpop.f32.mrb[64].mxu0 }
 0x705   :  { %v6623_v45 = vpop.f32.mrb[97].mxu1  ;;  %v22299_v19 = vpop.f32.mrb[65].mxu0 }
 0x706   :  { %v6625_v16 = vpop.f32.mrb[98].mxu1  ;;  %v22301_v46 = vpop.f32.mrb[66].mxu0 }
 0x707   :  { %v6700_v26 = vpack.c.bf16 %v6625_v16, %v6621_v60  ;;  %v6627_v34 = vpop.f32.mrb[99].mxu1  ;;  %v22305_v57 = vpop.f32.mrb[67].mxu0 }
 0x708   :  { %v6701_v33 = vpack.c.bf16 %v6627_v34, %v6623_v45 }
 0x70a   :  { %14640 = vmatprep.mubr.msk.bf16.mxu1 %vm6884_vm2, %v6701_v33 }
 0x70b   :  { %6942 = vmatmul.mubr.bf16.vlgmr.msra.gmra.mrb[128].mxu1 %v6700_v26 }
 0x70c   :  { %v6631_v39 = vpop.f32.mrb[100].mxu1  ;;  %7187 = vmatpush1.bf16.msra.mxu1 %v17286_v54  ;;  %v22319_v0 = vpop.f32.mrb[68].mxu0  ;;  %v17298_v54 = vld [vmem:[%s25793_s6 + $0x120] ss:$8 sps:$4 sm:$0xff]  }
 0x70d   :  { %v6633_v12 = vpop.f32.mrb[101].mxu1  ;;  %7188 = vmatprep.subr.bf16.mxu1 %v17291_v20  ;;  %v22324_v23 = vpop.f32.mrb[69].mxu0 }
 0x70e   :  { %v6635_v5 = vpop.f32.mrb[102].mxu1  ;;  %v22326_v24 = vpop.f32.mrb[70].mxu0 }
 0x70f   :  { %v6702_v42 = vpack.c.bf16 %v6635_v5, %v6631_v39  ;;  %v6637_v38 = vpop.f32.mrb[103].mxu1  ;;  %v22330_v29 = vpop.f32.mrb[71].mxu0  ;;  %v17303_v39 = vld [vmem:[%s25793_s6 + $0x134] ss:$8 sps:$4 sm:$0xff]  }
 0x710   :  { %v6703_v21 = vpack.c.bf16 %v6637_v38, %v6633_v12  ;;  %7189 = vmatpush1.bf16.msra.mxu1 %v17289_v41  ;;  %v17301_v12 = vld [vmem:[%s25793_s6 + $0x130] ss:$8 sps:$4 sm:$0xff]  }
 0x711   :  { %7190 = vmatprep.subr.bf16.mxu1 %v17294_v8 }
 0x712   :  { %14641 = vmatprep.mubr.msk.bf16.mxu1 %vm6884_vm2, %v6703_v21 }
 0x713   :  { %6952 = vmatmul.mubr.bf16.gmra.mrb[132].mxu1 %v6702_v42  ;;  %v17306_v42 = vld [vmem:[%s25793_s6 + $0x144] ss:$8 sps:$4 sm:$0xff]  }
 0x714   :  { %v6641_v36 = vpop.f32.mrb[104].mxu1  ;;  %7191 = vmatpush1.bf16.msra.mxu1 %v17292_v53  ;;  %v22344_v32 = vpop.f32.mrb[72].mxu0 }
 0x715   :  { %v6643_v4 = vpop.f32.mrb[105].mxu1  ;;  %7192 = vmatprep.subr.bf16.mxu1 %v17297_v56  ;;  %v22349_v18 = vpop.f32.mrb[73].mxu0 }
 0x716   :  { %v6645_v28 = vpop.f32.mrb[106].mxu1  ;;  %v22351_v60 = vpop.f32.mrb[74].mxu0 }
 0x717   :  { %v6704_v45 = vpack.c.bf16 %v6645_v28, %v6641_v36  ;;  %v6647_v16 = vpop.f32.mrb[107].mxu1  ;;  %v22355_v34 = vpop.f32.mrb[75].mxu0  ;;  %v17304_v28 = vld [vmem:[%s25793_s6 + $0x140] ss:$8 sps:$4 sm:$0xff]  }
 0x718   :  { %v6705_v33 = vpack.c.bf16 %v6647_v16, %v6643_v4  ;;  %7193 = vmatpush1.bf16.msra.mxu1 %v17295_v61  ;;  %v17309_v16 = vld [vmem:[%s25793_s6 + $0x154] ss:$8 sps:$4 sm:$0xff]  }
 0x719   :  { %7194 = vmatprep.subr.bf16.mxu1 %v17300_v49 }
 0x71a   :  { %14642 = vmatprep.mubr.msk.bf16.mxu1 %vm6884_vm2, %v6705_v33 }
 0x71b   :  { %6962 = vmatmul.mubr.bf16.gmra.mrb[136].mxu1 %v6704_v45 }
 0x71c   :  { %v6651_v41 = vpop.f32.mrb[108].mxu1  ;;  %7195 = vmatpush1.bf16.msra.mxu1 %v17298_v54  ;;  %v22369_v8 = vpop.f32.mrb[76].mxu0  ;;  %v17307_v54 = vld [vmem:[%s25793_s6 + $0x150] ss:$8 sps:$4 sm:$0xff]  }
 0x71d   :  { %v6653_v5 = vpop.f32.mrb[109].mxu1  ;;  %7196 = vmatprep.subr.bf16.mxu1 %v17303_v39  ;;  %v22374_v38 = vpop.f32.mrb[77].mxu0 }
 0x71e   :  { %v6655_v21 = vpop.f32.mrb[110].mxu1  ;;  %v22376_v53 = vpop.f32.mrb[78].mxu0 }
 0x71f   :  { %v6706_v56 = vpack.c.bf16 %v6655_v21, %v6651_v41  ;;  %v6657_v36 = vpop.f32.mrb[111].mxu1  ;;  %v22380_v4 = vpop.f32.mrb[79].mxu0 }
 0x720   :  { %v6707_v49 = vpack.c.bf16 %v6657_v36, %v6653_v5  ;;  %7197 = vmatpush1.bf16.msra.mxu1 %v17301_v12  ;;  %v17312_v12 = vld [vmem:[%s25793_s6 + $0x164] ss:$8 sps:$4 sm:$0xff]  }
 0x721   :  { %7198 = vmatprep.subr.bf16.mxu1 %v17306_v42 }
 0x722   :  { %14643 = vmatprep.mubr.msk.bf16.mxu1 %vm6884_vm2, %v6707_v49 }
 0x723   :  { %6972 = vmatmul.mubr.bf16.gmra.mrb[140].mxu1 %v6706_v56 }
 0x724   :  { %v6661_v33 = vpop.f32.mrb[112].mxu1  ;;  %7199 = vmatpush1.bf16.msra.mxu1 %v17304_v28  ;;  %v22394_v39 = vpop.f32.mrb[80].mxu0 }
 0x725   :  { %v6663_v41 = vpop.f32.mrb[113].mxu1  ;;  %7200 = vmatprep.subr.bf16.mxu1 %v17309_v16  ;;  %v22399_v5 = vpop.f32.mrb[81].mxu0  ;;  %v17310_v16 = vld [vmem:[%s25793_s6 + $0x160] ss:$8 sps:$4 sm:$0xff]  }
 0x726   :  { %v6665_v42 = vpop.f32.mrb[114].mxu1  ;;  %v22401_v21 = vpop.f32.mrb[82].mxu0 }
 0x727   :  { %v6708_v56 = vpack.c.bf16 %v6665_v42, %v6661_v33  ;;  %v6667_v36 = vpop.f32.mrb[115].mxu1  ;;  %v22405_v28 = vpop.f32.mrb[83].mxu0  ;;  %v17315_v33 = vld [vmem:[%s25793_s6 + $0x174] ss:$8 sps:$4 sm:$0xff]  }
 0x728   :  { %v6709_v61 = vpack.c.bf16 %v6667_v36, %v6663_v41  ;;  %7201 = vmatpush1.bf16.msra.mxu1 %v17307_v54  ;;  %v17313_v54 = vld [vmem:[%s25793_s6 + $0x170] ss:$8 sps:$4 sm:$0xff]  }
 0x729   :  { %7202 = vmatprep.subr.bf16.mxu1 %v17312_v12  ;;  %v17318_v12 = vld [vmem:[%s25793_s6 + $0x184] ss:$8 sps:$4 sm:$0xff]  }
 0x72a   :  { %14644 = vmatprep.mubr.msk.bf16.mxu1 %vm6884_vm2, %v6709_v61 }
 0x72b   :  { %6982 = vmatmul.mubr.bf16.gmra.mrb[144].mxu1 %v6708_v56 }
 0x72c   :  { %v6671_v42 = vpop.f32.mrb[116].mxu1  ;;  %7203 = vmatpush1.bf16.msra.mxu1 %v17310_v16  ;;  %v22419_v41 = vpop.f32.mrb[84].mxu0 }
 0x72d   :  { %v6673_v36 = vpop.f32.mrb[117].mxu1  ;;  %7204 = vmatprep.subr.bf16.mxu1 %v17315_v33  ;;  %v22424_v49 = vpop.f32.mrb[85].mxu0  ;;  %v17316_v33 = vld [vmem:[%s25793_s6 + $0x180] ss:$8 sps:$4 sm:$0xff]  }
 0x72e   :  { %v6675_v45 = vpop.f32.mrb[118].mxu1  ;;  %v22426_v26 = vpop.f32.mrb[86].mxu0 }
 0x72f   :  { %v6710_v61 = vpack.c.bf16 %v6675_v45, %v6671_v42  ;;  %v6677_v56 = vpop.f32.mrb[119].mxu1  ;;  %v22430_v20 = vpop.f32.mrb[87].mxu0  ;;  %v17321_v45 = vld [vmem:[%s25793_s6 + $0x194] ss:$8 sps:$4 sm:$0xff]  }
 0x730   :  { %v6711_v14 = vpack.c.bf16 %v6677_v56, %v6673_v36  ;;  %7205 = vmatpush1.bf16.msra.mxu1 %v17313_v54  ;;  %v17319_v54 = vld [vmem:[%s25793_s6 + $0x190] ss:$8 sps:$4 sm:$0xff]  }
 0x731   :  { %7206 = vmatprep.subr.bf16.mxu1 %v17318_v12  ;;  %v17324_v12 = vld [vmem:[%s25793_s6 + $0x1a4] ss:$8 sps:$4 sm:$0xff]  }
 0x732   :  { %14645 = vmatprep.mubr.msk.bf16.mxu1 %vm6884_vm2, %v6711_v14 }
 0x733   :  { %6992 = vmatmul.mubr.bf16.gmra.mrb[148].mxu1 %v6710_v61 }
 0x734   :  { %v6681_v42 = vpop.f32.mrb[120].mxu1  ;;  %7207 = vmatpush1.bf16.msra.mxu1 %v17316_v33  ;;  %v22444_v36 = vpop.f32.mrb[88].mxu0 }
 0x735   :  { %v6683_v56 = vpop.f32.mrb[121].mxu1  ;;  %7208 = vmatprep.subr.bf16.mxu1 %v17321_v45  ;;  %v22449_v16 = vpop.f32.mrb[89].mxu0  ;;  %v17322_v45 = vld [vmem:[%s25793_s6 + $0x1a0] ss:$8 sps:$4 sm:$0xff]  }
 0x736   :  { %v6685_v59 = vpop.f32.mrb[122].mxu1  ;;  %v22451_v9 = vpop.f32.mrb[90].mxu0 }
 0x737   :  { %v6712_v14 = vpack.c.bf16 %v6685_v59, %v6681_v42  ;;  %v6687_v61 = vpop.f32.mrb[123].mxu1  ;;  %v22455_v10 = vpop.f32.mrb[91].mxu0  ;;  %v17327_v59 = vld [vmem:[%s25793_s6 + $0x1b4] ss:$8 sps:$4 sm:$0xff]  }
 0x738   :  { %v6713_v2 = vpack.c.bf16 %v6687_v61, %v6683_v56  ;;  %7209 = vmatpush1.bf16.msra.mxu1 %v17319_v54  ;;  %v17325_v54 = vld [vmem:[%s25793_s6 + $0x1b0] ss:$8 sps:$4 sm:$0xff]  }
 0x739   :  { %7210 = vmatprep.subr.bf16.mxu1 %v17324_v12  ;;  %v17330_v12 = vld [vmem:[%s25793_s6 + $0x1c4] ss:$8 sps:$4 sm:$0xff]  }
 0x73a   :  { %14646 = vmatprep.mubr.msk.bf16.mxu1 %vm6884_vm2, %v6713_v2 }
 0x73b   :  { %7002 = vmatmul.mubr.bf16.gmra.mrb[152].mxu1 %v6712_v14 }
 0x73c   :  { %v6691_v42 = vpop.f32.mrb[124].mxu1  ;;  %7211 = vmatpush1.bf16.msra.mxu1 %v17322_v45  ;;  %v22469_v56 = vpop.f32.mrb[92].mxu0 }
 0x73d   :  { %v6693_v61 = vpop.f32.mrb[125].mxu1  ;;  %7212 = vmatprep.subr.bf16.mxu1 %v17327_v59  ;;  %v22474_v33 = vpop.f32.mrb[93].mxu0 }
 0x73e   :  { %v6695_v35 = vpop.f32.mrb[126].mxu1  ;;  %v22476_v3 = vpop.f32.mrb[94].mxu0 }
 0x73f   :  { %v6714_v2 = vpack.c.bf16 %v6695_v35, %v6691_v42  ;;  %v6697_v14 = vpop.f32.mrb[127].mxu1  ;;  %v7474_v45 = vpack.c.bf16 %v22476_v3, %v22469_v56  ;;  %v22480_v15 = vpop.f32.mrb[95].mxu0  ;;  %v17372_v35 = vld [vmem:[%s25795_s8 + $0x664] ss:$68 sps:$4 sm:$0xff]   ;;  %v17378_v42 = vld [vmem:[%s25795_s8 + $0x6ec] ss:$68 sps:$4 sm:$0xff]  }
 0x740   :  { %v6715_v40 = vpack.c.bf16 %v6697_v14, %v6693_v61  ;;  %7213 = vmatpush1.bf16.msra.mxu1 %v17325_v54  ;;  %v7475_v59 = vpack.c.bf16 %v22480_v15, %v22474_v33  ;;  %9785 = vmatprep.subr.bf16.mxu0 %v17372_v35  ;;  %v17384_v54 = vld [vmem:[%s25795_s8 + $0x774] ss:$68 sps:$4 sm:$0xff]   ;;  %v17328_v61 = vld [vmem:[%s25793_s6 + $0x1c0] ss:$8 sps:$4 sm:$0xff]   ;;  %v17336_v14 = vld [vmem:[%s25793_s6 + $0x1e4] ss:$8 sps:$4 sm:$0xff]  }
 0x741   :  { %7668 = vmatprep.subr.bf16.mxu1 %v17330_v12  ;;  %9786 = vmatpush1.bf16.msra.mxu0 %v17370_v13  ;;  %v17382_v13 = vld [vmem:[%s25795_s8 + $0x770] ss:$68 sps:$4 sm:$0xff]   ;;  %v17390_v12 = vld [vmem:[%s25795_s8 + $0x7fc] ss:$68 sps:$4 sm:$0xff]   ;;  %v17459_v15 = vld [vmem:[%s25795_s8 + $0xde4] ss:$68 sps:$4 sm:$0xff]  }
 0x742   :  { %14647 = vmatprep.mubr.msk.bf16.mxu1 %vm6884_vm2, %v6715_v40  ;;  %v17376_v40 = vld [vmem:[%s25795_s8 + $0x6e8] ss:$68 sps:$4 sm:$0xff]   ;;  %9787 = vmatprep.subr.bf16.mxu0 %v17378_v42  ;;  %v17339_v42 = vld [vmem:[%s25793_s6 + $0x1f4] ss:$8 sps:$4 sm:$0xff]   ;;  %v17457_v33 = vld [vmem:[%s25795_s8 + $0xde0] ss:$68 sps:$4 sm:$0xff]  }
 0x743   :  { %7012 = vmatmul.mubr.bf16.gmra.mrb[156].mxu1 %v6714_v2  ;;  %v17331_v2 = vld [vmem:[%s25793_s6 + $0x1d0] ss:$8 sps:$4 sm:$0xff]   ;;  %v17334_v35 = vld [vmem:[%s25793_s6 + $0x1e0] ss:$8 sps:$4 sm:$0xff]  }
 0x744   :  { %14676 = vmatprep.mubr.msk.bf16.mxu1 %vm6884_vm2, %v22090_v63  ;;  %v17333_v63 = vld [vmem:[%s25793_s6 + $0x1d4] ss:$8 sps:$4 sm:$0xff]   ;;  %v17465_v56 = vld [vmem:[%s25795_s8 + $0xe6c] ss:$68 sps:$4 sm:$0xff]  }
 0x745   :  { %9788 = vmatpush1.bf16.msra.mxu0 %v17376_v40  ;;  %v17394_v40 = vld [vmem:[%s25795_s8 + $0x880] ss:$68 sps:$4 sm:$0xff]  }
 0x746   :  { %9789 = vmatprep.subr.bf16.mxu0 %v17384_v54  ;;  %v17402_v54 = vld [vmem:[%s25795_s8 + $0x90c] ss:$68 sps:$4 sm:$0xff]   ;;  %v17462_v3 = vld [vmem:[%s25795_s8 + $0xe5c] ss:$68 sps:$4 sm:$0xff]  }
 0x749   :  { %9790 = vmatpush1.bf16.msra.mxu0 %v17382_v13  ;;  %v17340_v13 = vld [vmem:[%s25793_s6 + $0x200] ss:$8 sps:$4 sm:$0xff]  }
 0x74a   :  { %9791 = vmatprep.subr.bf16.mxu0 %v17390_v12  ;;  %v17345_v12 = vld [vmem:[%s25793_s6 + $0x214] ss:$8 sps:$4 sm:$0xff]  }
 0x74b   :  { %7219 = vmatmul.mubr.bf16.vlgmr.msra.gmra.mrb[128].mxu1 %v22088_v58  ;;  %v17388_v58 = vld [vmem:[%s25795_s8 + $0x7f8] ss:$68 sps:$4 sm:$0xff]  }
 0x74c   :  { %14677 = vmatprep.mubr.msk.bf16.mxu1 %vm6884_vm2, %v22102_v11  ;;  %7669 = vmatpush1.bf16.msra.mxu1 %v17328_v61  ;;  %v17396_v11 = vld [vmem:[%s25795_s8 + $0x884] ss:$68 sps:$4 sm:$0xff]   ;;  %v17337_v61 = vld [vmem:[%s25793_s6 + $0x1f0] ss:$8 sps:$4 sm:$0xff]  }
 0x74d   :  { %7670 = vmatprep.subr.bf16.mxu1 %v17333_v63  ;;  %9792 = vmatpush1.bf16.msra.mxu0 %v17388_v58  ;;  %v17342_v63 = vld [vmem:[%s25793_s6 + $0x204] ss:$8 sps:$4 sm:$0xff]   ;;  %v17343_v58 = vld [vmem:[%s25793_s6 + $0x210] ss:$8 sps:$4 sm:$0xff]  }
 0x74e   :  { %9793 = vmatprep.subr.bf16.mxu0 %v17396_v11  ;;  %v17348_v11 = vld [vmem:[%s25793_s6 + $0x224] ss:$8 sps:$4 sm:$0xff]  }
 0x750   :  { %7671 = vmatpush1.bf16.msra.mxu1 %v17331_v2  ;;  %v17406_v2 = vld [vmem:[%s25795_s8 + $0x990] ss:$68 sps:$4 sm:$0xff]  }
 0x751   :  { %7672 = vmatprep.subr.bf16.mxu1 %v17336_v14  ;;  %9794 = vmatpush1.bf16.msra.mxu0 %v17394_v40  ;;  %v17414_v14 = vld [vmem:[%s25795_s8 + $0xa1c] ss:$68 sps:$4 sm:$0xff]  }
 0x752   :  { %9795 = vmatprep.subr.bf16.mxu0 %v17402_v54  ;;  %v17418_v40 = vld [vmem:[%s25795_s8 + $0xaa0] ss:$68 sps:$4 sm:$0xff]   ;;  %v17426_v54 = vld [vmem:[%s25795_s8 + $0xb2c] ss:$68 sps:$4 sm:$0xff]  }
 0x753   :  { %7229 = vmatmul.mubr.bf16.gmra.mrb[132].mxu1 %v22100_v62  ;;  %v17400_v62 = vld [vmem:[%s25795_s8 + $0x908] ss:$68 sps:$4 sm:$0xff]  }
 0x754   :  { %14678 = vmatprep.mubr.msk.bf16.mxu1 %vm6884_vm2, %v22114_v55  ;;  %7673 = vmatpush1.bf16.msra.mxu1 %v17334_v35  ;;  %v17408_v55 = vld [vmem:[%s25795_s8 + $0x994] ss:$68 sps:$4 sm:$0xff]   ;;  %v17346_v35 = vld [vmem:[%s25793_s6 + $0x220] ss:$8 sps:$4 sm:$0xff]  }
 0x755   :  { %7674 = vmatprep.subr.bf16.mxu1 %v17339_v42  ;;  %9796 = vmatpush1.bf16.msra.mxu0 %v17400_v62  ;;  %v17351_v42 = vld [vmem:[%s25793_s6 + $0x234] ss:$8 sps:$4 sm:$0xff]   ;;  %v17352_v62 = vld [vmem:[%s25793_s6 + $0x240] ss:$8 sps:$4 sm:$0xff]  }
 0x756   :  { %9797 = vmatprep.subr.bf16.mxu0 %v17408_v55  ;;  %v17357_v55 = vld [vmem:[%s25793_s6 + $0x254] ss:$8 sps:$4 sm:$0xff]  }
 0x758   :  { %7675 = vmatpush1.bf16.msra.mxu1 %v17337_v61  ;;  %v17349_v61 = vld [vmem:[%s25793_s6 + $0x230] ss:$8 sps:$4 sm:$0xff]  }
 0x759   :  { %7676 = vmatprep.subr.bf16.mxu1 %v17342_v63  ;;  %9798 = vmatpush1.bf16.msra.mxu0 %v17406_v2  ;;  %v17354_v63 = vld [vmem:[%s25793_s6 + $0x244] ss:$8 sps:$4 sm:$0xff]   ;;  %v17355_v2 = vld [vmem:[%s25793_s6 + $0x250] ss:$8 sps:$4 sm:$0xff]  }
 0x75a   :  { %9799 = vmatprep.subr.bf16.mxu0 %v17414_v14  ;;  %v17360_v14 = vld [vmem:[%s25793_s6 + $0x264] ss:$8 sps:$4 sm:$0xff]  }
 0x75b   :  { %7239 = vmatmul.mubr.bf16.gmra.mrb[136].mxu1 %v22112_v17  ;;  %v17412_v17 = vld [vmem:[%s25795_s8 + $0xa18] ss:$68 sps:$4 sm:$0xff]  }
 0x75c   :  { %14679 = vmatprep.mubr.msk.bf16.mxu1 %vm6884_vm2, %v22126_v51  ;;  %7677 = vmatpush1.bf16.msra.mxu1 %v17340_v13  ;;  %v17420_v51 = vld [vmem:[%s25795_s8 + $0xaa4] ss:$68 sps:$4 sm:$0xff]   ;;  %v17430_v13 = vld [vmem:[%s25795_s8 + $0xbb0] ss:$68 sps:$4 sm:$0xff]  }
 0x75d   :  { %7678 = vmatprep.subr.bf16.mxu1 %v17345_v12  ;;  %9800 = vmatpush1.bf16.msra.mxu0 %v17412_v17  ;;  %v17438_v12 = vld [vmem:[%s25795_s8 + $0xc3c] ss:$68 sps:$4 sm:$0xff]  }
 0x75e   :  { %9801 = vmatprep.subr.bf16.mxu0 %v17420_v51  ;;  %v17442_v17 = vld [vmem:[%s25795_s8 + $0xcc0] ss:$68 sps:$4 sm:$0xff]   ;;  %v17450_v51 = vld [vmem:[%s25795_s8 + $0xd4c] ss:$68 sps:$4 sm:$0xff]  }
 0x760   :  { %7679 = vmatpush1.bf16.msra.mxu1 %v17343_v58  ;;  %v17358_v58 = vld [vmem:[%s25793_s6 + $0x260] ss:$8 sps:$4 sm:$0xff]  }
 0x761   :  { %7680 = vmatprep.subr.bf16.mxu1 %v17348_v11  ;;  %9802 = vmatpush1.bf16.msra.mxu0 %v17418_v40  ;;  %v17363_v11 = vld [vmem:[%s25793_s6 + $0x274] ss:$8 sps:$4 sm:$0xff]  }
 0x762   :  { %9803 = vmatprep.subr.bf16.mxu0 %v17426_v54  ;;  %v17369_v40 = vld [vmem:[%s25793_s6 + $0x294] ss:$8 sps:$4 sm:$0xff]   ;;  %v17367_v54 = vld [vmem:[%s25793_s6 + $0x290] ss:$8 sps:$4 sm:$0xff]  }
 0x763   :  { %7249 = vmatmul.mubr.bf16.gmra.mrb[140].mxu1 %v22124_v50  ;;  %v17424_v50 = vld [vmem:[%s25795_s8 + $0xb28] ss:$68 sps:$4 sm:$0xff]  }
 0x764   :  { %14680 = vmatprep.mubr.msk.bf16.mxu1 %vm6884_vm2, %v22058_v30  ;;  %7681 = vmatpush1.bf16.msra.mxu1 %v17346_v35  ;;  %v17432_v30 = vld [vmem:[%s25795_s8 + $0xbb4] ss:$68 sps:$4 sm:$0xff]  }
 0x765   :  { %7682 = vmatprep.subr.bf16.mxu1 %v17351_v42  ;;  %9804 = vmatpush1.bf16.msra.mxu0 %v17424_v50  ;;  %v17361_v35 = vld [vmem:[%s25793_s6 + $0x270] ss:$8 sps:$4 sm:$0xff]   ;;  %v17366_v42 = vld [vmem:[%s25793_s6 + $0x284] ss:$8 sps:$4 sm:$0xff]   ;;  %v25841_v50 = vpack.c.bf16 %v22301_v46, %v22297_v44 }
 0x766   :  { %9805 = vmatprep.subr.bf16.mxu0 %v17432_v30  ;;  %v17385_v44 = vld [vmem:[%s25795_s8 + $0x780] ss:$68 sps:$4 sm:$0xff]   ;;  %v17393_v46 = vld [vmem:[%s25795_s8 + $0x80c] ss:$68 sps:$4 sm:$0xff]  }
 0x767   :  { %v17391_v30 = vld [vmem:[%s25795_s8 + $0x808] ss:$68 sps:$4 sm:$0xff]  }
 0x768   :  { %7683 = vmatpush1.bf16.msra.mxu1 %v17349_v61  ;;  %v17375_v61 = vld [vmem:[%s25795_s8 + $0x674] ss:$68 sps:$4 sm:$0xff]  }
 0x769   :  { %7684 = vmatprep.subr.bf16.mxu1 %v17354_v63  ;;  %9806 = vmatpush1.bf16.msra.mxu0 %v17430_v13  ;;  %v17381_v63 = vld [vmem:[%s25795_s8 + $0x6fc] ss:$68 sps:$4 sm:$0xff]   ;;  %v17411_v13 = vld [vmem:[%s25795_s8 + $0x9a4] ss:$68 sps:$4 sm:$0xff]  }
 0x76a   :  { %9807 = vmatprep.subr.bf16.mxu0 %v17438_v12  ;;  %v17415_v12 = vld [vmem:[%s25795_s8 + $0xa28] ss:$68 sps:$4 sm:$0xff]  }
 0x76b   :  { %7259 = vmatmul.mubr.bf16.gmra.mrb[144].mxu1 %v22056_v7  ;;  %v17436_v7 = vld [vmem:[%s25795_s8 + $0xc38] ss:$68 sps:$4 sm:$0xff]  }
 0x76c   :  { %14681 = vmatprep.mubr.msk.bf16.mxu1 %vm6884_vm2, %v22066_v6  ;;  %7685 = vmatpush1.bf16.msra.mxu1 %v17352_v62  ;;  %v17444_v6 = vld [vmem:[%s25795_s8 + $0xcc4] ss:$68 sps:$4 sm:$0xff]   ;;  %v17399_v62 = vld [vmem:[%s25795_s8 + $0x894] ss:$68 sps:$4 sm:$0xff]  }
 0x76d   :  { %7686 = vmatprep.subr.bf16.mxu1 %v17357_v55  ;;  %9808 = vmatpush1.bf16.msra.mxu0 %v17436_v7  ;;  %v17403_v55 = vld [vmem:[%s25795_s8 + $0x918] ss:$68 sps:$4 sm:$0xff]   ;;  %v17435_v7 = vld [vmem:[%s25795_s8 + $0xbc4] ss:$68 sps:$4 sm:$0xff]  }
 0x76e   :  { %9809 = vmatprep.subr.bf16.mxu0 %v17444_v6  ;;  %v17439_v6 = vld [vmem:[%s25795_s8 + $0xc48] ss:$68 sps:$4 sm:$0xff]  }
 0x770   :  { %7687 = vmatpush1.bf16.msra.mxu1 %v17355_v2  ;;  %v17423_v2 = vld [vmem:[%s25795_s8 + $0xab4] ss:$68 sps:$4 sm:$0xff]  }
 0x771   :  { %7688 = vmatprep.subr.bf16.mxu1 %v17360_v14  ;;  %9810 = vmatpush1.bf16.msra.mxu0 %v17442_v17  ;;  %v17427_v14 = vld [vmem:[%s25795_s8 + $0xb38] ss:$68 sps:$4 sm:$0xff]   ;;  %v17471_v17 = vld [vmem:[%s25795_s8 + $0x684] ss:$68 sps:$4 sm:$0xff]  }
 0x772   :  { %9811 = vmatprep.subr.bf16.mxu0 %v17450_v51  ;;  %v7813_v51 = vld [vmem:[%s25794_s7] sm:$0x3] }
 0x773   :  { %7269 = vmatmul.mubr.bf16.gmra.mrb[148].mxu1 %v22064_v31  ;;  %v17448_v31 = vld [vmem:[%s25795_s8 + $0xd48] ss:$68 sps:$4 sm:$0xff]  }
 0x774   :  { %14682 = vmatprep.mubr.msk.bf16.mxu1 %vm6884_vm2, %v22074_v25  ;;  %7689 = vmatpush1.bf16.msra.mxu1 %v17358_v58  ;;  %v17364_v25 = vld [vmem:[%s25793_s6 + $0x280] ss:$8 sps:$4 sm:$0xff]   ;;  %v17447_v58 = vld [vmem:[%s25795_s8 + $0xcd4] ss:$68 sps:$4 sm:$0xff]  }
 0x775   :  { %7690 = vmatprep.subr.bf16.mxu1 %v17363_v11  ;;  %9812 = vmatpush1.bf16.msra.mxu0 %v17448_v31  ;;  %v17468_v11 = vld [vmem:[%s25795_s8 + $0x66c] ss:$68 sps:$4 sm:$0xff]  }
 0x778   :  { %7691 = vmatpush1.bf16.msra.mxu1 %v17361_v35  ;;  %v22848_v35 = vrot.slane %v7813_v51, %v21363_v1 }
 0x779   :  { %7692 = vmatprep.subr.bf16.mxu1 %v17366_v42  ;;  %v22851_v42 = vrot.slane %v7813_v51, %v21368_v47 }
 0x77b   :  { %7279 = vmatmul.mubr.bf16.gmra.mrb[152].mxu1 %v22072_v52  ;;  %v25840_v52 = vpack.c.bf16 %v22305_v57, %v22299_v19  ;;  %v17379_v19 = vld [vmem:[%s25795_s8 + $0x6f8] ss:$68 sps:$4 sm:$0xff]   ;;  %v17387_v57 = vld [vmem:[%s25795_s8 + $0x784] ss:$68 sps:$4 sm:$0xff]  }
 0x77c   :  { %14683 = vmatprep.mubr.msk.bf16.mxu1 %vm6884_vm2, %v22084_v43  ;;  %7693 = vmatpush1.bf16.msra.mxu1 %v17364_v25  ;;  %v17373_v43 = vld [vmem:[%s25795_s8 + $0x670] ss:$68 sps:$4 sm:$0xff]  }
 0x77d   :  { %7694 = vmatprep.subr.bf16.mxu1 %v17369_v40 }
 0x780   :  { %7695 = vmatpush1.bf16.msra.mxu1 %v17367_v54 }
 0x781   :  { %10011 = vmatprep.subr.bf16.mxu1 %v17375_v61 }
 0x783   :  { %7289 = vmatmul.mubr.bf16.gmra.mrb[156].mxu1 %v22080_v37  ;;  %v25842_v37 = vpack.c.bf16 %v22330_v29, %v22324_v23  ;;  %v25843_v23 = vpack.c.bf16 %v22326_v24, %v22319_v0  ;;  %v25844_v29 = vpack.c.bf16 %v22355_v34, %v22349_v18  ;;  %v17397_v0 = vld [vmem:[%s25795_s8 + $0x890] ss:$68 sps:$4 sm:$0xff]   ;;  %v17405_v24 = vld [vmem:[%s25795_s8 + $0x91c] ss:$68 sps:$4 sm:$0xff]   ;;  %v25845_v18 = vpack.c.bf16 %v22351_v60, %v22344_v32 }
 0x784   :  { %14720 = vmatprep.mubr.msk.bf16.mxu1 %vm6884_vm2, %v25840_v52  ;;  %v25846_v34 = vpack.c.bf16 %v22380_v4, %v22374_v38  ;;  %v17409_v32 = vld [vmem:[%s25795_s8 + $0x9a0] ss:$68 sps:$4 sm:$0xff]   ;;  %v17417_v60 = vld [vmem:[%s25795_s8 + $0xa2c] ss:$68 sps:$4 sm:$0xff]   ;;  %v25847_v38 = vpack.c.bf16 %v22376_v53, %v22369_v8  ;;  %v25848_v4 = vpack.c.bf16 %v22405_v28, %v22399_v5  ;;  %v25849_v5 = vpack.c.bf16 %v22401_v21, %v22394_v39 }
 0x785   :  { %v17421_v8 = vld [vmem:[%s25795_s8 + $0xab0] ss:$68 sps:$4 sm:$0xff]   ;;  %v17429_v53 = vld [vmem:[%s25795_s8 + $0xb3c] ss:$68 sps:$4 sm:$0xff]   ;;  %v25850_v28 = vpack.c.bf16 %v22430_v20, %v22424_v49  ;;  %v25851_v21 = vpack.c.bf16 %v22426_v26, %v22419_v41  ;;  %v25852_v49 = vpack.c.bf16 %v22455_v10, %v22449_v16  ;;  %v25853_v41 = vpack.c.bf16 %v22451_v9, %v22444_v36 }
 0x786   :  { %v17433_v39 = vld [vmem:[%s25795_s8 + $0xbc0] ss:$68 sps:$4 sm:$0xff]   ;;  %v17441_v20 = vld [vmem:[%s25795_s8 + $0xc4c] ss:$68 sps:$4 sm:$0xff]   ;;  %v17451_v16 = vld [vmem:[%s25795_s8 + $0xd58] ss:$68 sps:$4 sm:$0xff]  }
 0x787   :  { %v17445_v26 = vld [vmem:[%s25795_s8 + $0xcd0] ss:$68 sps:$4 sm:$0xff]   ;;  %v17453_v10 = vld [vmem:[%s25795_s8 + $0xd5c] ss:$68 sps:$4 sm:$0xff]  }
 0x788   :  { %v17456_v9 = vld [vmem:[%s25795_s8 + $0xdd4] ss:$68 sps:$4 sm:$0xff]  }
 0x789   :  { %v17454_v36 = vld [vmem:[%s25795_s8 + $0xdd0] ss:$68 sps:$4 sm:$0xff]   ;;  %9813 = vmatprep.subr.bf16.mxu0 %v17456_v9 }
 0x78a   :  { %9814 = vmatpush1.bf16.msra.mxu0 %v17454_v36  ;;  %v17484_v36 = vld [vmem:[%s25795_s8 + $0x800] ss:$68 sps:$4 sm:$0xff]  }
 0x78b   :  { %7701 = vmatmul.mubr.bf16.vlgmr.msra.gmra.mrb[128].mxu1 %v25841_v50  ;;  %9815 = vmatprep.subr.bf16.mxu0 %v17462_v3 }
 0x78c   :  { %14721 = vmatprep.mubr.msk.bf16.mxu1 %vm6884_vm2, %v25842_v37  ;;  %10012 = vmatpush1.bf16.msra.mxu1 %v17373_v43 }
 0x78d   :  { %10013 = vmatprep.subr.bf16.mxu1 %v17381_v63 }
 0x790   :  { %10014 = vmatpush1.bf16.msra.mxu1 %v17379_v19 }
 0x791   :  { %10015 = vmatprep.subr.bf16.mxu1 %v17387_v57 }
 0x793   :  { %7711 = vmatmul.mubr.bf16.gmra.mrb[132].mxu1 %v25843_v23 }
 0x794   :  { %14722 = vmatprep.mubr.msk.bf16.mxu1 %vm6884_vm2, %v25844_v29  ;;  %10016 = vmatpush1.bf16.msra.mxu1 %v17385_v44  ;;  %v17466_v29 = vld [vmem:[%s25795_s8 + $0x668] ss:$68 sps:$4 sm:$0xff]  }
 0x795   :  { %10017 = vmatprep.subr.bf16.mxu1 %v17393_v46 }
 0x798   :  { %10018 = vmatpush1.bf16.msra.mxu1 %v17391_v30  ;;  %v17469_v30 = vld [vmem:[%s25795_s8 + $0x680] ss:$68 sps:$4 sm:$0xff]  }
 0x799   :  { %10019 = vmatprep.subr.bf16.mxu1 %v17399_v62 }
 0x79b   :  { %7721 = vmatmul.mubr.bf16.gmra.mrb[136].mxu1 %v25845_v18  ;;  %v17477_v18 = vld [vmem:[%s25795_s8 + $0x70c] ss:$68 sps:$4 sm:$0xff]  }
 0x79c   :  { %14723 = vmatprep.mubr.msk.bf16.mxu1 %vm6884_vm2, %v25846_v34  ;;  %10020 = vmatpush1.bf16.msra.mxu1 %v17397_v0 }
 0x79d   :  { %10021 = vmatprep.subr.bf16.mxu1 %v17405_v24  ;;  %v17474_v24 = vld [vmem:[%s25795_s8 + $0x6f4] ss:$68 sps:$4 sm:$0xff]  }
 0x7a0   :  { %10022 = vmatpush1.bf16.msra.mxu1 %v17403_v55 }
 0x7a1   :  { %10023 = vmatprep.subr.bf16.mxu1 %v17411_v13 }
 0x7a3   :  { %7731 = vmatmul.mubr.bf16.gmra.mrb[140].mxu1 %v25847_v38  ;;  %v17472_v38 = vld [vmem:[%s25795_s8 + $0x6f0] ss:$68 sps:$4 sm:$0xff]  }
 0x7a4   :  { %14724 = vmatprep.mubr.msk.bf16.mxu1 %vm6884_vm2, %v25848_v4  ;;  %10024 = vmatpush1.bf16.msra.mxu1 %v17409_v32  ;;  %v17475_v4 = vld [vmem:[%s25795_s8 + $0x708] ss:$68 sps:$4 sm:$0xff]  }
 0x7a5   :  { %10025 = vmatprep.subr.bf16.mxu1 %v17417_v60 }
 0x7a8   :  { %10026 = vmatpush1.bf16.msra.mxu1 %v17415_v12 }
 0x7a9   :  { %10027 = vmatprep.subr.bf16.mxu1 %v17423_v2 }
 0x7ab   :  { %7741 = vmatmul.mubr.bf16.gmra.mrb[144].mxu1 %v25849_v5 }
 0x7ac   :  { %14725 = vmatprep.mubr.msk.bf16.mxu1 %vm6884_vm2, %v25850_v28  ;;  %10028 = vmatpush1.bf16.msra.mxu1 %v17421_v8  ;;  %v17480_v8 = vld [vmem:[%s25795_s8 + $0x77c] ss:$68 sps:$4 sm:$0xff]  }
 0x7ad   :  { %10029 = vmatprep.subr.bf16.mxu1 %v17429_v53  ;;  %v17483_v53 = vld [vmem:[%s25795_s8 + $0x794] ss:$68 sps:$4 sm:$0xff]  }
 0x7b0   :  { %10030 = vmatpush1.bf16.msra.mxu1 %v17427_v14 }
 0x7b1   :  { %10031 = vmatprep.subr.bf16.mxu1 %v17435_v7 }
 0x7b3   :  { %7751 = vmatmul.mubr.bf16.gmra.mrb[148].mxu1 %v25851_v21  ;;  %v17481_v21 = vld [vmem:[%s25795_s8 + $0x790] ss:$68 sps:$4 sm:$0xff]  }
 0x7b4   :  { %14726 = vmatprep.mubr.msk.bf16.mxu1 %vm6884_vm2, %v25852_v49  ;;  %10032 = vmatpush1.bf16.msra.mxu1 %v17433_v39 }
 0x7b5   :  { %10033 = vmatprep.subr.bf16.mxu1 %v17441_v20  ;;  %v17478_v20 = vld [vmem:[%s25795_s8 + $0x778] ss:$68 sps:$4 sm:$0xff]  }
 0x7b8   :  { %10034 = vmatpush1.bf16.msra.mxu1 %v17439_v6 }
 0x7b9   :  { %10035 = vmatprep.subr.bf16.mxu1 %v17447_v58  ;;  %v17486_v58 = vld [vmem:[%s25795_s8 + $0x804] ss:$68 sps:$4 sm:$0xff]  }
 0x7bb   :  { %7761 = vmatmul.mubr.bf16.gmra.mrb[152].mxu1 %v25853_v41 }
 0x7bc   :  { %14727 = vmatprep.mubr.msk.bf16.mxu1 %vm6884_vm2, %v7475_v59  ;;  %10036 = vmatpush1.bf16.msra.mxu1 %v17445_v26  ;;  %v17463_v59 = vld [vmem:[%s25795_s8 + $0xe68] ss:$68 sps:$4 sm:$0xff]   ;;  %v17489_v26 = vld [vmem:[%s25795_s8 + $0x81c] ss:$68 sps:$4 sm:$0xff]  }
 0x7bd   :  { %10037 = vmatprep.subr.bf16.mxu1 %v17453_v10 }
 0x7c0   :  { %10038 = vmatpush1.bf16.msra.mxu1 %v17451_v16 }
 0x7c1   :  { %10039 = vmatprep.subr.bf16.mxu1 %v17459_v15 }
 0x7c3   :  { %7771 = vmatmul.mubr.bf16.gmra.mrb[156].mxu1 %v7474_v45  ;;  %v17460_v45 = vld [vmem:[%s25795_s8 + $0xe58] ss:$68 sps:$4 sm:$0xff]  }
 0x7c4   :  { %10040 = vmatpush1.bf16.msra.mxu1 %v17457_v33  ;;  %9816 = vmatpush1.bf16.msra.mxu0 %v17460_v45  ;;  %v17487_v33 = vld [vmem:[%s25795_s8 + $0x818] ss:$68 sps:$4 sm:$0xff]   ;;  %v17492_v45 = vld [vmem:[%s25795_s8 + $0x88c] ss:$68 sps:$4 sm:$0xff]  }
 0x7c5   :  { %10041 = vmatprep.subr.bf16.mxu1 %v17465_v56  ;;  %9898 = vmatprep.subr.bf16.mxu0 %v17468_v11 }
 0x7c8   :  { %10042 = vmatpush1.bf16.msra.mxu1 %v17463_v59  ;;  %v17495_v59 = vld [vmem:[%s25795_s8 + $0x8a4] ss:$68 sps:$4 sm:$0xff]  }
 0x7c9   :  { %10237 = vmatprep.subr.bf16.mxu1 %v17471_v17 }
 0x85e   :  { %v7702_v31 = vpop.f32.mrb[128].mxu1 }
 0x85f   :  { %v7825_v25 = vadd.f32 %v22848_v35, %v7702_v31  ;;  %v7704_v40 = vpop.f32.mrb[129].mxu1 }
 0x860   :  { %v7826_v54 = vadd.f32 %v22851_v42, %v7704_v40  ;;  %v7706_v61 = vpop.f32.mrb[130].mxu1  ;;  %v17490_v40 = vld [vmem:[%s25795_s8 + $0x888] ss:$68 sps:$4 sm:$0xff]  }
 0x861   :  { %v7827_v52 = vadd.f32 %v22848_v35, %v7706_v61  ;;  %v7708_v43 = vpop.f32.mrb[131].mxu1  ;;  %v7857_v50 = vmax.f32 %v7825_v25, 0.0 }
 0x862   :  { %v7828_v63 = vadd.f32 %v22851_v42, %v7708_v43  ;;  %v7858_v19 = vmax.f32 %v7826_v54, 0.0  ;;  %v17493_v54 = vld [vmem:[%s25795_s8 + $0x8a0] ss:$68 sps:$4 sm:$0xff]   ;;  %v17498_v43 = vld [vmem:[%s25795_s8 + $0x914] ss:$68 sps:$4 sm:$0xff]  }
 0x863   :  { %v7859_v37 = vmax.f32 %v7827_v52, 0.0 }
 0x864   :  { %v7860_v57 = vmax.f32 %v7828_v63, 0.0  ;;  %v17501_v63 = vld [vmem:[%s25795_s8 + $0x92c] ss:$68 sps:$4 sm:$0xff]  }
 0x865   :  { %v22857_v44 = vpack.c.bf16 %v7859_v37, %v7857_v50 }
 0x866   :  { %v22859_v46 = vpack.c.bf16 %v7860_v57, %v7858_v19  ;;  %v7712_v23 = vpop.f32.mrb[132].mxu1 }
 0x867   :  { %v7829_v62 = vadd.f32 %v22848_v35, %v7712_v23  ;;  %v7714_v0 = vpop.f32.mrb[133].mxu1 }
 0x868   :  { %v7830_v34 = vadd.f32 %v22851_v42, %v7714_v0  ;;  %v7716_v55 = vpop.f32.mrb[134].mxu1  ;;  %9817 = vmatprep.mubr.bf16.mxu0 %v22859_v46  ;;  %10043 = vmatprep.mubr.bf16.mxu1 %v22859_v46 }
 0x869   :  { %v7831_v13 = vadd.f32 %v22848_v35, %v7716_v55  ;;  %v7718_v32 = vpop.f32.mrb[135].mxu1  ;;  %9818 = vmatmul.mubr.bf16.vlgmr.msra.gmra.mrb[96].mxu0 %v22857_v44  ;;  %10044 = vmatmul.mubr.bf16.vlgmr.msra.gmra.mrb[160].mxu1 %v22857_v44  ;;  %v7861_v12 = vmax.f32 %v7829_v62, 0.0 }
 0x86a   :  { %v7832_v60 = vadd.f32 %v22851_v42, %v7718_v32  ;;  %9899 = vmatpush1.bf16.msra.mxu0 %v17466_v29  ;;  %10238 = vmatpush1.bf16.msra.mxu1 %v17469_v30  ;;  %v7862_v5 = vmax.f32 %v7830_v34, 0.0  ;;  %v17496_v29 = vld [vmem:[%s25795_s8 + $0x910] ss:$68 sps:$4 sm:$0xff]   ;;  %v17499_v30 = vld [vmem:[%s25795_s8 + $0x928] ss:$68 sps:$4 sm:$0xff]  }
 0x86b   :  { %v7863_v2 = vmax.f32 %v7831_v13, 0.0  ;;  %9900 = vmatprep.subr.bf16.mxu0 %v17474_v24  ;;  %10239 = vmatprep.subr.bf16.mxu1 %v17477_v18  ;;  %v17504_v24 = vld [vmem:[%s25795_s8 + $0x99c] ss:$68 sps:$4 sm:$0xff]   ;;  %v17507_v18 = vld [vmem:[%s25795_s8 + $0x9b4] ss:$68 sps:$4 sm:$0xff]  }
 0x86c   :  { %v7864_v28 = vmax.f32 %v7832_v60, 0.0 }
 0x86d   :  { %v22893_v14 = vpack.c.bf16 %v7863_v2, %v7861_v12 }
 0x86e   :  { %v22895_v7 = vpack.c.bf16 %v7864_v28, %v7862_v5  ;;  %v7722_v39 = vpop.f32.mrb[136].mxu1  ;;  %9901 = vmatpush1.bf16.msra.mxu0 %v17472_v38  ;;  %10240 = vmatpush1.bf16.msra.mxu1 %v17475_v4  ;;  %v17502_v38 = vld [vmem:[%s25795_s8 + $0x998] ss:$68 sps:$4 sm:$0xff]   ;;  %v17505_v4 = vld [vmem:[%s25795_s8 + $0x9b0] ss:$68 sps:$4 sm:$0xff]  }
 0x86f   :  { %v7833_v49 = vadd.f32 %v22848_v35, %v7722_v39  ;;  %v7724_v6 = vpop.f32.mrb[137].mxu1  ;;  %9902 = vmatprep.subr.bf16.mxu0 %v17480_v8  ;;  %10241 = vmatprep.subr.bf16.mxu1 %v17483_v53  ;;  %v17510_v8 = vld [vmem:[%s25795_s8 + $0xa24] ss:$68 sps:$4 sm:$0xff]   ;;  %v17513_v53 = vld [vmem:[%s25795_s8 + $0xa3c] ss:$68 sps:$4 sm:$0xff]  }
 0x870   :  { %v7834_v10 = vadd.f32 %v22851_v42, %v7724_v6  ;;  %v7726_v41 = vpop.f32.mrb[138].mxu1  ;;  %9827 = vmatprep.mubr.bf16.mxu0 %v22895_v7  ;;  %10053 = vmatprep.mubr.bf16.mxu1 %v22895_v7  ;;  %v17511_v6 = vld [vmem:[%s25795_s8 + $0xa38] ss:$68 sps:$4 sm:$0xff]  }
 0x871   :  { %v7835_v16 = vadd.f32 %v22848_v35, %v7726_v41  ;;  %v7728_v9 = vpop.f32.mrb[139].mxu1  ;;  %9828 = vmatmul.mubr.bf16.gmra.mrb[100].mxu0 %v22893_v14  ;;  %10054 = vmatmul.mubr.bf16.gmra.mrb[164].mxu1 %v22893_v14  ;;  %v7865_v3 = vmax.f32 %v7833_v49, 0.0  ;;  %v17508_v49 = vld [vmem:[%s25795_s8 + $0xa20] ss:$68 sps:$4 sm:$0xff]  }
 0x872   :  { %v7836_v15 = vadd.f32 %v22851_v42, %v7728_v9  ;;  %9903 = vmatpush1.bf16.msra.mxu0 %v17478_v20  ;;  %10242 = vmatpush1.bf16.msra.mxu1 %v17481_v21  ;;  %v7866_v11 = vmax.f32 %v7834_v10, 0.0  ;;  %v17516_v10 = vld [vmem:[%s25795_s8 + $0xaac] ss:$68 sps:$4 sm:$0xff]   ;;  %v17519_v41 = vld [vmem:[%s25795_s8 + $0xac4] ss:$68 sps:$4 sm:$0xff]  }
 0x873   :  { %v7867_v56 = vmax.f32 %v7835_v16, 0.0  ;;  %9904 = vmatprep.subr.bf16.mxu0 %v17486_v58  ;;  %10243 = vmatprep.subr.bf16.mxu1 %v17489_v26 }
 0x874   :  { %v7868_v17 = vmax.f32 %v7836_v15, 0.0 }
 0x875   :  { %v22929_v51 = vpack.c.bf16 %v7867_v56, %v7865_v3  ;;  %v17514_v3 = vld [vmem:[%s25795_s8 + $0xaa8] ss:$68 sps:$4 sm:$0xff]   ;;  %v17517_v56 = vld [vmem:[%s25795_s8 + $0xac0] ss:$68 sps:$4 sm:$0xff]  }
 0x876   :  { %v22931_v31 = vpack.c.bf16 %v7868_v17, %v7866_v11  ;;  %v7732_v25 = vpop.f32.mrb[140].mxu1  ;;  %9905 = vmatpush1.bf16.msra.mxu0 %v17484_v36  ;;  %10244 = vmatpush1.bf16.msra.mxu1 %v17487_v33  ;;  %v17522_v11 = vld [vmem:[%s25795_s8 + $0xb34] ss:$68 sps:$4 sm:$0xff]   ;;  %v17525_v17 = vld [vmem:[%s25795_s8 + $0xb4c] ss:$68 sps:$4 sm:$0xff]  }
 0x877   :  { %v7837_v61 = vadd.f32 %v22848_v35, %v7732_v25  ;;  %v7734_v52 = vpop.f32.mrb[141].mxu1  ;;  %9906 = vmatprep.subr.bf16.mxu0 %v17492_v45  ;;  %10245 = vmatprep.subr.bf16.mxu1 %v17495_v59 }
 0x878   :  { %v7838_v50 = vadd.f32 %v22851_v42, %v7734_v52  ;;  %v7736_v37 = vpop.f32.mrb[142].mxu1  ;;  %9837 = vmatprep.mubr.bf16.mxu0 %v22931_v31  ;;  %10063 = vmatprep.mubr.bf16.mxu1 %v22931_v31 }
 0x879   :  { %v7839_v19 = vadd.f32 %v22848_v35, %v7736_v37  ;;  %v7738_v57 = vpop.f32.mrb[143].mxu1  ;;  %9838 = vmatmul.mubr.bf16.gmra.mrb[104].mxu0 %v22929_v51  ;;  %10064 = vmatmul.mubr.bf16.gmra.mrb[168].mxu1 %v22929_v51  ;;  %v7869_v62 = vmax.f32 %v7837_v61, 0.0 }
 0x87a   :  { %v7840_v23 = vadd.f32 %v22851_v42, %v7738_v57  ;;  %9907 = vmatpush1.bf16.msra.mxu0 %v17490_v40  ;;  %10246 = vmatpush1.bf16.msra.mxu1 %v17493_v54  ;;  %v7870_v34 = vmax.f32 %v7838_v50, 0.0  ;;  %v17531_v57 = vld [vmem:[%s25795_s8 + $0xbd4] ss:$68 sps:$4 sm:$0xff]  }
 0x87b   :  { %v7871_v0 = vmax.f32 %v7839_v19, 0.0  ;;  %9908 = vmatprep.subr.bf16.mxu0 %v17498_v43  ;;  %10247 = vmatprep.subr.bf16.mxu1 %v17501_v63  ;;  %v17520_v43 = vld [vmem:[%s25795_s8 + $0xb30] ss:$68 sps:$4 sm:$0xff]   ;;  %v17523_v63 = vld [vmem:[%s25795_s8 + $0xb48] ss:$68 sps:$4 sm:$0xff]  }
 0x87c   :  { %v7872_v55 = vmax.f32 %v7840_v23, 0.0  ;;  %v17528_v19 = vld [vmem:[%s25795_s8 + $0xbbc] ss:$68 sps:$4 sm:$0xff]  }
 0x87d   :  { %v22965_v13 = vpack.c.bf16 %v7871_v0, %v7869_v62 }
 0x87e   :  { %v22967_v32 = vpack.c.bf16 %v7872_v55, %v7870_v34  ;;  %v7742_v60 = vpop.f32.mrb[144].mxu1  ;;  %9909 = vmatpush1.bf16.msra.mxu0 %v17496_v29  ;;  %10248 = vmatpush1.bf16.msra.mxu1 %v17499_v30 }
 0x87f   :  { %v7841_v12 = vadd.f32 %v22848_v35, %v7742_v60  ;;  %v7744_v2 = vpop.f32.mrb[145].mxu1  ;;  %9910 = vmatprep.subr.bf16.mxu0 %v17504_v24  ;;  %10249 = vmatprep.subr.bf16.mxu1 %v17507_v18  ;;  %v17526_v24 = vld [vmem:[%s25795_s8 + $0xbb8] ss:$68 sps:$4 sm:$0xff]   ;;  %v17529_v18 = vld [vmem:[%s25795_s8 + $0xbd0] ss:$68 sps:$4 sm:$0xff]  }
 0x880   :  { %v7842_v5 = vadd.f32 %v22851_v42, %v7744_v2  ;;  %v7746_v28 = vpop.f32.mrb[146].mxu1  ;;  %9847 = vmatprep.mubr.bf16.mxu0 %v22967_v32  ;;  %10073 = vmatprep.mubr.bf16.mxu1 %v22967_v32  ;;  %v17534_v60 = vld [vmem:[%s25795_s8 + $0xc44] ss:$68 sps:$4 sm:$0xff]  }
 0x881   :  { %v7843_v39 = vadd.f32 %v22848_v35, %v7746_v28  ;;  %v7748_v20 = vpop.f32.mrb[147].mxu1  ;;  %9848 = vmatmul.mubr.bf16.gmra.mrb[108].mxu0 %v22965_v13  ;;  %10074 = vmatmul.mubr.bf16.gmra.mrb[172].mxu1 %v22965_v13  ;;  %v7873_v58 = vmax.f32 %v7841_v12, 0.0  ;;  %v17535_v28 = vld [vmem:[%s25795_s8 + $0xc58] ss:$68 sps:$4 sm:$0xff]  }
 0x882   :  { %v7844_v21 = vadd.f32 %v22851_v42, %v7748_v20  ;;  %9911 = vmatpush1.bf16.msra.mxu0 %v17502_v38  ;;  %10250 = vmatpush1.bf16.msra.mxu1 %v17505_v4  ;;  %v7874_v16 = vmax.f32 %v7842_v5, 0.0  ;;  %v17537_v38 = vld [vmem:[%s25795_s8 + $0xc5c] ss:$68 sps:$4 sm:$0xff]  }
 0x883   :  { %v7875_v26 = vmax.f32 %v7843_v39, 0.0  ;;  %9912 = vmatprep.subr.bf16.mxu0 %v17510_v8  ;;  %10251 = vmatprep.subr.bf16.mxu1 %v17513_v53  ;;  %v17532_v5 = vld [vmem:[%s25795_s8 + $0xc40] ss:$68 sps:$4 sm:$0xff]  }
 0x884   :  { %v7876_v9 = vmax.f32 %v7844_v21, 0.0  ;;  %v17540_v21 = vld [vmem:[%s25795_s8 + $0xccc] ss:$68 sps:$4 sm:$0xff]  }
 0x885   :  { %v23001_v15 = vpack.c.bf16 %v7875_v26, %v7873_v58 }
 0x886   :  { %v23003_v36 = vpack.c.bf16 %v7876_v9, %v7874_v16  ;;  %v7752_v33 = vpop.f32.mrb[148].mxu1  ;;  %9913 = vmatpush1.bf16.msra.mxu0 %v17508_v49  ;;  %10252 = vmatpush1.bf16.msra.mxu1 %v17511_v6  ;;  %v17543_v49 = vld [vmem:[%s25795_s8 + $0xce4] ss:$68 sps:$4 sm:$0xff]  }
 0x887   :  { %v7845_v45 = vadd.f32 %v22848_v35, %v7752_v33  ;;  %v7754_v59 = vpop.f32.mrb[149].mxu1  ;;  %9914 = vmatprep.subr.bf16.mxu0 %v17516_v10  ;;  %10253 = vmatprep.subr.bf16.mxu1 %v17519_v41  ;;  %v17538_v16 = vld [vmem:[%s25795_s8 + $0xcc8] ss:$68 sps:$4 sm:$0xff]   ;;  %v17541_v9 = vld [vmem:[%s25795_s8 + $0xce0] ss:$68 sps:$4 sm:$0xff]  }
 0x888   :  { %v7846_v25 = vadd.f32 %v22851_v42, %v7754_v59  ;;  %v7756_v40 = vpop.f32.mrb[150].mxu1  ;;  %9857 = vmatprep.mubr.bf16.mxu0 %v23003_v36  ;;  %10083 = vmatprep.mubr.bf16.mxu1 %v23003_v36 }
 0x889   :  { %v7847_v54 = vadd.f32 %v22848_v35, %v7756_v40  ;;  %v7758_v61 = vpop.f32.mrb[151].mxu1  ;;  %9858 = vmatmul.mubr.bf16.gmra.mrb[112].mxu0 %v23001_v15  ;;  %10084 = vmatmul.mubr.bf16.gmra.mrb[176].mxu1 %v23001_v15  ;;  %v7877_v50 = vmax.f32 %v7845_v45, 0.0  ;;  %v17549_v45 = vld [vmem:[%s25795_s8 + $0xd6c] ss:$68 sps:$4 sm:$0xff]  }
 0x88a   :  { %v7848_v52 = vadd.f32 %v22851_v42, %v7758_v61  ;;  %9915 = vmatpush1.bf16.msra.mxu0 %v17514_v3  ;;  %10254 = vmatpush1.bf16.msra.mxu1 %v17517_v56  ;;  %v7878_v23 = vmax.f32 %v7846_v25, 0.0  ;;  %v17546_v56 = vld [vmem:[%s25795_s8 + $0xd54] ss:$68 sps:$4 sm:$0xff]   ;;  %v17547_v61 = vld [vmem:[%s25795_s8 + $0xd68] ss:$68 sps:$4 sm:$0xff]  }
 0x88b   :  { %v7879_v37 = vmax.f32 %v7847_v54, 0.0  ;;  %9916 = vmatprep.subr.bf16.mxu0 %v17522_v11  ;;  %10255 = vmatprep.subr.bf16.mxu1 %v17525_v17  ;;  %v17544_v54 = vld [vmem:[%s25795_s8 + $0xd50] ss:$68 sps:$4 sm:$0xff]  }
 0x88c   :  { %v7880_v29 = vmax.f32 %v7848_v52, 0.0 }
 0x88d   :  { %v23037_v30 = vpack.c.bf16 %v7879_v37, %v7877_v50 }
 0x88e   :  { %v23039_v62 = vpack.c.bf16 %v7880_v29, %v7878_v23  ;;  %v7762_v0 = vpop.f32.mrb[152].mxu1  ;;  %9917 = vmatpush1.bf16.msra.mxu0 %v17520_v43  ;;  %10256 = vmatpush1.bf16.msra.mxu1 %v17523_v63  ;;  %v17553_v23 = vld [vmem:[%s25795_s8 + $0xdf0] ss:$68 sps:$4 sm:$0xff]   ;;  %v17558_v29 = vld [vmem:[%s25795_s8 + $0xe64] ss:$68 sps:$4 sm:$0xff]  }
 0x88f   :  { %v7849_v34 = vadd.f32 %v22848_v35, %v7762_v0  ;;  %v7764_v55 = vpop.f32.mrb[153].mxu1  ;;  %9918 = vmatprep.subr.bf16.mxu0 %v17528_v19  ;;  %10257 = vmatprep.subr.bf16.mxu1 %v17531_v57  ;;  %v17550_v57 = vld [vmem:[%s25795_s8 + $0xdd8] ss:$68 sps:$4 sm:$0xff]  }
 0x890   :  { %v7850_v4 = vadd.f32 %v22851_v42, %v7764_v55  ;;  %v7766_v12 = vpop.f32.mrb[154].mxu1  ;;  %9867 = vmatprep.mubr.bf16.mxu0 %v23039_v62  ;;  %10093 = vmatprep.mubr.bf16.mxu1 %v23039_v62  ;;  %v17561_v0 = vld [vmem:[%s25795_s8 + $0xe7c] ss:$68 sps:$4 sm:$0xff]   ;;  %v17567_v55 = vld [vmem:[%s25795_s8 + $0x694] ss:$68 sps:$4 sm:$0xff]  }
 0x891   :  { %v7851_v2 = vadd.f32 %v22848_v35, %v7766_v12  ;;  %v7768_v8 = vpop.f32.mrb[155].mxu1  ;;  %9868 = vmatmul.mubr.bf16.gmra.mrb[116].mxu0 %v23037_v30  ;;  %10094 = vmatmul.mubr.bf16.gmra.mrb[180].mxu1 %v23037_v30  ;;  %v7881_v39 = vmax.f32 %v7849_v34, 0.0  ;;  %v17564_v34 = vld [vmem:[%s25795_s8 + $0x67c] ss:$68 sps:$4 sm:$0xff]  }
 0x892   :  { %v7852_v53 = vadd.f32 %v22851_v42, %v7768_v8  ;;  %9919 = vmatpush1.bf16.msra.mxu0 %v17526_v24  ;;  %10258 = vmatpush1.bf16.msra.mxu1 %v17529_v18  ;;  %v7882_v6 = vmax.f32 %v7850_v4, 0.0  ;;  %v17556_v24 = vld [vmem:[%s25795_s8 + $0xe60] ss:$68 sps:$4 sm:$0xff]   ;;  %v17559_v18 = vld [vmem:[%s25795_s8 + $0xe78] ss:$68 sps:$4 sm:$0xff]  }
 0x893   :  { %v7883_v20 = vmax.f32 %v7851_v2, 0.0  ;;  %9920 = vmatprep.subr.bf16.mxu0 %v17534_v60  ;;  %10259 = vmatprep.subr.bf16.mxu1 %v17537_v38  ;;  %v17562_v60 = vld [vmem:[%s25795_s8 + $0x678] ss:$68 sps:$4 sm:$0xff]   ;;  %v17565_v38 = vld [vmem:[%s25795_s8 + $0x690] ss:$68 sps:$4 sm:$0xff]  }
 0x894   :  { %v7884_v58 = vmax.f32 %v7852_v53, 0.0  ;;  %v17570_v4 = vld [vmem:[%s25795_s8 + $0x704] ss:$68 sps:$4 sm:$0xff]   ;;  %v17573_v12 = vld [vmem:[%s25795_s8 + $0x71c] ss:$68 sps:$4 sm:$0xff]  }
 0x895   :  { %v23073_v26 = vpack.c.bf16 %v7883_v20, %v7881_v39  ;;  %v17568_v2 = vld [vmem:[%s25795_s8 + $0x700] ss:$68 sps:$4 sm:$0xff]   ;;  %v17571_v8 = vld [vmem:[%s25795_s8 + $0x718] ss:$68 sps:$4 sm:$0xff]   ;;  %v17576_v53 = vld [vmem:[%s25795_s8 + $0x78c] ss:$68 sps:$4 sm:$0xff]  }
 0x896   :  { %v23075_v10 = vpack.c.bf16 %v7884_v58, %v7882_v6  ;;  %v7772_v41 = vpop.f32.mrb[156].mxu1  ;;  %9921 = vmatpush1.bf16.msra.mxu0 %v17532_v5  ;;  %10260 = vmatpush1.bf16.msra.mxu1 %v17535_v28  ;;  %v17579_v5 = vld [vmem:[%s25795_s8 + $0x7a4] ss:$68 sps:$4 sm:$0xff]   ;;  %v17582_v20 = vld [vmem:[%s25795_s8 + $0x814] ss:$68 sps:$4 sm:$0xff]  }
 0x897   :  { %v7853_v33 = vadd.f32 %v22848_v35, %v7772_v41  ;;  %v7774_v3 = vpop.f32.mrb[157].mxu1  ;;  %9922 = vmatprep.subr.bf16.mxu0 %v17540_v21  ;;  %10261 = vmatprep.subr.bf16.mxu1 %v17543_v49  ;;  %v17574_v28 = vld [vmem:[%s25795_s8 + $0x788] ss:$68 sps:$4 sm:$0xff]   ;;  %v17577_v39 = vld [vmem:[%s25795_s8 + $0x7a0] ss:$68 sps:$4 sm:$0xff]  }
 0x898   :  { %v7854_v59 = vadd.f32 %v22851_v42, %v7774_v3  ;;  %v7776_v11 = vpop.f32.mrb[158].mxu1  ;;  %9877 = vmatprep.mubr.bf16.mxu0 %v23075_v10  ;;  %10103 = vmatprep.mubr.bf16.mxu1 %v23075_v10  ;;  %v17585_v21 = vld [vmem:[%s25795_s8 + $0x82c] ss:$68 sps:$4 sm:$0xff]   ;;  %v17588_v58 = vld [vmem:[%s25795_s8 + $0x89c] ss:$68 sps:$4 sm:$0xff]  }
 0x899   :  { %v7855_v17 = vadd.f32 %v22848_v35, %v7776_v11  ;;  %v7778_v25 = vpop.f32.mrb[159].mxu1  ;;  %9878 = vmatmul.mubr.bf16.gmra.mrb[120].mxu0 %v23073_v26  ;;  %10104 = vmatmul.mubr.bf16.gmra.mrb[184].mxu1 %v23073_v26  ;;  %v7885_v52 = vmax.f32 %v7853_v33, 0.0  ;;  %v17552_v35 = vld [vmem:[%s25795_s8 + $0xddc] ss:$68 sps:$4 sm:$0xff]   ;;  %v17580_v49 = vld [vmem:[%s25795_s8 + $0x810] ss:$68 sps:$4 sm:$0xff]  }
 0x89a   :  { %v7856_v40 = vadd.f32 %v22851_v42, %v7778_v25  ;;  %9923 = vmatpush1.bf16.msra.mxu0 %v17538_v16  ;;  %10262 = vmatpush1.bf16.msra.mxu1 %v17541_v9  ;;  %v17555_v42 = vld [vmem:[%s25795_s8 + $0xdf4] ss:$68 sps:$4 sm:$0xff]   ;;  %v7886_v63 = vmax.f32 %v7854_v59, 0.0  ;;  %v17583_v6 = vld [vmem:[%s25795_s8 + $0x828] ss:$68 sps:$4 sm:$0xff]  }
 0x89b   :  { %v7887_v43 = vmax.f32 %v7855_v17, 0.0  ;;  %9924 = vmatprep.subr.bf16.mxu0 %v17546_v56  ;;  %10263 = vmatprep.subr.bf16.mxu1 %v17549_v45  ;;  %v17591_v41 = vld [vmem:[%s25795_s8 + $0x8b4] ss:$68 sps:$4 sm:$0xff]   ;;  %v17594_v33 = vld [vmem:[%s25795_s8 + $0x924] ss:$68 sps:$4 sm:$0xff]  }
 0x89c   :  { %v7888_v50 = vmax.f32 %v7856_v40, 0.0  ;;  %v17586_v16 = vld [vmem:[%s25795_s8 + $0x898] ss:$68 sps:$4 sm:$0xff]   ;;  %v17589_v9 = vld [vmem:[%s25795_s8 + $0x8b0] ss:$68 sps:$4 sm:$0xff]  }
 0x89d   :  { %v23109_v37 = vpack.c.bf16 %v7887_v43, %v7885_v52  ;;  %v17597_v3 = vld [vmem:[%s25795_s8 + $0x93c] ss:$68 sps:$4 sm:$0xff]   ;;  %v17600_v59 = vld [vmem:[%s25795_s8 + $0x9ac] ss:$68 sps:$4 sm:$0xff]   ;;  %v17603_v11 = vld [vmem:[%s25795_s8 + $0x9c4] ss:$68 sps:$4 sm:$0xff]  }
 0x89e   :  { %v23111_v19 = vpack.c.bf16 %v7888_v50, %v7886_v63  ;;  %9925 = vmatpush1.bf16.msra.mxu0 %v17544_v54  ;;  %10264 = vmatpush1.bf16.msra.mxu1 %v17547_v61  ;;  %v17592_v56 = vld [vmem:[%s25795_s8 + $0x920] ss:$68 sps:$4 sm:$0xff]   ;;  %v17595_v45 = vld [vmem:[%s25795_s8 + $0x938] ss:$68 sps:$4 sm:$0xff]   ;;  %v17598_v17 = vld [vmem:[%s25795_s8 + $0x9a8] ss:$68 sps:$4 sm:$0xff]  }
 0x89f   :  { %9926 = vmatprep.subr.bf16.mxu0 %v17552_v35  ;;  %10265 = vmatprep.subr.bf16.mxu1 %v17555_v42  ;;  %v17601_v25 = vld [vmem:[%s25795_s8 + $0x9c0] ss:$68 sps:$4 sm:$0xff]   ;;  %v17606_v40 = vld [vmem:[%s25795_s8 + $0xa34] ss:$68 sps:$4 sm:$0xff]   ;;  %v17609_v54 = vld [vmem:[%s25795_s8 + $0xa4c] ss:$68 sps:$4 sm:$0xff]  }
 0x8a0   :  { %9887 = vmatprep.mubr.bf16.mxu0 %v23111_v19  ;;  %10113 = vmatprep.mubr.bf16.mxu1 %v23111_v19  ;;  %v17604_v61 = vld [vmem:[%s25795_s8 + $0xa30] ss:$68 sps:$4 sm:$0xff]   ;;  %v17607_v52 = vld [vmem:[%s25795_s8 + $0xa48] ss:$68 sps:$4 sm:$0xff]   ;;  %v17612_v43 = vld [vmem:[%s25795_s8 + $0xabc] ss:$68 sps:$4 sm:$0xff]  }
 0x8a1   :  { %9888 = vmatmul.mubr.bf16.gmra.mrb[124].mxu0 %v23109_v37  ;;  %10114 = vmatmul.mubr.bf16.gmra.mrb[188].mxu1 %v23109_v37  ;;  %v17615_v35 = vld [vmem:[%s25795_s8 + $0xad4] ss:$68 sps:$4 sm:$0xff]   ;;  %v17618_v50 = vld [vmem:[%s25795_s8 + $0xb44] ss:$68 sps:$4 sm:$0xff]  }
 0x8a2   :  { %9927 = vmatpush1.bf16.msra.mxu0 %v17550_v57  ;;  %9930 = vmatprep.mubr.bf16.mxu0 %v22859_v46  ;;  %v17610_v42 = vld [vmem:[%s25795_s8 + $0xab8] ss:$68 sps:$4 sm:$0xff]   ;;  %v17613_v63 = vld [vmem:[%s25795_s8 + $0xad0] ss:$68 sps:$4 sm:$0xff]  }
 0x8a3   :  { %10266 = vmatpush1.bf16.msra.mxu1 %v17553_v23  ;;  %10269 = vmatprep.mubr.bf16.mxu1 %v22859_v46  ;;  %v17621_v57 = vld [vmem:[%s25795_s8 + $0xb5c] ss:$68 sps:$4 sm:$0xff]  }
 0x8a4   :  { %9928 = vmatprep.subr.bf16.mxu0 %v17558_v29  ;;  %10267 = vmatprep.subr.bf16.mxu1 %v17561_v0  ;;  %v17616_v23 = vld [vmem:[%s25795_s8 + $0xb40] ss:$68 sps:$4 sm:$0xff]   ;;  %v17619_v29 = vld [vmem:[%s25795_s8 + $0xb58] ss:$68 sps:$4 sm:$0xff]   ;;  %v17624_v0 = vld [vmem:[%s25795_s8 + $0xbcc] ss:$68 sps:$4 sm:$0xff]  }
 0x8a6   :  { %9929 = vmatpush1.bf16.msra.mxu0 %v17556_v24  ;;  %v17627_v24 = vld [vmem:[%s25795_s8 + $0xbe4] ss:$68 sps:$4 sm:$0xff]  }
 0x8a7   :  { %10268 = vmatpush1.bf16.msra.mxu1 %v17559_v18  ;;  %10124 = vmatprep.subr.bf16.mxu0 %v17564_v34  ;;  %v17622_v18 = vld [vmem:[%s25795_s8 + $0xbc8] ss:$68 sps:$4 sm:$0xff]   ;;  %v17625_v34 = vld [vmem:[%s25795_s8 + $0xbe0] ss:$68 sps:$4 sm:$0xff]  }
 0x8a8   :  { %10463 = vmatprep.subr.bf16.mxu1 %v17567_v55  ;;  %v17630_v55 = vld [vmem:[%s25795_s8 + $0xc54] ss:$68 sps:$4 sm:$0xff]  }
 0x8a9   :  { %9931 = vmatmul.mubr.bf16.vlgmr.msra.gmra.mrb[128].mxu0 %v22857_v44 }
 0x8aa   :  { %10270 = vmatmul.mubr.bf16.vlgmr.msra.gmra.mrb[192].mxu1 %v22857_v44  ;;  %9940 = vmatprep.mubr.bf16.mxu0 %v22895_v7 }
 0x8ab   :  { %10125 = vmatpush1.bf16.msra.mxu0 %v17562_v60  ;;  %10279 = vmatprep.mubr.bf16.mxu1 %v22895_v7  ;;  %v17633_v60 = vld [vmem:[%s25795_s8 + $0xc6c] ss:$68 sps:$4 sm:$0xff]  }
 0x8ac   :  { %10464 = vmatpush1.bf16.msra.mxu1 %v17565_v38  ;;  %10126 = vmatprep.subr.bf16.mxu0 %v17570_v4  ;;  %v17628_v38 = vld [vmem:[%s25795_s8 + $0xc50] ss:$68 sps:$4 sm:$0xff]   ;;  %v17631_v4 = vld [vmem:[%s25795_s8 + $0xc68] ss:$68 sps:$4 sm:$0xff]  }
 0x8ad   :  { %10465 = vmatprep.subr.bf16.mxu1 %v17573_v12  ;;  %v17636_v12 = vld [vmem:[%s25795_s8 + $0xcdc] ss:$68 sps:$4 sm:$0xff]  }
 0x8af   :  { %10127 = vmatpush1.bf16.msra.mxu0 %v17568_v2  ;;  %v17639_v2 = vld [vmem:[%s25795_s8 + $0xcf4] ss:$68 sps:$4 sm:$0xff]  }
 0x8b0   :  { %10466 = vmatpush1.bf16.msra.mxu1 %v17571_v8  ;;  %10128 = vmatprep.subr.bf16.mxu0 %v17576_v53  ;;  %v17634_v8 = vld [vmem:[%s25795_s8 + $0xcd8] ss:$68 sps:$4 sm:$0xff]   ;;  %v17637_v53 = vld [vmem:[%s25795_s8 + $0xcf0] ss:$68 sps:$4 sm:$0xff]  }
 0x8b1   :  { %9941 = vmatmul.mubr.bf16.gmra.mrb[132].mxu0 %v22893_v14  ;;  %10467 = vmatprep.subr.bf16.mxu1 %v17579_v5  ;;  %v17642_v5 = vld [vmem:[%s25795_s8 + $0xd64] ss:$68 sps:$4 sm:$0xff]  }
 0x8b2   :  { %10280 = vmatmul.mubr.bf16.gmra.mrb[196].mxu1 %v22893_v14  ;;  %9950 = vmatprep.mubr.bf16.mxu0 %v22931_v31 }
 0x8b3   :  { %10129 = vmatpush1.bf16.msra.mxu0 %v17574_v28  ;;  %10289 = vmatprep.mubr.bf16.mxu1 %v22931_v31  ;;  %v17645_v28 = vld [vmem:[%s25795_s8 + $0xd7c] ss:$68 sps:$4 sm:$0xff]  }
 0x8b4   :  { %10468 = vmatpush1.bf16.msra.mxu1 %v17577_v39  ;;  %10130 = vmatprep.subr.bf16.mxu0 %v17582_v20  ;;  %v17640_v39 = vld [vmem:[%s25795_s8 + $0xd60] ss:$68 sps:$4 sm:$0xff]   ;;  %v17643_v20 = vld [vmem:[%s25795_s8 + $0xd78] ss:$68 sps:$4 sm:$0xff]  }
 0x8b5   :  { %10469 = vmatprep.subr.bf16.mxu1 %v17585_v21  ;;  %v17648_v21 = vld [vmem:[%s25795_s8 + $0xdec] ss:$68 sps:$4 sm:$0xff]  }
 0x8b7   :  { %10131 = vmatpush1.bf16.msra.mxu0 %v17580_v49  ;;  %v17651_v49 = vld [vmem:[%s25795_s8 + $0xe04] ss:$68 sps:$4 sm:$0xff]  }
 0x8b8   :  { %10470 = vmatpush1.bf16.msra.mxu1 %v17583_v6  ;;  %10132 = vmatprep.subr.bf16.mxu0 %v17588_v58  ;;  %v17646_v6 = vld [vmem:[%s25795_s8 + $0xde8] ss:$68 sps:$4 sm:$0xff]   ;;  %v17649_v58 = vld [vmem:[%s25795_s8 + $0xe00] ss:$68 sps:$4 sm:$0xff]  }
 0x8b9   :  { %9951 = vmatmul.mubr.bf16.gmra.mrb[136].mxu0 %v22929_v51  ;;  %10471 = vmatprep.subr.bf16.mxu1 %v17591_v41  ;;  %v17654_v41 = vld [vmem:[%s25795_s8 + $0xe74] ss:$68 sps:$4 sm:$0xff]  }
 0x8ba   :  { %10290 = vmatmul.mubr.bf16.gmra.mrb[200].mxu1 %v22929_v51  ;;  %9960 = vmatprep.mubr.bf16.mxu0 %v22967_v32 }
 0x8bb   :  { %10133 = vmatpush1.bf16.msra.mxu0 %v17586_v16  ;;  %10299 = vmatprep.mubr.bf16.mxu1 %v22967_v32  ;;  %v17657_v16 = vld [vmem:[%s25795_s8 + $0xe8c] ss:$68 sps:$4 sm:$0xff]  }
 0x8bc   :  { %10472 = vmatpush1.bf16.msra.mxu1 %v17589_v9  ;;  %10134 = vmatprep.subr.bf16.mxu0 %v17594_v33  ;;  %v17652_v9 = vld [vmem:[%s25795_s8 + $0xe70] ss:$68 sps:$4 sm:$0xff]   ;;  %v17655_v33 = vld [vmem:[%s25795_s8 + $0xe88] ss:$68 sps:$4 sm:$0xff]  }
 0x8bd   :  { %10473 = vmatprep.subr.bf16.mxu1 %v17597_v3  ;;  %v17660_v3 = vld [vmem:[%s25795_s8 + $0x68c] ss:$68 sps:$4 sm:$0xff]  }
 0x8bf   :  { %10135 = vmatpush1.bf16.msra.mxu0 %v17592_v56  ;;  %v17685_v56 = vld [vmem:[%s25795_s8 + $0xae0] ss:$68 sps:$4 sm:$0xff]  }
 0x8c0   :  { %10474 = vmatpush1.bf16.msra.mxu1 %v17595_v45  ;;  %10136 = vmatprep.subr.bf16.mxu0 %v17600_v59  ;;  %v17658_v45 = vld [vmem:[%s25795_s8 + $0x688] ss:$68 sps:$4 sm:$0xff]   ;;  %v17663_v59 = vld [vmem:[%s25795_s8 + $0x714] ss:$68 sps:$4 sm:$0xff]  }
 0x8c1   :  { %9961 = vmatmul.mubr.bf16.gmra.mrb[140].mxu0 %v22965_v13  ;;  %10475 = vmatprep.subr.bf16.mxu1 %v17603_v11  ;;  %v17686_v11 = vld [vmem:[%s25795_s8 + $0x6a0] ss:$68 sps:$4 sm:$0xff]  }
 0x8c2   :  { %10300 = vmatmul.mubr.bf16.gmra.mrb[204].mxu1 %v22965_v13  ;;  %9970 = vmatprep.mubr.bf16.mxu0 %v23003_v36 }
 0x8c3   :  { %10137 = vmatpush1.bf16.msra.mxu0 %v17598_v17  ;;  %10309 = vmatprep.mubr.bf16.mxu1 %v23003_v36  ;;  %v17690_v17 = vld [vmem:[%s25795_s8 + $0xb68] ss:$68 sps:$4 sm:$0xff]  }
 0x8c4   :  { %10476 = vmatpush1.bf16.msra.mxu1 %v17601_v25  ;;  %10138 = vmatprep.subr.bf16.mxu0 %v17606_v40  ;;  %v17661_v25 = vld [vmem:[%s25795_s8 + $0x710] ss:$68 sps:$4 sm:$0xff]   ;;  %v17666_v40 = vld [vmem:[%s25795_s8 + $0x79c] ss:$68 sps:$4 sm:$0xff]  }
 0x8c5   :  { %10477 = vmatprep.subr.bf16.mxu1 %v17609_v54  ;;  %v17691_v54 = vld [vmem:[%s25795_s8 + $0x728] ss:$68 sps:$4 sm:$0xff]  }
 0x8c7   :  { %10139 = vmatpush1.bf16.msra.mxu0 %v17604_v61  ;;  %v17695_v61 = vld [vmem:[%s25795_s8 + $0xbf0] ss:$68 sps:$4 sm:$0xff]  }
 0x8c8   :  { %10478 = vmatpush1.bf16.msra.mxu1 %v17607_v52  ;;  %10140 = vmatprep.subr.bf16.mxu0 %v17612_v43  ;;  %v17664_v52 = vld [vmem:[%s25795_s8 + $0x798] ss:$68 sps:$4 sm:$0xff]   ;;  %v17669_v43 = vld [vmem:[%s25795_s8 + $0x824] ss:$68 sps:$4 sm:$0xff]  }
 0x8c9   :  { %9971 = vmatmul.mubr.bf16.gmra.mrb[144].mxu0 %v23001_v15  ;;  %10479 = vmatprep.subr.bf16.mxu1 %v17615_v35  ;;  %v17696_v35 = vld [vmem:[%s25795_s8 + $0x7b0] ss:$68 sps:$4 sm:$0xff]  }
 0x8ca   :  { %10310 = vmatmul.mubr.bf16.gmra.mrb[208].mxu1 %v23001_v15  ;;  %9980 = vmatprep.mubr.bf16.mxu0 %v23039_v62 }
 0x8cb   :  { %10141 = vmatpush1.bf16.msra.mxu0 %v17610_v42  ;;  %10319 = vmatprep.mubr.bf16.mxu1 %v23039_v62  ;;  %v17700_v42 = vld [vmem:[%s25795_s8 + $0xc78] ss:$68 sps:$4 sm:$0xff]  }
 0x8cc   :  { %10480 = vmatpush1.bf16.msra.mxu1 %v17613_v63  ;;  %10142 = vmatprep.subr.bf16.mxu0 %v17618_v50  ;;  %v17667_v63 = vld [vmem:[%s25795_s8 + $0x820] ss:$68 sps:$4 sm:$0xff]   ;;  %v17672_v50 = vld [vmem:[%s25795_s8 + $0x8ac] ss:$68 sps:$4 sm:$0xff]  }
 0x8cd   :  { %10481 = vmatprep.subr.bf16.mxu1 %v17621_v57  ;;  %v17701_v57 = vld [vmem:[%s25795_s8 + $0x838] ss:$68 sps:$4 sm:$0xff]  }
 0x8cf   :  { %10143 = vmatpush1.bf16.msra.mxu0 %v17616_v23  ;;  %v17705_v23 = vld [vmem:[%s25795_s8 + $0xd00] ss:$68 sps:$4 sm:$0xff]  }
 0x8d0   :  { %10482 = vmatpush1.bf16.msra.mxu1 %v17619_v29  ;;  %10144 = vmatprep.subr.bf16.mxu0 %v17624_v0  ;;  %v17670_v29 = vld [vmem:[%s25795_s8 + $0x8a8] ss:$68 sps:$4 sm:$0xff]   ;;  %v17675_v0 = vld [vmem:[%s25795_s8 + $0x934] ss:$68 sps:$4 sm:$0xff]  }
 0x8d1   :  { %9981 = vmatmul.mubr.bf16.gmra.mrb[148].mxu0 %v23037_v30  ;;  %10483 = vmatprep.subr.bf16.mxu1 %v17627_v24  ;;  %v17706_v24 = vld [vmem:[%s25795_s8 + $0x8c0] ss:$68 sps:$4 sm:$0xff]  }
 0x8d2   :  { %10320 = vmatmul.mubr.bf16.gmra.mrb[212].mxu1 %v23037_v30  ;;  %9990 = vmatprep.mubr.bf16.mxu0 %v23075_v10 }
 0x8d3   :  { %10145 = vmatpush1.bf16.msra.mxu0 %v17622_v18  ;;  %10329 = vmatprep.mubr.bf16.mxu1 %v23075_v10  ;;  %v17710_v18 = vld [vmem:[%s25795_s8 + $0xd88] ss:$68 sps:$4 sm:$0xff]  }
 0x8d4   :  { %10484 = vmatpush1.bf16.msra.mxu1 %v17625_v34  ;;  %10146 = vmatprep.subr.bf16.mxu0 %v17630_v55  ;;  %v17673_v34 = vld [vmem:[%s25795_s8 + $0x930] ss:$68 sps:$4 sm:$0xff]   ;;  %v17678_v55 = vld [vmem:[%s25795_s8 + $0x9bc] ss:$68 sps:$4 sm:$0xff]  }
 0x8d5   :  { %10485 = vmatprep.subr.bf16.mxu1 %v17633_v60  ;;  %v17711_v60 = vld [vmem:[%s25795_s8 + $0x948] ss:$68 sps:$4 sm:$0xff]  }
 0x8d7   :  { %10147 = vmatpush1.bf16.msra.mxu0 %v17628_v38  ;;  %v17715_v38 = vld [vmem:[%s25795_s8 + $0xe10] ss:$68 sps:$4 sm:$0xff]  }
 0x8d8   :  { %10486 = vmatpush1.bf16.msra.mxu1 %v17631_v4  ;;  %10148 = vmatprep.subr.bf16.mxu0 %v17636_v12  ;;  %v17676_v4 = vld [vmem:[%s25795_s8 + $0x9b8] ss:$68 sps:$4 sm:$0xff]   ;;  %v17681_v12 = vld [vmem:[%s25795_s8 + $0xa44] ss:$68 sps:$4 sm:$0xff]  }
 0x8d9   :  { %9991 = vmatmul.mubr.bf16.gmra.mrb[152].mxu0 %v23073_v26  ;;  %10487 = vmatprep.subr.bf16.mxu1 %v17639_v2  ;;  %v17716_v2 = vld [vmem:[%s25795_s8 + $0x9d0] ss:$68 sps:$4 sm:$0xff]  }
 0x8da   :  { %10330 = vmatmul.mubr.bf16.gmra.mrb[216].mxu1 %v23073_v26  ;;  %10000 = vmatprep.mubr.bf16.mxu0 %v23111_v19 }
 0x8db   :  { %10149 = vmatpush1.bf16.msra.mxu0 %v17634_v8  ;;  %10339 = vmatprep.mubr.bf16.mxu1 %v23111_v19  ;;  %v17720_v8 = vld [vmem:[%s25795_s8 + $0xe98] ss:$68 sps:$4 sm:$0xff]  }
 0x8dc   :  { %10488 = vmatpush1.bf16.msra.mxu1 %v17637_v53  ;;  %10150 = vmatprep.subr.bf16.mxu0 %v17642_v5  ;;  %v17679_v53 = vld [vmem:[%s25795_s8 + $0xa40] ss:$68 sps:$4 sm:$0xff]   ;;  %v17684_v5 = vld [vmem:[%s25795_s8 + $0xacc] ss:$68 sps:$4 sm:$0xff]  }
 0x8dd   :  { %10489 = vmatprep.subr.bf16.mxu1 %v17645_v28  ;;  %v17721_v28 = vld [vmem:[%s25795_s8 + $0xa58] ss:$68 sps:$4 sm:$0xff]  }
 0x8df   :  { %10151 = vmatpush1.bf16.msra.mxu0 %v17640_v39  ;;  %v17739_v39 = vld [vmem:[%s25795_s8 + $0x14] ss:$68 sps:$4 sm:$0xff]  }
 0x8e0   :  { %10490 = vmatpush1.bf16.msra.mxu1 %v17643_v20  ;;  %10152 = vmatprep.subr.bf16.mxu0 %v17648_v21  ;;  %v17682_v20 = vld [vmem:[%s25795_s8 + $0xac8] ss:$68 sps:$4 sm:$0xff]   ;;  %v17689_v21 = vld [vmem:[%s25795_s8 + $0xb54] ss:$68 sps:$4 sm:$0xff]  }
 0x8e1   :  { %10001 = vmatmul.mubr.bf16.gmra.mrb[156].mxu0 %v23109_v37  ;;  %10491 = vmatprep.subr.bf16.mxu1 %v17651_v49  ;;  %v17687_v49 = vld [vmem:[%s25795_s8 + $0xb50] ss:$68 sps:$4 sm:$0xff]  }
 0x8e2   :  { %10340 = vmatmul.mubr.bf16.gmra.mrb[220].mxu1 %v23109_v37  ;;  %10156 = vmatprep.mubr.bf16.mxu0 %v22859_v46 }
 0x8e3   :  { %10153 = vmatpush1.bf16.msra.mxu0 %v17646_v6  ;;  %10495 = vmatprep.mubr.bf16.mxu1 %v22859_v46  ;;  %v17694_v6 = vld [vmem:[%s25795_s8 + $0xbdc] ss:$68 sps:$4 sm:$0xff]  }
 0x8e4   :  { %10492 = vmatpush1.bf16.msra.mxu1 %v17649_v58  ;;  %10154 = vmatprep.subr.bf16.mxu0 %v17654_v41  ;;  %v17692_v58 = vld [vmem:[%s25795_s8 + $0xbd8] ss:$68 sps:$4 sm:$0xff]   ;;  %v17699_v41 = vld [vmem:[%s25795_s8 + $0xc64] ss:$68 sps:$4 sm:$0xff]  }
 0x8e5   :  { %10493 = vmatprep.subr.bf16.mxu1 %v17657_v16  ;;  %v17697_v16 = vld [vmem:[%s25795_s8 + $0xc60] ss:$68 sps:$4 sm:$0xff]  }
 0x8e7   :  { %10155 = vmatpush1.bf16.msra.mxu0 %v17652_v9  ;;  %v17704_v9 = vld [vmem:[%s25795_s8 + $0xcec] ss:$68 sps:$4 sm:$0xff]  }
 0x8e8   :  { %10494 = vmatpush1.bf16.msra.mxu1 %v17655_v33  ;;  %10350 = vmatprep.subr.bf16.mxu0 %v17660_v3  ;;  %v17702_v33 = vld [vmem:[%s25795_s8 + $0xce8] ss:$68 sps:$4 sm:$0xff]   ;;  %v17709_v3 = vld [vmem:[%s25795_s8 + $0xd74] ss:$68 sps:$4 sm:$0xff]  }
 0x8e9   :  { %15799 = vmatprep.subr.bf16.mxu1 %v17685_v56  ;;  %v17707_v56 = vld [vmem:[%s25795_s8 + $0xd70] ss:$68 sps:$4 sm:$0xff]  }
 0x8ea   :  { %10157 = vmatmul.mubr.bf16.vlgmr.msra.gmra.mrb[160].mxu0 %v22857_v44 }
 0x8eb   :  { %10496 = vmatmul.mubr.bf16.vlgmr.msra.gmra.mrb[224].mxu1 %v22857_v44  ;;  %10166 = vmatprep.mubr.bf16.mxu0 %v22895_v7 }
 0x8ec   :  { %10351 = vmatpush1.bf16.msra.mxu0 %v17658_v45  ;;  %10505 = vmatprep.mubr.bf16.mxu1 %v22895_v7  ;;  %v17714_v45 = vld [vmem:[%s25795_s8 + $0xdfc] ss:$68 sps:$4 sm:$0xff]  }
 0x8ed   :  { %10352 = vmatprep.subr.bf16.mxu0 %v17663_v59  ;;  %15800 = vmatpush3.bf16.msra.mxu1 %v17686_v11  ;;  %v17712_v59 = vld [vmem:[%s25795_s8 + $0xdf8] ss:$68 sps:$4 sm:$0xff]   ;;  %v17719_v11 = vld [vmem:[%s25795_s8 + $0xe84] ss:$68 sps:$4 sm:$0xff]  }
 0x8ee   :  { %15801 = vmatprep.subr.bf16.mxu1 %v17690_v17  ;;  %v17717_v17 = vld [vmem:[%s25795_s8 + $0xe80] ss:$68 sps:$4 sm:$0xff]  }
 0x8f0   :  { %10353 = vmatpush1.bf16.msra.mxu0 %v17661_v25  ;;  %v17724_v25 = vld [vmem:[%s25795_s8 + $0x69c] ss:$68 sps:$4 sm:$0xff]  }
 0x8f1   :  { %10354 = vmatprep.subr.bf16.mxu0 %v17666_v40  ;;  %15802 = vmatpush3.bf16.msra.mxu1 %v17691_v54  ;;  %v17722_v40 = vld [vmem:[%s25795_s8 + $0x698] ss:$68 sps:$4 sm:$0xff]   ;;  %v17727_v54 = vld [vmem:[%s25795_s8 + $0x724] ss:$68 sps:$4 sm:$0xff]  }
 0x8f2   :  { %10167 = vmatmul.mubr.bf16.gmra.mrb[164].mxu0 %v22893_v14  ;;  %15803 = vmatprep.subr.bf16.mxu1 %v17695_v61  ;;  %v17737_v61 = vld [vmem:[%s25795_s8 + $0x10] ss:$68 sps:$4 sm:$0xff]  }
 0x8f3   :  { %10506 = vmatmul.mubr.bf16.gmra.mrb[228].mxu1 %v22893_v14  ;;  %10176 = vmatprep.mubr.bf16.mxu0 %v22931_v31 }
 0x8f4   :  { %10355 = vmatpush1.bf16.msra.mxu0 %v17664_v52  ;;  %10515 = vmatprep.mubr.bf16.mxu1 %v22931_v31  ;;  %v17745_v52 = vld [vmem:[%s25795_s8 + $0x9c] ss:$68 sps:$4 sm:$0xff]  }
 0x8f5   :  { %10356 = vmatprep.subr.bf16.mxu0 %v17669_v43  ;;  %15804 = vmatpush3.bf16.msra.mxu1 %v17696_v35  ;;  %v17725_v43 = vld [vmem:[%s25795_s8 + $0x720] ss:$68 sps:$4 sm:$0xff]   ;;  %v17730_v35 = vld [vmem:[%s25795_s8 + $0x7ac] ss:$68 sps:$4 sm:$0xff]  }
 0x8f6   :  { %15805 = vmatprep.subr.bf16.mxu1 %v17700_v42  ;;  %v17743_v42 = vld [vmem:[%s25795_s8 + $0x98] ss:$68 sps:$4 sm:$0xff]  }
 0x8f8   :  { %10357 = vmatpush1.bf16.msra.mxu0 %v17667_v63  ;;  %v17728_v63 = vld [vmem:[%s25795_s8 + $0x7a8] ss:$68 sps:$4 sm:$0xff]  }
 0x8f9   :  { %10358 = vmatprep.subr.bf16.mxu0 %v17672_v50  ;;  %15806 = vmatpush3.bf16.msra.mxu1 %v17701_v57  ;;  %v17733_v50 = vld [vmem:[%s25795_s8 + $0x834] ss:$68 sps:$4 sm:$0xff]   ;;  %v17751_v57 = vld [vmem:[%s25795_s8 + $0x124] ss:$68 sps:$4 sm:$0xff]  }
 0x8fa   :  { %10177 = vmatmul.mubr.bf16.gmra.mrb[168].mxu0 %v22929_v51  ;;  %15807 = vmatprep.subr.bf16.mxu1 %v17705_v23  ;;  %v17749_v23 = vld [vmem:[%s25795_s8 + $0x120] ss:$68 sps:$4 sm:$0xff]  }
 0x8fb   :  { %10516 = vmatmul.mubr.bf16.gmra.mrb[232].mxu1 %v22929_v51  ;;  %10186 = vmatprep.mubr.bf16.mxu0 %v22967_v32 }
 0x8fc   :  { %10359 = vmatpush1.bf16.msra.mxu0 %v17670_v29  ;;  %10525 = vmatprep.mubr.bf16.mxu1 %v22967_v32  ;;  %v17731_v29 = vld [vmem:[%s25795_s8 + $0x830] ss:$68 sps:$4 sm:$0xff]  }
 0x8fd   :  { %10360 = vmatprep.subr.bf16.mxu0 %v17675_v0  ;;  %15808 = vmatpush3.bf16.msra.mxu1 %v17706_v24  ;;  %v17757_v0 = vld [vmem:[%s25795_s8 + $0x1ac] ss:$68 sps:$4 sm:$0xff]   ;;  %v17736_v24 = vld [vmem:[%s25795_s8 + $0x8bc] ss:$68 sps:$4 sm:$0xff]  }
 0x8fe   :  { %15809 = vmatprep.subr.bf16.mxu1 %v17710_v18  ;;  %v17734_v18 = vld [vmem:[%s25795_s8 + $0x8b8] ss:$68 sps:$4 sm:$0xff]  }
 0x900   :  { %10361 = vmatpush1.bf16.msra.mxu0 %v17673_v34  ;;  %v17742_v34 = vld [vmem:[%s25795_s8 + $0x944] ss:$68 sps:$4 sm:$0xff]  }
 0x901   :  { %10362 = vmatprep.subr.bf16.mxu0 %v17678_v55  ;;  %15810 = vmatpush3.bf16.msra.mxu1 %v17711_v60  ;;  %v17755_v55 = vld [vmem:[%s25795_s8 + $0x1a8] ss:$68 sps:$4 sm:$0xff]   ;;  %v17763_v60 = vld [vmem:[%s25795_s8 + $0x234] ss:$68 sps:$4 sm:$0xff]  }
 0x902   :  { %10187 = vmatmul.mubr.bf16.gmra.mrb[172].mxu0 %v22965_v13  ;;  %15811 = vmatprep.subr.bf16.mxu1 %v17715_v38  ;;  %v17740_v38 = vld [vmem:[%s25795_s8 + $0x940] ss:$68 sps:$4 sm:$0xff]  }
 0x903   :  { %10526 = vmatmul.mubr.bf16.gmra.mrb[236].mxu1 %v22965_v13  ;;  %10196 = vmatprep.mubr.bf16.mxu0 %v23003_v36 }
 0x904   :  { %10363 = vmatpush1.bf16.msra.mxu0 %v17676_v4  ;;  %10535 = vmatprep.mubr.bf16.mxu1 %v23003_v36  ;;  %v17748_v4 = vld [vmem:[%s25795_s8 + $0x9cc] ss:$68 sps:$4 sm:$0xff]  }
 0x905   :  { %10364 = vmatprep.subr.bf16.mxu0 %v17681_v12  ;;  %15812 = vmatpush3.bf16.msra.mxu1 %v17716_v2  ;;  %v17761_v12 = vld [vmem:[%s25795_s8 + $0x230] ss:$68 sps:$4 sm:$0xff]   ;;  %v17746_v2 = vld [vmem:[%s25795_s8 + $0x9c8] ss:$68 sps:$4 sm:$0xff]  }
 0x906   :  { %15813 = vmatprep.subr.bf16.mxu1 %v17720_v8  ;;  %v17754_v8 = vld [vmem:[%s25795_s8 + $0xa54] ss:$68 sps:$4 sm:$0xff]  }
 0x908   :  { %10365 = vmatpush1.bf16.msra.mxu0 %v17679_v53  ;;  %v17769_v53 = vld [vmem:[%s25795_s8 + $0x2bc] ss:$68 sps:$4 sm:$0xff]  }
 0x909   :  { %10366 = vmatprep.subr.bf16.mxu0 %v17684_v5  ;;  %15814 = vmatpush3.bf16.msra.mxu1 %v17721_v28  ;;  %v17767_v5 = vld [vmem:[%s25795_s8 + $0x2b8] ss:$68 sps:$4 sm:$0xff]   ;;  %v17752_v28 = vld [vmem:[%s25795_s8 + $0xa50] ss:$68 sps:$4 sm:$0xff]  }
 0x90a   :  { %10197 = vmatmul.mubr.bf16.gmra.mrb[176].mxu0 %v23001_v15  ;;  %12068 = vmatprep.subr.bf16.mxu1 %v17739_v39  ;;  %v17775_v39 = vld [vmem:[%s25795_s8 + $0x344] ss:$68 sps:$4 sm:$0xff]  }
 0x90b   :  { %10536 = vmatmul.mubr.bf16.gmra.mrb[240].mxu1 %v23001_v15  ;;  %10206 = vmatprep.mubr.bf16.mxu0 %v23039_v62 }
 0x90c   :  { %10367 = vmatpush1.bf16.msra.mxu0 %v17682_v20  ;;  %10545 = vmatprep.mubr.bf16.mxu1 %v23039_v62  ;;  %v17760_v20 = vld [vmem:[%s25795_s8 + $0xadc] ss:$68 sps:$4 sm:$0xff]  }
 0x90d   :  { %10368 = vmatprep.subr.bf16.mxu0 %v17689_v21  ;;  %v17758_v21 = vld [vmem:[%s25795_s8 + $0xad8] ss:$68 sps:$4 sm:$0xff]  }
 0x910   :  { %10369 = vmatpush1.bf16.msra.mxu0 %v17687_v49  ;;  %v17766_v49 = vld [vmem:[%s25795_s8 + $0xb64] ss:$68 sps:$4 sm:$0xff]  }
 0x911   :  { %10370 = vmatprep.subr.bf16.mxu0 %v17694_v6  ;;  %v17773_v6 = vld [vmem:[%s25795_s8 + $0x340] ss:$68 sps:$4 sm:$0xff]  }
 0x912   :  { %10207 = vmatmul.mubr.bf16.gmra.mrb[180].mxu0 %v23037_v30 }
 0x913   :  { %10546 = vmatmul.mubr.bf16.gmra.mrb[244].mxu1 %v23037_v30  ;;  %10216 = vmatprep.mubr.bf16.mxu0 %v23075_v10 }
 0x914   :  { %10371 = vmatpush1.bf16.msra.mxu0 %v17692_v58  ;;  %10555 = vmatprep.mubr.bf16.mxu1 %v23075_v10  ;;  %v17781_v58 = vld [vmem:[%s25795_s8 + $0x3cc] ss:$68 sps:$4 sm:$0xff]  }
 0x915   :  { %10372 = vmatprep.subr.bf16.mxu0 %v17699_v41  ;;  %v17764_v41 = vld [vmem:[%s25795_s8 + $0xb60] ss:$68 sps:$4 sm:$0xff]  }
 0x918   :  { %10373 = vmatpush1.bf16.msra.mxu0 %v17697_v16  ;;  %v17772_v16 = vld [vmem:[%s25795_s8 + $0xbec] ss:$68 sps:$4 sm:$0xff]  }
 0x919   :  { %10374 = vmatprep.subr.bf16.mxu0 %v17704_v9  ;;  %v17779_v9 = vld [vmem:[%s25795_s8 + $0x3c8] ss:$68 sps:$4 sm:$0xff]  }
 0x91a   :  { %10217 = vmatmul.mubr.bf16.gmra.mrb[184].mxu0 %v23073_v26 }
 0x91b   :  { %10556 = vmatmul.mubr.bf16.gmra.mrb[248].mxu1 %v23073_v26  ;;  %10226 = vmatprep.mubr.bf16.mxu0 %v23111_v19 }
 0x91c   :  { %10375 = vmatpush1.bf16.msra.mxu0 %v17702_v33  ;;  %10565 = vmatprep.mubr.bf16.mxu1 %v23111_v19  ;;  %v17770_v33 = vld [vmem:[%s25795_s8 + $0xbe8] ss:$68 sps:$4 sm:$0xff]  }
 0x91d   :  { %10376 = vmatprep.subr.bf16.mxu0 %v17709_v3  ;;  %v17778_v3 = vld [vmem:[%s25795_s8 + $0xc74] ss:$68 sps:$4 sm:$0xff]  }
 0x920   :  { %10377 = vmatpush1.bf16.msra.mxu0 %v17707_v56  ;;  %v17787_v56 = vld [vmem:[%s25795_s8 + $0x454] ss:$68 sps:$4 sm:$0xff]  }
 0x921   :  { %10378 = vmatprep.subr.bf16.mxu0 %v17714_v45  ;;  %v17785_v45 = vld [vmem:[%s25795_s8 + $0x450] ss:$68 sps:$4 sm:$0xff]  }
 0x922   :  { %10227 = vmatmul.mubr.bf16.gmra.mrb[188].mxu0 %v23109_v37 }
 0x923   :  { %10566 = vmatmul.mubr.bf16.gmra.mrb[252].mxu1 %v23109_v37  ;;  %10382 = vmatprep.mubr.bf16.mxu0 %v22859_v46 }
 0x924   :  { %10379 = vmatpush1.bf16.msra.mxu0 %v17712_v59  ;;  %10721 = vmatprep.mubr.bf16.mxu1 %v22859_v46  ;;  %v17776_v59 = vld [vmem:[%s25795_s8 + $0xc70] ss:$68 sps:$4 sm:$0xff]  }
 0x925   :  { %10380 = vmatprep.subr.bf16.mxu0 %v17719_v11  ;;  %v17793_v11 = vld [vmem:[%s25795_s8 + $0x4dc] ss:$68 sps:$4 sm:$0xff]  }
 0x928   :  { %10381 = vmatpush1.bf16.msra.mxu0 %v17717_v17  ;;  %v17784_v17 = vld [vmem:[%s25795_s8 + $0xcfc] ss:$68 sps:$4 sm:$0xff]  }
 0x929   :  { %10576 = vmatprep.subr.bf16.mxu0 %v17724_v25  ;;  %v17782_v25 = vld [vmem:[%s25795_s8 + $0xcf8] ss:$68 sps:$4 sm:$0xff]  }
 0x92b   :  { %10383 = vmatmul.mubr.bf16.vlgmr.msra.gmra.mrb[192].mxu0 %v22857_v44  ;;  %10722 = vmatmul.mubr.bf16.vlgmr.msra.gmra.mrb[0].mxu1 %v22857_v44 }
 0x92c   :  { %10392 = vmatprep.mubr.bf16.mxu0 %v22895_v7  ;;  %10577 = vmatpush1.bf16.msra.mxu0 %v17722_v40  ;;  %v17790_v40 = vld [vmem:[%s25795_s8 + $0xd84] ss:$68 sps:$4 sm:$0xff]  }
 0x92d   :  { %10729 = vmatprep.mubr.bf16.mxu1 %v22895_v7  ;;  %10578 = vmatprep.subr.bf16.mxu0 %v17727_v54  ;;  %v17791_v54 = vld [vmem:[%s25795_s8 + $0x4d8] ss:$68 sps:$4 sm:$0xff]  }
 0x92e   :  { %12069 = vmatpush1.bf16.msra.mxu1 %v17737_v61  ;;  %v17799_v61 = vld [vmem:[%s25795_s8 + $0x564] ss:$68 sps:$4 sm:$0xff]  }
 0x92f   :  { %12070 = vmatprep.subr.bf16.mxu1 %v17745_v52  ;;  %v17788_v52 = vld [vmem:[%s25795_s8 + $0xd80] ss:$68 sps:$4 sm:$0xff]  }
 0x930   :  { %10579 = vmatpush1.bf16.msra.mxu0 %v17725_v43  ;;  %v17796_v43 = vld [vmem:[%s25795_s8 + $0xe0c] ss:$68 sps:$4 sm:$0xff]  }
 0x931   :  { %10580 = vmatprep.subr.bf16.mxu0 %v17730_v35  ;;  %v17797_v35 = vld [vmem:[%s25795_s8 + $0x560] ss:$68 sps:$4 sm:$0xff]  }
 0x932   :  { %12071 = vmatpush1.bf16.msra.mxu1 %v17743_v42  ;;  %v17794_v42 = vld [vmem:[%s25795_s8 + $0xe08] ss:$68 sps:$4 sm:$0xff]  }
 0x933   :  { %10393 = vmatmul.mubr.bf16.gmra.mrb[196].mxu0 %v22893_v14  ;;  %10730 = vmatmul.mubr.bf16.gmra.mrb[4].mxu1 %v22893_v14 }
 0x934   :  { %10402 = vmatprep.mubr.bf16.mxu0 %v22931_v31  ;;  %10581 = vmatpush1.bf16.msra.mxu0 %v17728_v63  ;;  %v17802_v63 = vld [vmem:[%s25795_s8 + $0xe94] ss:$68 sps:$4 sm:$0xff]  }
 0x935   :  { %10737 = vmatprep.mubr.bf16.mxu1 %v22931_v31  ;;  %10582 = vmatprep.subr.bf16.mxu0 %v17733_v50  ;;  %v17805_v50 = vld [vmem:[%s25795_s8 + $0x5ec] ss:$68 sps:$4 sm:$0xff]  }
 0x936   :  { %12072 = vmatprep.subr.bf16.mxu1 %v17751_v57  ;;  %v17803_v57 = vld [vmem:[%s25795_s8 + $0x5e8] ss:$68 sps:$4 sm:$0xff]  }
 0x937   :  { %12073 = vmatpush1.bf16.msra.mxu1 %v17749_v23  ;;  %v17800_v23 = vld [vmem:[%s25795_s8 + $0xe90] ss:$68 sps:$4 sm:$0xff]  }
 0x938   :  { %10583 = vmatpush1.bf16.msra.mxu0 %v17731_v29  ;;  %12074 = vmatprep.subr.bf16.mxu1 %v17757_v0  ;;  %v17820_v29 = vld [vmem:[%s25795_s8 + $0x24] ss:$68 sps:$4 sm:$0xff]  }
 0x939   :  { %10584 = vmatprep.subr.bf16.mxu0 %v17736_v24  ;;  %v17808_v0 = vld [vmem:[%s25795_s8 + $0x4] ss:$68 sps:$4 sm:$0xff]   ;;  %v17811_v24 = vld [vmem:[%s25795_s8 + $0x8c] ss:$68 sps:$4 sm:$0xff]  }
 0x93b   :  { %10403 = vmatmul.mubr.bf16.gmra.mrb[200].mxu0 %v22929_v51  ;;  %10738 = vmatmul.mubr.bf16.gmra.mrb[8].mxu1 %v22929_v51 }
 0x93c   :  { %10412 = vmatprep.mubr.bf16.mxu0 %v22967_v32  ;;  %10585 = vmatpush1.bf16.msra.mxu0 %v17734_v18  ;;  %v17818_v18 = vld [vmem:[%s25795_s8 + $0x20] ss:$68 sps:$4 sm:$0xff]  }
 0x93d   :  { %10745 = vmatprep.mubr.bf16.mxu1 %v22967_v32  ;;  %10586 = vmatprep.subr.bf16.mxu0 %v17742_v34  ;;  %v17823_v34 = vld [vmem:[%s25795_s8 + $0xac] ss:$68 sps:$4 sm:$0xff]  }
 0x93e   :  { %12075 = vmatpush1.bf16.msra.mxu1 %v17755_v55  ;;  %v17809_v55 = vld [vmem:[%s25795_s8 + $0x88] ss:$68 sps:$4 sm:$0xff]  }
 0x93f   :  { %12076 = vmatprep.subr.bf16.mxu1 %v17763_v60  ;;  %v17821_v60 = vld [vmem:[%s25795_s8 + $0xa8] ss:$68 sps:$4 sm:$0xff]  }
 0x940   :  { %10587 = vmatpush1.bf16.msra.mxu0 %v17740_v38  ;;  %v17829_v38 = vld [vmem:[%s25795_s8 + $0x134] ss:$68 sps:$4 sm:$0xff]  }
 0x941   :  { %10588 = vmatprep.subr.bf16.mxu0 %v17748_v4  ;;  %v17817_v4 = vld [vmem:[%s25795_s8 + $0x19c] ss:$68 sps:$4 sm:$0xff]  }
 0x942   :  { %12077 = vmatpush1.bf16.msra.mxu1 %v17761_v12  ;;  %v17827_v12 = vld [vmem:[%s25795_s8 + $0x130] ss:$68 sps:$4 sm:$0xff]  }
 0x943   :  { %10413 = vmatmul.mubr.bf16.gmra.mrb[204].mxu0 %v22965_v13  ;;  %10746 = vmatmul.mubr.bf16.gmra.mrb[12].mxu1 %v22965_v13 }
 0x944   :  { %10422 = vmatprep.mubr.bf16.mxu0 %v23003_v36  ;;  %10589 = vmatpush1.bf16.msra.mxu0 %v17746_v2  ;;  %v25854_v2 = vld [vmem:[#allocation7_spill] sm:$0xff] }
 0x945   :  { %10753 = vmatprep.mubr.bf16.mxu1 %v23003_v36  ;;  %10590 = vmatprep.subr.bf16.mxu0 %v17754_v8  ;;  %v17835_v8 = vld [vmem:[%s25795_s8 + $0x1bc] ss:$68 sps:$4 sm:$0xff]  }
 0x946   :  { %12078 = vmatprep.subr.bf16.mxu1 %v17769_v53  ;;  %v25855_v53 = vld [vmem:[#allocation9_spill] sm:$0xff] }
 0x947   :  { %12079 = vmatpush1.bf16.msra.mxu1 %v17767_v5  ;;  %v17815_v5 = vld [vmem:[%s25795_s8 + $0x198] ss:$68 sps:$4 sm:$0xff]  }
 0x948   :  { %10591 = vmatpush1.bf16.msra.mxu0 %v17752_v28  ;;  %12080 = vmatprep.subr.bf16.mxu1 %v17775_v39  ;;  %v17833_v28 = vld [vmem:[%s25795_s8 + $0x1b8] ss:$68 sps:$4 sm:$0xff]   ;;  %v17841_v39 = vld [vmem:[%s25795_s8 + $0x244] ss:$68 sps:$4 sm:$0xff]  }
 0x949   :  { %10592 = vmatprep.subr.bf16.mxu0 %v17760_v20  ;;  %v17832_v20 = vld [vmem:[%s25795_s8 + $0x2ac] ss:$68 sps:$4 sm:$0xff]  }
 0x94b   :  { %10423 = vmatmul.mubr.bf16.gmra.mrb[208].mxu0 %v23001_v15  ;;  %10754 = vmatmul.mubr.bf16.gmra.mrb[16].mxu1 %v23001_v15 }
 0x94c   :  { %10432 = vmatprep.mubr.bf16.mxu0 %v23039_v62  ;;  %10593 = vmatpush1.bf16.msra.mxu0 %v17758_v21  ;;  %v17839_v21 = vld [vmem:[%s25795_s8 + $0x240] ss:$68 sps:$4 sm:$0xff]  }
 0x94d   :  { %10761 = vmatprep.mubr.bf16.mxu1 %v23039_v62  ;;  %10594 = vmatprep.subr.bf16.mxu0 %v17766_v49  ;;  %v25856_v49 = vld [vmem:[#allocation8_spill] sm:$0xff] }
 0x94e   :  { %12081 = vmatpush1.bf16.msra.mxu1 %v17773_v6  ;;  %v17844_v6 = vld [vmem:[%s25795_s8 + $0x2cc] ss:$68 sps:$4 sm:$0xff]  }
 0x94f   :  { %12082 = vmatprep.subr.bf16.mxu1 %v17781_v58  ;;  %v25857_v58 = vld [vmem:[#allocation11_spill] sm:$0xff] }
 0x950   :  { %10595 = vmatpush1.bf16.msra.mxu0 %v17764_v41  ;;  %v17830_v41 = vld [vmem:[%s25795_s8 + $0x2a8] ss:$68 sps:$4 sm:$0xff]  }
 0x951   :  { %10596 = vmatprep.subr.bf16.mxu0 %v17772_v16  ;;  %v17842_v16 = vld [vmem:[%s25795_s8 + $0x2c8] ss:$68 sps:$4 sm:$0xff]  }
 0x952   :  { %12083 = vmatpush1.bf16.msra.mxu1 %v17779_v9  ;;  %v17850_v9 = vld [vmem:[%s25795_s8 + $0x354] ss:$68 sps:$4 sm:$0xff]  }
 0x953   :  { %10433 = vmatmul.mubr.bf16.gmra.mrb[212].mxu0 %v23037_v30  ;;  %10762 = vmatmul.mubr.bf16.gmra.mrb[20].mxu1 %v23037_v30 }
 0x954   :  { %10442 = vmatprep.mubr.bf16.mxu0 %v23075_v10  ;;  %10597 = vmatpush1.bf16.msra.mxu0 %v17770_v33  ;;  %v17847_v33 = vld [vmem:[%s25795_s8 + $0x3bc] ss:$68 sps:$4 sm:$0xff]  }
 0x955   :  { %10769 = vmatprep.mubr.bf16.mxu1 %v23075_v10  ;;  %10598 = vmatprep.subr.bf16.mxu0 %v17778_v3  ;;  %v17848_v3 = vld [vmem:[%s25795_s8 + $0x350] ss:$68 sps:$4 sm:$0xff]  }
 0x956   :  { %12084 = vmatprep.subr.bf16.mxu1 %v17787_v56  ;;  %v25858_v56 = vld [vmem:[#allocation10_spill] sm:$0xff] }
 0x957   :  { %12085 = vmatpush1.bf16.msra.mxu1 %v17785_v45  ;;  %v17856_v45 = vld [vmem:[%s25795_s8 + $0x3dc] ss:$68 sps:$4 sm:$0xff]  }
 0x958   :  { %10599 = vmatpush1.bf16.msra.mxu0 %v17776_v59  ;;  %12086 = vmatprep.subr.bf16.mxu1 %v17793_v11  ;;  %v25859_v59 = vld [vmem:[#allocation13_spill] sm:$0xff]  ;;  %v17845_v11 = vld [vmem:[%s25795_s8 + $0x3b8] ss:$68 sps:$4 sm:$0xff]  }
 0x959   :  { %10600 = vmatprep.subr.bf16.mxu0 %v17784_v17  ;;  %v17854_v17 = vld [vmem:[%s25795_s8 + $0x3d8] ss:$68 sps:$4 sm:$0xff]  }
 0x95b   :  { %10443 = vmatmul.mubr.bf16.gmra.mrb[216].mxu0 %v23073_v26  ;;  %10770 = vmatmul.mubr.bf16.gmra.mrb[24].mxu1 %v23073_v26 }
 0x95c   :  { %10452 = vmatprep.mubr.bf16.mxu0 %v23111_v19  ;;  %10601 = vmatpush1.bf16.msra.mxu0 %v17782_v25  ;;  %v17862_v25 = vld [vmem:[%s25795_s8 + $0x464] ss:$68 sps:$4 sm:$0xff]  }
 0x95d   :  { %10777 = vmatprep.mubr.bf16.mxu1 %v23111_v19  ;;  %10602 = vmatprep.subr.bf16.mxu0 %v17790_v40  ;;  %v17859_v40 = vld [vmem:[%s25795_s8 + $0x4cc] ss:$68 sps:$4 sm:$0xff]  }
 0x95e   :  { %12087 = vmatpush1.bf16.msra.mxu1 %v17791_v54  ;;  %v17860_v54 = vld [vmem:[%s25795_s8 + $0x460] ss:$68 sps:$4 sm:$0xff]  }
 0x95f   :  { %12088 = vmatprep.subr.bf16.mxu1 %v17799_v61  ;;  %v25860_v61 = vld [vmem:[#allocation12_spill] sm:$0xff] }
 0x960   :  { %10603 = vmatpush1.bf16.msra.mxu0 %v17788_v52  ;;  %v17865_v52 = vld [vmem:[%s25795_s8 + $0x4ec] ss:$68 sps:$4 sm:$0xff]  }
 0x961   :  { %10604 = vmatprep.subr.bf16.mxu0 %v17796_v43  ;;  %v25861_v43 = vld [vmem:[#allocation15_spill] sm:$0xff] }
 0x962   :  { %12089 = vmatpush1.bf16.msra.mxu1 %v17797_v35  ;;  %v17857_v35 = vld [vmem:[%s25795_s8 + $0x4c8] ss:$68 sps:$4 sm:$0xff]  }
 0x963   :  { %10453 = vmatmul.mubr.bf16.gmra.mrb[220].mxu0 %v23109_v37  ;;  %10778 = vmatmul.mubr.bf16.gmra.mrb[28].mxu1 %v23109_v37 }
 0x964   :  { %10605 = vmatpush1.bf16.msra.mxu0 %v17794_v42  ;;  %10608 = vmatprep.mubr.bf16.mxu0 %v22859_v46  ;;  %v17806_v46 = vld [vmem:[%s25795_s8] ss:$68 sps:$4 sm:$0xff]   ;;  %v17868_v42 = vld [vmem:[%s25795_s8 + $0x554] ss:$68 sps:$4 sm:$0xff]  }
 0x965   :  { %15220 = vmatprep.mubr.msk.bf16.mxu1 %vm5236_vm1, %v21389_v22  ;;  %10606 = vmatprep.subr.bf16.mxu0 %v17802_v63  ;;  %v17871_v63 = vld [vmem:[%s25795_s8 + $0x574] ss:$68 sps:$4 sm:$0xff]  }
 0x966   :  { %12090 = vmatprep.subr.bf16.mxu1 %v17805_v50  ;;  %v17869_v50 = vld [vmem:[%s25795_s8 + $0x570] ss:$68 sps:$4 sm:$0xff]  }
 0x967   :  { %12091 = vmatpush1.bf16.msra.mxu1 %v17803_v57  ;;  %v17874_v57 = vld [vmem:[%s25795_s8 + $0x5dc] ss:$68 sps:$4 sm:$0xff]  }
 0x968   :  { %10607 = vmatpush1.bf16.msra.mxu0 %v17800_v23  ;;  %12294 = vmatprep.subr.bf16.mxu1 %v17820_v29  ;;  %v25862_v23 = vld [vmem:[#allocation14_spill] sm:$0xff]  ;;  %v17877_v29 = vld [vmem:[%s25795_s8 + $0x5fc] ss:$68 sps:$4 sm:$0xff]  }
 0x969   :  { %11842 = vmatprep.subr.bf16.mxu0 %v17808_v0  ;;  %v25863_v0 = vld [vmem:[#allocation17_spill] sm:$0xff] }
 0x96b   :  { %10609 = vmatmul.mubr.bf16.vlgmr.msra.gmra.mrb[224].mxu0 %v22857_v44  ;;  %12101 = vmatmul.mubr.bf16.vlgmr.msra.gmra.mrb[160].mxu1 %v21387_v48  ;;  %v17814_v44 = vld [vmem:[%s25795_s8 + $0x114] ss:$68 sps:$4 sm:$0xff]  }
 0x96c   :  { %10618 = vmatprep.mubr.bf16.mxu0 %v22895_v7  ;;  %11843 = vmatpush1.bf16.msra.mxu0 %v17806_v46  ;;  %v17812_v7 = vld [vmem:[%s25795_s8 + $0x110] ss:$68 sps:$4 sm:$0xff]   ;;  %v17872_v46 = vld [vmem:[%s25795_s8 + $0x5d8] ss:$68 sps:$4 sm:$0xff]  }
 0x96d   :  { %15221 = vmatprep.mubr.msk.bf16.mxu1 %vm5236_vm1, %v21401_v27  ;;  %11844 = vmatprep.subr.bf16.mxu0 %v17811_v24  ;;  %v17880_v24 = vld [vmem:[%s25795_s8 + $0xc] ss:$68 sps:$4 sm:$0xff]  }
 0x96e   :  { %12295 = vmatpush1.bf16.msra.mxu1 %v17818_v18  ;;  %v25864_v18 = vld [vmem:[#allocation16_spill] sm:$0xff] }
 0x96f   :  { %12296 = vmatprep.subr.bf16.mxu1 %v17823_v34  ;;  %v25865_v34 = vld [vmem:[#allocation19_spill] sm:$0xff] }
 0x970   :  { %11845 = vmatpush1.bf16.msra.mxu0 %v17809_v55  ;;  %v25866_v55 = vld [vmem:[#allocation18_spill] sm:$0xff] }
 0x971   :  { %11846 = vmatprep.subr.bf16.mxu0 %v17814_v44  ;;  %v17895_v44 = vld [vmem:[%s25795_s8 + $0xbc] ss:$68 sps:$4 sm:$0xff]  }
 0x972   :  { %12297 = vmatpush1.bf16.msra.mxu1 %v17821_v60  ;;  %v17881_v60 = vld [vmem:[%s25795_s8 + $0x90] ss:$68 sps:$4 sm:$0xff]  }
 0x973   :  { %10619 = vmatmul.mubr.bf16.gmra.mrb[228].mxu0 %v22893_v14  ;;  %12111 = vmatmul.mubr.bf16.gmra.mrb[164].mxu1 %v25854_v2  ;;  %v17826_v14 = vld [vmem:[%s25795_s8 + $0x224] ss:$68 sps:$4 sm:$0xff]  }
 0x974   :  { %10628 = vmatprep.mubr.bf16.mxu0 %v22931_v31  ;;  %15222 = vmatprep.mubr.msk.bf16.mxu1 %vm5236_vm1, %v25855_v53  ;;  %v17824_v31 = vld [vmem:[%s25795_s8 + $0x220] ss:$68 sps:$4 sm:$0xff]  }
 0x975   :  { %11847 = vmatpush1.bf16.msra.mxu0 %v17812_v7  ;;  %12298 = vmatprep.subr.bf16.mxu1 %v17829_v38  ;;  %v17886_v7 = vld [vmem:[%s25795_s8 + $0x11c] ss:$68 sps:$4 sm:$0xff]  }
 0x976   :  { %11848 = vmatprep.subr.bf16.mxu0 %v17817_v4  ;;  %12299 = vmatpush1.bf16.msra.mxu1 %v17827_v12  ;;  %v17893_v38 = vld [vmem:[%s25795_s8 + $0xb8] ss:$68 sps:$4 sm:$0xff]   ;;  %v17901_v12 = vld [vmem:[%s25795_s8 + $0x144] ss:$68 sps:$4 sm:$0xff]  }
 0x977   :  { %12300 = vmatprep.subr.bf16.mxu1 %v17835_v8  ;;  %v17884_v4 = vld [vmem:[%s25795_s8 + $0x118] ss:$68 sps:$4 sm:$0xff]   ;;  %v17889_v8 = vld [vmem:[%s25795_s8 + $0x1a4] ss:$68 sps:$4 sm:$0xff]  }
 0x979   :  { %11849 = vmatpush1.bf16.msra.mxu0 %v17815_v5  ;;  %v17899_v5 = vld [vmem:[%s25795_s8 + $0x140] ss:$68 sps:$4 sm:$0xff]  }
 0x97a   :  { %11850 = vmatprep.subr.bf16.mxu0 %v17826_v14  ;;  %12301 = vmatpush1.bf16.msra.mxu1 %v17833_v28  ;;  %v17907_v14 = vld [vmem:[%s25795_s8 + $0x1cc] ss:$68 sps:$4 sm:$0xff]   ;;  %v17887_v28 = vld [vmem:[%s25795_s8 + $0x1a0] ss:$68 sps:$4 sm:$0xff]  }
 0x97b   :  { %10629 = vmatmul.mubr.bf16.gmra.mrb[232].mxu0 %v22929_v51  ;;  %12121 = vmatmul.mubr.bf16.gmra.mrb[168].mxu1 %v25856_v49  ;;  %v17838_v51 = vld [vmem:[%s25795_s8 + $0x334] ss:$68 sps:$4 sm:$0xff]  }
 0x97c   :  { %10638 = vmatprep.mubr.bf16.mxu0 %v22967_v32  ;;  %15223 = vmatprep.mubr.msk.bf16.mxu1 %vm5236_vm1, %v25857_v58  ;;  %v17836_v32 = vld [vmem:[%s25795_s8 + $0x330] ss:$68 sps:$4 sm:$0xff]  }
 0x97d   :  { %11851 = vmatpush1.bf16.msra.mxu0 %v17824_v31  ;;  %12302 = vmatprep.subr.bf16.mxu1 %v17841_v39  ;;  %v17898_v31 = vld [vmem:[%s25795_s8 + $0x22c] ss:$68 sps:$4 sm:$0xff]  }
 0x97e   :  { %11852 = vmatprep.subr.bf16.mxu0 %v17832_v20  ;;  %12303 = vmatpush1.bf16.msra.mxu1 %v17839_v21  ;;  %v17905_v39 = vld [vmem:[%s25795_s8 + $0x1c8] ss:$68 sps:$4 sm:$0xff]   ;;  %v17913_v21 = vld [vmem:[%s25795_s8 + $0x254] ss:$68 sps:$4 sm:$0xff]  }
 0x97f   :  { %12304 = vmatprep.subr.bf16.mxu1 %v17844_v6  ;;  %v17896_v20 = vld [vmem:[%s25795_s8 + $0x228] ss:$68 sps:$4 sm:$0xff]   ;;  %v17904_v6 = vld [vmem:[%s25795_s8 + $0x2b4] ss:$68 sps:$4 sm:$0xff]  }
 0x981   :  { %11853 = vmatpush1.bf16.msra.mxu0 %v17830_v41  ;;  %v17911_v41 = vld [vmem:[%s25795_s8 + $0x250] ss:$68 sps:$4 sm:$0xff]  }
 0x982   :  { %11854 = vmatprep.subr.bf16.mxu0 %v17838_v51  ;;  %12305 = vmatpush1.bf16.msra.mxu1 %v17842_v16  ;;  %v17916_v51 = vld [vmem:[%s25795_s8 + $0x2dc] ss:$68 sps:$4 sm:$0xff]   ;;  %v17902_v16 = vld [vmem:[%s25795_s8 + $0x2b0] ss:$68 sps:$4 sm:$0xff]  }
 0x983   :  { %10639 = vmatmul.mubr.bf16.gmra.mrb[236].mxu0 %v22965_v13  ;;  %12131 = vmatmul.mubr.bf16.gmra.mrb[172].mxu1 %v25858_v56  ;;  %v17853_v13 = vld [vmem:[%s25795_s8 + $0x444] ss:$68 sps:$4 sm:$0xff]  }
 0x984   :  { %10648 = vmatprep.mubr.bf16.mxu0 %v23003_v36  ;;  %15224 = vmatprep.mubr.msk.bf16.mxu1 %vm5236_vm1, %v25859_v59  ;;  %v17851_v36 = vld [vmem:[%s25795_s8 + $0x440] ss:$68 sps:$4 sm:$0xff]  }
 0x985   :  { %11855 = vmatpush1.bf16.msra.mxu0 %v17836_v32  ;;  %12306 = vmatprep.subr.bf16.mxu1 %v17850_v9  ;;  %v17910_v32 = vld [vmem:[%s25795_s8 + $0x33c] ss:$68 sps:$4 sm:$0xff]  }
 0x986   :  { %11856 = vmatprep.subr.bf16.mxu0 %v17847_v33  ;;  %12307 = vmatpush1.bf16.msra.mxu1 %v17848_v3  ;;  %v17914_v9 = vld [vmem:[%s25795_s8 + $0x2d8] ss:$68 sps:$4 sm:$0xff]   ;;  %v17922_v3 = vld [vmem:[%s25795_s8 + $0x364] ss:$68 sps:$4 sm:$0xff]  }
 0x987   :  { %12308 = vmatprep.subr.bf16.mxu1 %v17856_v45  ;;  %v17908_v33 = vld [vmem:[%s25795_s8 + $0x338] ss:$68 sps:$4 sm:$0xff]   ;;  %v17919_v45 = vld [vmem:[%s25795_s8 + $0x3c4] ss:$68 sps:$4 sm:$0xff]  }
 0x989   :  { %11857 = vmatpush1.bf16.msra.mxu0 %v17845_v11  ;;  %v17920_v11 = vld [vmem:[%s25795_s8 + $0x360] ss:$68 sps:$4 sm:$0xff]  }
 0x98a   :  { %11858 = vmatprep.subr.bf16.mxu0 %v17853_v13  ;;  %12309 = vmatpush1.bf16.msra.mxu1 %v17854_v17  ;;  %v17928_v13 = vld [vmem:[%s25795_s8 + $0x3ec] ss:$68 sps:$4 sm:$0xff]   ;;  %v17917_v17 = vld [vmem:[%s25795_s8 + $0x3c0] ss:$68 sps:$4 sm:$0xff]  }
 0x98b   :  { %10649 = vmatmul.mubr.bf16.gmra.mrb[240].mxu0 %v23001_v15  ;;  %12141 = vmatmul.mubr.bf16.gmra.mrb[176].mxu1 %v25860_v61  ;;  %v17863_v15 = vld [vmem:[%s25795_s8 + $0x4e8] ss:$68 sps:$4 sm:$0xff]  }
 0x98c   :  { %10658 = vmatprep.mubr.bf16.mxu0 %v23039_v62  ;;  %15225 = vmatprep.mubr.msk.bf16.mxu1 %vm5236_vm1, %v25861_v43  ;;  %v17866_v62 = vld [vmem:[%s25795_s8 + $0x550] ss:$68 sps:$4 sm:$0xff]  }
 0x98d   :  { %11859 = vmatpush1.bf16.msra.mxu0 %v17851_v36  ;;  %12310 = vmatprep.subr.bf16.mxu1 %v17862_v25  ;;  %v17925_v36 = vld [vmem:[%s25795_s8 + $0x44c] ss:$68 sps:$4 sm:$0xff]  }
 0x98e   :  { %11860 = vmatprep.subr.bf16.mxu0 %v17859_v40  ;;  %12311 = vmatpush1.bf16.msra.mxu1 %v17860_v54  ;;  %v17926_v25 = vld [vmem:[%s25795_s8 + $0x3e8] ss:$68 sps:$4 sm:$0xff]   ;;  %v17934_v54 = vld [vmem:[%s25795_s8 + $0x474] ss:$68 sps:$4 sm:$0xff]  }
 0x98f   :  { %12312 = vmatprep.subr.bf16.mxu1 %v17865_v52  ;;  %v17923_v40 = vld [vmem:[%s25795_s8 + $0x448] ss:$68 sps:$4 sm:$0xff]   ;;  %v17931_v52 = vld [vmem:[%s25795_s8 + $0x4d4] ss:$68 sps:$4 sm:$0xff]  }
 0x991   :  { %11861 = vmatpush1.bf16.msra.mxu0 %v17857_v35  ;;  %v17932_v35 = vld [vmem:[%s25795_s8 + $0x470] ss:$68 sps:$4 sm:$0xff]  }
 0x992   :  { %12313 = vmatpush1.bf16.msra.mxu1 %v17863_v15  ;;  %11862 = vmatprep.subr.bf16.mxu0 %v17868_v42  ;;  %v17937_v15 = vld [vmem:[%s25795_s8 + $0x4fc] ss:$68 sps:$4 sm:$0xff]   ;;  %v17929_v42 = vld [vmem:[%s25795_s8 + $0x4d0] ss:$68 sps:$4 sm:$0xff]  }
 0x993   :  { %10659 = vmatmul.mubr.bf16.gmra.mrb[244].mxu0 %v23037_v30  ;;  %12151 = vmatmul.mubr.bf16.gmra.mrb[180].mxu1 %v25862_v23  ;;  %v17875_v30 = vld [vmem:[%s25795_s8 + $0x5f8] ss:$68 sps:$4 sm:$0xff]  }
 0x994   :  { %10668 = vmatprep.mubr.bf16.mxu0 %v23075_v10  ;;  %15226 = vmatprep.mubr.msk.bf16.mxu1 %vm5236_vm1, %v25863_v0  ;;  %v17892_v10 = vld [vmem:[%s25795_s8 + $0x34] ss:$68 sps:$4 sm:$0xff]  }
 0x995   :  { %11863 = vmatpush1.bf16.msra.mxu0 %v17866_v62  ;;  %12314 = vmatprep.subr.bf16.mxu1 %v17871_v63  ;;  %v17935_v62 = vld [vmem:[%s25795_s8 + $0x4f8] ss:$68 sps:$4 sm:$0xff]  }
 0x996   :  { %12315 = vmatpush1.bf16.msra.mxu1 %v17869_v50  ;;  %11864 = vmatprep.subr.bf16.mxu0 %v17874_v57  ;;  %v17940_v63 = vld [vmem:[%s25795_s8 + $0x55c] ss:$68 sps:$4 sm:$0xff]   ;;  %v17943_v57 = vld [vmem:[%s25795_s8 + $0x584] ss:$68 sps:$4 sm:$0xff]  }
 0x997   :  { %12316 = vmatprep.subr.bf16.mxu1 %v17877_v29  ;;  %v17938_v50 = vld [vmem:[%s25795_s8 + $0x558] ss:$68 sps:$4 sm:$0xff]   ;;  %v17941_v29 = vld [vmem:[%s25795_s8 + $0x580] ss:$68 sps:$4 sm:$0xff]  }
 0x999   :  { %11865 = vmatpush1.bf16.msra.mxu0 %v17872_v46  ;;  %v17946_v46 = vld [vmem:[%s25795_s8 + $0x5e4] ss:$68 sps:$4 sm:$0xff]  }
 0x99a   :  { %12317 = vmatpush1.bf16.msra.mxu1 %v17875_v30  ;;  %11955 = vmatprep.subr.bf16.mxu0 %v17880_v24  ;;  %v17949_v30 = vld [vmem:[%s25795_s8 + $0x60c] ss:$68 sps:$4 sm:$0xff]   ;;  %v17944_v24 = vld [vmem:[%s25795_s8 + $0x5e0] ss:$68 sps:$4 sm:$0xff]  }
 0x99b   :  { %10669 = vmatmul.mubr.bf16.gmra.mrb[248].mxu0 %v23073_v26  ;;  %12161 = vmatmul.mubr.bf16.gmra.mrb[184].mxu1 %v25864_v18  ;;  %v17878_v26 = vld [vmem:[%s25795_s8 + $0x8] ss:$68 sps:$4 sm:$0xff]  }
 0x99c   :  { %10678 = vmatprep.mubr.bf16.mxu0 %v23111_v19  ;;  %15227 = vmatprep.mubr.msk.bf16.mxu1 %vm5236_vm1, %v25865_v34  ;;  %v17883_v19 = vld [vmem:[%s25795_s8 + $0x94] ss:$68 sps:$4 sm:$0xff]  }
 0x99d   :  { %12520 = vmatprep.subr.bf16.mxu1 %v17892_v10  ;;  %v17947_v10 = vld [vmem:[%s25795_s8 + $0x608] ss:$68 sps:$4 sm:$0xff]  }
 0x9a3   :  { %10679 = vmatmul.mubr.bf16.gmra.mrb[252].mxu0 %v23109_v37  ;;  %12171 = vmatmul.mubr.bf16.gmra.mrb[188].mxu1 %v25866_v55  ;;  %v17890_v37 = vld [vmem:[%s25795_s8 + $0x30] ss:$68 sps:$4 sm:$0xff]  }
 0x9a4   :  { %15204 = vmatprep.mubr.msk.bf16.mxu0 %vm5236_vm1, %v21389_v22  ;;  %15236 = vmatprep.mubr.msk.bf16.mxu1 %vm5236_vm1, %v21389_v22 }
 0x9ab   :  { %11875 = vmatmul.mubr.bf16.vlgmr.msra.gmra.mrb[96].mxu0 %v21387_v48  ;;  %12327 = vmatmul.mubr.bf16.vlgmr.msra.gmra.mrb[192].mxu1 %v21387_v48 }
 0x9ac   :  { %15205 = vmatprep.mubr.msk.bf16.mxu0 %vm5236_vm1, %v21401_v27  ;;  %11956 = vmatpush1.bf16.msra.mxu0 %v17878_v26  ;;  %v17952_v26 = vld [vmem:[%s25795_s8 + $0x1c] ss:$68 sps:$4 sm:$0xff]  }
 0x9ad   :  { %15237 = vmatprep.mubr.msk.bf16.mxu1 %vm5236_vm1, %v21401_v27  ;;  %11957 = vmatprep.subr.bf16.mxu0 %v17883_v19  ;;  %v25867_v19 = vmov 0  }
 0x9ae   :  { %12521 = vmatpush1.bf16.msra.mxu1 %v17890_v37  ;;  %v17950_v37 = vld [vmem:[%s25795_s8 + $0x18] ss:$68 sps:$4 sm:$0xff]  }
 0x9af   :  { %12522 = vmatprep.subr.bf16.mxu1 %v17895_v44  ;;  %v17955_v44 = vld [vmem:[%s25795_s8 + $0xa4] ss:$68 sps:$4 sm:$0xff]  }
 0x9b0   :  { %11958 = vmatpush1.bf16.msra.mxu0 %v17881_v60  ;;  %v17962_v60 = vld [vmem:[%s25795_s8 + $0x40] ss:$68 sps:$4 sm:$0xff]  }
 0x9b1   :  { %11959 = vmatprep.subr.bf16.mxu0 %v17886_v7  ;;  %v17953_v7 = vld [vmem:[%s25795_s8 + $0xa0] ss:$68 sps:$4 sm:$0xff]  }
 0x9b2   :  { %12523 = vmatpush1.bf16.msra.mxu1 %v17893_v38  ;;  %v17958_v38 = vld [vmem:[%s25795_s8 + $0x12c] ss:$68 sps:$4 sm:$0xff]  }
 0x9b3   :  { %11885 = vmatmul.mubr.bf16.gmra.mrb[100].mxu0 %v25854_v2  ;;  %12337 = vmatmul.mubr.bf16.gmra.mrb[196].mxu1 %v25854_v2 }
 0x9b4   :  { %15206 = vmatprep.mubr.msk.bf16.mxu0 %vm5236_vm1, %v25855_v53  ;;  %15238 = vmatprep.mubr.msk.bf16.mxu1 %vm5236_vm1, %v25855_v53 }
 0x9b5   :  { %11960 = vmatpush1.bf16.msra.mxu0 %v17884_v4  ;;  %12524 = vmatprep.subr.bf16.mxu1 %v17901_v12  ;;  %v17963_v4 = vld [vmem:[%s25795_s8 + $0xc8] ss:$68 sps:$4 sm:$0xff]  }
 0x9b6   :  { %11961 = vmatprep.subr.bf16.mxu0 %v17889_v8  ;;  %12525 = vmatpush1.bf16.msra.mxu1 %v17899_v5  ;;  %v17956_v12 = vld [vmem:[%s25795_s8 + $0x128] ss:$68 sps:$4 sm:$0xff]   ;;  %v17961_v8 = vld [vmem:[%s25795_s8 + $0x1b4] ss:$68 sps:$4 sm:$0xff]  }
 0x9b7   :  { %12526 = vmatprep.subr.bf16.mxu1 %v17907_v14  ;;  %v17967_v5 = vld [vmem:[%s25795_s8 + $0x150] ss:$68 sps:$4 sm:$0xff]  }
 0x9b8   :  { %v17959_v14 = vld [vmem:[%s25795_s8 + $0x1b0] ss:$68 sps:$4 sm:$0xff]  }
 0x9b9   :  { %11962 = vmatpush1.bf16.msra.mxu0 %v17887_v28  ;;  %v17966_v28 = vld [vmem:[%s25795_s8 + $0x23c] ss:$68 sps:$4 sm:$0xff]  }
 0x9ba   :  { %11963 = vmatprep.subr.bf16.mxu0 %v17898_v31  ;;  %12527 = vmatpush1.bf16.msra.mxu1 %v17905_v39  ;;  %v17971_v31 = vld [vmem:[%s25795_s8 + $0x1d8] ss:$68 sps:$4 sm:$0xff]  }
 0x9bb   :  { %11895 = vmatmul.mubr.bf16.gmra.mrb[104].mxu0 %v25856_v49  ;;  %12347 = vmatmul.mubr.bf16.gmra.mrb[200].mxu1 %v25856_v49  ;;  %v17964_v39 = vld [vmem:[%s25795_s8 + $0x238] ss:$68 sps:$4 sm:$0xff]  }
 0x9bc   :  { %15207 = vmatprep.mubr.msk.bf16.mxu0 %vm5236_vm1, %v25857_v58  ;;  %15239 = vmatprep.mubr.msk.bf16.mxu1 %vm5236_vm1, %v25857_v58 }
 0x9bd   :  { %11964 = vmatpush1.bf16.msra.mxu0 %v17896_v20  ;;  %12528 = vmatprep.subr.bf16.mxu1 %v17913_v21  ;;  %v17970_v20 = vld [vmem:[%s25795_s8 + $0x2c4] ss:$68 sps:$4 sm:$0xff]  }
 0x9be   :  { %11965 = vmatprep.subr.bf16.mxu0 %v17904_v6  ;;  %12529 = vmatpush1.bf16.msra.mxu1 %v17911_v41  ;;  %v17975_v21 = vld [vmem:[%s25795_s8 + $0x260] ss:$68 sps:$4 sm:$0xff]  }
 0x9bf   :  { %12530 = vmatprep.subr.bf16.mxu1 %v17916_v51  ;;  %v17968_v6 = vld [vmem:[%s25795_s8 + $0x2c0] ss:$68 sps:$4 sm:$0xff]   ;;  %v17974_v51 = vld [vmem:[%s25795_s8 + $0x34c] ss:$68 sps:$4 sm:$0xff]  }
 0x9c1   :  { %11966 = vmatpush1.bf16.msra.mxu0 %v17902_v16  ;;  %v17976_v16 = vld [vmem:[%s25795_s8 + $0x2e8] ss:$68 sps:$4 sm:$0xff]  }
 0x9c2   :  { %11967 = vmatprep.subr.bf16.mxu0 %v17910_v32  ;;  %12531 = vmatpush1.bf16.msra.mxu1 %v17914_v9 }
 0x9c3   :  { %11905 = vmatmul.mubr.bf16.gmra.mrb[108].mxu0 %v25858_v56  ;;  %12357 = vmatmul.mubr.bf16.gmra.mrb[204].mxu1 %v25858_v56 }
 0x9c4   :  { %15208 = vmatprep.mubr.msk.bf16.mxu0 %vm5236_vm1, %v25859_v59  ;;  %15240 = vmatprep.mubr.msk.bf16.mxu1 %vm5236_vm1, %v25859_v59 }
 0x9c5   :  { %11968 = vmatpush1.bf16.msra.mxu0 %v17908_v33  ;;  %12532 = vmatprep.subr.bf16.mxu1 %v17922_v3 }
 0x9c6   :  { %11969 = vmatprep.subr.bf16.mxu0 %v17919_v45  ;;  %12533 = vmatpush1.bf16.msra.mxu1 %v17920_v11  ;;  %v17972_v45 = vld [vmem:[%s25795_s8 + $0x348] ss:$68 sps:$4 sm:$0xff]  }
 0x9c7   :  { %12534 = vmatprep.subr.bf16.mxu1 %v17928_v13  ;;  %v17979_v13 = vld [vmem:[%s25795_s8 + $0x3d4] ss:$68 sps:$4 sm:$0xff]  }
 0x9c9   :  { %11970 = vmatpush1.bf16.msra.mxu0 %v17917_v17  ;;  %v17980_v17 = vld [vmem:[%s25795_s8 + $0x370] ss:$68 sps:$4 sm:$0xff]  }
 0x9ca   :  { %11971 = vmatprep.subr.bf16.mxu0 %v17925_v36  ;;  %12535 = vmatpush1.bf16.msra.mxu1 %v17926_v25  ;;  %v17977_v36 = vld [vmem:[%s25795_s8 + $0x3d0] ss:$68 sps:$4 sm:$0xff]  }
 0x9cb   :  { %11915 = vmatmul.mubr.bf16.gmra.mrb[112].mxu0 %v25860_v61  ;;  %12367 = vmatmul.mubr.bf16.gmra.mrb[208].mxu1 %v25860_v61 }
 0x9cc   :  { %15209 = vmatprep.mubr.msk.bf16.mxu0 %vm5236_vm1, %v25861_v43  ;;  %15241 = vmatprep.mubr.msk.bf16.mxu1 %vm5236_vm1, %v25861_v43 }
 0x9cd   :  { %11972 = vmatpush1.bf16.msra.mxu0 %v17923_v40  ;;  %12536 = vmatprep.subr.bf16.mxu1 %v17934_v54  ;;  %v17983_v40 = vld [vmem:[%s25795_s8 + $0x45c] ss:$68 sps:$4 sm:$0xff]  }
 0x9ce   :  { %11973 = vmatprep.subr.bf16.mxu0 %v17931_v52  ;;  %12537 = vmatpush1.bf16.msra.mxu1 %v17932_v35  ;;  %v17984_v54 = vld [vmem:[%s25795_s8 + $0x3f8] ss:$68 sps:$4 sm:$0xff]  }
 0x9cf   :  { %12538 = vmatprep.subr.bf16.mxu1 %v17937_v15 }
 0x9d1   :  { %11974 = vmatpush1.bf16.msra.mxu0 %v17929_v42 }
 0x9d2   :  { %12539 = vmatpush1.bf16.msra.mxu1 %v17935_v62  ;;  %11975 = vmatprep.subr.bf16.mxu0 %v17940_v63  ;;  %v17981_v62 = vld [vmem:[%s25795_s8 + $0x458] ss:$68 sps:$4 sm:$0xff]  }
 0x9d3   :  { %11925 = vmatmul.mubr.bf16.gmra.mrb[116].mxu0 %v25862_v23  ;;  %12377 = vmatmul.mubr.bf16.gmra.mrb[212].mxu1 %v25862_v23 }
 0x9d4   :  { %15210 = vmatprep.mubr.msk.bf16.mxu0 %vm5236_vm1, %v25863_v0  ;;  %15242 = vmatprep.mubr.msk.bf16.mxu1 %vm5236_vm1, %v25863_v0 }
 0x9d5   :  { %11976 = vmatpush1.bf16.msra.mxu0 %v17938_v50  ;;  %12540 = vmatprep.subr.bf16.mxu1 %v17943_v57  ;;  %v17987_v50 = vld [vmem:[%s25795_s8 + $0x4e4] ss:$68 sps:$4 sm:$0xff]  }
 0x9d6   :  { %12541 = vmatpush1.bf16.msra.mxu1 %v17941_v29  ;;  %11977 = vmatprep.subr.bf16.mxu0 %v17946_v46  ;;  %v17988_v57 = vld [vmem:[%s25795_s8 + $0x480] ss:$68 sps:$4 sm:$0xff]  }
 0x9d7   :  { %12542 = vmatprep.subr.bf16.mxu1 %v17949_v30  ;;  %v17985_v29 = vld [vmem:[%s25795_s8 + $0x4e0] ss:$68 sps:$4 sm:$0xff]   ;;  %v17989_v30 = vld [vmem:[%s25795_s8 + $0x508] ss:$68 sps:$4 sm:$0xff]  }
 0x9d9   :  { %11978 = vmatpush1.bf16.msra.mxu0 %v17944_v24  ;;  %v17992_v24 = vld [vmem:[%s25795_s8 + $0x56c] ss:$68 sps:$4 sm:$0xff]  }
 0x9da   :  { %12543 = vmatpush1.bf16.msra.mxu1 %v17947_v10  ;;  %12181 = vmatprep.subr.bf16.mxu0 %v17952_v26 }
 0x9db   :  { %11935 = vmatmul.mubr.bf16.gmra.mrb[120].mxu0 %v25864_v18  ;;  %12387 = vmatmul.mubr.bf16.gmra.mrb[216].mxu1 %v25864_v18 }
 0x9dc   :  { %15211 = vmatprep.mubr.msk.bf16.mxu0 %vm5236_vm1, %v25865_v34  ;;  %15243 = vmatprep.mubr.msk.bf16.mxu1 %vm5236_vm1, %v25865_v34 }
 0x9dd   :  { %12746 = vmatprep.subr.bf16.mxu1 %v25867_v19 }
 0x9e3   :  { %11945 = vmatmul.mubr.bf16.gmra.mrb[124].mxu0 %v25866_v55  ;;  %12397 = vmatmul.mubr.bf16.gmra.mrb[220].mxu1 %v25866_v55 }
 0x9e4   :  { %15212 = vmatprep.mubr.msk.bf16.mxu0 %vm5236_vm1, %v21389_v22  ;;  %15252 = vmatprep.mubr.msk.bf16.mxu1 %vm5236_vm1, %v21389_v22 }
 0x9eb   :  { %11988 = vmatmul.mubr.bf16.vlgmr.msra.gmra.mrb[128].mxu0 %v21387_v48  ;;  %12553 = vmatmul.mubr.bf16.vlgmr.msra.gmra.mrb[224].mxu1 %v21387_v48 }
 0x9ec   :  { %15213 = vmatprep.mubr.msk.bf16.mxu0 %vm5236_vm1, %v21401_v27  ;;  %12182 = vmatpush1.bf16.msra.mxu0 %v17950_v37 }
 0x9ed   :  { %15253 = vmatprep.mubr.msk.bf16.mxu1 %vm5236_vm1, %v21401_v27  ;;  %12183 = vmatprep.subr.bf16.mxu0 %v17955_v44 }
 0x9ee   :  { %12747 = vmatpush1.bf16.msra.mxu1 %v17962_v60  ;;  %v17990_v60 = vld [vmem:[%s25795_s8 + $0x568] ss:$68 sps:$4 sm:$0xff]  }
 0x9ef   :  { %12748 = vmatprep.subr.bf16.mxu1 %v25867_v19 }
 0x9f0   :  { %12184 = vmatpush1.bf16.msra.mxu0 %v17953_v7 }
 0x9f1   :  { %12185 = vmatprep.subr.bf16.mxu0 %v17958_v38  ;;  %v17993_v38 = vld [vmem:[%s25795_s8 + $0x590] ss:$68 sps:$4 sm:$0xff]  }
 0x9f2   :  { %12749 = vmatpush1.bf16.msra.mxu1 %v17963_v4  ;;  %v17996_v4 = vld [vmem:[%s25795_s8 + $0x5f4] ss:$68 sps:$4 sm:$0xff]  }
 0x9f3   :  { %11998 = vmatmul.mubr.bf16.gmra.mrb[132].mxu0 %v25854_v2  ;;  %12563 = vmatmul.mubr.bf16.gmra.mrb[228].mxu1 %v25854_v2 }
 0x9f4   :  { %15214 = vmatprep.mubr.msk.bf16.mxu0 %vm5236_vm1, %v25855_v53  ;;  %15254 = vmatprep.mubr.msk.bf16.mxu1 %vm5236_vm1, %v25855_v53 }
 0x9f5   :  { %12186 = vmatpush1.bf16.msra.mxu0 %v17956_v12  ;;  %12750 = vmatprep.subr.bf16.mxu1 %v25867_v19  ;;  %v17994_v12 = vld [vmem:[%s25795_s8 + $0x5f0] ss:$68 sps:$4 sm:$0xff]  }
 0x9f6   :  { %12187 = vmatprep.subr.bf16.mxu0 %v17961_v8  ;;  %12751 = vmatpush1.bf16.msra.mxu1 %v17967_v5  ;;  %v17997_v5 = vld [vmem:[%s25795_s8 + $0x618] ss:$68 sps:$4 sm:$0xff]  }
 0x9f7   :  { %12752 = vmatprep.subr.bf16.mxu1 %v25867_v19 }
 0x9f9   :  { %12188 = vmatpush1.bf16.msra.mxu0 %v17959_v14  ;;  %v18000_v14 = vld [vmem:[%s25795_s8 + $0x2c] ss:$68 sps:$4 sm:$0xff]  }
 0x9fa   :  { %12189 = vmatprep.subr.bf16.mxu0 %v17966_v28  ;;  %12753 = vmatpush1.bf16.msra.mxu1 %v17971_v31 }
 0x9fb   :  { %12008 = vmatmul.mubr.bf16.gmra.mrb[136].mxu0 %v25856_v49  ;;  %12573 = vmatmul.mubr.bf16.gmra.mrb[232].mxu1 %v25856_v49 }
 0x9fc   :  { %15215 = vmatprep.mubr.msk.bf16.mxu0 %vm5236_vm1, %v25857_v58  ;;  %15255 = vmatprep.mubr.msk.bf16.mxu1 %vm5236_vm1, %v25857_v58 }
 0x9fd   :  { %12190 = vmatpush1.bf16.msra.mxu0 %v17964_v39  ;;  %12754 = vmatprep.subr.bf16.mxu1 %v25867_v19 }
 0x9fe   :  { %v15815_v41 = vpop.f32.mrb[0].mxu1  ;;  %12191 = vmatprep.subr.bf16.mxu0 %v17970_v20  ;;  %12755 = vmatpush1.bf16.msra.mxu1 %v17975_v21 }
 0x9ff   :  { %v15816_v32 = vpop.f32.mrb[1].mxu1  ;;  %12756 = vmatprep.subr.bf16.mxu1 %v25867_v19 }
 0xa00   :  { %v24196_v9 = vadd.f32 %v15816_v32, %v15815_v41  ;;  %v15818_v33 = vpop.f32.mrb[2].mxu1 }
 0xa01   :  { %v15819_v3 = vpop.f32.mrb[3].mxu1  ;;  %12192 = vmatpush1.bf16.msra.mxu0 %v17968_v6 }
 0xa02   :  { %v24201_v11 = vadd.f32 %v15819_v3, %v15818_v33  ;;  %12193 = vmatprep.subr.bf16.mxu0 %v17974_v51  ;;  %12757 = vmatpush1.bf16.msra.mxu1 %v17976_v16 }
 0xa03   :  { %12018 = vmatmul.mubr.bf16.gmra.mrb[140].mxu0 %v25858_v56  ;;  %12583 = vmatmul.mubr.bf16.gmra.mrb[236].mxu1 %v25858_v56 }
 0xa04   :  { %15216 = vmatprep.mubr.msk.bf16.mxu0 %vm5236_vm1, %v25859_v59  ;;  %15256 = vmatprep.mubr.msk.bf16.mxu1 %vm5236_vm1, %v25859_v59 }
 0xa05   :  { %12194 = vmatpush1.bf16.msra.mxu0 %v17972_v45  ;;  %12758 = vmatprep.subr.bf16.mxu1 %v25867_v19 }
 0xa06   :  { %v15821_v25 = vpop.f32.mrb[4].mxu1  ;;  %12195 = vmatprep.subr.bf16.mxu0 %v17979_v13  ;;  %12759 = vmatpush1.bf16.msra.mxu1 %v17980_v17  ;;  %v17998_v17 = vld [vmem:[%s25795_s8 + $0x28] ss:$68 sps:$4 sm:$0xff]  }
 0xa07   :  { %v15822_v52 = vpop.f32.mrb[5].mxu1  ;;  %12760 = vmatprep.subr.bf16.mxu1 %v25867_v19 }
 0xa08   :  { %v24226_v35 = vadd.f32 %v15822_v52, %v15821_v25  ;;  %v15824_v15 = vpop.f32.mrb[6].mxu1  ;;  %v18003_v25 = vld [vmem:[%s25795_s8 + $0xb4] ss:$68 sps:$4 sm:$0xff]   ;;  %v18006_v52 = vld [vmem:[%s25795_s8 + $0x13c] ss:$68 sps:$4 sm:$0xff]  }
 0xa09   :  { %v15825_v42 = vpop.f32.mrb[7].mxu1  ;;  %12196 = vmatpush1.bf16.msra.mxu0 %v17977_v36 }
 0xa0a   :  { %v24231_v63 = vadd.f32 %v15825_v42, %v15824_v15  ;;  %12197 = vmatprep.subr.bf16.mxu0 %v17983_v40  ;;  %12761 = vmatpush1.bf16.msra.mxu1 %v17984_v54  ;;  %v18001_v54 = vld [vmem:[%s25795_s8 + $0xb0] ss:$68 sps:$4 sm:$0xff]  }
 0xa0b   :  { %12028 = vmatmul.mubr.bf16.gmra.mrb[144].mxu0 %v25860_v61  ;;  %12593 = vmatmul.mubr.bf16.gmra.mrb[240].mxu1 %v25860_v61 }
 0xa0c   :  { %15217 = vmatprep.mubr.msk.bf16.mxu0 %vm5236_vm1, %v25861_v43  ;;  %15257 = vmatprep.mubr.msk.bf16.mxu1 %vm5236_vm1, %v25861_v43 }
 0xa0d   :  { %12198 = vmatpush1.bf16.msra.mxu0 %v17981_v62  ;;  %12762 = vmatprep.subr.bf16.mxu1 %v25867_v19 }
 0xa0e   :  { %v15827_v46 = vpop.f32.mrb[8].mxu1  ;;  %12199 = vmatprep.subr.bf16.mxu0 %v17987_v50  ;;  %12763 = vmatpush1.bf16.msra.mxu1 %v17988_v57 }
 0xa0f   :  { %v15828_v10 = vpop.f32.mrb[9].mxu1  ;;  %12764 = vmatprep.subr.bf16.mxu1 %v25867_v19 }
 0xa10   :  { %v24256_v26 = vadd.f32 %v15828_v10, %v15827_v46  ;;  %v15830_v37 = vpop.f32.mrb[10].mxu1 }
 0xa11   :  { %v15831_v44 = vpop.f32.mrb[11].mxu1  ;;  %12200 = vmatpush1.bf16.msra.mxu0 %v17985_v29  ;;  %v18004_v29 = vld [vmem:[%s25795_s8 + $0x138] ss:$68 sps:$4 sm:$0xff]  }
 0xa12   :  { %v24261_v7 = vadd.f32 %v15831_v44, %v15830_v37  ;;  %12765 = vmatpush1.bf16.msra.mxu1 %v17989_v30  ;;  %12201 = vmatprep.subr.bf16.mxu0 %v17992_v24  ;;  %v18009_v30 = vld [vmem:[%s25795_s8 + $0x1c4] ss:$68 sps:$4 sm:$0xff]   ;;  %v18012_v37 = vld [vmem:[%s25795_s8 + $0x24c] ss:$68 sps:$4 sm:$0xff]  }
 0xa13   :  { %12038 = vmatmul.mubr.bf16.gmra.mrb[148].mxu0 %v25862_v23  ;;  %12603 = vmatmul.mubr.bf16.gmra.mrb[244].mxu1 %v25862_v23  ;;  %v18007_v24 = vld [vmem:[%s25795_s8 + $0x1c0] ss:$68 sps:$4 sm:$0xff]  }
 0xa14   :  { %15218 = vmatprep.mubr.msk.bf16.mxu0 %vm5236_vm1, %v25863_v0  ;;  %15258 = vmatprep.mubr.msk.bf16.mxu1 %vm5236_vm1, %v25863_v0 }
 0xa15   :  { %12202 = vmatpush1.bf16.msra.mxu0 %v17990_v60  ;;  %12766 = vmatprep.subr.bf16.mxu1 %v25867_v19 }
 0xa16   :  { %v15833_v8 = vpop.f32.mrb[12].mxu1  ;;  %12767 = vmatpush1.bf16.msra.mxu1 %v17993_v38  ;;  %12203 = vmatprep.subr.bf16.mxu0 %v17996_v4 }
 0xa17   :  { %v15834_v28 = vpop.f32.mrb[13].mxu1  ;;  %12768 = vmatprep.subr.bf16.mxu1 %v25867_v19 }
 0xa18   :  { %v24286_v31 = vadd.f32 %v15834_v28, %v15833_v8  ;;  %v15836_v39 = vpop.f32.mrb[14].mxu1  ;;  %v24361_v28 = vld [vmem:[%s25796_s9] sm:$0xff] }
 0xa19   :  { %v15837_v20 = vpop.f32.mrb[15].mxu1  ;;  %12204 = vmatpush1.bf16.msra.mxu0 %v17994_v12  ;;  %v25868_v12 = vld [vmem:[#allocation5_spill] sm:$0xff] }
 0xa1a   :  { %v24288_v21 = vadd.f32 %v15837_v20, %v15836_v39  ;;  %12769 = vmatpush1.bf16.msra.mxu1 %v17997_v5  ;;  %12407 = vmatprep.subr.bf16.mxu0 %v18000_v14  ;;  %v13139_v8 = vsub.s32 4, %v25868_v12  ;;  %v18010_v5 = vld [vmem:[%s25795_s8 + $0x248] ss:$68 sps:$4 sm:$0xff]   ;;  %v13143_v39 = vsub.s32 5, %v25868_v12  ;;  %v18015_v20 = vld [vmem:[%s25795_s8 + $0x2d4] ss:$68 sps:$4 sm:$0xff]  }
 0xa1b   :  { %12048 = vmatmul.mubr.bf16.gmra.mrb[152].mxu0 %v25864_v18  ;;  %12613 = vmatmul.mubr.bf16.gmra.mrb[248].mxu1 %v25864_v18 }
 0xa1c   :  { %15219 = vmatprep.mubr.msk.bf16.mxu0 %vm5236_vm1, %v25865_v34  ;;  %15259 = vmatprep.mubr.msk.bf16.mxu1 %vm5236_vm1, %v25865_v34 }
 0xa1e   :  { %v15839_v19 = vpop.f32.mrb[16].mxu1 }
 0xa1f   :  { %v15840_v6 = vpop.f32.mrb[17].mxu1 }
 0xa20   :  { %v24296_v41 = vadd.f32 %v15840_v6, %v15839_v19  ;;  %v15842_v51 = vpop.f32.mrb[18].mxu1  ;;  %v24376_v19 = vrot.slane %v24361_v28, %v13139_v8  ;;  %v18013_v6 = vld [vmem:[%s25795_s8 + $0x2d0] ss:$68 sps:$4 sm:$0xff]  }
 0xa21   :  { %v15843_v16 = vpop.f32.mrb[19].mxu1 }
 0xa22   :  { %v24298_v32 = vadd.f32 %v15843_v16, %v15842_v51  ;;  %v24384_v16 = vrot.slane %v24361_v28, %v13143_v39 }
 0xa23   :  { %12058 = vmatmul.mubr.bf16.gmra.mrb[156].mxu0 %v25866_v55  ;;  %12623 = vmatmul.mubr.bf16.gmra.mrb[252].mxu1 %v25866_v55 }
 0xa24   :  { %15228 = vmatprep.mubr.msk.bf16.mxu0 %vm5236_vm1, %v21389_v22  ;;  %15268 = vmatprep.mubr.msk.bf16.mxu1 %vm5236_vm1, %v21389_v22 }
 0xa26   :  { %v15845_v33 = vpop.f32.mrb[20].mxu1 }
 0xa27   :  { %v15846_v3 = vpop.f32.mrb[21].mxu1 }
 0xa28   :  { %v24306_v45 = vadd.f32 %v15846_v3, %v15845_v33  ;;  %v15848_v13 = vpop.f32.mrb[22].mxu1  ;;  %v18018_v33 = vld [vmem:[%s25795_s8 + $0x35c] ss:$68 sps:$4 sm:$0xff]  }
 0xa29   :  { %v15849_v36 = vpop.f32.mrb[23].mxu1  ;;  %v18071_v3 = vld [vmem:[%s25787_s0 + $0x20] sm:$0xff] }
 0xa2a   :  { %v24314_v40 = vadd.f32 %v15849_v36, %v15848_v13  ;;  %v18072_v36 = vld [vmem:[%s25787_s0 + $0x28] sm:$0xff] }
 0xa2b   :  { %12214 = vmatmul.mubr.bf16.vlgmr.msra.gmra.mrb[160].mxu0 %v21387_v48  ;;  %12779 = vmatmul.mubr.bf16.vlgmr.msra.gmra.mrb[32].mxu1 %v21387_v48 }
 0xa2c   :  { %15229 = vmatprep.mubr.msk.bf16.mxu0 %vm5236_vm1, %v21401_v27  ;;  %12408 = vmatpush1.bf16.msra.mxu0 %v17998_v17 }
 0xa2d   :  { %15269 = vmatprep.mubr.msk.bf16.mxu1 %vm5236_vm1, %v21401_v27  ;;  %12409 = vmatprep.subr.bf16.mxu0 %v18003_v25 }
 0xa2e   :  { %v15851_v15 = vpop.f32.mrb[24].mxu1 }
 0xa2f   :  { %v15852_v42 = vpop.f32.mrb[25].mxu1 }
 0xa30   :  { %v24328_v62 = vadd.f32 %v15852_v42, %v15851_v15  ;;  %v15854_v50 = vpop.f32.mrb[26].mxu1  ;;  %12410 = vmatpush1.bf16.msra.mxu0 %v18001_v54  ;;  %v18073_v15 = vld [vmem:[%s25787_s0 + $0xa8] sm:$0xff] }
 0xa31   :  { %v15855_v57 = vpop.f32.mrb[27].mxu1  ;;  %12411 = vmatprep.subr.bf16.mxu0 %v18006_v52 }
 0xa32   :  { %v24333_v46 = vadd.f32 %v15855_v57, %v15854_v50  ;;  %v18016_v57 = vld [vmem:[%s25795_s8 + $0x358] ss:$68 sps:$4 sm:$0xff]  }
 0xa33   :  { %12224 = vmatmul.mubr.bf16.gmra.mrb[164].mxu0 %v25854_v2  ;;  %12787 = vmatmul.mubr.bf16.gmra.mrb[36].mxu1 %v25854_v2 }
 0xa34   :  { %15230 = vmatprep.mubr.msk.bf16.mxu0 %vm5236_vm1, %v25855_v53  ;;  %15270 = vmatprep.mubr.msk.bf16.mxu1 %vm5236_vm1, %v25855_v53 }
 0xa35   :  { %12412 = vmatpush1.bf16.msra.mxu0 %v18004_v29 }
 0xa36   :  { %v15857_v10 = vpop.f32.mrb[28].mxu1  ;;  %12413 = vmatprep.subr.bf16.mxu0 %v18009_v30  ;;  %v18074_v30 = vld [vmem:[%s25787_s0 + $0xb0] sm:$0xff] }
 0xa37   :  { %v15858_v44 = vpop.f32.mrb[29].mxu1 }
 0xa38   :  { %v24350_v60 = vadd.f32 %v15858_v44, %v15857_v10  ;;  %v15860_v38 = vpop.f32.mrb[30].mxu1  ;;  %v18021_v10 = vld [vmem:[%s25795_s8 + $0x3e4] ss:$68 sps:$4 sm:$0xff]  }
 0xa39   :  { %v15861_v4 = vpop.f32.mrb[31].mxu1  ;;  %12414 = vmatpush1.bf16.msra.mxu0 %v18007_v24 }
 0xa3a   :  { %v24356_v14 = vadd.f32 %v15861_v4, %v15860_v38  ;;  %12415 = vmatprep.subr.bf16.mxu0 %v18012_v37 }
 0xa3b   :  { %12234 = vmatmul.mubr.bf16.gmra.mrb[168].mxu0 %v25856_v49  ;;  %12795 = vmatmul.mubr.bf16.gmra.mrb[40].mxu1 %v25856_v49 }
 0xa3c   :  { %15231 = vmatprep.mubr.msk.bf16.mxu0 %vm5236_vm1, %v25857_v58  ;;  %15271 = vmatprep.mubr.msk.bf16.mxu1 %vm5236_vm1, %v25857_v58 }
 0xa3d   :  { %12416 = vmatpush1.bf16.msra.mxu0 %v18010_v5 }
 0xa3e   :  { %v12102_v51 = vpop.f32.mrb[160].mxu1  ;;  %12417 = vmatprep.subr.bf16.mxu0 %v18015_v20  ;;  %v18019_v20 = vld [vmem:[%s25795_s8 + $0x3e0] ss:$68 sps:$4 sm:$0xff]  }
 0xa3f   :  { %v12847_v13 = vadd.f32 %v18071_v3, %v12102_v51  ;;  %v12104_v17 = vpop.f32.mrb[161].mxu1  ;;  %v18075_v3 = vld [vmem:[%s25787_s0 + $0x130] sm:$0xff] }
 0xa40   :  { %v12848_v25 = vadd.f32 %v18072_v36, %v12104_v17  ;;  %v12106_v54 = vpop.f32.mrb[162].mxu1  ;;  %v18076_v36 = vld [vmem:[%s25787_s0 + $0x138] sm:$0xff] }
 0xa41   :  { %v13210_v52 = vadd.f32 %v24376_v19, %v12847_v13  ;;  %v12864_v42 = vadd.f32 %v18073_v15, %v12106_v54  ;;  %v12108_v50 = vpop.f32.mrb[163].mxu1  ;;  %12418 = vmatpush1.bf16.msra.mxu0 %v18013_v6  ;;  %v18077_v15 = vld [vmem:[%s25787_s0 + $0x1b8] sm:$0xff] }
 0xa42   :  { %v13211_v29 = vadd.f32 %v24384_v16, %v12848_v25  ;;  %v12865_v24 = vadd.f32 %v18074_v30, %v12108_v50  ;;  %12419 = vmatprep.subr.bf16.mxu0 %v18018_v33  ;;  %v18024_v33 = vld [vmem:[%s25795_s8 + $0x46c] ss:$68 sps:$4 sm:$0xff]   ;;  %v18078_v30 = vld [vmem:[%s25787_s0 + $0x1c0] sm:$0xff] }
 0xa43   :  { %v13482_v37 = vmax.f32 %v13210_v52, 0.0  ;;  %v13227_v44 = vadd.f32 %v24376_v19, %v12864_v42  ;;  %12244 = vmatmul.mubr.bf16.gmra.mrb[172].mxu0 %v25858_v56  ;;  %12803 = vmatmul.mubr.bf16.gmra.mrb[44].mxu1 %v25858_v56 }
 0xa44   :  { %v13483_v38 = vmax.f32 %v13211_v29, 0.0  ;;  %v13228_v4 = vadd.f32 %v24384_v16, %v12865_v24  ;;  %15232 = vmatprep.mubr.msk.bf16.mxu0 %vm5236_vm1, %v25859_v59  ;;  %15272 = vmatprep.mubr.msk.bf16.mxu1 %vm5236_vm1, %v25859_v59 }
 0xa45   :  { %13754 = vst [vmem:[#allocation2 + $0x20] sm:$0xff] %v13482_v37  ;;  %v13499_v5 = vmax.f32 %v13227_v44, 0.0  ;;  %12420 = vmatpush1.bf16.msra.mxu0 %v18016_v57  ;;  %v18022_v57 = vld [vmem:[%s25795_s8 + $0x468] ss:$68 sps:$4 sm:$0xff]  }
 0xa46   :  { %13755 = vst [vmem:[#allocation2 + $0x28] sm:$0xff] %v13483_v38  ;;  %v13500_v6 = vmax.f32 %v13228_v4, 0.0  ;;  %v12112_v51 = vpop.f32.mrb[164].mxu1  ;;  %12421 = vmatprep.subr.bf16.mxu0 %v18021_v10  ;;  %v18027_v10 = vld [vmem:[%s25795_s8 + $0x4f4] ss:$68 sps:$4 sm:$0xff]  }
 0xa47   :  { %13771 = vst [vmem:[#allocation2 + $0xa8] sm:$0xff] %v13499_v5  ;;  %v12881_v13 = vadd.f32 %v18075_v3, %v12112_v51  ;;  %v12114_v17 = vpop.f32.mrb[165].mxu1  ;;  %v18079_v3 = vld [vmem:[%s25787_s0 + $0x240] sm:$0xff] }
 0xa48   :  { %13772 = vst [vmem:[#allocation2 + $0xb0] sm:$0xff] %v13500_v6  ;;  %v12882_v25 = vadd.f32 %v18076_v36, %v12114_v17  ;;  %v12116_v54 = vpop.f32.mrb[166].mxu1  ;;  %v18080_v36 = vld [vmem:[%s25787_s0 + $0x248] sm:$0xff] }
 0xa49   :  { %v13244_v52 = vadd.f32 %v24376_v19, %v12881_v13  ;;  %v12898_v42 = vadd.f32 %v18077_v15, %v12116_v54  ;;  %v12118_v50 = vpop.f32.mrb[167].mxu1  ;;  %12422 = vmatpush1.bf16.msra.mxu0 %v18019_v20  ;;  %v18025_v20 = vld [vmem:[%s25795_s8 + $0x4f0] ss:$68 sps:$4 sm:$0xff]   ;;  %v18081_v15 = vld [vmem:[%s25787_s0 + $0x2c8] sm:$0xff] }
 0xa4a   :  { %v13245_v29 = vadd.f32 %v24384_v16, %v12882_v25  ;;  %v12899_v24 = vadd.f32 %v18078_v30, %v12118_v50  ;;  %12423 = vmatprep.subr.bf16.mxu0 %v18024_v33  ;;  %v18030_v33 = vld [vmem:[%s25795_s8 + $0x57c] ss:$68 sps:$4 sm:$0xff]   ;;  %v18082_v30 = vld [vmem:[%s25787_s0 + $0x2d0] sm:$0xff] }
 0xa4b   :  { %v13516_v37 = vmax.f32 %v13244_v52, 0.0  ;;  %v13261_v44 = vadd.f32 %v24376_v19, %v12898_v42  ;;  %12254 = vmatmul.mubr.bf16.gmra.mrb[176].mxu0 %v25860_v61  ;;  %12811 = vmatmul.mubr.bf16.gmra.mrb[48].mxu1 %v25860_v61 }
 0xa4c   :  { %v13517_v38 = vmax.f32 %v13245_v29, 0.0  ;;  %v13262_v4 = vadd.f32 %v24384_v16, %v12899_v24  ;;  %15233 = vmatprep.mubr.msk.bf16.mxu0 %vm5236_vm1, %v25861_v43  ;;  %15273 = vmatprep.mubr.msk.bf16.mxu1 %vm5236_vm1, %v25861_v43 }
 0xa4d   :  { %13788 = vst [vmem:[#allocation2 + $0x130] sm:$0xff] %v13516_v37  ;;  %v13533_v5 = vmax.f32 %v13261_v44, 0.0  ;;  %12424 = vmatpush1.bf16.msra.mxu0 %v18022_v57  ;;  %v18028_v57 = vld [vmem:[%s25795_s8 + $0x578] ss:$68 sps:$4 sm:$0xff]  }
 0xa4e   :  { %13789 = vst [vmem:[#allocation2 + $0x138] sm:$0xff] %v13517_v38  ;;  %v13534_v6 = vmax.f32 %v13262_v4, 0.0  ;;  %v12122_v51 = vpop.f32.mrb[168].mxu1  ;;  %12425 = vmatprep.subr.bf16.mxu0 %v18027_v10  ;;  %v18033_v10 = vld [vmem:[%s25795_s8 + $0x604] ss:$68 sps:$4 sm:$0xff]  }
 0xa4f   :  { %13805 = vst [vmem:[#allocation2 + $0x1b8] sm:$0xff] %v13533_v5  ;;  %v12915_v13 = vadd.f32 %v18079_v3, %v12122_v51  ;;  %v12124_v17 = vpop.f32.mrb[169].mxu1  ;;  %v18083_v3 = vld [vmem:[%s25787_s0 + $0x350] sm:$0xff] }
 0xa50   :  { %13806 = vst [vmem:[#allocation2 + $0x1c0] sm:$0xff] %v13534_v6  ;;  %v12916_v25 = vadd.f32 %v18080_v36, %v12124_v17  ;;  %v12126_v54 = vpop.f32.mrb[170].mxu1  ;;  %v18084_v36 = vld [vmem:[%s25787_s0 + $0x358] sm:$0xff] }
 0xa51   :  { %v13278_v52 = vadd.f32 %v24376_v19, %v12915_v13  ;;  %v12932_v42 = vadd.f32 %v18081_v15, %v12126_v54  ;;  %v12128_v50 = vpop.f32.mrb[171].mxu1  ;;  %12426 = vmatpush1.bf16.msra.mxu0 %v18025_v20  ;;  %v18031_v20 = vld [vmem:[%s25795_s8 + $0x600] ss:$68 sps:$4 sm:$0xff]   ;;  %v18085_v15 = vld [vmem:[%s25787_s0 + $0x3d8] sm:$0xff] }
 0xa52   :  { %v13279_v29 = vadd.f32 %v24384_v16, %v12916_v25  ;;  %v12933_v24 = vadd.f32 %v18082_v30, %v12128_v50  ;;  %12427 = vmatprep.subr.bf16.mxu0 %v18030_v33  ;;  %v18036_v33 = vld [vmem:[%s25795_s8 + $0x3c] ss:$68 sps:$4 sm:$0xff]  }
 0xa53   :  { %v13550_v37 = vmax.f32 %v13278_v52, 0.0  ;;  %v13295_v44 = vadd.f32 %v24376_v19, %v12932_v42  ;;  %12264 = vmatmul.mubr.bf16.gmra.mrb[180].mxu0 %v25862_v23  ;;  %12819 = vmatmul.mubr.bf16.gmra.mrb[52].mxu1 %v25862_v23 }
 0xa54   :  { %v13551_v38 = vmax.f32 %v13279_v29, 0.0  ;;  %v13296_v4 = vadd.f32 %v24384_v16, %v12933_v24  ;;  %15234 = vmatprep.mubr.msk.bf16.mxu0 %vm5236_vm1, %v25863_v0  ;;  %15274 = vmatprep.mubr.msk.bf16.mxu1 %vm5236_vm1, %v25863_v0  ;;  %v18086_v29 = vld [vmem:[%s25787_s0 + $0x3e0] sm:$0xff] }
 0xa55   :  { %13822 = vst [vmem:[#allocation2 + $0x240] sm:$0xff] %v13550_v37  ;;  %v13567_v5 = vmax.f32 %v13295_v44, 0.0  ;;  %12428 = vmatpush1.bf16.msra.mxu0 %v18028_v57 }
 0xa56   :  { %13823 = vst [vmem:[#allocation2 + $0x248] sm:$0xff] %v13551_v38  ;;  %v13568_v6 = vmax.f32 %v13296_v4, 0.0  ;;  %v12132_v51 = vpop.f32.mrb[172].mxu1  ;;  %12429 = vmatprep.subr.bf16.mxu0 %v18033_v10 }
 0xa57   :  { %13839 = vst [vmem:[#allocation2 + $0x2c8] sm:$0xff] %v13567_v5  ;;  %v12949_v13 = vadd.f32 %v18083_v3, %v12132_v51  ;;  %v12134_v17 = vpop.f32.mrb[173].mxu1 }
 0xa58   :  { %13840 = vst [vmem:[#allocation2 + $0x2d0] sm:$0xff] %v13568_v6  ;;  %v12950_v25 = vadd.f32 %v18084_v36, %v12134_v17  ;;  %v12136_v54 = vpop.f32.mrb[174].mxu1  ;;  %v18089_v36 = vld [vmem:[%s25787_s0 + $0x4e8] sm:$0xff] }
 0xa59   :  { %v13312_v52 = vadd.f32 %v24376_v19, %v12949_v13  ;;  %v12966_v42 = vadd.f32 %v18085_v15, %v12136_v54  ;;  %v12138_v50 = vpop.f32.mrb[175].mxu1  ;;  %12430 = vmatpush1.bf16.msra.mxu0 %v18031_v20  ;;  %v18087_v20 = vld [vmem:[%s25787_s0 + $0x460] sm:$0xff]  ;;  %v18090_v15 = vld [vmem:[%s25787_s0 + $0x4f0] sm:$0xff] }
 0xa5a   :  { %v13313_v57 = vadd.f32 %v24384_v16, %v12950_v25  ;;  %v12967_v30 = vadd.f32 %v18086_v29, %v12138_v50  ;;  %12633 = vmatprep.subr.bf16.mxu0 %v18036_v33  ;;  %v18088_v33 = vld [vmem:[%s25787_s0 + $0x468] sm:$0xff] }
 0xa5b   :  { %v13584_v24 = vmax.f32 %v13312_v52, 0.0  ;;  %v13329_v10 = vadd.f32 %v24376_v19, %v12966_v42  ;;  %12274 = vmatmul.mubr.bf16.gmra.mrb[184].mxu0 %v25864_v18  ;;  %12827 = vmatmul.mubr.bf16.gmra.mrb[56].mxu1 %v25864_v18 }
 0xa5c   :  { %v13585_v37 = vmax.f32 %v13313_v57, 0.0  ;;  %v13330_v44 = vadd.f32 %v24384_v16, %v12967_v30  ;;  %15235 = vmatprep.mubr.msk.bf16.mxu0 %vm5236_vm1, %v25865_v34  ;;  %15275 = vmatprep.mubr.msk.bf16.mxu1 %vm5236_vm1, %v25865_v34 }
 0xa5d   :  { %13856 = vst [vmem:[#allocation2 + $0x350] sm:$0xff] %v13584_v24  ;;  %v13601_v38 = vmax.f32 %v13329_v10, 0.0 }
 0xa5e   :  { %13857 = vst [vmem:[#allocation2 + $0x358] sm:$0xff] %v13585_v37  ;;  %v13602_v4 = vmax.f32 %v13330_v44, 0.0  ;;  %v12142_v5 = vpop.f32.mrb[176].mxu1  ;;  %v18091_v44 = vld [vmem:[%s25787_s0 + $0x570] sm:$0xff] }
 0xa5f   :  { %13873 = vst [vmem:[#allocation2 + $0x3d8] sm:$0xff] %v13601_v38  ;;  %v12983_v6 = vadd.f32 %v18087_v20, %v12142_v5  ;;  %v12144_v51 = vpop.f32.mrb[177].mxu1  ;;  %v18092_v5 = vld [vmem:[%s25787_s0 + $0x578] sm:$0xff] }
 0xa60   :  { %13874 = vst [vmem:[#allocation2 + $0x3e0] sm:$0xff] %v13602_v4  ;;  %v12984_v3 = vadd.f32 %v18088_v33, %v12144_v51  ;;  %v12146_v13 = vpop.f32.mrb[178].mxu1  ;;  %v18034_v51 = vld [vmem:[%s25795_s8 + $0x38] ss:$68 sps:$4 sm:$0xff]  }
 0xa61   :  { %v13346_v17 = vadd.f32 %v24376_v19, %v12983_v6  ;;  %v13000_v25 = vadd.f32 %v18089_v36, %v12146_v13  ;;  %v12148_v54 = vpop.f32.mrb[179].mxu1  ;;  %v18039_v36 = vld [vmem:[%s25795_s8 + $0xc4] ss:$68 sps:$4 sm:$0xff]  }
 0xa62   :  { %v13347_v52 = vadd.f32 %v24384_v16, %v12984_v3  ;;  %v13001_v42 = vadd.f32 %v18090_v15, %v12148_v54  ;;  %v18093_v3 = vld [vmem:[%s25787_s0 + $0x5f8] sm:$0xff]  ;;  %v18094_v54 = vld [vmem:[%s25787_s0 + $0x600] sm:$0xff] }
 0xa63   :  { %v13618_v50 = vmax.f32 %v13346_v17, 0.0  ;;  %v13363_v57 = vadd.f32 %v24376_v19, %v13000_v25  ;;  %12284 = vmatmul.mubr.bf16.gmra.mrb[188].mxu0 %v25866_v55  ;;  %12835 = vmatmul.mubr.bf16.gmra.mrb[60].mxu1 %v25866_v55 }
 0xa64   :  { %v13619_v29 = vmax.f32 %v13347_v52, 0.0  ;;  %v13364_v30 = vadd.f32 %v24384_v16, %v13001_v42  ;;  %15244 = vmatprep.mubr.msk.bf16.mxu0 %vm5236_vm1, %v21389_v22 }
 0xa65   :  { %13890 = vst [vmem:[#allocation2 + $0x460] sm:$0xff] %v13618_v50  ;;  %v13635_v24 = vmax.f32 %v13363_v57, 0.0 }
 0xa66   :  { %13891 = vst [vmem:[#allocation2 + $0x468] sm:$0xff] %v13619_v29  ;;  %v13636_v10 = vmax.f32 %v13364_v30, 0.0  ;;  %v12152_v37 = vpop.f32.mrb[180].mxu1  ;;  %v18037_v29 = vld [vmem:[%s25795_s8 + $0xc0] ss:$68 sps:$4 sm:$0xff]  }
 0xa67   :  { %13907 = vst [vmem:[#allocation2 + $0x4e8] sm:$0xff] %v13635_v24  ;;  %v13017_v38 = vadd.f32 %v18091_v44, %v12152_v37  ;;  %v12154_v4 = vpop.f32.mrb[181].mxu1  ;;  %v18042_v24 = vld [vmem:[%s25795_s8 + $0x14c] ss:$68 sps:$4 sm:$0xff]   ;;  %v18095_v44 = vld [vmem:[%s25787_s0 + $0x680] sm:$0xff] }
 0xa68   :  { %13908 = vst [vmem:[#allocation2 + $0x4f0] sm:$0xff] %v13636_v10  ;;  %v13018_v20 = vadd.f32 %v18092_v5, %v12154_v4  ;;  %v12156_v6 = vpop.f32.mrb[182].mxu1  ;;  %v18096_v5 = vld [vmem:[%s25787_s0 + $0x688] sm:$0xff] }
 0xa69   :  { %v13380_v33 = vadd.f32 %v24376_v19, %v13017_v38  ;;  %v13034_v13 = vadd.f32 %v18093_v3, %v12156_v6  ;;  %v12158_v17 = vpop.f32.mrb[183].mxu1  ;;  %v18097_v3 = vld [vmem:[%s25787_s0 + $0x708] sm:$0xff] }
 0xa6a   :  { %v13381_v25 = vadd.f32 %v24384_v16, %v13018_v20  ;;  %v13035_v52 = vadd.f32 %v18094_v54, %v12158_v17  ;;  %v18098_v54 = vld [vmem:[%s25787_s0 + $0x710] sm:$0xff] }
 0xa6b   :  { %v13652_v15 = vmax.f32 %v13380_v33, 0.0  ;;  %v13397_v42 = vadd.f32 %v24376_v19, %v13034_v13  ;;  %12440 = vmatmul.mubr.bf16.vlgmr.msra.gmra.mrb[192].mxu0 %v21387_v48 }
 0xa6c   :  { %v13653_v50 = vmax.f32 %v13381_v25, 0.0  ;;  %v13398_v57 = vadd.f32 %v24384_v16, %v13035_v52  ;;  %15245 = vmatprep.mubr.msk.bf16.mxu0 %vm5236_vm1, %v21401_v27  ;;  %12634 = vmatpush1.bf16.msra.mxu0 %v18034_v51  ;;  %v18040_v51 = vld [vmem:[%s25795_s8 + $0x148] ss:$68 sps:$4 sm:$0xff]  }
 0xa6d   :  { %13924 = vst [vmem:[#allocation2 + $0x570] sm:$0xff] %v13652_v15  ;;  %v13669_v30 = vmax.f32 %v13397_v42, 0.0  ;;  %12635 = vmatprep.subr.bf16.mxu0 %v18039_v36  ;;  %v18045_v36 = vld [vmem:[%s25795_s8 + $0x1d4] ss:$68 sps:$4 sm:$0xff]  }
 0xa6e   :  { %13925 = vst [vmem:[#allocation2 + $0x578] sm:$0xff] %v13653_v50  ;;  %v13670_v10 = vmax.f32 %v13398_v57, 0.0  ;;  %v12162_v37 = vpop.f32.mrb[184].mxu1 }
 0xa6f   :  { %13941 = vst [vmem:[#allocation2 + $0x5f8] sm:$0xff] %v13669_v30  ;;  %v13051_v38 = vadd.f32 %v18095_v44, %v12162_v37  ;;  %v12164_v4 = vpop.f32.mrb[185].mxu1  ;;  %v18099_v44 = vld [vmem:[%s25787_s0 + $0x790] sm:$0xff] }
 0xa70   :  { %13942 = vst [vmem:[#allocation2 + $0x600] sm:$0xff] %v13670_v10  ;;  %v13052_v20 = vadd.f32 %v18096_v5, %v12164_v4  ;;  %v12166_v6 = vpop.f32.mrb[186].mxu1  ;;  %12636 = vmatpush1.bf16.msra.mxu0 %v18037_v29  ;;  %v18043_v29 = vld [vmem:[%s25795_s8 + $0x1d0] ss:$68 sps:$4 sm:$0xff]   ;;  %v18100_v5 = vld [vmem:[%s25787_s0 + $0x798] sm:$0xff] }
 0xa71   :  { %v13414_v33 = vadd.f32 %v24376_v19, %v13051_v38  ;;  %v13068_v13 = vadd.f32 %v18097_v3, %v12166_v6  ;;  %v12168_v17 = vpop.f32.mrb[187].mxu1  ;;  %12637 = vmatprep.subr.bf16.mxu0 %v18042_v24  ;;  %v18048_v24 = vld [vmem:[%s25795_s8 + $0x25c] ss:$68 sps:$4 sm:$0xff]  }
 0xa72   :  { %v13415_v25 = vadd.f32 %v24384_v16, %v13052_v20  ;;  %v13069_v52 = vadd.f32 %v18098_v54, %v12168_v17  ;;  %v18101_v3 = vld [vmem:[%s25787_s0 + $0x818] sm:$0xff]  ;;  %v18102_v54 = vld [vmem:[%s25787_s0 + $0x820] sm:$0xff] }
 0xa73   :  { %v13686_v15 = vmax.f32 %v13414_v33, 0.0  ;;  %v13431_v42 = vadd.f32 %v24376_v19, %v13068_v13  ;;  %12450 = vmatmul.mubr.bf16.gmra.mrb[196].mxu0 %v25854_v2 }
 0xa74   :  { %v13687_v50 = vmax.f32 %v13415_v25, 0.0  ;;  %v13432_v57 = vadd.f32 %v24384_v16, %v13069_v52  ;;  %15246 = vmatprep.mubr.msk.bf16.mxu0 %vm5236_vm1, %v25855_v53  ;;  %12638 = vmatpush1.bf16.msra.mxu0 %v18040_v51  ;;  %v18046_v51 = vld [vmem:[%s25795_s8 + $0x258] ss:$68 sps:$4 sm:$0xff]  }
 0xa75   :  { %13958 = vst [vmem:[#allocation2 + $0x680] sm:$0xff] %v13686_v15  ;;  %v13703_v30 = vmax.f32 %v13431_v42, 0.0  ;;  %12639 = vmatprep.subr.bf16.mxu0 %v18045_v36  ;;  %v18051_v36 = vld [vmem:[%s25795_s8 + $0x2e4] ss:$68 sps:$4 sm:$0xff]  }
 0xa76   :  { %13959 = vst [vmem:[#allocation2 + $0x688] sm:$0xff] %v13687_v50  ;;  %v13704_v10 = vmax.f32 %v13432_v57, 0.0  ;;  %v12172_v37 = vpop.f32.mrb[188].mxu1  ;;  %v24618_v15 = vld [vmem:[%s25796_s9 + $0x8] sm:$0xff] }
 0xa77   :  { %13975 = vst [vmem:[#allocation2 + $0x708] sm:$0xff] %v13703_v30  ;;  %v13085_v38 = vadd.f32 %v18099_v44, %v12172_v37  ;;  %v12174_v4 = vpop.f32.mrb[189].mxu1  ;;  %v18049_v30 = vld [vmem:[%s25795_s8 + $0x2e0] ss:$68 sps:$4 sm:$0xff]  }
 0xa78   :  { %13976 = vst [vmem:[#allocation2 + $0x710] sm:$0xff] %v13704_v10  ;;  %v13086_v20 = vadd.f32 %v18100_v5, %v12174_v4  ;;  %v12176_v6 = vpop.f32.mrb[190].mxu1  ;;  %12640 = vmatpush1.bf16.msra.mxu0 %v18043_v29  ;;  %v24630_v10 = vrot.slane %v24361_v28, %v21363_v1  ;;  %v24641_v4 = vrot.slane %v24361_v28, %v21368_v47  ;;  %v18105_v28 = vld [vmem:[%s25787_s0 + $0x8] sm:$0xff] }
 0xa79   :  { %v13448_v33 = vadd.f32 %v24376_v19, %v13085_v38  ;;  %v13102_v13 = vadd.f32 %v18101_v3, %v12176_v6  ;;  %v12178_v17 = vpop.f32.mrb[191].mxu1  ;;  %12641 = vmatprep.subr.bf16.mxu0 %v18048_v24  ;;  %v24645_v5 = vrot.slane %v24618_v15, %v21368_v47  ;;  %v18104_v6 = vld [vmem:[%s25787_s0 + $0x40] sm:$0xff] }
 0xa7a   :  { %v13449_v25 = vadd.f32 %v24384_v16, %v13086_v20  ;;  %v13103_v52 = vadd.f32 %v18102_v54, %v12178_v17  ;;  %v18052_v54 = vld [vmem:[%s25795_s8 + $0x368] ss:$68 sps:$4 sm:$0xff]  }
 0xa7b   :  { %v13720_v42 = vmax.f32 %v13448_v33, 0.0  ;;  %v13465_v50 = vadd.f32 %v24376_v19, %v13102_v13  ;;  %12460 = vmatmul.mubr.bf16.gmra.mrb[200].mxu0 %v25856_v49  ;;  %v24634_v19 = vrot.slane %v24618_v15, %v21363_v1  ;;  %v18103_v1 = vld [vmem:[%s25787_s0] sm:$0xff]  ;;  %v18106_v13 = vld [vmem:[%s25787_s0 + $0x48] sm:$0xff] }
 0xa7c   :  { %v13721_v57 = vmax.f32 %v13449_v25, 0.0  ;;  %v13466_v29 = vadd.f32 %v24384_v16, %v13103_v52  ;;  %15247 = vmatprep.mubr.msk.bf16.mxu0 %vm5236_vm1, %v25857_v58  ;;  %12642 = vmatpush1.bf16.msra.mxu0 %v18046_v51  ;;  %v18054_v16 = vld [vmem:[%s25795_s8 + $0x36c] ss:$68 sps:$4 sm:$0xff]  }
 0xa7d   :  { %13992 = vst [vmem:[#allocation2 + $0x790] sm:$0xff] %v13720_v42  ;;  %v13737_v24 = vmax.f32 %v13465_v50, 0.0  ;;  %12643 = vmatprep.subr.bf16.mxu0 %v18051_v36  ;;  %v18107_v50 = vld [vmem:[%s25787_s0 + $0x88] sm:$0xff] }
 0xa7e   :  { %13993 = vst [vmem:[#allocation2 + $0x798] sm:$0xff] %v13721_v57  ;;  %v13738_v37 = vmax.f32 %v13466_v29, 0.0  ;;  %v11876_v44 = vpop.f32.mrb[96].mxu0  ;;  %v12328_v38 = vpop.f32.mrb[192].mxu1  ;;  %v18108_v29 = vld [vmem:[%s25787_s0 + $0xc8] sm:$0xff] }
 0xa7f   :  { %14009 = vst [vmem:[#allocation2 + $0x818] sm:$0xff] %v13737_v24  ;;  %v12843_v20 = vadd.f32 %v18103_v1, %v11876_v44  ;;  %v12851_v51 = vadd.f32 %v18104_v6, %v12328_v38  ;;  %v11878_v33 = vpop.f32.mrb[97].mxu0  ;;  %v12330_v3 = vpop.f32.mrb[193].mxu1  ;;  %v18057_v44 = vld [vmem:[%s25795_s8 + $0x3f4] ss:$68 sps:$4 sm:$0xff]  }
 0xa80   :  { %14010 = vst [vmem:[#allocation2 + $0x820] sm:$0xff] %v13738_v37  ;;  %v12844_v47 = vadd.f32 %v18105_v28, %v11878_v33  ;;  %v12852_v17 = vadd.f32 %v18106_v13, %v12330_v3  ;;  %v11880_v36 = vpop.f32.mrb[98].mxu0  ;;  %v12332_v25 = vpop.f32.mrb[194].mxu1  ;;  %12644 = vmatpush1.bf16.msra.mxu0 %v18049_v30 }
 0xa81   :  { %v13206_v52 = vadd.f32 %v24630_v10, %v12843_v20  ;;  %v13214_v42 = vadd.f32 %v24634_v19, %v12851_v51  ;;  %v12860_v57 = vadd.f32 %v18107_v50, %v11880_v36  ;;  %v12868_v24 = vadd.f32 %v18108_v29, %v12332_v25  ;;  %v11882_v37 = vpop.f32.mrb[99].mxu0  ;;  %v12334_v30 = vpop.f32.mrb[195].mxu1  ;;  %12645 = vmatprep.subr.bf16.mxu0 %v18054_v16  ;;  %v18109_v20 = vld [vmem:[%s25787_s0 + $0x90] sm:$0xff] }
 0xa82   :  { %v13207_v38 = vadd.f32 %v24641_v4, %v12844_v47  ;;  %v13215_v1 = vadd.f32 %v24645_v5, %v12852_v17  ;;  %v12861_v6 = vadd.f32 %v18109_v20, %v11882_v37  ;;  %v18110_v51 = vld [vmem:[%s25787_s0 + $0xd0] sm:$0xff] }
 0xa83   :  { %v12869_v33 = vadd.f32 %v18110_v51, %v12334_v30  ;;  %v13478_v3 = vmax.f32 %v13206_v52, 0.0  ;;  %v13486_v16 = vmax.f32 %v13214_v42, 0.0  ;;  %v13223_v28 = vadd.f32 %v24630_v10, %v12860_v57  ;;  %12470 = vmatmul.mubr.bf16.gmra.mrb[204].mxu0 %v25858_v56  ;;  %v18055_v52 = vld [vmem:[%s25795_s8 + $0x3f0] ss:$68 sps:$4 sm:$0xff]   ;;  %v18060_v57 = vld [vmem:[%s25795_s8 + $0x47c] ss:$68 sps:$4 sm:$0xff]  }
 0xa84   :  { %v13231_v13 = vadd.f32 %v24634_v19, %v12868_v24  ;;  %v13479_v47 = vmax.f32 %v13207_v38, 0.0  ;;  %v13487_v17 = vmax.f32 %v13215_v1, 0.0  ;;  %v13224_v36 = vadd.f32 %v24641_v4, %v12861_v6  ;;  %15248 = vmatprep.mubr.msk.bf16.mxu0 %vm5236_vm1, %v25859_v59  ;;  %12646 = vmatpush1.bf16.msra.mxu0 %v18052_v54  ;;  %v18111_v54 = vld [vmem:[%s25787_s0 + $0x110] sm:$0xff]  ;;  %v18113_v51 = vld [vmem:[%s25787_s0 + $0x118] sm:$0xff] }
 0xa85   :  { %v13232_v25 = vadd.f32 %v24645_v5, %v12869_v33  ;;  %13750 = vst [vmem:[#allocation2] sm:$0xff] %v13478_v3  ;;  %13758 = vst [vmem:[#allocation2 + $0x40] sm:$0xff] %v13486_v16  ;;  %v13495_v42 = vmax.f32 %v13223_v28, 0.0  ;;  %12647 = vmatprep.subr.bf16.mxu0 %v18057_v44  ;;  %v18112_v44 = vld [vmem:[%s25787_s0 + $0x150] sm:$0xff]  ;;  %v18114_v3 = vld [vmem:[%s25787_s0 + $0x158] sm:$0xff] }
 0xa86   :  { %v13503_v50 = vmax.f32 %v13231_v13, 0.0  ;;  %13751 = vst [vmem:[#allocation2 + $0x8] sm:$0xff] %v13479_v47  ;;  %13759 = vst [vmem:[#allocation2 + $0x48] sm:$0xff] %v13487_v17  ;;  %v13496_v29 = vmax.f32 %v13224_v36, 0.0  ;;  %v11886_v37 = vpop.f32.mrb[100].mxu0  ;;  %v12338_v30 = vpop.f32.mrb[196].mxu1 }
 0xa87   :  { %v13504_v24 = vmax.f32 %v13232_v25, 0.0  ;;  %13767 = vst [vmem:[#allocation2 + $0x88] sm:$0xff] %v13495_v42  ;;  %v12877_v38 = vadd.f32 %v18111_v54, %v11886_v37  ;;  %v12885_v1 = vadd.f32 %v18112_v44, %v12338_v30  ;;  %v11888_v20 = vpop.f32.mrb[101].mxu0  ;;  %v12340_v6 = vpop.f32.mrb[197].mxu1  ;;  %v18058_v47 = vld [vmem:[%s25795_s8 + $0x478] ss:$68 sps:$4 sm:$0xff]  }
 0xa88   :  { %13775 = vst [vmem:[#allocation2 + $0xc8] sm:$0xff] %v13503_v50  ;;  %13768 = vst [vmem:[#allocation2 + $0x90] sm:$0xff] %v13496_v29  ;;  %v12878_v33 = vadd.f32 %v18113_v51, %v11888_v20  ;;  %v12886_v16 = vadd.f32 %v18114_v3, %v12340_v6  ;;  %v11890_v28 = vpop.f32.mrb[102].mxu0  ;;  %v12342_v13 = vpop.f32.mrb[198].mxu1  ;;  %12648 = vmatpush1.bf16.msra.mxu0 %v18055_v52  ;;  %v18115_v25 = vld [vmem:[%s25787_s0 + $0x198] sm:$0xff] }
 0xa89   :  { %13776 = vst [vmem:[#allocation2 + $0xd0] sm:$0xff] %v13504_v24  ;;  %v13240_v17 = vadd.f32 %v24630_v10, %v12877_v38  ;;  %v13248_v36 = vadd.f32 %v24634_v19, %v12885_v1  ;;  %v12894_v42 = vadd.f32 %v18115_v25, %v11890_v28  ;;  %v18116_v50 = vld [vmem:[%s25787_s0 + $0x1d8] sm:$0xff]  ;;  %v11892_v24 = vpop.f32.mrb[103].mxu0  ;;  %v12344_v52 = vpop.f32.mrb[199].mxu1  ;;  %12649 = vmatprep.subr.bf16.mxu0 %v18060_v57  ;;  %v18063_v37 = vld [vmem:[%s25795_s8 + $0x504] ss:$68 sps:$4 sm:$0xff]  }
 0xa8a   :  { %v12902_v29 = vadd.f32 %v18116_v50, %v12342_v13  ;;  %v13241_v30 = vadd.f32 %v24641_v4, %v12878_v33  ;;  %v13249_v54 = vadd.f32 %v24645_v5, %v12886_v16  ;;  %v18117_v38 = vld [vmem:[%s25787_s0 + $0x1a0] sm:$0xff] }
 0xa8b   :  { %v12895_v44 = vadd.f32 %v18117_v38, %v11892_v24  ;;  %v18118_v1 = vld [vmem:[%s25787_s0 + $0x1e0] sm:$0xff]  ;;  %v13512_v6 = vmax.f32 %v13240_v17, 0.0  ;;  %v13520_v57 = vmax.f32 %v13248_v36, 0.0  ;;  %v13257_v51 = vadd.f32 %v24630_v10, %v12894_v42  ;;  %12480 = vmatmul.mubr.bf16.gmra.mrb[208].mxu0 %v25860_v61  ;;  %v18066_v42 = vld [vmem:[%s25795_s8 + $0x58c] ss:$68 sps:$4 sm:$0xff]  }
 0xa8c   :  { %v12903_v20 = vadd.f32 %v18118_v1, %v12344_v52  ;;  %v13265_v3 = vadd.f32 %v24634_v19, %v12902_v29  ;;  %v13513_v33 = vmax.f32 %v13241_v30, 0.0  ;;  %v13521_v16 = vmax.f32 %v13249_v54, 0.0  ;;  %15249 = vmatprep.mubr.msk.bf16.mxu0 %vm5236_vm1, %v25861_v43  ;;  %12650 = vmatpush1.bf16.msra.mxu0 %v18058_v47  ;;  %v18061_v17 = vld [vmem:[%s25795_s8 + $0x500] ss:$68 sps:$4 sm:$0xff]   ;;  %v18121_v1 = vld [vmem:[%s25787_s0 + $0x228] sm:$0xff] }
 0xa8d   :  { %v13258_v28 = vadd.f32 %v24641_v4, %v12895_v44  ;;  %13784 = vst [vmem:[#allocation2 + $0x110] sm:$0xff] %v13512_v6  ;;  %13792 = vst [vmem:[#allocation2 + $0x150] sm:$0xff] %v13520_v57  ;;  %v13529_v36 = vmax.f32 %v13257_v51, 0.0  ;;  %12651 = vmatprep.subr.bf16.mxu0 %v18063_v37  ;;  %v18119_v47 = vld [vmem:[%s25787_s0 + $0x220] sm:$0xff]  ;;  %v18122_v6 = vld [vmem:[%s25787_s0 + $0x268] sm:$0xff] }
 0xa8e   :  { %v13266_v13 = vadd.f32 %v24645_v5, %v12903_v20  ;;  %v13537_v25 = vmax.f32 %v13265_v3, 0.0  ;;  %13785 = vst [vmem:[#allocation2 + $0x118] sm:$0xff] %v13513_v33  ;;  %13793 = vst [vmem:[#allocation2 + $0x158] sm:$0xff] %v13521_v16  ;;  %v11896_v24 = vpop.f32.mrb[104].mxu0  ;;  %v12348_v52 = vpop.f32.mrb[200].mxu1  ;;  %v18120_v37 = vld [vmem:[%s25787_s0 + $0x260] sm:$0xff] }
 0xa8f   :  { %v13530_v50 = vmax.f32 %v13258_v28, 0.0  ;;  %13801 = vst [vmem:[#allocation2 + $0x198] sm:$0xff] %v13529_v36  ;;  %v12911_v30 = vadd.f32 %v18119_v47, %v11896_v24  ;;  %v12919_v54 = vadd.f32 %v18120_v37, %v12348_v52  ;;  %v11898_v38 = vpop.f32.mrb[105].mxu0  ;;  %v12350_v44 = vpop.f32.mrb[201].mxu1  ;;  %v18064_v33 = vld [vmem:[%s25795_s8 + $0x588] ss:$68 sps:$4 sm:$0xff]  }
 0xa90   :  { %v13538_v29 = vmax.f32 %v13266_v13, 0.0  ;;  %13809 = vst [vmem:[#allocation2 + $0x1d8] sm:$0xff] %v13537_v25  ;;  %v12912_v20 = vadd.f32 %v18121_v1, %v11898_v38  ;;  %v12920_v57 = vadd.f32 %v18122_v6, %v12350_v44  ;;  %v11900_v51 = vpop.f32.mrb[106].mxu0  ;;  %v12352_v3 = vpop.f32.mrb[202].mxu1  ;;  %12652 = vmatpush1.bf16.msra.mxu0 %v18061_v17  ;;  %v18123_v13 = vld [vmem:[%s25787_s0 + $0x2a8] sm:$0xff] }
 0xa91   :  { %13802 = vst [vmem:[#allocation2 + $0x1a0] sm:$0xff] %v13530_v50  ;;  %v13274_v16 = vadd.f32 %v24630_v10, %v12911_v30  ;;  %v13282_v28 = vadd.f32 %v24634_v19, %v12919_v54  ;;  %v12928_v36 = vadd.f32 %v18123_v13, %v11900_v51  ;;  %v18124_v25 = vld [vmem:[%s25787_s0 + $0x2e8] sm:$0xff]  ;;  %v12354_v17 = vpop.f32.mrb[203].mxu1  ;;  %12653 = vmatprep.subr.bf16.mxu0 %v18066_v42  ;;  %v18069_v24 = vld [vmem:[%s25795_s8 + $0x614] ss:$68 sps:$4 sm:$0xff]  }
 0xa92   :  { %13810 = vst [vmem:[#allocation2 + $0x1e0] sm:$0xff] %v13538_v29  ;;  %v12936_v50 = vadd.f32 %v18124_v25, %v12352_v3  ;;  %v11902_v29 = vpop.f32.mrb[107].mxu0  ;;  %v13275_v52 = vadd.f32 %v24641_v4, %v12912_v20  ;;  %v13283_v47 = vadd.f32 %v24645_v5, %v12920_v57  ;;  %v18125_v30 = vld [vmem:[%s25787_s0 + $0x2b0] sm:$0xff] }
 0xa93   :  { %v12929_v37 = vadd.f32 %v18125_v30, %v11902_v29  ;;  %v18126_v54 = vld [vmem:[%s25787_s0 + $0x2f0] sm:$0xff]  ;;  %v13546_v44 = vmax.f32 %v13274_v16, 0.0  ;;  %v13554_v42 = vmax.f32 %v13282_v28, 0.0  ;;  %v13291_v1 = vadd.f32 %v24630_v10, %v12928_v36  ;;  %12490 = vmatmul.mubr.bf16.gmra.mrb[212].mxu0 %v25862_v23 }
 0xa94   :  { %v12937_v38 = vadd.f32 %v18126_v54, %v12354_v17  ;;  %v13299_v6 = vadd.f32 %v24634_v19, %v12936_v50  ;;  %v13547_v20 = vmax.f32 %v13275_v52, 0.0  ;;  %v13555_v57 = vmax.f32 %v13283_v47, 0.0  ;;  %15250 = vmatprep.mubr.msk.bf16.mxu0 %vm5236_vm1, %v25863_v0  ;;  %12654 = vmatpush1.bf16.msra.mxu0 %v18064_v33  ;;  %v18067_v16 = vld [vmem:[%s25795_s8 + $0x610] ss:$68 sps:$4 sm:$0xff]  }
 0xa95   :  { %v13292_v51 = vadd.f32 %v24641_v4, %v12929_v37  ;;  %13818 = vst [vmem:[#allocation2 + $0x220] sm:$0xff] %v13546_v44  ;;  %13826 = vst [vmem:[#allocation2 + $0x260] sm:$0xff] %v13554_v42  ;;  %v13563_v28 = vmax.f32 %v13291_v1, 0.0  ;;  %12655 = vmatprep.subr.bf16.mxu0 %v18069_v24  ;;  %v18127_v33 = vld [vmem:[%s25787_s0 + $0x330] sm:$0xff]  ;;  %v18129_v37 = vld [vmem:[%s25787_s0 + $0x338] sm:$0xff] }
 0xa96   :  { %v13300_v3 = vadd.f32 %v24645_v5, %v12937_v38  ;;  %v13571_v13 = vmax.f32 %v13299_v6, 0.0  ;;  %13819 = vst [vmem:[#allocation2 + $0x228] sm:$0xff] %v13547_v20  ;;  %13827 = vst [vmem:[#allocation2 + $0x268] sm:$0xff] %v13555_v57  ;;  %v11906_v50 = vpop.f32.mrb[108].mxu0  ;;  %v12358_v29 = vpop.f32.mrb[204].mxu1  ;;  %v18128_v52 = vld [vmem:[%s25787_s0 + $0x370] sm:$0xff] }
 0xa97   :  { %v13564_v36 = vmax.f32 %v13292_v51, 0.0  ;;  %13835 = vst [vmem:[#allocation2 + $0x2a8] sm:$0xff] %v13563_v28  ;;  %v12945_v17 = vadd.f32 %v18127_v33, %v11906_v50  ;;  %v12953_v47 = vadd.f32 %v18128_v52, %v12358_v29  ;;  %v11908_v30 = vpop.f32.mrb[109].mxu0  ;;  %v12360_v24 = vpop.f32.mrb[205].mxu1  ;;  %v18130_v38 = vld [vmem:[%s25787_s0 + $0x378] sm:$0xff]  ;;  %v18133_v50 = vld [vmem:[%s25787_s0 + $0x3c0] sm:$0xff] }
 0xa98   :  { %v13572_v25 = vmax.f32 %v13300_v3, 0.0  ;;  %13843 = vst [vmem:[#allocation2 + $0x2e8] sm:$0xff] %v13571_v13  ;;  %v12946_v54 = vadd.f32 %v18129_v37, %v11908_v30  ;;  %v12954_v44 = vadd.f32 %v18130_v38, %v12360_v24  ;;  %v11910_v42 = vpop.f32.mrb[110].mxu0  ;;  %v12362_v1 = vpop.f32.mrb[206].mxu1  ;;  %12656 = vmatpush1.bf16.msra.mxu0 %v18067_v16  ;;  %v18131_v57 = vld [vmem:[%s25787_s0 + $0x3b8] sm:$0xff]  ;;  %v18134_v33 = vld [vmem:[%s25787_s0 + $0x400] sm:$0xff] }
 0xa99   :  { %13836 = vst [vmem:[#allocation2 + $0x2b0] sm:$0xff] %v13564_v36  ;;  %v13308_v6 = vadd.f32 %v24630_v10, %v12945_v17  ;;  %v13316_v20 = vadd.f32 %v24634_v19, %v12953_v47  ;;  %v12962_v51 = vadd.f32 %v18131_v57, %v11910_v42  ;;  %v18132_v3 = vld [vmem:[%s25787_s0 + $0x3f8] sm:$0xff]  ;;  %v11912_v13 = vpop.f32.mrb[111].mxu0  ;;  %v12364_v36 = vpop.f32.mrb[207].mxu1 }
 0xa9a   :  { %13844 = vst [vmem:[#allocation2 + $0x2f0] sm:$0xff] %v13572_v25  ;;  %v12970_v28 = vadd.f32 %v18132_v3, %v12362_v1  ;;  %v13309_v25 = vadd.f32 %v24641_v4, %v12946_v54  ;;  %v13317_v16 = vadd.f32 %v24645_v5, %v12954_v44  ;;  %v12963_v29 = vadd.f32 %v18133_v50, %v11912_v13  ;;  %v18135_v3 = vld [vmem:[%s25787_s0 + $0x440] sm:$0xff]  ;;  %v18137_v50 = vld [vmem:[%s25787_s0 + $0x448] sm:$0xff] }
 0xa9b   :  { %v12971_v17 = vadd.f32 %v18134_v33, %v12364_v36  ;;  %v13580_v52 = vmax.f32 %v13308_v6, 0.0  ;;  %v13588_v47 = vmax.f32 %v13316_v20, 0.0  ;;  %v13325_v30 = vadd.f32 %v24630_v10, %v12962_v51  ;;  %12500 = vmatmul.mubr.bf16.gmra.mrb[216].mxu0 %v25864_v18  ;;  %v18136_v13 = vld [vmem:[%s25787_s0 + $0x480] sm:$0xff]  ;;  %v18138_v33 = vld [vmem:[%s25787_s0 + $0x488] sm:$0xff] }
 0xa9c   :  { %v13333_v24 = vadd.f32 %v24634_v19, %v12970_v28  ;;  %v13581_v37 = vmax.f32 %v13309_v25, 0.0  ;;  %v13589_v54 = vmax.f32 %v13317_v16, 0.0  ;;  %v13326_v38 = vadd.f32 %v24641_v4, %v12963_v29  ;;  %15251 = vmatprep.mubr.msk.bf16.mxu0 %vm5236_vm1, %v25865_v34 }
 0xa9d   :  { %v13334_v44 = vadd.f32 %v24645_v5, %v12971_v17  ;;  %13852 = vst [vmem:[#allocation2 + $0x330] sm:$0xff] %v13580_v52  ;;  %13860 = vst [vmem:[#allocation2 + $0x370] sm:$0xff] %v13588_v47  ;;  %v13597_v42 = vmax.f32 %v13325_v30, 0.0 }
 0xa9e   :  { %v13605_v1 = vmax.f32 %v13333_v24, 0.0  ;;  %13853 = vst [vmem:[#allocation2 + $0x338] sm:$0xff] %v13581_v37  ;;  %13861 = vst [vmem:[#allocation2 + $0x378] sm:$0xff] %v13589_v54  ;;  %v13598_v6 = vmax.f32 %v13326_v38, 0.0  ;;  %v11916_v57 = vpop.f32.mrb[112].mxu0  ;;  %v12368_v51 = vpop.f32.mrb[208].mxu1 }
 0xa9f   :  { %v13606_v20 = vmax.f32 %v13334_v44, 0.0  ;;  %13869 = vst [vmem:[#allocation2 + $0x3b8] sm:$0xff] %v13597_v42  ;;  %v12979_v28 = vadd.f32 %v18135_v3, %v11916_v57  ;;  %v12987_v36 = vadd.f32 %v18136_v13, %v12368_v51  ;;  %v11918_v25 = vpop.f32.mrb[113].mxu0  ;;  %v12370_v16 = vpop.f32.mrb[209].mxu1  ;;  %v18139_v37 = vld [vmem:[%s25787_s0 + $0x4c8] sm:$0xff]  ;;  %v18141_v57 = vld [vmem:[%s25787_s0 + $0x4d0] sm:$0xff] }
 0xaa0   :  { %13877 = vst [vmem:[#allocation2 + $0x3f8] sm:$0xff] %v13605_v1  ;;  %13870 = vst [vmem:[#allocation2 + $0x3c0] sm:$0xff] %v13598_v6  ;;  %v12980_v29 = vadd.f32 %v18137_v50, %v11918_v25  ;;  %v12988_v17 = vadd.f32 %v18138_v33, %v12370_v16  ;;  %v11920_v52 = vpop.f32.mrb[114].mxu0  ;;  %v12372_v47 = vpop.f32.mrb[210].mxu1  ;;  %v18140_v38 = vld [vmem:[%s25787_s0 + $0x508] sm:$0xff]  ;;  %v18142_v3 = vld [vmem:[%s25787_s0 + $0x510] sm:$0xff] }
 0xaa1   :  { %13878 = vst [vmem:[#allocation2 + $0x400] sm:$0xff] %v13606_v20  ;;  %v13342_v30 = vadd.f32 %v24630_v10, %v12979_v28  ;;  %v13350_v24 = vadd.f32 %v24634_v19, %v12987_v36  ;;  %v12996_v54 = vadd.f32 %v18139_v37, %v11920_v52  ;;  %v13004_v44 = vadd.f32 %v18140_v38, %v12372_v47  ;;  %v11922_v42 = vpop.f32.mrb[115].mxu0  ;;  %v12374_v1 = vpop.f32.mrb[211].mxu1  ;;  %v18143_v38 = vld [vmem:[%s25787_s0 + $0x550] sm:$0xff] }
 0xaa2   :  { %v13343_v6 = vadd.f32 %v24641_v4, %v12980_v29  ;;  %v13351_v20 = vadd.f32 %v24645_v5, %v12988_v17  ;;  %v12997_v51 = vadd.f32 %v18141_v57, %v11922_v42  ;;  %v13005_v28 = vadd.f32 %v18142_v3, %v12374_v1 }
 0xaa3   :  { %v13614_v13 = vmax.f32 %v13342_v30, 0.0  ;;  %v13622_v36 = vmax.f32 %v13350_v24, 0.0  ;;  %v13359_v25 = vadd.f32 %v24630_v10, %v12996_v54  ;;  %v13367_v16 = vadd.f32 %v24634_v19, %v13004_v44  ;;  %12510 = vmatmul.mubr.bf16.gmra.mrb[220].mxu0 %v25866_v55 }
 0xaa4   :  { %v13615_v50 = vmax.f32 %v13343_v6, 0.0  ;;  %v13623_v29 = vmax.f32 %v13351_v20, 0.0  ;;  %v13360_v33 = vadd.f32 %v24641_v4, %v12997_v51  ;;  %v13368_v17 = vadd.f32 %v24645_v5, %v13005_v28  ;;  %15260 = vmatprep.mubr.msk.bf16.mxu0 %vm5236_vm1, %v21389_v22  ;;  %v18144_v22 = vld [vmem:[%s25787_s0 + $0x590] sm:$0xff]  ;;  %v18145_v20 = vld [vmem:[%s25787_s0 + $0x558] sm:$0xff] }
 0xaa5   :  { %13886 = vst [vmem:[#allocation2 + $0x440] sm:$0xff] %v13614_v13  ;;  %13894 = vst [vmem:[#allocation2 + $0x480] sm:$0xff] %v13622_v36  ;;  %v13631_v52 = vmax.f32 %v13359_v25, 0.0  ;;  %v13639_v47 = vmax.f32 %v13367_v16, 0.0  ;;  %v18146_v51 = vld [vmem:[%s25787_s0 + $0x598] sm:$0xff] }
 0xaa6   :  { %13887 = vst [vmem:[#allocation2 + $0x448] sm:$0xff] %v13615_v50  ;;  %13895 = vst [vmem:[#allocation2 + $0x488] sm:$0xff] %v13623_v29  ;;  %v13632_v30 = vmax.f32 %v13360_v33, 0.0  ;;  %v13640_v24 = vmax.f32 %v13368_v17, 0.0  ;;  %v11926_v37 = vpop.f32.mrb[116].mxu0  ;;  %v12378_v54 = vpop.f32.mrb[212].mxu1 }
 0xaa7   :  { %13903 = vst [vmem:[#allocation2 + $0x4c8] sm:$0xff] %v13631_v52  ;;  %13911 = vst [vmem:[#allocation2 + $0x508] sm:$0xff] %v13639_v47  ;;  %v13013_v44 = vadd.f32 %v18143_v38, %v11926_v37  ;;  %v13021_v42 = vadd.f32 %v18144_v22, %v12378_v54  ;;  %v11928_v1 = vpop.f32.mrb[117].mxu0  ;;  %v12380_v6 = vpop.f32.mrb[213].mxu1  ;;  %v18147_v16 = vld [vmem:[%s25787_s0 + $0x5d8] sm:$0xff]  ;;  %v18150_v54 = vld [vmem:[%s25787_s0 + $0x620] sm:$0xff] }
 0xaa8   :  { %13904 = vst [vmem:[#allocation2 + $0x4d0] sm:$0xff] %v13632_v30  ;;  %13912 = vst [vmem:[#allocation2 + $0x510] sm:$0xff] %v13640_v24  ;;  %v13014_v57 = vadd.f32 %v18145_v20, %v11928_v1  ;;  %v13022_v3 = vadd.f32 %v18146_v51, %v12380_v6  ;;  %v11930_v28 = vpop.f32.mrb[118].mxu0  ;;  %v12382_v13 = vpop.f32.mrb[214].mxu1  ;;  %v18148_v29 = vld [vmem:[%s25787_s0 + $0x618] sm:$0xff]  ;;  %v18149_v24 = vld [vmem:[%s25787_s0 + $0x5e0] sm:$0xff] }
 0xaa9   :  { %v13376_v36 = vadd.f32 %v24630_v10, %v13013_v44  ;;  %v13384_v25 = vadd.f32 %v24634_v19, %v13021_v42  ;;  %v13030_v50 = vadd.f32 %v18147_v16, %v11930_v28  ;;  %v13038_v33 = vadd.f32 %v18148_v29, %v12382_v13  ;;  %v11932_v17 = vpop.f32.mrb[119].mxu0  ;;  %v12384_v52 = vpop.f32.mrb[215].mxu1 }
 0xaaa   :  { %v13377_v47 = vadd.f32 %v24641_v4, %v13014_v57  ;;  %v13385_v30 = vadd.f32 %v24645_v5, %v13022_v3  ;;  %v13031_v37 = vadd.f32 %v18149_v24, %v11932_v17  ;;  %v13039_v38 = vadd.f32 %v18150_v54, %v12384_v52  ;;  %v18153_v52 = vld [vmem:[%s25787_s0 + $0x668] sm:$0xff] }
 0xaab   :  { %v13648_v44 = vmax.f32 %v13376_v36, 0.0  ;;  %v13656_v22 = vmax.f32 %v13384_v25, 0.0  ;;  %v13393_v42 = vadd.f32 %v24630_v10, %v13030_v50  ;;  %v13401_v1 = vadd.f32 %v24634_v19, %v13038_v33  ;;  %12666 = vmatmul.mubr.bf16.vlgmr.msra.gmra.mrb[224].mxu0 %v21387_v48  ;;  %v18151_v48 = vld [vmem:[%s25787_s0 + $0x660] sm:$0xff] }
 0xaac   :  { %v13649_v6 = vmax.f32 %v13377_v47, 0.0  ;;  %v13657_v20 = vmax.f32 %v13385_v30, 0.0  ;;  %v13394_v57 = vadd.f32 %v24641_v4, %v13031_v37  ;;  %v13402_v51 = vadd.f32 %v24645_v5, %v13039_v38  ;;  %15261 = vmatprep.mubr.msk.bf16.mxu0 %vm5236_vm1, %v21401_v27  ;;  %v18152_v27 = vld [vmem:[%s25787_s0 + $0x6a0] sm:$0xff]  ;;  %v18154_v30 = vld [vmem:[%s25787_s0 + $0x6a8] sm:$0xff] }
 0xaad   :  { %13920 = vst [vmem:[#allocation2 + $0x550] sm:$0xff] %v13648_v44  ;;  %13928 = vst [vmem:[#allocation2 + $0x590] sm:$0xff] %v13656_v22  ;;  %v13665_v3 = vmax.f32 %v13393_v42, 0.0  ;;  %v13673_v28 = vmax.f32 %v13401_v1, 0.0  ;;  %v18155_v22 = vld [vmem:[%s25787_s0 + $0x6e8] sm:$0xff] }
 0xaae   :  { %13921 = vst [vmem:[#allocation2 + $0x558] sm:$0xff] %v13649_v6  ;;  %13929 = vst [vmem:[#allocation2 + $0x598] sm:$0xff] %v13657_v20  ;;  %v13666_v13 = vmax.f32 %v13394_v57, 0.0  ;;  %v13674_v36 = vmax.f32 %v13402_v51, 0.0  ;;  %v11936_v25 = vpop.f32.mrb[120].mxu0  ;;  %v12388_v16 = vpop.f32.mrb[216].mxu1 }
 0xaaf   :  { %13937 = vst [vmem:[#allocation2 + $0x5d8] sm:$0xff] %v13665_v3  ;;  %13945 = vst [vmem:[#allocation2 + $0x618] sm:$0xff] %v13673_v28  ;;  %v13047_v50 = vadd.f32 %v18151_v48, %v11936_v25  ;;  %v13055_v29 = vadd.f32 %v18152_v27, %v12388_v16  ;;  %v11938_v33 = vpop.f32.mrb[121].mxu0  ;;  %v12390_v17 = vpop.f32.mrb[217].mxu1  ;;  %v18156_v1 = vld [vmem:[%s25787_s0 + $0x728] sm:$0xff]  ;;  %v18157_v28 = vld [vmem:[%s25787_s0 + $0x6f0] sm:$0xff] }
 0xab0   :  { %13938 = vst [vmem:[#allocation2 + $0x5e0] sm:$0xff] %v13666_v13  ;;  %13946 = vst [vmem:[#allocation2 + $0x620] sm:$0xff] %v13674_v36  ;;  %v13048_v47 = vadd.f32 %v18153_v52, %v11938_v33  ;;  %v13056_v24 = vadd.f32 %v18154_v30, %v12390_v17  ;;  %v11940_v37 = vpop.f32.mrb[122].mxu0  ;;  %v12392_v54 = vpop.f32.mrb[218].mxu1  ;;  %v18158_v36 = vld [vmem:[%s25787_s0 + $0x730] sm:$0xff] }
 0xab1   :  { %v13410_v38 = vadd.f32 %v24630_v10, %v13047_v50  ;;  %v13418_v44 = vadd.f32 %v24634_v19, %v13055_v29  ;;  %v13064_v42 = vadd.f32 %v18155_v22, %v11940_v37  ;;  %v13072_v6 = vadd.f32 %v18156_v1, %v12392_v54  ;;  %v11942_v20 = vpop.f32.mrb[123].mxu0  ;;  %v12394_v57 = vpop.f32.mrb[219].mxu1 }
 0xab2   :  { %v13411_v51 = vadd.f32 %v24641_v4, %v13048_v47  ;;  %v13419_v3 = vadd.f32 %v24645_v5, %v13056_v24  ;;  %v13065_v13 = vadd.f32 %v18157_v28, %v11942_v20  ;;  %v13073_v25 = vadd.f32 %v18158_v36, %v12394_v57  ;;  %v18162_v57 = vld [vmem:[%s25787_s0 + $0x7b8] sm:$0xff] }
 0xab3   :  { %v13682_v16 = vmax.f32 %v13410_v38, 0.0  ;;  %v13690_v48 = vmax.f32 %v13418_v44, 0.0  ;;  %v13427_v50 = vadd.f32 %v24630_v10, %v13064_v42  ;;  %v13435_v27 = vadd.f32 %v24634_v19, %v13072_v6  ;;  %12676 = vmatmul.mubr.bf16.gmra.mrb[228].mxu0 %v25854_v2  ;;  %v18159_v2 = vld [vmem:[%s25787_s0 + $0x770] sm:$0xff]  ;;  %v18161_v6 = vld [vmem:[%s25787_s0 + $0x778] sm:$0xff] }
 0xab4   :  { %v13683_v29 = vmax.f32 %v13411_v51, 0.0  ;;  %v13691_v33 = vmax.f32 %v13419_v3, 0.0  ;;  %v13428_v17 = vadd.f32 %v24641_v4, %v13065_v13  ;;  %v13436_v52 = vadd.f32 %v24645_v5, %v13073_v25  ;;  %15262 = vmatprep.mubr.msk.bf16.mxu0 %vm5236_vm1, %v25855_v53  ;;  %v18160_v53 = vld [vmem:[%s25787_s0 + $0x7b0] sm:$0xff] }
 0xab5   :  { %13954 = vst [vmem:[#allocation2 + $0x660] sm:$0xff] %v13682_v16  ;;  %13962 = vst [vmem:[#allocation2 + $0x6a0] sm:$0xff] %v13690_v48  ;;  %v13699_v47 = vmax.f32 %v13427_v50, 0.0  ;;  %v13707_v30 = vmax.f32 %v13435_v27, 0.0  ;;  %v13135_v13 = vsub.s32 3, %v25868_v12  ;;  %v18163_v16 = vld [vmem:[%s25787_s0 + $0x7f8] sm:$0xff] }
 0xab6   :  { %13955 = vst [vmem:[#allocation2 + $0x668] sm:$0xff] %v13683_v29  ;;  %13963 = vst [vmem:[#allocation2 + $0x6a8] sm:$0xff] %v13691_v33  ;;  %v13700_v24 = vmax.f32 %v13428_v17, 0.0  ;;  %v13708_v37 = vmax.f32 %v13436_v52, 0.0  ;;  %v11946_v54 = vpop.f32.mrb[124].mxu0  ;;  %v12398_v38 = vpop.f32.mrb[220].mxu1 }
 0xab7   :  { %13971 = vst [vmem:[#allocation2 + $0x6e8] sm:$0xff] %v13699_v47  ;;  %13979 = vst [vmem:[#allocation2 + $0x728] sm:$0xff] %v13707_v30  ;;  %v13081_v44 = vadd.f32 %v18159_v2, %v11946_v54  ;;  %v13089_v22 = vadd.f32 %v18160_v53, %v12398_v38  ;;  %v11948_v42 = vpop.f32.mrb[125].mxu0  ;;  %v12400_v1 = vpop.f32.mrb[221].mxu1  ;;  %v18164_v50 = vld [vmem:[%s25787_s0 + $0x838] sm:$0xff]  ;;  %v18165_v47 = vld [vmem:[%s25787_s0 + $0x800] sm:$0xff] }
 0xab8   :  { %13972 = vst [vmem:[#allocation2 + $0x6f0] sm:$0xff] %v13700_v24  ;;  %13980 = vst [vmem:[#allocation2 + $0x730] sm:$0xff] %v13708_v37  ;;  %v13082_v20 = vadd.f32 %v18161_v6, %v11948_v42  ;;  %v13090_v51 = vadd.f32 %v18162_v57, %v12400_v1  ;;  %v11950_v3 = vpop.f32.mrb[126].mxu0  ;;  %v12402_v28 = vpop.f32.mrb[222].mxu1  ;;  %v18166_v24 = vld [vmem:[%s25787_s0 + $0x840] sm:$0xff] }
 0xab9   :  { %v13444_v36 = vadd.f32 %v24630_v10, %v13081_v44  ;;  %v13452_v25 = vadd.f32 %v24634_v19, %v13089_v22  ;;  %v13098_v48 = vadd.f32 %v18163_v16, %v11950_v3  ;;  %v13106_v27 = vadd.f32 %v18164_v50, %v12402_v28  ;;  %v11952_v29 = vpop.f32.mrb[127].mxu0  ;;  %v12404_v33 = vpop.f32.mrb[223].mxu1 }
 0xaba   :  { %v13445_v17 = vadd.f32 %v24641_v4, %v13082_v20  ;;  %v13453_v52 = vadd.f32 %v24645_v5, %v13090_v51  ;;  %v13099_v30 = vadd.f32 %v18165_v47, %v11952_v29  ;;  %v13107_v37 = vadd.f32 %v18166_v24, %v12404_v33 }
 0xabb   :  { %v13716_v54 = vmax.f32 %v13444_v36, 0.0  ;;  %v13724_v38 = vmax.f32 %v13452_v25, 0.0  ;;  %v13461_v2 = vadd.f32 %v24630_v10, %v13098_v48  ;;  %v13469_v44 = vadd.f32 %v24634_v19, %v13106_v27  ;;  %12686 = vmatmul.mubr.bf16.gmra.mrb[232].mxu0 %v25856_v49  ;;  %v24964_v10 = vld [vmem:[%s25796_s9] sm:$0xff]  ;;  %v25869_v19 = vld [vmem:[#allocation6_spill] sm:$0xff] }
 0xabc   :  { %v13717_v53 = vmax.f32 %v13445_v17, 0.0  ;;  %v13725_v22 = vmax.f32 %v13453_v52, 0.0  ;;  %v13462_v42 = vadd.f32 %v24641_v4, %v13099_v30  ;;  %v13470_v1 = vadd.f32 %v24645_v5, %v13107_v37  ;;  %15263 = vmatprep.mubr.msk.bf16.mxu0 %vm5236_vm1, %v25857_v58  ;;  %v18169_v25 = vld [vmem:[%s25787_s0 + $0x60] sm:$0xff]  ;;  %v18171_v27 = vld [vmem:[%s25787_s0 + $0x68] sm:$0xff]  ;;  %v18172_v30 = vld [vmem:[%s25787_s0 + $0x98] sm:$0xff] }
 0xabd   :  { %13988 = vst [vmem:[#allocation2 + $0x770] sm:$0xff] %v13716_v54  ;;  %13996 = vst [vmem:[#allocation2 + $0x7b0] sm:$0xff] %v13724_v38  ;;  %v13733_v6 = vmax.f32 %v13461_v2, 0.0  ;;  %v13741_v20 = vmax.f32 %v13469_v44, 0.0  ;;  %v24968_v49 = vrot.slane %v24964_v10, %v25869_v19  ;;  %v24973_v4 = vrot.slane %v24618_v15, %v13139_v8  ;;  %v18168_v8 = vld [vmem:[%s25787_s0 + $0x10] sm:$0xff]  ;;  %v18173_v37 = vld [vmem:[%s25787_s0 + $0xe8] sm:$0xff] }
 0xabe   :  { %13989 = vst [vmem:[#allocation2 + $0x778] sm:$0xff] %v13717_v53  ;;  %13997 = vst [vmem:[#allocation2 + $0x7b8] sm:$0xff] %v13725_v22  ;;  %v13734_v58 = vmax.f32 %v13462_v42, 0.0  ;;  %v13742_v5 = vmax.f32 %v13470_v1, 0.0  ;;  %v11989_v57 = vpop.f32.mrb[128].mxu0  ;;  %v12554_v51 = vpop.f32.mrb[224].mxu1  ;;  %v24978_v3 = vrot.slane %v24964_v10, %v13135_v13  ;;  %v24983_v28 = vrot.slane %v24618_v15, %v13143_v39 }
 0xabf   :  { %14005 = vst [vmem:[#allocation2 + $0x7f8] sm:$0xff] %v13733_v6  ;;  %14013 = vst [vmem:[#allocation2 + $0x838] sm:$0xff] %v13741_v20  ;;  %v12845_v36 = vadd.f32 %v18168_v8, %v11989_v57  ;;  %v12855_v16 = vadd.f32 %v18169_v25, %v12554_v51  ;;  %v11991_v48 = vpop.f32.mrb[129].mxu0  ;;  %v12556_v50 = vpop.f32.mrb[225].mxu1  ;;  %v18170_v39 = vld [vmem:[%s25787_s0 + $0x18] sm:$0xff]  ;;  %v18174_v22 = vld [vmem:[%s25787_s0 + $0xa0] sm:$0xff] }
 0xac0   :  { %14006 = vst [vmem:[#allocation2 + $0x800] sm:$0xff] %v13734_v58  ;;  %14014 = vst [vmem:[#allocation2 + $0x840] sm:$0xff] %v13742_v5  ;;  %v12846_v15 = vadd.f32 %v18170_v39, %v11991_v48  ;;  %v12856_v29 = vadd.f32 %v18171_v27, %v12556_v50  ;;  %v11993_v33 = vpop.f32.mrb[130].mxu0  ;;  %v12558_v17 = vpop.f32.mrb[226].mxu1  ;;  %v18175_v1 = vld [vmem:[%s25787_s0 + $0xf0] sm:$0xff] }
 0xac1   :  { %v13208_v52 = vadd.f32 %v24968_v49, %v12845_v36  ;;  %v13218_v47 = vadd.f32 %v24973_v4, %v12855_v16  ;;  %v12862_v24 = vadd.f32 %v18172_v30, %v11993_v33  ;;  %v12872_v54 = vadd.f32 %v18173_v37, %v12558_v17  ;;  %v11995_v38 = vpop.f32.mrb[131].mxu0  ;;  %v12560_v2 = vpop.f32.mrb[227].mxu1 }
 0xac2   :  { %v13209_v44 = vadd.f32 %v24978_v3, %v12846_v15  ;;  %v13219_v53 = vadd.f32 %v24983_v28, %v12856_v29  ;;  %v12863_v42 = vadd.f32 %v18174_v22, %v11995_v38  ;;  %v12873_v6 = vadd.f32 %v18175_v1, %v12560_v2 }
 0xac3   :  { %v13480_v20 = vmax.f32 %v13208_v52, 0.0  ;;  %v13490_v58 = vmax.f32 %v13218_v47, 0.0  ;;  %v13225_v5 = vadd.f32 %v24968_v49, %v12862_v24  ;;  %v13235_v57 = vadd.f32 %v24973_v4, %v12872_v54  ;;  %12696 = vmatmul.mubr.bf16.gmra.mrb[236].mxu0 %v25858_v56  ;;  %v18176_v56 = vld [vmem:[%s25787_s0 + $0x120] sm:$0xff]  ;;  %v18178_v47 = vld [vmem:[%s25787_s0 + $0x128] sm:$0xff]  ;;  %v18179_v24 = vld [vmem:[%s25787_s0 + $0x178] sm:$0xff] }
 0xac4   :  { %v13481_v51 = vmax.f32 %v13209_v44, 0.0  ;;  %v13491_v8 = vmax.f32 %v13219_v53, 0.0  ;;  %v13226_v36 = vadd.f32 %v24978_v3, %v12863_v42  ;;  %v13236_v25 = vadd.f32 %v24983_v28, %v12873_v6  ;;  %15264 = vmatprep.mubr.msk.bf16.mxu0 %vm5236_vm1, %v25859_v59  ;;  %v18177_v59 = vld [vmem:[%s25787_s0 + $0x170] sm:$0xff]  ;;  %v18180_v53 = vld [vmem:[%s25787_s0 + $0x1a8] sm:$0xff]  ;;  %v18181_v42 = vld [vmem:[%s25787_s0 + $0x1f8] sm:$0xff] }
 0xac5   :  { %13752 = vst [vmem:[#allocation2 + $0x10] sm:$0xff] %v13480_v20  ;;  %13762 = vst [vmem:[#allocation2 + $0x60] sm:$0xff] %v13490_v58  ;;  %v13497_v16 = vmax.f32 %v13225_v5, 0.0  ;;  %v13507_v48 = vmax.f32 %v13235_v57, 0.0  ;;  %v18182_v57 = vld [vmem:[%s25787_s0 + $0x1b0] sm:$0xff] }
 0xac6   :  { %13753 = vst [vmem:[#allocation2 + $0x18] sm:$0xff] %v13481_v51  ;;  %13763 = vst [vmem:[#allocation2 + $0x68] sm:$0xff] %v13491_v8  ;;  %v13498_v50 = vmax.f32 %v13226_v36, 0.0  ;;  %v13508_v39 = vmax.f32 %v13236_v25, 0.0  ;;  %v11999_v15 = vpop.f32.mrb[132].mxu0  ;;  %v12564_v27 = vpop.f32.mrb[228].mxu1 }
 0xac7   :  { %13769 = vst [vmem:[#allocation2 + $0x98] sm:$0xff] %v13497_v16  ;;  %13779 = vst [vmem:[#allocation2 + $0xe8] sm:$0xff] %v13507_v48  ;;  %v12879_v29 = vadd.f32 %v18176_v56, %v11999_v15  ;;  %v12889_v33 = vadd.f32 %v18177_v59, %v12564_v27  ;;  %v12001_v17 = vpop.f32.mrb[133].mxu0  ;;  %v12566_v52 = vpop.f32.mrb[229].mxu1  ;;  %v18183_v8 = vld [vmem:[%s25787_s0 + $0x200] sm:$0xff] }
 0xac8   :  { %13770 = vst [vmem:[#allocation2 + $0xa0] sm:$0xff] %v13498_v50  ;;  %13780 = vst [vmem:[#allocation2 + $0xf0] sm:$0xff] %v13508_v39  ;;  %v12880_v30 = vadd.f32 %v18178_v47, %v12001_v17  ;;  %v12890_v37 = vadd.f32 %v18179_v24, %v12566_v52  ;;  %v12003_v54 = vpop.f32.mrb[134].mxu0  ;;  %v12568_v38 = vpop.f32.mrb[230].mxu1 }
 0xac9   :  { %v13242_v2 = vadd.f32 %v24968_v49, %v12879_v29  ;;  %v13252_v44 = vadd.f32 %v24973_v4, %v12889_v33  ;;  %v12896_v22 = vadd.f32 %v18180_v53, %v12003_v54  ;;  %v12906_v1 = vadd.f32 %v18181_v42, %v12568_v38  ;;  %v12005_v6 = vpop.f32.mrb[135].mxu0  ;;  %v12570_v20 = vpop.f32.mrb[231].mxu1  ;;  %v18186_v38 = vld [vmem:[%s25787_s0 + $0x238] sm:$0xff] }
 0xaca   :  { %v13243_v58 = vadd.f32 %v24978_v3, %v12880_v30  ;;  %v13253_v5 = vadd.f32 %v24983_v28, %v12890_v37  ;;  %v12897_v51 = vadd.f32 %v18182_v57, %v12005_v6  ;;  %v12907_v36 = vadd.f32 %v18183_v8, %v12570_v20  ;;  %v18188_v20 = vld [vmem:[%s25787_s0 + $0x2b8] sm:$0xff] }
 0xacb   :  { %v13514_v25 = vmax.f32 %v13242_v2, 0.0  ;;  %v13524_v16 = vmax.f32 %v13252_v44, 0.0  ;;  %v13259_v48 = vadd.f32 %v24968_v49, %v12896_v22  ;;  %v13269_v50 = vadd.f32 %v24973_v4, %v12906_v1  ;;  %12706 = vmatmul.mubr.bf16.gmra.mrb[240].mxu0 %v25860_v61  ;;  %v18184_v61 = vld [vmem:[%s25787_s0 + $0x230] sm:$0xff]  ;;  %v18187_v44 = vld [vmem:[%s25787_s0 + $0x288] sm:$0xff] }
 0xacc   :  { %v13515_v39 = vmax.f32 %v13243_v58, 0.0  ;;  %v13525_v15 = vmax.f32 %v13253_v5, 0.0  ;;  %v13260_v27 = vadd.f32 %v24978_v3, %v12897_v51  ;;  %v13270_v56 = vadd.f32 %v24983_v28, %v12907_v36  ;;  %15265 = vmatprep.mubr.msk.bf16.mxu0 %vm5236_vm1, %v25861_v43  ;;  %v18185_v43 = vld [vmem:[%s25787_s0 + $0x280] sm:$0xff]  ;;  %v18189_v5 = vld [vmem:[%s25787_s0 + $0x308] sm:$0xff] }
 0xacd   :  { %13786 = vst [vmem:[#allocation2 + $0x120] sm:$0xff] %v13514_v25  ;;  %13796 = vst [vmem:[#allocation2 + $0x170] sm:$0xff] %v13524_v16  ;;  %v13531_v29 = vmax.f32 %v13259_v48, 0.0  ;;  %v13541_v59 = vmax.f32 %v13269_v50, 0.0  ;;  %v18190_v16 = vld [vmem:[%s25787_s0 + $0x2c0] sm:$0xff]  ;;  %v18191_v50 = vld [vmem:[%s25787_s0 + $0x310] sm:$0xff] }
 0xace   :  { %13787 = vst [vmem:[#allocation2 + $0x128] sm:$0xff] %v13515_v39  ;;  %13797 = vst [vmem:[#allocation2 + $0x178] sm:$0xff] %v13525_v15  ;;  %v13532_v33 = vmax.f32 %v13260_v27, 0.0  ;;  %v13542_v17 = vmax.f32 %v13270_v56, 0.0  ;;  %v12009_v52 = vpop.f32.mrb[136].mxu0  ;;  %v12574_v47 = vpop.f32.mrb[232].mxu1 }
 0xacf   :  { %13803 = vst [vmem:[#allocation2 + $0x1a8] sm:$0xff] %v13531_v29  ;;  %13813 = vst [vmem:[#allocation2 + $0x1f8] sm:$0xff] %v13541_v59  ;;  %v12913_v30 = vadd.f32 %v18184_v61, %v12009_v52  ;;  %v12923_v24 = vadd.f32 %v18185_v43, %v12574_v47  ;;  %v12011_v37 = vpop.f32.mrb[137].mxu0  ;;  %v12576_v54 = vpop.f32.mrb[233].mxu1 }
 0xad0   :  { %13804 = vst [vmem:[#allocation2 + $0x1b0] sm:$0xff] %v13532_v33  ;;  %13814 = vst [vmem:[#allocation2 + $0x200] sm:$0xff] %v13542_v17  ;;  %v12914_v2 = vadd.f32 %v18186_v38, %v12011_v37  ;;  %v12924_v53 = vadd.f32 %v18187_v44, %v12576_v54  ;;  %v12013_v22 = vpop.f32.mrb[138].mxu0  ;;  %v12578_v42 = vpop.f32.mrb[234].mxu1 }
 0xad1   :  { %v13276_v1 = vadd.f32 %v24968_v49, %v12913_v30  ;;  %v13286_v6 = vadd.f32 %v24973_v4, %v12923_v24  ;;  %v12930_v58 = vadd.f32 %v18188_v20, %v12013_v22  ;;  %v12940_v57 = vadd.f32 %v18189_v5, %v12578_v42  ;;  %v12015_v51 = vpop.f32.mrb[139].mxu0  ;;  %v12580_v8 = vpop.f32.mrb[235].mxu1  ;;  %v18195_v42 = vld [vmem:[%s25787_s0 + $0x398] sm:$0xff] }
 0xad2   :  { %v13277_v36 = vadd.f32 %v24978_v3, %v12914_v2  ;;  %v13287_v25 = vadd.f32 %v24983_v28, %v12924_v53  ;;  %v12931_v48 = vadd.f32 %v18190_v16, %v12015_v51  ;;  %v12941_v39 = vadd.f32 %v18191_v50, %v12580_v8  ;;  %v18194_v53 = vld [vmem:[%s25787_s0 + $0x348] sm:$0xff]  ;;  %v18197_v8 = vld [vmem:[%s25787_s0 + $0x418] sm:$0xff] }
 0xad3   :  { %v13548_v15 = vmax.f32 %v13276_v1, 0.0  ;;  %v13558_v27 = vmax.f32 %v13286_v6, 0.0  ;;  %v13293_v56 = vadd.f32 %v24968_v49, %v12930_v58  ;;  %v13303_v29 = vadd.f32 %v24973_v4, %v12940_v57  ;;  %12716 = vmatmul.mubr.bf16.gmra.mrb[244].mxu0 %v25862_v23  ;;  %v18192_v23 = vld [vmem:[%s25787_s0 + $0x340] sm:$0xff]  ;;  %v18196_v57 = vld [vmem:[%s25787_s0 + $0x3c8] sm:$0xff] }
 0xad4   :  { %v13549_v59 = vmax.f32 %v13277_v36, 0.0  ;;  %v13559_v33 = vmax.f32 %v13287_v25, 0.0  ;;  %v13294_v17 = vadd.f32 %v24978_v3, %v12931_v48  ;;  %v13304_v52 = vadd.f32 %v24983_v28, %v12941_v39  ;;  %15266 = vmatprep.mubr.msk.bf16.mxu0 %vm5236_vm1, %v25863_v0  ;;  %v18193_v0 = vld [vmem:[%s25787_s0 + $0x390] sm:$0xff] }
 0xad5   :  { %13820 = vst [vmem:[#allocation2 + $0x230] sm:$0xff] %v13548_v15  ;;  %13830 = vst [vmem:[#allocation2 + $0x280] sm:$0xff] %v13558_v27  ;;  %v13565_v47 = vmax.f32 %v13293_v56, 0.0  ;;  %v13575_v61 = vmax.f32 %v13303_v29, 0.0  ;;  %v18198_v39 = vld [vmem:[%s25787_s0 + $0x3d0] sm:$0xff]  ;;  %v18199_v27 = vld [vmem:[%s25787_s0 + $0x420] sm:$0xff] }
 0xad6   :  { %13821 = vst [vmem:[#allocation2 + $0x238] sm:$0xff] %v13549_v59  ;;  %13831 = vst [vmem:[#allocation2 + $0x288] sm:$0xff] %v13559_v33  ;;  %v13566_v30 = vmax.f32 %v13294_v17, 0.0  ;;  %v13576_v43 = vmax.f32 %v13304_v52, 0.0  ;;  %v12019_v24 = vpop.f32.mrb[140].mxu0  ;;  %v12584_v37 = vpop.f32.mrb[236].mxu1 }
 0xad7   :  { %13837 = vst [vmem:[#allocation2 + $0x2b8] sm:$0xff] %v13565_v47  ;;  %13847 = vst [vmem:[#allocation2 + $0x308] sm:$0xff] %v13575_v61  ;;  %v12947_v54 = vadd.f32 %v18192_v23, %v12019_v24  ;;  %v12957_v38 = vadd.f32 %v18193_v0, %v12584_v37  ;;  %v12021_v2 = vpop.f32.mrb[141].mxu0  ;;  %v12586_v44 = vpop.f32.mrb[237].mxu1 }
 0xad8   :  { %13838 = vst [vmem:[#allocation2 + $0x2c0] sm:$0xff] %v13566_v30  ;;  %13848 = vst [vmem:[#allocation2 + $0x310] sm:$0xff] %v13576_v43  ;;  %v12948_v22 = vadd.f32 %v18194_v53, %v12021_v2  ;;  %v12958_v1 = vadd.f32 %v18195_v42, %v12586_v44  ;;  %v12023_v6 = vpop.f32.mrb[142].mxu0  ;;  %v12588_v20 = vpop.f32.mrb[238].mxu1 }
 0xad9   :  { %v13310_v58 = vadd.f32 %v24968_v49, %v12947_v54  ;;  %v13320_v5 = vadd.f32 %v24973_v4, %v12957_v38  ;;  %v12964_v51 = vadd.f32 %v18196_v57, %v12023_v6  ;;  %v12974_v36 = vadd.f32 %v18197_v8, %v12588_v20  ;;  %v12025_v25 = vpop.f32.mrb[143].mxu0  ;;  %v12590_v16 = vpop.f32.mrb[239].mxu1 }
 0xada   :  { %v13311_v48 = vadd.f32 %v24978_v3, %v12948_v22  ;;  %v13321_v50 = vadd.f32 %v24983_v28, %v12958_v1  ;;  %v12965_v15 = vadd.f32 %v18198_v39, %v12025_v25  ;;  %v12975_v56 = vadd.f32 %v18199_v27, %v12590_v16  ;;  %v18202_v22 = vld [vmem:[%s25787_s0 + $0x458] sm:$0xff]  ;;  %v18203_v1 = vld [vmem:[%s25787_s0 + $0x4a8] sm:$0xff] }
 0xadb   :  { %v13582_v29 = vmax.f32 %v13310_v58, 0.0  ;;  %v13592_v59 = vmax.f32 %v13320_v5, 0.0  ;;  %v13327_v33 = vadd.f32 %v24968_v49, %v12964_v51  ;;  %v13337_v17 = vadd.f32 %v24973_v4, %v12974_v36  ;;  %12726 = vmatmul.mubr.bf16.gmra.mrb[248].mxu0 %v25864_v18  ;;  %v18200_v18 = vld [vmem:[%s25787_s0 + $0x450] sm:$0xff]  ;;  %v18204_v51 = vld [vmem:[%s25787_s0 + $0x4d8] sm:$0xff]  ;;  %v18205_v36 = vld [vmem:[%s25787_s0 + $0x528] sm:$0xff] }
 0xadc   :  { %v13583_v52 = vmax.f32 %v13311_v48, 0.0  ;;  %v13593_v47 = vmax.f32 %v13321_v50, 0.0  ;;  %v13328_v61 = vadd.f32 %v24978_v3, %v12965_v15  ;;  %v13338_v30 = vadd.f32 %v24983_v28, %v12975_v56  ;;  %15267 = vmatprep.mubr.msk.bf16.mxu0 %vm5236_vm1, %v25865_v34  ;;  %v18201_v34 = vld [vmem:[%s25787_s0 + $0x4a0] sm:$0xff]  ;;  %v18207_v56 = vld [vmem:[%s25787_s0 + $0x530] sm:$0xff] }
 0xadd   :  { %13854 = vst [vmem:[#allocation2 + $0x340] sm:$0xff] %v13582_v29  ;;  %13864 = vst [vmem:[#allocation2 + $0x390] sm:$0xff] %v13592_v59  ;;  %v13599_v43 = vmax.f32 %v13327_v33, 0.0  ;;  %v13609_v24 = vmax.f32 %v13337_v17, 0.0  ;;  %v18206_v15 = vld [vmem:[%s25787_s0 + $0x4e0] sm:$0xff] }
 0xade   :  { %13855 = vst [vmem:[#allocation2 + $0x348] sm:$0xff] %v13583_v52  ;;  %13865 = vst [vmem:[#allocation2 + $0x398] sm:$0xff] %v13593_v47  ;;  %v13600_v37 = vmax.f32 %v13328_v61, 0.0  ;;  %v13610_v23 = vmax.f32 %v13338_v30, 0.0  ;;  %v12029_v54 = vpop.f32.mrb[144].mxu0  ;;  %v12594_v0 = vpop.f32.mrb[240].mxu1 }
 0xadf   :  { %13871 = vst [vmem:[#allocation2 + $0x3c8] sm:$0xff] %v13599_v43  ;;  %13881 = vst [vmem:[#allocation2 + $0x418] sm:$0xff] %v13609_v24  ;;  %v12981_v38 = vadd.f32 %v18200_v18, %v12029_v54  ;;  %v12991_v2 = vadd.f32 %v18201_v34, %v12594_v0  ;;  %v12031_v44 = vpop.f32.mrb[145].mxu0  ;;  %v12596_v53 = vpop.f32.mrb[241].mxu1  ;;  %v18209_v34 = vld [vmem:[%s25787_s0 + $0x5b0] sm:$0xff] }
 0xae0   :  { %13872 = vst [vmem:[#allocation2 + $0x3d0] sm:$0xff] %v13600_v37  ;;  %13882 = vst [vmem:[#allocation2 + $0x420] sm:$0xff] %v13610_v23  ;;  %v12982_v42 = vadd.f32 %v18202_v22, %v12031_v44  ;;  %v12992_v6 = vadd.f32 %v18203_v1, %v12596_v53  ;;  %v12033_v20 = vpop.f32.mrb[146].mxu0  ;;  %v12598_v58 = vpop.f32.mrb[242].mxu1  ;;  %v18210_v22 = vld [vmem:[%s25787_s0 + $0x568] sm:$0xff]  ;;  %v18211_v1 = vld [vmem:[%s25787_s0 + $0x5b8] sm:$0xff] }
 0xae1   :  { %v13344_v5 = vadd.f32 %v24968_v49, %v12981_v38  ;;  %v13354_v57 = vadd.f32 %v24973_v4, %v12991_v2  ;;  %v12998_v8 = vadd.f32 %v18204_v51, %v12033_v20  ;;  %v13008_v25 = vadd.f32 %v18205_v36, %v12598_v58  ;;  %v12035_v16 = vpop.f32.mrb[147].mxu0  ;;  %v12600_v48 = vpop.f32.mrb[243].mxu1  ;;  %v18212_v51 = vld [vmem:[%s25787_s0 + $0x5e8] sm:$0xff]  ;;  %v18213_v36 = vld [vmem:[%s25787_s0 + $0x638] sm:$0xff] }
 0xae2   :  { %v13345_v50 = vadd.f32 %v24978_v3, %v12982_v42  ;;  %v13355_v39 = vadd.f32 %v24983_v28, %v12992_v6  ;;  %v12999_v27 = vadd.f32 %v18206_v15, %v12035_v16  ;;  %v13009_v29 = vadd.f32 %v18207_v56, %v12600_v48  ;;  %v18214_v15 = vld [vmem:[%s25787_s0 + $0x5f0] sm:$0xff]  ;;  %v18215_v56 = vld [vmem:[%s25787_s0 + $0x640] sm:$0xff] }
 0xae3   :  { %v13616_v59 = vmax.f32 %v13344_v5, 0.0  ;;  %v13626_v33 = vmax.f32 %v13354_v57, 0.0  ;;  %v13361_v17 = vadd.f32 %v24968_v49, %v12998_v8  ;;  %v13371_v52 = vadd.f32 %v24973_v4, %v13008_v25  ;;  %12736 = vmatmul.mubr.bf16.gmra.mrb[252].mxu0 %v25866_v55  ;;  %v18208_v55 = vld [vmem:[%s25787_s0 + $0x560] sm:$0xff] }
 0xae4   :  { %v13617_v47 = vmax.f32 %v13345_v50, 0.0  ;;  %v13627_v61 = vmax.f32 %v13355_v39, 0.0  ;;  %v13362_v30 = vadd.f32 %v24978_v3, %v12999_v27  ;;  %v13372_v43 = vadd.f32 %v24983_v28, %v13009_v29 }
 0xae5   :  { %13888 = vst [vmem:[#allocation2 + $0x450] sm:$0xff] %v13616_v59  ;;  %13898 = vst [vmem:[#allocation2 + $0x4a0] sm:$0xff] %v13626_v33  ;;  %v13633_v24 = vmax.f32 %v13361_v17, 0.0  ;;  %v13643_v37 = vmax.f32 %v13371_v52, 0.0 }
 0xae6   :  { %13889 = vst [vmem:[#allocation2 + $0x458] sm:$0xff] %v13617_v47  ;;  %13899 = vst [vmem:[#allocation2 + $0x4a8] sm:$0xff] %v13627_v61  ;;  %v13634_v23 = vmax.f32 %v13362_v30, 0.0  ;;  %v13644_v54 = vmax.f32 %v13372_v43, 0.0  ;;  %v12039_v0 = vpop.f32.mrb[148].mxu0  ;;  %v12604_v18 = vpop.f32.mrb[244].mxu1 }
 0xae7   :  { %13905 = vst [vmem:[#allocation2 + $0x4d8] sm:$0xff] %v13633_v24  ;;  %13915 = vst [vmem:[#allocation2 + $0x528] sm:$0xff] %v13643_v37  ;;  %v13015_v38 = vadd.f32 %v18208_v55, %v12039_v0  ;;  %v13025_v2 = vadd.f32 %v18209_v34, %v12604_v18  ;;  %v12041_v44 = vpop.f32.mrb[149].mxu0  ;;  %v12606_v53 = vpop.f32.mrb[245].mxu1  ;;  %v18216_v55 = vld [vmem:[%s25787_s0 + $0x670] sm:$0xff]  ;;  %v18217_v34 = vld [vmem:[%s25787_s0 + $0x6c0] sm:$0xff] }
 0xae8   :  { %13906 = vst [vmem:[#allocation2 + $0x4e0] sm:$0xff] %v13634_v23  ;;  %13916 = vst [vmem:[#allocation2 + $0x530] sm:$0xff] %v13644_v54  ;;  %v13016_v42 = vadd.f32 %v18210_v22, %v12041_v44  ;;  %v13026_v6 = vadd.f32 %v18211_v1, %v12606_v53  ;;  %v12043_v20 = vpop.f32.mrb[150].mxu0  ;;  %v12608_v58 = vpop.f32.mrb[246].mxu1  ;;  %v18218_v22 = vld [vmem:[%s25787_s0 + $0x678] sm:$0xff]  ;;  %v18219_v1 = vld [vmem:[%s25787_s0 + $0x6c8] sm:$0xff] }
 0xae9   :  { %v13378_v5 = vadd.f32 %v24968_v49, %v13015_v38  ;;  %v13388_v57 = vadd.f32 %v24973_v4, %v13025_v2  ;;  %v13032_v8 = vadd.f32 %v18212_v51, %v12043_v20  ;;  %v13042_v25 = vadd.f32 %v18213_v36, %v12608_v58  ;;  %v12045_v16 = vpop.f32.mrb[151].mxu0  ;;  %v12610_v48 = vpop.f32.mrb[247].mxu1  ;;  %v18220_v51 = vld [vmem:[%s25787_s0 + $0x6f8] sm:$0xff]  ;;  %v18221_v36 = vld [vmem:[%s25787_s0 + $0x748] sm:$0xff] }
 0xaea   :  { %v13379_v50 = vadd.f32 %v24978_v3, %v13016_v42  ;;  %v13389_v39 = vadd.f32 %v24983_v28, %v13026_v6  ;;  %v13033_v27 = vadd.f32 %v18214_v15, %v12045_v16  ;;  %v13043_v29 = vadd.f32 %v18215_v56, %v12610_v48  ;;  %v18222_v15 = vld [vmem:[%s25787_s0 + $0x700] sm:$0xff]  ;;  %v18223_v56 = vld [vmem:[%s25787_s0 + $0x750] sm:$0xff] }
 0xaeb   :  { %v13650_v59 = vmax.f32 %v13378_v5, 0.0  ;;  %v13660_v33 = vmax.f32 %v13388_v57, 0.0  ;;  %v13395_v17 = vadd.f32 %v24968_v49, %v13032_v8  ;;  %v13405_v52 = vadd.f32 %v24973_v4, %v13042_v25 }
 0xaec   :  { %v13651_v47 = vmax.f32 %v13379_v50, 0.0  ;;  %v13661_v61 = vmax.f32 %v13389_v39, 0.0  ;;  %v13396_v30 = vadd.f32 %v24978_v3, %v13033_v27  ;;  %v13406_v43 = vadd.f32 %v24983_v28, %v13043_v29 }
 0xaed   :  { %13922 = vst [vmem:[#allocation2 + $0x560] sm:$0xff] %v13650_v59  ;;  %13932 = vst [vmem:[#allocation2 + $0x5b0] sm:$0xff] %v13660_v33  ;;  %v13667_v24 = vmax.f32 %v13395_v17, 0.0  ;;  %v13677_v37 = vmax.f32 %v13405_v52, 0.0 }
 0xaee   :  { %13923 = vst [vmem:[#allocation2 + $0x568] sm:$0xff] %v13651_v47  ;;  %13933 = vst [vmem:[#allocation2 + $0x5b8] sm:$0xff] %v13661_v61  ;;  %v13668_v23 = vmax.f32 %v13396_v30, 0.0  ;;  %v13678_v54 = vmax.f32 %v13406_v43, 0.0  ;;  %v12049_v0 = vpop.f32.mrb[152].mxu0  ;;  %v12614_v18 = vpop.f32.mrb[248].mxu1 }
 0xaef   :  { %13939 = vst [vmem:[#allocation2 + $0x5e8] sm:$0xff] %v13667_v24  ;;  %13949 = vst [vmem:[#allocation2 + $0x638] sm:$0xff] %v13677_v37  ;;  %v13049_v38 = vadd.f32 %v18216_v55, %v12049_v0  ;;  %v13059_v2 = vadd.f32 %v18217_v34, %v12614_v18  ;;  %v12051_v44 = vpop.f32.mrb[153].mxu0  ;;  %v12616_v53 = vpop.f32.mrb[249].mxu1  ;;  %v18224_v55 = vld [vmem:[%s25787_s0 + $0x780] sm:$0xff]  ;;  %v18225_v34 = vld [vmem:[%s25787_s0 + $0x7d0] sm:$0xff] }
 0xaf0   :  { %13940 = vst [vmem:[#allocation2 + $0x5f0] sm:$0xff] %v13668_v23  ;;  %13950 = vst [vmem:[#allocation2 + $0x640] sm:$0xff] %v13678_v54  ;;  %v13050_v42 = vadd.f32 %v18218_v22, %v12051_v44  ;;  %v13060_v6 = vadd.f32 %v18219_v1, %v12616_v53  ;;  %v12053_v20 = vpop.f32.mrb[154].mxu0  ;;  %v12618_v58 = vpop.f32.mrb[250].mxu1  ;;  %v18226_v22 = vld [vmem:[%s25787_s0 + $0x788] sm:$0xff]  ;;  %v18227_v1 = vld [vmem:[%s25787_s0 + $0x7d8] sm:$0xff] }
 0xaf1   :  { %v13412_v5 = vadd.f32 %v24968_v49, %v13049_v38  ;;  %v13422_v57 = vadd.f32 %v24973_v4, %v13059_v2  ;;  %v13066_v8 = vadd.f32 %v18220_v51, %v12053_v20  ;;  %v13076_v25 = vadd.f32 %v18221_v36, %v12618_v58  ;;  %v12055_v16 = vpop.f32.mrb[155].mxu0  ;;  %v12620_v48 = vpop.f32.mrb[251].mxu1  ;;  %v18228_v36 = vld [vmem:[%s25787_s0 + $0x808] sm:$0xff] }
 0xaf2   :  { %v13413_v50 = vadd.f32 %v24978_v3, %v13050_v42  ;;  %v13423_v39 = vadd.f32 %v24983_v28, %v13060_v6  ;;  %v13067_v27 = vadd.f32 %v18222_v15, %v12055_v16  ;;  %v13077_v29 = vadd.f32 %v18223_v56, %v12620_v48  ;;  %v18229_v16 = vld [vmem:[%s25787_s0 + $0x858] sm:$0xff]  ;;  %v18230_v56 = vld [vmem:[%s25787_s0 + $0x810] sm:$0xff] }
 0xaf3   :  { %v13684_v59 = vmax.f32 %v13412_v5, 0.0  ;;  %v13694_v33 = vmax.f32 %v13422_v57, 0.0  ;;  %v13429_v17 = vadd.f32 %v24968_v49, %v13066_v8  ;;  %v13439_v52 = vadd.f32 %v24973_v4, %v13076_v25 }
 0xaf4   :  { %v13685_v47 = vmax.f32 %v13413_v50, 0.0  ;;  %v13695_v61 = vmax.f32 %v13423_v39, 0.0  ;;  %v13430_v30 = vadd.f32 %v24978_v3, %v13067_v27  ;;  %v13440_v43 = vadd.f32 %v24983_v28, %v13077_v29 }
 0xaf5   :  { %13956 = vst [vmem:[#allocation2 + $0x670] sm:$0xff] %v13684_v59  ;;  %13966 = vst [vmem:[#allocation2 + $0x6c0] sm:$0xff] %v13694_v33  ;;  %v13701_v24 = vmax.f32 %v13429_v17, 0.0  ;;  %v13711_v37 = vmax.f32 %v13439_v52, 0.0  ;;  %v13147_v5 = vsub.s32 6, %v25868_v12  ;;  %v13151_v57 = vsub.s32 7, %v25868_v12 }
 0xaf6   :  { %13957 = vst [vmem:[#allocation2 + $0x678] sm:$0xff] %v13685_v47  ;;  %13967 = vst [vmem:[#allocation2 + $0x6c8] sm:$0xff] %v13695_v61  ;;  %v13702_v23 = vmax.f32 %v13430_v30, 0.0  ;;  %v13712_v54 = vmax.f32 %v13440_v43, 0.0  ;;  %v12059_v0 = vpop.f32.mrb[156].mxu0  ;;  %v12624_v18 = vpop.f32.mrb[252].mxu1 }
 0xaf7   :  { %13973 = vst [vmem:[#allocation2 + $0x6f8] sm:$0xff] %v13701_v24  ;;  %13983 = vst [vmem:[#allocation2 + $0x748] sm:$0xff] %v13711_v37  ;;  %v13083_v38 = vadd.f32 %v18224_v55, %v12059_v0  ;;  %v13093_v2 = vadd.f32 %v18225_v34, %v12624_v18  ;;  %v12061_v44 = vpop.f32.mrb[157].mxu0  ;;  %v12626_v53 = vpop.f32.mrb[253].mxu1  ;;  %v18231_v59 = vld [vmem:[%s25787_s0 + $0x860] sm:$0xff]  ;;  %v25259_v0 = vrot.slane %v24964_v10, %v13147_v5  ;;  %v18315_v12 = vld [vmem:[%s25787_s0 + $0xf8] sm:$0xff] }
 0xaf8   :  { %13974 = vst [vmem:[#allocation2 + $0x700] sm:$0xff] %v13702_v23  ;;  %13984 = vst [vmem:[#allocation2 + $0x750] sm:$0xff] %v13712_v54  ;;  %v13084_v42 = vadd.f32 %v18226_v22, %v12061_v44  ;;  %v13094_v6 = vadd.f32 %v18227_v1, %v12626_v53  ;;  %v12063_v20 = vpop.f32.mrb[158].mxu0  ;;  %v12628_v58 = vpop.f32.mrb[254].mxu1  ;;  %v25273_v53 = vld [vmem:[%s25796_s9 + $0x10] ss:$0 sm:$0xff] }
 0xaf9   :  { %v13446_v51 = vadd.f32 %v24968_v49, %v13083_v38  ;;  %v13456_v8 = vadd.f32 %v24973_v4, %v13093_v2  ;;  %v13100_v25 = vadd.f32 %v18228_v36, %v12063_v20  ;;  %v13110_v48 = vadd.f32 %v18229_v16, %v12628_v58  ;;  %v12065_v50 = vpop.f32.mrb[159].mxu0  ;;  %v12630_v39 = vpop.f32.mrb[255].mxu1  ;;  %v18235_v58 = vld [vmem:[%s25787_s0 + $0xb8] sm:$0xff] }
 0xafa   :  { %v13447_v15 = vadd.f32 %v24978_v3, %v13084_v42  ;;  %v13457_v27 = vadd.f32 %v24983_v28, %v13094_v6  ;;  %v13101_v29 = vadd.f32 %v18230_v56, %v12065_v50  ;;  %v13111_v33 = vadd.f32 %v18231_v59, %v12630_v39  ;;  %v18237_v56 = vld [vmem:[%s25787_s0 + $0x108] sm:$0xff] }
 0xafb   :  { %v13718_v17 = vmax.f32 %v13446_v51, 0.0  ;;  %v13728_v52 = vmax.f32 %v13456_v8, 0.0  ;;  %v13463_v47 = vadd.f32 %v24968_v49, %v13100_v25  ;;  %v13473_v61 = vadd.f32 %v24973_v4, %v13110_v48  ;;  %v18236_v48 = vld [vmem:[%s25787_s0 + $0xc0] sm:$0xff] }
 0xafc   :  { %v13719_v30 = vmax.f32 %v13447_v15, 0.0  ;;  %v13729_v43 = vmax.f32 %v13457_v27, 0.0  ;;  %v13464_v24 = vadd.f32 %v24978_v3, %v13101_v29  ;;  %v13474_v37 = vadd.f32 %v24983_v28, %v13111_v33  ;;  %v18232_v28 = vld [vmem:[%s25787_s0 + $0x30] sm:$0xff] }
 0xafd   :  { %13990 = vst [vmem:[#allocation2 + $0x780] sm:$0xff] %v13718_v17  ;;  %14000 = vst [vmem:[#allocation2 + $0x7d0] sm:$0xff] %v13728_v52  ;;  %v13735_v23 = vmax.f32 %v13463_v47, 0.0  ;;  %v13745_v54 = vmax.f32 %v13473_v61, 0.0  ;;  %v25264_v3 = vrot.slane %v24964_v10, %v13151_v57  ;;  %v18233_v10 = vld [vmem:[%s25787_s0 + $0x38] sm:$0xff] }
 0xafe   :  { %13991 = vst [vmem:[#allocation2 + $0x788] sm:$0xff] %v13719_v30  ;;  %14001 = vst [vmem:[#allocation2 + $0x7d8] sm:$0xff] %v13729_v43  ;;  %v13736_v49 = vmax.f32 %v13464_v24, 0.0  ;;  %v13746_v18 = vmax.f32 %v13474_v37, 0.0  ;;  %v12215_v4 = vpop.f32.mrb[160].mxu0  ;;  %v12780_v55 = vpop.f32.mrb[32].mxu1 }
 0xaff   :  { %14007 = vst [vmem:[#allocation2 + $0x808] sm:$0xff] %v13735_v23  ;;  %14017 = vst [vmem:[#allocation2 + $0x858] sm:$0xff] %v13745_v54  ;;  %v12849_v38 = vadd.f32 %v18232_v28, %v12215_v4  ;;  %v12781_v34 = vadd.f32 %v24196_v9, %v12780_v55  ;;  %v12217_v2 = vpop.f32.mrb[161].mxu0  ;;  %v12782_v44 = vpop.f32.mrb[33].mxu1  ;;  %v18234_v9 = vld [vmem:[%s25787_s0 + $0x80] sm:$0xff] }
 0xb00   :  { %14008 = vst [vmem:[#allocation2 + $0x810] sm:$0xff] %v13736_v49  ;;  %14018 = vst [vmem:[#allocation2 + $0x860] sm:$0xff] %v13746_v18  ;;  %v12850_v22 = vadd.f32 %v18233_v10, %v12217_v2  ;;  %v12219_v42 = vpop.f32.mrb[162].mxu0  ;;  %v12783_v1 = vpop.f32.mrb[34].mxu1  ;;  %v18238_v24 = vld [vmem:[%s25787_s0 + $0x140] sm:$0xff]  ;;  %v18239_v18 = vld [vmem:[%s25787_s0 + $0x148] sm:$0xff] }
 0xb01   :  { %v13212_v6 = vadd.f32 %v25259_v0, %v12849_v38  ;;  %v12859_v20 = vadd.f32 %v18234_v9, %v12781_v34  ;;  %v12866_v51 = vadd.f32 %v18235_v58, %v12219_v42  ;;  %v12784_v8 = vadd.f32 %v24201_v11, %v12783_v1  ;;  %v12221_v36 = vpop.f32.mrb[163].mxu0  ;;  %v12785_v25 = vpop.f32.mrb[35].mxu1  ;;  %v18240_v34 = vld [vmem:[%s25787_s0 + $0x190] sm:$0xff] }
 0xb02   :  { %v13213_v16 = vadd.f32 %v25264_v3, %v12850_v22  ;;  %v12867_v50 = vadd.f32 %v18236_v48, %v12221_v36 }
 0xb03   :  { %v13484_v39 = vmax.f32 %v13212_v6, 0.0  ;;  %v13222_v15 = vadd.f32 %v25273_v53, %v12859_v20  ;;  %v13229_v27 = vadd.f32 %v25259_v0, %v12866_v51  ;;  %v12876_v29 = vadd.f32 %v18237_v56, %v12784_v8  ;;  %v18242_v6 = vld [vmem:[%s25787_s0 + $0x1d0] sm:$0xff]  ;;  %v18243_v8 = vld [vmem:[%s25787_s0 + $0x218] sm:$0xff] }
 0xb04   :  { %v13485_v11 = vmax.f32 %v13213_v16, 0.0  ;;  %v13230_v59 = vadd.f32 %v25264_v3, %v12867_v50 }
 0xb05   :  { %13756 = vst [vmem:[#allocation2 + $0x30] sm:$0xff] %v13484_v39  ;;  %v13494_v33 = vmax.f32 %v13222_v15, 0.0  ;;  %v13501_v17 = vmax.f32 %v13229_v27, 0.0  ;;  %v13239_v52 = vadd.f32 %v25273_v53, %v12876_v29  ;;  %v18244_v29 = vld [vmem:[%s25787_s0 + $0x250] sm:$0xff] }
 0xb06   :  { %13757 = vst [vmem:[#allocation2 + $0x38] sm:$0xff] %v13485_v11  ;;  %v13502_v47 = vmax.f32 %v13230_v59, 0.0  ;;  %v12225_v61 = vpop.f32.mrb[164].mxu0  ;;  %v12788_v30 = vpop.f32.mrb[36].mxu1 }
 0xb07   :  { %13766 = vst.msk [vmem:[#allocation2 + $0x80] sm:$0xff] %vm3062_vm0, %v13494_v33  ;;  %13773 = vst [vmem:[#allocation2 + $0xb8] sm:$0xff] %v13501_v17  ;;  %v13511_v43 = vmax.f32 %v13239_v52, 0.0  ;;  %v12883_v37 = vadd.f32 %v18238_v24, %v12225_v61  ;;  %v12789_v23 = vadd.f32 %v24226_v35, %v12788_v30  ;;  %v12227_v54 = vpop.f32.mrb[165].mxu0  ;;  %v12790_v49 = vpop.f32.mrb[37].mxu1  ;;  %v18241_v35 = vld [vmem:[%s25787_s0 + $0x1c8] sm:$0xff] }
 0xb08   :  { %13774 = vst [vmem:[#allocation2 + $0xc0] sm:$0xff] %v13502_v47  ;;  %v12884_v4 = vadd.f32 %v18239_v18, %v12227_v54  ;;  %v12229_v55 = vpop.f32.mrb[166].mxu0  ;;  %v12791_v28 = vpop.f32.mrb[38].mxu1  ;;  %v18245_v52 = vld [vmem:[%s25787_s0 + $0x258] sm:$0xff]  ;;  %v18246_v24 = vld [vmem:[%s25787_s0 + $0x2a0] sm:$0xff] }
 0xb09   :  { %13783 = vst.msk [vmem:[#allocation2 + $0x108] sm:$0xff] %vm3062_vm0, %v13511_v43  ;;  %v13246_v38 = vadd.f32 %v25259_v0, %v12883_v37  ;;  %v12893_v2 = vadd.f32 %v18240_v34, %v12789_v23  ;;  %v12900_v44 = vadd.f32 %v18241_v35, %v12229_v55  ;;  %v12792_v10 = vadd.f32 %v24231_v63, %v12791_v28  ;;  %v12231_v22 = vpop.f32.mrb[167].mxu0  ;;  %v12793_v42 = vpop.f32.mrb[39].mxu1  ;;  %v18248_v55 = vld [vmem:[%s25787_s0 + $0x2e0] sm:$0xff]  ;;  %v18249_v35 = vld [vmem:[%s25787_s0 + $0x328] sm:$0xff] }
 0xb0a   :  { %v13247_v1 = vadd.f32 %v25264_v3, %v12884_v4  ;;  %v12901_v9 = vadd.f32 %v18242_v6, %v12231_v22 }
 0xb0b   :  { %v13518_v20 = vmax.f32 %v13246_v38, 0.0  ;;  %v13256_v58 = vadd.f32 %v25273_v53, %v12893_v2  ;;  %v13263_v51 = vadd.f32 %v25259_v0, %v12900_v44  ;;  %v12910_v36 = vadd.f32 %v18243_v8, %v12792_v10 }
 0xb0c   :  { %v13519_v63 = vmax.f32 %v13247_v1, 0.0  ;;  %v13264_v25 = vadd.f32 %v25264_v3, %v12901_v9 }
 0xb0d   :  { %13790 = vst [vmem:[#allocation2 + $0x140] sm:$0xff] %v13518_v20  ;;  %v13528_v16 = vmax.f32 %v13256_v58, 0.0  ;;  %v13535_v48 = vmax.f32 %v13263_v51, 0.0  ;;  %v13273_v50 = vadd.f32 %v25273_v53, %v12910_v36  ;;  %v18250_v51 = vld [vmem:[%s25787_s0 + $0x360] sm:$0xff] }
 0xb0e   :  { %13791 = vst [vmem:[#allocation2 + $0x148] sm:$0xff] %v13519_v63  ;;  %v13536_v39 = vmax.f32 %v13264_v25, 0.0  ;;  %v12235_v15 = vpop.f32.mrb[168].mxu0  ;;  %v12796_v27 = vpop.f32.mrb[40].mxu1 }
 0xb0f   :  { %13800 = vst.msk [vmem:[#allocation2 + $0x190] sm:$0xff] %vm3062_vm0, %v13528_v16  ;;  %13807 = vst [vmem:[#allocation2 + $0x1c8] sm:$0xff] %v13535_v48  ;;  %v13545_v56 = vmax.f32 %v13273_v50, 0.0  ;;  %v12917_v11 = vadd.f32 %v18244_v29, %v12235_v15  ;;  %v12797_v59 = vadd.f32 %v24256_v26, %v12796_v27  ;;  %v12237_v33 = vpop.f32.mrb[169].mxu0  ;;  %v12798_v17 = vpop.f32.mrb[41].mxu1  ;;  %v18247_v26 = vld [vmem:[%s25787_s0 + $0x2d8] sm:$0xff] }
 0xb10   :  { %13808 = vst [vmem:[#allocation2 + $0x1d0] sm:$0xff] %v13536_v39  ;;  %v12918_v47 = vadd.f32 %v18245_v52, %v12237_v33  ;;  %v12239_v61 = vpop.f32.mrb[170].mxu0  ;;  %v12799_v30 = vpop.f32.mrb[42].mxu1  ;;  %v18251_v16 = vld [vmem:[%s25787_s0 + $0x368] sm:$0xff]  ;;  %v18252_v27 = vld [vmem:[%s25787_s0 + $0x3b0] sm:$0xff] }
 0xb11   :  { %13817 = vst.msk [vmem:[#allocation2 + $0x218] sm:$0xff] %vm3062_vm0, %v13545_v56  ;;  %v13280_v43 = vadd.f32 %v25259_v0, %v12917_v11  ;;  %v12927_v37 = vadd.f32 %v18246_v24, %v12797_v59  ;;  %v12934_v23 = vadd.f32 %v18247_v26, %v12239_v61  ;;  %v12800_v54 = vadd.f32 %v24261_v7, %v12799_v30  ;;  %v12241_v49 = vpop.f32.mrb[171].mxu0  ;;  %v12801_v18 = vpop.f32.mrb[43].mxu1  ;;  %v18254_v52 = vld [vmem:[%s25787_s0 + $0x3f0] sm:$0xff]  ;;  %v18255_v24 = vld [vmem:[%s25787_s0 + $0x438] sm:$0xff] }
 0xb12   :  { %v13281_v4 = vadd.f32 %v25264_v3, %v12918_v47  ;;  %v12935_v28 = vadd.f32 %v18248_v55, %v12241_v49 }
 0xb13   :  { %v13552_v38 = vmax.f32 %v13280_v43, 0.0  ;;  %v13290_v34 = vadd.f32 %v25273_v53, %v12927_v37  ;;  %v13297_v2 = vadd.f32 %v25259_v0, %v12934_v23  ;;  %v12944_v44 = vadd.f32 %v18249_v35, %v12800_v54 }
 0xb14   :  { %v13553_v7 = vmax.f32 %v13281_v4, 0.0  ;;  %v13298_v10 = vadd.f32 %v25264_v3, %v12935_v28 }
 0xb15   :  { %13824 = vst [vmem:[#allocation2 + $0x250] sm:$0xff] %v13552_v38  ;;  %v13562_v22 = vmax.f32 %v13290_v34, 0.0  ;;  %v13569_v42 = vmax.f32 %v13297_v2, 0.0  ;;  %v13307_v1 = vadd.f32 %v25273_v53, %v12944_v44  ;;  %v18256_v38 = vld [vmem:[%s25787_s0 + $0x470] sm:$0xff] }
 0xb16   :  { %13825 = vst [vmem:[#allocation2 + $0x258] sm:$0xff] %v13553_v7  ;;  %v13570_v6 = vmax.f32 %v13298_v10, 0.0  ;;  %v12245_v9 = vpop.f32.mrb[172].mxu0  ;;  %v12804_v20 = vpop.f32.mrb[44].mxu1  ;;  %v18257_v7 = vld [vmem:[%s25787_s0 + $0x478] sm:$0xff] }
 0xb17   :  { %13834 = vst.msk [vmem:[#allocation2 + $0x2a0] sm:$0xff] %vm3062_vm0, %v13562_v22  ;;  %13841 = vst [vmem:[#allocation2 + $0x2d8] sm:$0xff] %v13569_v42  ;;  %v13579_v58 = vmax.f32 %v13307_v1, 0.0  ;;  %v12951_v8 = vadd.f32 %v18250_v51, %v12245_v9  ;;  %v12805_v36 = vadd.f32 %v24286_v31, %v12804_v20  ;;  %v12247_v63 = vpop.f32.mrb[173].mxu0  ;;  %v12806_v25 = vpop.f32.mrb[45].mxu1  ;;  %v18253_v31 = vld [vmem:[%s25787_s0 + $0x3e8] sm:$0xff] }
 0xb18   :  { %13842 = vst [vmem:[#allocation2 + $0x2e0] sm:$0xff] %v13570_v6  ;;  %v12952_v48 = vadd.f32 %v18251_v16, %v12247_v63  ;;  %v12249_v50 = vpop.f32.mrb[174].mxu0  ;;  %v12807_v39 = vpop.f32.mrb[46].mxu1  ;;  %v18258_v6 = vld [vmem:[%s25787_s0 + $0x4c0] sm:$0xff] }
 0xb19   :  { %13851 = vst.msk [vmem:[#allocation2 + $0x328] sm:$0xff] %vm3062_vm0, %v13579_v58  ;;  %v13314_v15 = vadd.f32 %v25259_v0, %v12951_v8  ;;  %v12961_v56 = vadd.f32 %v18252_v27, %v12805_v36  ;;  %v12968_v29 = vadd.f32 %v18253_v31, %v12249_v50  ;;  %v12808_v11 = vadd.f32 %v24288_v21, %v12807_v39  ;;  %v12251_v59 = vpop.f32.mrb[175].mxu0  ;;  %v12809_v33 = vpop.f32.mrb[47].mxu1  ;;  %v18260_v63 = vld [vmem:[%s25787_s0 + $0x500] sm:$0xff]  ;;  %v18261_v39 = vld [vmem:[%s25787_s0 + $0x548] sm:$0xff] }
 0xb1a   :  { %v13315_v17 = vadd.f32 %v25264_v3, %v12952_v48  ;;  %v12969_v47 = vadd.f32 %v18254_v52, %v12251_v59  ;;  %v18262_v52 = vld [vmem:[%s25787_s0 + $0x580] sm:$0xff] }
 0xb1b   :  { %v13586_v61 = vmax.f32 %v13314_v15, 0.0  ;;  %v13324_v30 = vadd.f32 %v25273_v53, %v12961_v56  ;;  %v13331_v43 = vadd.f32 %v25259_v0, %v12968_v29  ;;  %v12978_v37 = vadd.f32 %v18255_v24, %v12808_v11  ;;  %v18263_v24 = vld [vmem:[%s25787_s0 + $0x588] sm:$0xff] }
 0xb1c   :  { %v13587_v21 = vmax.f32 %v13315_v17, 0.0  ;;  %v13332_v26 = vadd.f32 %v25264_v3, %v12969_v47 }
 0xb1d   :  { %13858 = vst [vmem:[#allocation2 + $0x360] sm:$0xff] %v13586_v61  ;;  %v13596_v23 = vmax.f32 %v13324_v30, 0.0  ;;  %v13603_v54 = vmax.f32 %v13331_v43, 0.0  ;;  %v13341_v49 = vadd.f32 %v25273_v53, %v12978_v37 }
 0xb1e   :  { %13859 = vst [vmem:[#allocation2 + $0x368] sm:$0xff] %v13587_v21  ;;  %v13604_v18 = vmax.f32 %v13332_v26, 0.0  ;;  %v12255_v4 = vpop.f32.mrb[176].mxu0  ;;  %v12812_v55 = vpop.f32.mrb[48].mxu1 }
 0xb1f   :  { %13868 = vst.msk [vmem:[#allocation2 + $0x3b0] sm:$0xff] %vm3062_vm0, %v13596_v23  ;;  %13875 = vst [vmem:[#allocation2 + $0x3e8] sm:$0xff] %v13603_v54  ;;  %v13613_v28 = vmax.f32 %v13341_v49, 0.0  ;;  %v12985_v34 = vadd.f32 %v18256_v38, %v12255_v4  ;;  %v12813_v2 = vadd.f32 %v24296_v41, %v12812_v55  ;;  %v12257_v35 = vpop.f32.mrb[177].mxu0  ;;  %v12814_v44 = vpop.f32.mrb[49].mxu1  ;;  %v18259_v41 = vld [vmem:[%s25787_s0 + $0x4f8] sm:$0xff] }
 0xb20   :  { %13876 = vst [vmem:[#allocation2 + $0x3f0] sm:$0xff] %v13604_v18  ;;  %v12986_v10 = vadd.f32 %v18257_v7, %v12257_v35  ;;  %v12259_v22 = vpop.f32.mrb[178].mxu0  ;;  %v12815_v42 = vpop.f32.mrb[50].mxu1  ;;  %v18264_v54 = vld [vmem:[%s25787_s0 + $0x5d0] sm:$0xff] }
 0xb21   :  { %13885 = vst.msk [vmem:[#allocation2 + $0x438] sm:$0xff] %vm3062_vm0, %v13613_v28  ;;  %v13348_v1 = vadd.f32 %v25259_v0, %v12985_v34  ;;  %v12995_v9 = vadd.f32 %v18258_v6, %v12813_v2  ;;  %v13002_v20 = vadd.f32 %v18259_v41, %v12259_v22  ;;  %v12816_v58 = vadd.f32 %v24298_v32, %v12815_v42  ;;  %v12261_v51 = vpop.f32.mrb[179].mxu0  ;;  %v12817_v8 = vpop.f32.mrb[51].mxu1  ;;  %v18266_v34 = vld [vmem:[%s25787_s0 + $0x610] sm:$0xff] }
 0xb22   :  { %v13349_v36 = vadd.f32 %v25264_v3, %v12986_v10  ;;  %v13003_v25 = vadd.f32 %v18260_v63, %v12261_v51  ;;  %v18267_v10 = vld [vmem:[%s25787_s0 + $0x658] sm:$0xff]  ;;  %v18268_v8 = vld [vmem:[%s25787_s0 + $0x690] sm:$0xff] }
 0xb23   :  { %v13620_v16 = vmax.f32 %v13348_v1, 0.0  ;;  %v13358_v48 = vadd.f32 %v25273_v53, %v12995_v9  ;;  %v13365_v50 = vadd.f32 %v25259_v0, %v13002_v20  ;;  %v13012_v15 = vadd.f32 %v18261_v39, %v12816_v58 }
 0xb24   :  { %v13621_v32 = vmax.f32 %v13349_v36, 0.0  ;;  %v13366_v27 = vadd.f32 %v25264_v3, %v13003_v25 }
 0xb25   :  { %13892 = vst [vmem:[#allocation2 + $0x470] sm:$0xff] %v13620_v16  ;;  %v13630_v56 = vmax.f32 %v13358_v48, 0.0  ;;  %v13637_v31 = vmax.f32 %v13365_v50, 0.0  ;;  %v13375_v29 = vadd.f32 %v25273_v53, %v13012_v15  ;;  %v18269_v48 = vld [vmem:[%s25787_s0 + $0x698] sm:$0xff] }
 0xb26   :  { %13893 = vst [vmem:[#allocation2 + $0x478] sm:$0xff] %v13621_v32  ;;  %v13638_v11 = vmax.f32 %v13366_v27, 0.0  ;;  %v12265_v59 = vpop.f32.mrb[180].mxu0  ;;  %v12820_v33 = vpop.f32.mrb[52].mxu1  ;;  %v18270_v27 = vld [vmem:[%s25787_s0 + $0x6e0] sm:$0xff] }
 0xb27   :  { %13902 = vst.msk [vmem:[#allocation2 + $0x4c0] sm:$0xff] %vm3062_vm0, %v13630_v56  ;;  %13909 = vst [vmem:[#allocation2 + $0x4f8] sm:$0xff] %v13637_v31  ;;  %v13647_v17 = vmax.f32 %v13375_v29, 0.0  ;;  %v13019_v47 = vadd.f32 %v18262_v52, %v12265_v59  ;;  %v12821_v61 = vadd.f32 %v24306_v45, %v12820_v33  ;;  %v12267_v30 = vpop.f32.mrb[181].mxu0  ;;  %v12822_v43 = vpop.f32.mrb[53].mxu1  ;;  %v18265_v45 = vld [vmem:[%s25787_s0 + $0x608] sm:$0xff] }
 0xb28   :  { %13910 = vst [vmem:[#allocation2 + $0x500] sm:$0xff] %v13638_v11  ;;  %v13020_v37 = vadd.f32 %v18263_v24, %v12267_v30  ;;  %v12269_v21 = vpop.f32.mrb[182].mxu0  ;;  %v12823_v26 = vpop.f32.mrb[54].mxu1  ;;  %v18273_v43 = vld [vmem:[%s25787_s0 + $0x768] sm:$0xff] }
 0xb29   :  { %13919 = vst.msk [vmem:[#allocation2 + $0x548] sm:$0xff] %vm3062_vm0, %v13647_v17  ;;  %v13382_v23 = vadd.f32 %v25259_v0, %v13019_v47  ;;  %v13029_v49 = vadd.f32 %v18264_v54, %v12821_v61  ;;  %v13036_v18 = vadd.f32 %v18265_v45, %v12269_v21  ;;  %v12824_v4 = vadd.f32 %v24314_v40, %v12823_v26  ;;  %v12271_v55 = vpop.f32.mrb[183].mxu0  ;;  %v12825_v28 = vpop.f32.mrb[55].mxu1  ;;  %v18272_v17 = vld [vmem:[%s25787_s0 + $0x720] sm:$0xff] }
 0xb2a   :  { %v13383_v38 = vadd.f32 %v25264_v3, %v13020_v37  ;;  %v13037_v2 = vadd.f32 %v18266_v34, %v12271_v55 }
 0xb2b   :  { %v13654_v35 = vmax.f32 %v13382_v23, 0.0  ;;  %v13392_v44 = vadd.f32 %v25273_v53, %v13029_v49  ;;  %v13399_v7 = vadd.f32 %v25259_v0, %v13036_v18  ;;  %v13046_v22 = vadd.f32 %v18267_v10, %v12824_v4  ;;  %v18274_v4 = vld [vmem:[%s25787_s0 + $0x7a0] sm:$0xff] }
 0xb2c   :  { %v13655_v40 = vmax.f32 %v13383_v38, 0.0  ;;  %v13400_v42 = vadd.f32 %v25264_v3, %v13037_v2  ;;  %v18275_v2 = vld [vmem:[%s25787_s0 + $0x7a8] sm:$0xff] }
 0xb2d   :  { %13926 = vst [vmem:[#allocation2 + $0x580] sm:$0xff] %v13654_v35  ;;  %v13664_v1 = vmax.f32 %v13392_v44, 0.0  ;;  %v13671_v6 = vmax.f32 %v13399_v7, 0.0  ;;  %v13409_v9 = vadd.f32 %v25273_v53, %v13046_v22  ;;  %v18276_v22 = vld [vmem:[%s25787_s0 + $0x7f0] sm:$0xff] }
 0xb2e   :  { %13927 = vst [vmem:[#allocation2 + $0x588] sm:$0xff] %v13655_v40  ;;  %v13672_v41 = vmax.f32 %v13400_v42, 0.0  ;;  %v12275_v20 = vpop.f32.mrb[184].mxu0  ;;  %v12828_v58 = vpop.f32.mrb[56].mxu1 }
 0xb2f   :  { %13936 = vst.msk [vmem:[#allocation2 + $0x5d0] sm:$0xff] %vm3062_vm0, %v13664_v1  ;;  %13943 = vst [vmem:[#allocation2 + $0x608] sm:$0xff] %v13671_v6  ;;  %v13681_v51 = vmax.f32 %v13409_v9, 0.0  ;;  %v13053_v36 = vadd.f32 %v18268_v8, %v12275_v20  ;;  %v12829_v63 = vadd.f32 %v24328_v62, %v12828_v58  ;;  %v12277_v25 = vpop.f32.mrb[185].mxu0  ;;  %v12830_v16 = vpop.f32.mrb[57].mxu1  ;;  %v18271_v62 = vld [vmem:[%s25787_s0 + $0x718] sm:$0xff] }
 0xb30   :  { %13944 = vst [vmem:[#allocation2 + $0x610] sm:$0xff] %v13672_v41  ;;  %v13054_v50 = vadd.f32 %v18269_v48, %v12277_v25  ;;  %v12279_v39 = vpop.f32.mrb[186].mxu0  ;;  %v12831_v15 = vpop.f32.mrb[58].mxu1  ;;  %v18278_v20 = vld [vmem:[%s25787_s0 + $0x830] sm:$0xff] }
 0xb31   :  { %13953 = vst.msk [vmem:[#allocation2 + $0x658] sm:$0xff] %vm3062_vm0, %v13681_v51  ;;  %v13416_v32 = vadd.f32 %v25259_v0, %v13053_v36  ;;  %v13063_v56 = vadd.f32 %v18270_v27, %v12829_v63  ;;  %v13070_v31 = vadd.f32 %v18271_v62, %v12279_v39  ;;  %v12832_v29 = vadd.f32 %v24333_v46, %v12831_v15  ;;  %v12281_v11 = vpop.f32.mrb[187].mxu0  ;;  %v12833_v59 = vpop.f32.mrb[59].mxu1  ;;  %v18279_v63 = vld [vmem:[%s25787_s0 + $0x878] sm:$0xff]  ;;  %v25496_v15 = vld [vmem:[%s25796_s9 + $0x8] sm:$0xff] }
 0xb32   :  { %v13417_v33 = vadd.f32 %v25264_v3, %v13054_v50  ;;  %v13071_v52 = vadd.f32 %v18272_v17, %v12281_v11  ;;  %v18283_v59 = vld [vmem:[%s25787_s0 + $0xd8] sm:$0xff] }
 0xb33   :  { %v13688_v47 = vmax.f32 %v13416_v32, 0.0  ;;  %v13426_v61 = vadd.f32 %v25273_v53, %v13063_v56  ;;  %v13433_v30 = vadd.f32 %v25259_v0, %v13070_v31  ;;  %v13080_v24 = vadd.f32 %v18273_v43, %v12832_v29  ;;  %v18281_v56 = vld [vmem:[%s25787_s0 + $0x50] sm:$0xff] }
 0xb34   :  { %v13689_v46 = vmax.f32 %v13417_v33, 0.0  ;;  %v13434_v37 = vadd.f32 %v25264_v3, %v13071_v52 }
 0xb35   :  { %13960 = vst [vmem:[#allocation2 + $0x690] sm:$0xff] %v13688_v47  ;;  %v13698_v21 = vmax.f32 %v13426_v61, 0.0  ;;  %v13705_v26 = vmax.f32 %v13433_v30, 0.0  ;;  %v13443_v23 = vadd.f32 %v25273_v53, %v13080_v24  ;;  %v18284_v47 = vld [vmem:[%s25787_s0 + $0xe0] sm:$0xff] }
 0xb36   :  { %13961 = vst [vmem:[#allocation2 + $0x698] sm:$0xff] %v13689_v46  ;;  %v13706_v54 = vmax.f32 %v13434_v37, 0.0  ;;  %v12285_v49 = vpop.f32.mrb[188].mxu0  ;;  %v12836_v45 = vpop.f32.mrb[60].mxu1 }
 0xb37   :  { %13970 = vst.msk [vmem:[#allocation2 + $0x6e0] sm:$0xff] %vm3062_vm0, %v13698_v21  ;;  %13977 = vst [vmem:[#allocation2 + $0x718] sm:$0xff] %v13705_v26  ;;  %v13715_v18 = vmax.f32 %v13443_v23, 0.0  ;;  %v13087_v55 = vadd.f32 %v18274_v4, %v12285_v49  ;;  %v12837_v28 = vadd.f32 %v24350_v60, %v12836_v45  ;;  %v12287_v38 = vpop.f32.mrb[189].mxu0  ;;  %v12838_v34 = vpop.f32.mrb[61].mxu1  ;;  %v18277_v60 = vld [vmem:[%s25787_s0 + $0x828] sm:$0xff] }
 0xb38   :  { %13978 = vst [vmem:[#allocation2 + $0x720] sm:$0xff] %v13706_v54  ;;  %v13088_v35 = vadd.f32 %v18275_v2, %v12287_v38  ;;  %v12289_v44 = vpop.f32.mrb[190].mxu0  ;;  %v12839_v7 = vpop.f32.mrb[62].mxu1  ;;  %v18285_v23 = vld [vmem:[%s25787_s0 + $0x160] sm:$0xff]  ;;  %v18286_v45 = vld [vmem:[%s25787_s0 + $0x168] sm:$0xff] }
 0xb39   :  { %13987 = vst.msk [vmem:[#allocation2 + $0x768] sm:$0xff] %vm3062_vm0, %v13715_v18  ;;  %v13450_v10 = vadd.f32 %v25259_v0, %v13087_v55  ;;  %v13097_v40 = vadd.f32 %v18276_v22, %v12837_v28  ;;  %v13104_v42 = vadd.f32 %v18277_v60, %v12289_v44  ;;  %v12840_v1 = vadd.f32 %v24356_v14, %v12839_v7  ;;  %v12291_v6 = vpop.f32.mrb[191].mxu0  ;;  %v12841_v9 = vpop.f32.mrb[63].mxu1  ;;  %v18287_v28 = vld [vmem:[%s25787_s0 + $0x1e8] sm:$0xff] }
 0xb3a   :  { %v13451_v41 = vadd.f32 %v25264_v3, %v13088_v35  ;;  %v13105_v58 = vadd.f32 %v18278_v20, %v12291_v6  ;;  %v18288_v35 = vld [vmem:[%s25787_s0 + $0x1f0] sm:$0xff]  ;;  %v18290_v20 = vld [vmem:[%s25787_s0 + $0x278] sm:$0xff] }
 0xb3b   :  { %v13722_v51 = vmax.f32 %v13450_v10, 0.0  ;;  %v13460_v8 = vadd.f32 %v25273_v53, %v13097_v40  ;;  %v13467_v36 = vadd.f32 %v25259_v0, %v13104_v42  ;;  %v13114_v25 = vadd.f32 %v18279_v63, %v12840_v1  ;;  %v18289_v6 = vld [vmem:[%s25787_s0 + $0x270] sm:$0xff] }
 0xb3c   :  { %v13723_v14 = vmax.f32 %v13451_v41, 0.0  ;;  %v13468_v16 = vadd.f32 %v25264_v3, %v13105_v58  ;;  %v25500_v0 = vrot.slane %v25496_v15, %v25869_v19  ;;  %v25505_v3 = vrot.slane %v25496_v15, %v13135_v13  ;;  %v18282_v19 = vld [vmem:[%s25787_s0 + $0x58] sm:$0xff] }
 0xb3d   :  { %13994 = vst [vmem:[#allocation2 + $0x7a0] sm:$0xff] %v13722_v51  ;;  %v13732_v48 = vmax.f32 %v13460_v8, 0.0  ;;  %v13739_v50 = vmax.f32 %v13467_v36, 0.0  ;;  %v13477_v39 = vadd.f32 %v25273_v53, %v13114_v25  ;;  %v18291_v36 = vld [vmem:[%s25787_s0 + $0x2f8] sm:$0xff] }
 0xb3e   :  { %13995 = vst [vmem:[#allocation2 + $0x7a8] sm:$0xff] %v13723_v14  ;;  %v13740_v32 = vmax.f32 %v13468_v16, 0.0  ;;  %v12441_v27 = vpop.f32.mrb[192].mxu0  ;;  %v18292_v16 = vld [vmem:[%s25787_s0 + $0x300] sm:$0xff] }
 0xb3f   :  { %14004 = vst.msk [vmem:[#allocation2 + $0x7f0] sm:$0xff] %vm3062_vm0, %v13732_v48  ;;  %14011 = vst [vmem:[#allocation2 + $0x828] sm:$0xff] %v13739_v50  ;;  %v13749_v53 = vmax.f32 %v13477_v39, 0.0  ;;  %v12853_v62 = vadd.f32 %v18281_v56, %v12441_v27  ;;  %v12443_v31 = vpop.f32.mrb[193].mxu0 }
 0xb40   :  { %14012 = vst [vmem:[#allocation2 + $0x830] sm:$0xff] %v13740_v32  ;;  %v12854_v29 = vadd.f32 %v18282_v19, %v12443_v31  ;;  %v12445_v11 = vpop.f32.mrb[194].mxu0  ;;  %v18293_v31 = vld [vmem:[%s25787_s0 + $0x380] sm:$0xff] }
 0xb41   :  { %14021 = vst.msk [vmem:[#allocation2 + $0x878] sm:$0xff] %vm3062_vm0, %v13749_v53  ;;  %v13216_v13 = vadd.f32 %v25500_v0, %v12853_v62  ;;  %v12870_v33 = vadd.f32 %v18283_v59, %v12445_v11  ;;  %v12447_v17 = vpop.f32.mrb[195].mxu0  ;;  %v18294_v11 = vld [vmem:[%s25787_s0 + $0x388] sm:$0xff] }
 0xb42   :  { %v13217_v52 = vadd.f32 %v25505_v3, %v12854_v29  ;;  %v12871_v61 = vadd.f32 %v18284_v47, %v12447_v17  ;;  %v18295_v17 = vld [vmem:[%s25787_s0 + $0x408] sm:$0xff] }
 0xb43   :  { %v13488_v30 = vmax.f32 %v13216_v13, 0.0  ;;  %v13233_v43 = vadd.f32 %v25500_v0, %v12870_v33 }
 0xb44   :  { %v13489_v24 = vmax.f32 %v13217_v52, 0.0  ;;  %v13234_v46 = vadd.f32 %v25505_v3, %v12871_v61 }
 0xb45   :  { %13760 = vst [vmem:[#allocation2 + $0x50] sm:$0xff] %v13488_v30  ;;  %v13505_v37 = vmax.f32 %v13233_v43, 0.0  ;;  %v18296_v30 = vld [vmem:[%s25787_s0 + $0x410] sm:$0xff] }
 0xb46   :  { %13761 = vst [vmem:[#allocation2 + $0x58] sm:$0xff] %v13489_v24  ;;  %v13506_v21 = vmax.f32 %v13234_v46, 0.0  ;;  %v12451_v26 = vpop.f32.mrb[196].mxu0 }
 0xb47   :  { %13777 = vst [vmem:[#allocation2 + $0xd8] sm:$0xff] %v13505_v37  ;;  %v12887_v54 = vadd.f32 %v18285_v23, %v12451_v26  ;;  %v12453_v49 = vpop.f32.mrb[197].mxu0 }
 0xb48   :  { %13778 = vst [vmem:[#allocation2 + $0xe0] sm:$0xff] %v13506_v21  ;;  %v12888_v18 = vadd.f32 %v18286_v45, %v12453_v49  ;;  %v12455_v4 = vpop.f32.mrb[198].mxu0  ;;  %v18297_v49 = vld [vmem:[%s25787_s0 + $0x490] sm:$0xff] }
 0xb49   :  { %v13250_v55 = vadd.f32 %v25500_v0, %v12887_v54  ;;  %v12904_v38 = vadd.f32 %v18287_v28, %v12455_v4  ;;  %v12457_v34 = vpop.f32.mrb[199].mxu0  ;;  %v18298_v4 = vld [vmem:[%s25787_s0 + $0x498] sm:$0xff] }
 0xb4a   :  { %v13251_v2 = vadd.f32 %v25505_v3, %v12888_v18  ;;  %v12905_v44 = vadd.f32 %v18288_v35, %v12457_v34  ;;  %v18299_v34 = vld [vmem:[%s25787_s0 + $0x518] sm:$0xff] }
 0xb4b   :  { %v13522_v7 = vmax.f32 %v13250_v55, 0.0  ;;  %v13267_v10 = vadd.f32 %v25500_v0, %v12904_v38 }
 0xb4c   :  { %v13523_v22 = vmax.f32 %v13251_v2, 0.0  ;;  %v13268_v40 = vadd.f32 %v25505_v3, %v12905_v44 }
 0xb4d   :  { %13794 = vst [vmem:[#allocation2 + $0x160] sm:$0xff] %v13522_v7  ;;  %v13539_v60 = vmax.f32 %v13267_v10, 0.0  ;;  %v18300_v7 = vld [vmem:[%s25787_s0 + $0x520] sm:$0xff] }
 0xb4e   :  { %13795 = vst [vmem:[#allocation2 + $0x168] sm:$0xff] %v13523_v22  ;;  %v13540_v42 = vmax.f32 %v13268_v40, 0.0  ;;  %v12461_v1 = vpop.f32.mrb[200].mxu0 }
 0xb4f   :  { %13811 = vst [vmem:[#allocation2 + $0x1e8] sm:$0xff] %v13539_v60  ;;  %v12921_v9 = vadd.f32 %v18289_v6, %v12461_v1  ;;  %v12463_v41 = vpop.f32.mrb[201].mxu0 }
 0xb50   :  { %13812 = vst [vmem:[#allocation2 + $0x1f0] sm:$0xff] %v13540_v42  ;;  %v12922_v58 = vadd.f32 %v18290_v20, %v12463_v41  ;;  %v12465_v51 = vpop.f32.mrb[202].mxu0  ;;  %v18301_v41 = vld [vmem:[%s25787_s0 + $0x5a0] sm:$0xff] }
 0xb51   :  { %v13284_v8 = vadd.f32 %v25500_v0, %v12921_v9  ;;  %v12938_v63 = vadd.f32 %v18291_v36, %v12465_v51  ;;  %v12467_v25 = vpop.f32.mrb[203].mxu0  ;;  %v18302_v51 = vld [vmem:[%s25787_s0 + $0x5a8] sm:$0xff] }
 0xb52   :  { %v13285_v14 = vadd.f32 %v25505_v3, %v12922_v58  ;;  %v12939_v48 = vadd.f32 %v18292_v16, %v12467_v25  ;;  %v18303_v25 = vld [vmem:[%s25787_s0 + $0x628] sm:$0xff] }
 0xb53   :  { %v13556_v50 = vmax.f32 %v13284_v8, 0.0  ;;  %v13301_v39 = vadd.f32 %v25500_v0, %v12938_v63 }
 0xb54   :  { %v13557_v32 = vmax.f32 %v13285_v14, 0.0  ;;  %v13302_v27 = vadd.f32 %v25505_v3, %v12939_v48 }
 0xb55   :  { %13828 = vst [vmem:[#allocation2 + $0x270] sm:$0xff] %v13556_v50  ;;  %v13573_v53 = vmax.f32 %v13301_v39, 0.0  ;;  %v18304_v50 = vld [vmem:[%s25787_s0 + $0x630] sm:$0xff] }
 0xb56   :  { %13829 = vst [vmem:[#allocation2 + $0x278] sm:$0xff] %v13557_v32  ;;  %v13574_v56 = vmax.f32 %v13302_v27, 0.0  ;;  %v12471_v62 = vpop.f32.mrb[204].mxu0 }
 0xb57   :  { %13845 = vst [vmem:[#allocation2 + $0x2f8] sm:$0xff] %v13573_v53  ;;  %v12955_v19 = vadd.f32 %v18293_v31, %v12471_v62  ;;  %v12473_v29 = vpop.f32.mrb[205].mxu0 }
 0xb58   :  { %13846 = vst [vmem:[#allocation2 + $0x300] sm:$0xff] %v13574_v56  ;;  %v12956_v13 = vadd.f32 %v18294_v11, %v12473_v29  ;;  %v12475_v59 = vpop.f32.mrb[206].mxu0  ;;  %v18305_v29 = vld [vmem:[%s25787_s0 + $0x6b0] sm:$0xff] }
 0xb59   :  { %v13318_v33 = vadd.f32 %v25500_v0, %v12955_v19  ;;  %v12972_v52 = vadd.f32 %v18295_v17, %v12475_v59  ;;  %v12477_v47 = vpop.f32.mrb[207].mxu0  ;;  %v18306_v59 = vld [vmem:[%s25787_s0 + $0x6b8] sm:$0xff] }
 0xb5a   :  { %v13319_v61 = vadd.f32 %v25505_v3, %v12956_v13  ;;  %v12973_v43 = vadd.f32 %v18296_v30, %v12477_v47  ;;  %v18307_v47 = vld [vmem:[%s25787_s0 + $0x738] sm:$0xff] }
 0xb5b   :  { %v13590_v24 = vmax.f32 %v13318_v33, 0.0  ;;  %v13335_v46 = vadd.f32 %v25500_v0, %v12972_v52 }
 0xb5c   :  { %v13591_v37 = vmax.f32 %v13319_v61, 0.0  ;;  %v13336_v21 = vadd.f32 %v25505_v3, %v12973_v43 }
 0xb5d   :  { %13862 = vst [vmem:[#allocation2 + $0x380] sm:$0xff] %v13590_v24  ;;  %v13607_v26 = vmax.f32 %v13335_v46, 0.0  ;;  %v18308_v24 = vld [vmem:[%s25787_s0 + $0x740] sm:$0xff] }
 0xb5e   :  { %13863 = vst [vmem:[#allocation2 + $0x388] sm:$0xff] %v13591_v37  ;;  %v13608_v23 = vmax.f32 %v13336_v21, 0.0  ;;  %v12481_v54 = vpop.f32.mrb[208].mxu0 }
 0xb5f   :  { %13879 = vst [vmem:[#allocation2 + $0x408] sm:$0xff] %v13607_v26  ;;  %v12989_v45 = vadd.f32 %v18297_v49, %v12481_v54  ;;  %v12483_v18 = vpop.f32.mrb[209].mxu0 }
 0xb60   :  { %13880 = vst [vmem:[#allocation2 + $0x410] sm:$0xff] %v13608_v23  ;;  %v12990_v55 = vadd.f32 %v18298_v4, %v12483_v18  ;;  %v12485_v28 = vpop.f32.mrb[210].mxu0  ;;  %v18309_v18 = vld [vmem:[%s25787_s0 + $0x7c0] sm:$0xff] }
 0xb61   :  { %v13352_v38 = vadd.f32 %v25500_v0, %v12989_v45  ;;  %v13006_v2 = vadd.f32 %v18299_v34, %v12485_v28  ;;  %v12487_v35 = vpop.f32.mrb[211].mxu0  ;;  %v18310_v28 = vld [vmem:[%s25787_s0 + $0x7c8] sm:$0xff] }
 0xb62   :  { %v13353_v44 = vadd.f32 %v25505_v3, %v12990_v55  ;;  %v13007_v10 = vadd.f32 %v18300_v7, %v12487_v35  ;;  %v18311_v35 = vld [vmem:[%s25787_s0 + $0x848] sm:$0xff] }
 0xb63   :  { %v13624_v22 = vmax.f32 %v13352_v38, 0.0  ;;  %v13369_v40 = vadd.f32 %v25500_v0, %v13006_v2 }
 0xb64   :  { %v13625_v60 = vmax.f32 %v13353_v44, 0.0  ;;  %v13370_v42 = vadd.f32 %v25505_v3, %v13007_v10 }
 0xb65   :  { %13896 = vst [vmem:[#allocation2 + $0x490] sm:$0xff] %v13624_v22  ;;  %v13641_v1 = vmax.f32 %v13369_v40, 0.0  ;;  %v18312_v22 = vld [vmem:[%s25787_s0 + $0x850] sm:$0xff] }
 0xb66   :  { %13897 = vst [vmem:[#allocation2 + $0x498] sm:$0xff] %v13625_v60  ;;  %v13642_v6 = vmax.f32 %v13370_v42, 0.0  ;;  %v12491_v9 = vpop.f32.mrb[212].mxu0 }
 0xb67   :  { %13913 = vst [vmem:[#allocation2 + $0x518] sm:$0xff] %v13641_v1  ;;  %v13023_v20 = vadd.f32 %v18301_v41, %v12491_v9  ;;  %v12493_v58 = vpop.f32.mrb[213].mxu0  ;;  %v25640_v41 = vrot.slane %v25496_v15, %v13147_v5  ;;  %v18314_v5 = vld [vmem:[%s25787_s0 + $0x78] sm:$0xff] }
 0xb68   :  { %13914 = vst [vmem:[#allocation2 + $0x520] sm:$0xff] %v13642_v6  ;;  %v13024_v8 = vadd.f32 %v18302_v51, %v12493_v58  ;;  %v12495_v36 = vpop.f32.mrb[214].mxu0  ;;  %v25645_v51 = vrot.slane %v25496_v15, %v13151_v57 }
 0xb69   :  { %v13386_v63 = vadd.f32 %v25500_v0, %v13023_v20  ;;  %v13040_v14 = vadd.f32 %v18303_v25, %v12495_v36  ;;  %v12497_v16 = vpop.f32.mrb[215].mxu0 }
 0xb6a   :  { %v13387_v48 = vadd.f32 %v25505_v3, %v13024_v8  ;;  %v13041_v39 = vadd.f32 %v18304_v50, %v12497_v16  ;;  %v18316_v16 = vld [vmem:[%s25787_s0 + $0x100] sm:$0xff] }
 0xb6b   :  { %v13658_v32 = vmax.f32 %v13386_v63, 0.0  ;;  %v13403_v27 = vadd.f32 %v25500_v0, %v13040_v14 }
 0xb6c   :  { %v13659_v53 = vmax.f32 %v13387_v48, 0.0  ;;  %v13404_v56 = vadd.f32 %v25505_v3, %v13041_v39 }
 0xb6d   :  { %13930 = vst [vmem:[#allocation2 + $0x5a0] sm:$0xff] %v13658_v32  ;;  %v13675_v62 = vmax.f32 %v13403_v27, 0.0 }
 0xb6e   :  { %13931 = vst [vmem:[#allocation2 + $0x5a8] sm:$0xff] %v13659_v53  ;;  %v13676_v31 = vmax.f32 %v13404_v56, 0.0  ;;  %v12501_v19 = vpop.f32.mrb[216].mxu0 }
 0xb6f   :  { %13947 = vst [vmem:[#allocation2 + $0x628] sm:$0xff] %v13675_v62  ;;  %v13057_v11 = vadd.f32 %v18305_v29, %v12501_v19  ;;  %v12503_v13 = vpop.f32.mrb[217].mxu0 }
 0xb70   :  { %13948 = vst [vmem:[#allocation2 + $0x630] sm:$0xff] %v13676_v31  ;;  %v13058_v33 = vadd.f32 %v18306_v59, %v12503_v13  ;;  %v12505_v17 = vpop.f32.mrb[218].mxu0  ;;  %v18317_v31 = vld [vmem:[%s25787_s0 + $0x180] sm:$0xff] }
 0xb71   :  { %v13420_v52 = vadd.f32 %v25500_v0, %v13057_v11  ;;  %v13074_v61 = vadd.f32 %v18307_v47, %v12505_v17  ;;  %v12507_v30 = vpop.f32.mrb[219].mxu0  ;;  %v18318_v11 = vld [vmem:[%s25787_s0 + $0x188] sm:$0xff] }
 0xb72   :  { %v13421_v43 = vadd.f32 %v25505_v3, %v13058_v33  ;;  %v13075_v46 = vadd.f32 %v18308_v24, %v12507_v30  ;;  %v18319_v17 = vld [vmem:[%s25787_s0 + $0x208] sm:$0xff]  ;;  %v18320_v30 = vld [vmem:[%s25787_s0 + $0x210] sm:$0xff] }
 0xb73   :  { %v13692_v37 = vmax.f32 %v13420_v52, 0.0  ;;  %v13437_v21 = vadd.f32 %v25500_v0, %v13074_v61 }
 0xb74   :  { %v13693_v26 = vmax.f32 %v13421_v43, 0.0  ;;  %v13438_v23 = vadd.f32 %v25505_v3, %v13075_v46 }
 0xb75   :  { %13964 = vst [vmem:[#allocation2 + $0x6b0] sm:$0xff] %v13692_v37  ;;  %v13709_v54 = vmax.f32 %v13437_v21, 0.0 }
 0xb76   :  { %13965 = vst [vmem:[#allocation2 + $0x6b8] sm:$0xff] %v13693_v26  ;;  %v13710_v49 = vmax.f32 %v13438_v23, 0.0  ;;  %v12511_v45 = vpop.f32.mrb[220].mxu0 }
 0xb77   :  { %13981 = vst [vmem:[#allocation2 + $0x738] sm:$0xff] %v13709_v54  ;;  %v13091_v4 = vadd.f32 %v18309_v18, %v12511_v45  ;;  %v12513_v55 = vpop.f32.mrb[221].mxu0 }
 0xb78   :  { %13982 = vst [vmem:[#allocation2 + $0x740] sm:$0xff] %v13710_v49  ;;  %v13092_v38 = vadd.f32 %v18310_v28, %v12513_v55  ;;  %v12515_v34 = vpop.f32.mrb[222].mxu0  ;;  %v18321_v49 = vld [vmem:[%s25787_s0 + $0x290] sm:$0xff] }
 0xb79   :  { %v13454_v2 = vadd.f32 %v25500_v0, %v13091_v4  ;;  %v13108_v44 = vadd.f32 %v18311_v35, %v12515_v34  ;;  %v12517_v7 = vpop.f32.mrb[223].mxu0  ;;  %v18322_v4 = vld [vmem:[%s25787_s0 + $0x298] sm:$0xff] }
 0xb7a   :  { %v13455_v10 = vadd.f32 %v25505_v3, %v13092_v38  ;;  %v13109_v40 = vadd.f32 %v18312_v22, %v12517_v7  ;;  %v18323_v34 = vld [vmem:[%s25787_s0 + $0x318] sm:$0xff]  ;;  %v18324_v7 = vld [vmem:[%s25787_s0 + $0x320] sm:$0xff] }
 0xb7b   :  { %v13726_v60 = vmax.f32 %v13454_v2, 0.0  ;;  %v13471_v42 = vadd.f32 %v25500_v0, %v13108_v44  ;;  %v18313_v0 = vld [vmem:[%s25787_s0 + $0x70] sm:$0xff] }
 0xb7c   :  { %v13727_v1 = vmax.f32 %v13455_v10, 0.0  ;;  %v13472_v6 = vadd.f32 %v25505_v3, %v13109_v40 }
 0xb7d   :  { %13998 = vst [vmem:[#allocation2 + $0x7c0] sm:$0xff] %v13726_v60  ;;  %v13743_v9 = vmax.f32 %v13471_v42, 0.0 }
 0xb7e   :  { %13999 = vst [vmem:[#allocation2 + $0x7c8] sm:$0xff] %v13727_v1  ;;  %v13744_v20 = vmax.f32 %v13472_v6, 0.0  ;;  %v12667_v58 = vpop.f32.mrb[224].mxu0 }
 0xb7f   :  { %14015 = vst [vmem:[#allocation2 + $0x848] sm:$0xff] %v13743_v9  ;;  %v12857_v3 = vadd.f32 %v18313_v0, %v12667_v58  ;;  %v12669_v8 = vpop.f32.mrb[225].mxu0 }
 0xb80   :  { %14016 = vst [vmem:[#allocation2 + $0x850] sm:$0xff] %v13744_v20  ;;  %v12858_v36 = vadd.f32 %v18314_v5, %v12669_v8  ;;  %v12671_v63 = vpop.f32.mrb[226].mxu0  ;;  %v18325_v20 = vld [vmem:[%s25787_s0 + $0x3a0] sm:$0xff] }
 0xb81   :  { %v13220_v25 = vadd.f32 %v25640_v41, %v12857_v3  ;;  %v12874_v57 = vadd.f32 %v18315_v12, %v12671_v63  ;;  %v12673_v15 = vpop.f32.mrb[227].mxu0  ;;  %v18326_v3 = vld [vmem:[%s25787_s0 + $0x3a8] sm:$0xff] }
 0xb82   :  { %v13221_v14 = vadd.f32 %v25645_v51, %v12858_v36  ;;  %v12875_v48 = vadd.f32 %v18316_v16, %v12673_v15  ;;  %v18327_v63 = vld [vmem:[%s25787_s0 + $0x428] sm:$0xff]  ;;  %v18328_v15 = vld [vmem:[%s25787_s0 + $0x430] sm:$0xff] }
 0xb83   :  { %v13492_v50 = vmax.f32 %v13220_v25, 0.0  ;;  %v13237_v39 = vadd.f32 %v25640_v41, %v12874_v57 }
 0xb84   :  { %v13493_v32 = vmax.f32 %v13221_v14, 0.0  ;;  %v13238_v27 = vadd.f32 %v25645_v51, %v12875_v48 }
 0xb85   :  { %13764 = vst [vmem:[#allocation2 + $0x70] sm:$0xff] %v13492_v50  ;;  %v13509_v53 = vmax.f32 %v13237_v39, 0.0 }
 0xb86   :  { %13765 = vst [vmem:[#allocation2 + $0x78] sm:$0xff] %v13493_v32  ;;  %v13510_v56 = vmax.f32 %v13238_v27, 0.0  ;;  %v12677_v62 = vpop.f32.mrb[228].mxu0 }
 0xb87   :  { %13781 = vst [vmem:[#allocation2 + $0xf8] sm:$0xff] %v13509_v53  ;;  %v12891_v19 = vadd.f32 %v18317_v31, %v12677_v62  ;;  %v12679_v29 = vpop.f32.mrb[229].mxu0 }
 0xb88   :  { %13782 = vst [vmem:[#allocation2 + $0x100] sm:$0xff] %v13510_v56  ;;  %v12892_v13 = vadd.f32 %v18318_v11, %v12679_v29  ;;  %v12681_v59 = vpop.f32.mrb[230].mxu0  ;;  %v18329_v56 = vld [vmem:[%s25787_s0 + $0x4b0] sm:$0xff] }
 0xb89   :  { %v13254_v33 = vadd.f32 %v25640_v41, %v12891_v19  ;;  %v12908_v52 = vadd.f32 %v18319_v17, %v12681_v59  ;;  %v12683_v47 = vpop.f32.mrb[231].mxu0  ;;  %v18330_v19 = vld [vmem:[%s25787_s0 + $0x4b8] sm:$0xff] }
 0xb8a   :  { %v13255_v61 = vadd.f32 %v25645_v51, %v12892_v13  ;;  %v12909_v43 = vadd.f32 %v18320_v30, %v12683_v47  ;;  %v18331_v59 = vld [vmem:[%s25787_s0 + $0x538] sm:$0xff]  ;;  %v18332_v47 = vld [vmem:[%s25787_s0 + $0x540] sm:$0xff] }
 0xb8b   :  { %v13526_v24 = vmax.f32 %v13254_v33, 0.0  ;;  %v13271_v46 = vadd.f32 %v25640_v41, %v12908_v52 }
 0xb8c   :  { %v13527_v37 = vmax.f32 %v13255_v61, 0.0  ;;  %v13272_v21 = vadd.f32 %v25645_v51, %v12909_v43 }
 0xb8d   :  { %13798 = vst [vmem:[#allocation2 + $0x180] sm:$0xff] %v13526_v24  ;;  %v13543_v26 = vmax.f32 %v13271_v46, 0.0 }
 0xb8e   :  { %13799 = vst [vmem:[#allocation2 + $0x188] sm:$0xff] %v13527_v37  ;;  %v13544_v23 = vmax.f32 %v13272_v21, 0.0  ;;  %v12687_v54 = vpop.f32.mrb[232].mxu0 }
 0xb8f   :  { %13815 = vst [vmem:[#allocation2 + $0x208] sm:$0xff] %v13543_v26  ;;  %v12925_v45 = vadd.f32 %v18321_v49, %v12687_v54  ;;  %v12689_v18 = vpop.f32.mrb[233].mxu0 }
 0xb90   :  { %13816 = vst [vmem:[#allocation2 + $0x210] sm:$0xff] %v13544_v23  ;;  %v12926_v55 = vadd.f32 %v18322_v4, %v12689_v18  ;;  %v12691_v28 = vpop.f32.mrb[234].mxu0  ;;  %v18333_v23 = vld [vmem:[%s25787_s0 + $0x5c0] sm:$0xff] }
 0xb91   :  { %v13288_v38 = vadd.f32 %v25640_v41, %v12925_v45  ;;  %v12942_v2 = vadd.f32 %v18323_v34, %v12691_v28  ;;  %v12693_v35 = vpop.f32.mrb[235].mxu0  ;;  %v18334_v45 = vld [vmem:[%s25787_s0 + $0x5c8] sm:$0xff] }
 0xb92   :  { %v13289_v44 = vadd.f32 %v25645_v51, %v12926_v55  ;;  %v12943_v10 = vadd.f32 %v18324_v7, %v12693_v35  ;;  %v18335_v28 = vld [vmem:[%s25787_s0 + $0x648] sm:$0xff]  ;;  %v18336_v35 = vld [vmem:[%s25787_s0 + $0x650] sm:$0xff] }
 0xb93   :  { %v13560_v22 = vmax.f32 %v13288_v38, 0.0  ;;  %v13305_v40 = vadd.f32 %v25640_v41, %v12942_v2 }
 0xb94   :  { %v13561_v60 = vmax.f32 %v13289_v44, 0.0  ;;  %v13306_v42 = vadd.f32 %v25645_v51, %v12943_v10 }
 0xb95   :  { %13832 = vst [vmem:[#allocation2 + $0x290] sm:$0xff] %v13560_v22  ;;  %v13577_v1 = vmax.f32 %v13305_v40, 0.0 }
 0xb96   :  { %13833 = vst [vmem:[#allocation2 + $0x298] sm:$0xff] %v13561_v60  ;;  %v13578_v6 = vmax.f32 %v13306_v42, 0.0  ;;  %v12697_v9 = vpop.f32.mrb[236].mxu0 }
 0xb97   :  { %13849 = vst [vmem:[#allocation2 + $0x318] sm:$0xff] %v13577_v1  ;;  %v12959_v58 = vadd.f32 %v18325_v20, %v12697_v9  ;;  %v12699_v0 = vpop.f32.mrb[237].mxu0 }
 0xb98   :  { %13850 = vst [vmem:[#allocation2 + $0x320] sm:$0xff] %v13578_v6  ;;  %v12960_v8 = vadd.f32 %v18326_v3, %v12699_v0  ;;  %v12701_v5 = vpop.f32.mrb[238].mxu0  ;;  %v18337_v6 = vld [vmem:[%s25787_s0 + $0x6d0] sm:$0xff] }
 0xb99   :  { %v13322_v36 = vadd.f32 %v25640_v41, %v12959_v58  ;;  %v12976_v25 = vadd.f32 %v18327_v63, %v12701_v5  ;;  %v12703_v12 = vpop.f32.mrb[239].mxu0  ;;  %v18338_v58 = vld [vmem:[%s25787_s0 + $0x6d8] sm:$0xff] }
 0xb9a   :  { %v13323_v57 = vadd.f32 %v25645_v51, %v12960_v8  ;;  %v12977_v14 = vadd.f32 %v18328_v15, %v12703_v12  ;;  %v18339_v5 = vld [vmem:[%s25787_s0 + $0x758] sm:$0xff]  ;;  %v18340_v12 = vld [vmem:[%s25787_s0 + $0x760] sm:$0xff] }
 0xb9b   :  { %v13594_v16 = vmax.f32 %v13322_v36, 0.0  ;;  %v13339_v48 = vadd.f32 %v25640_v41, %v12976_v25 }
 0xb9c   :  { %v13595_v50 = vmax.f32 %v13323_v57, 0.0  ;;  %v13340_v39 = vadd.f32 %v25645_v51, %v12977_v14 }
 0xb9d   :  { %13866 = vst [vmem:[#allocation2 + $0x3a0] sm:$0xff] %v13594_v16  ;;  %v13611_v32 = vmax.f32 %v13339_v48, 0.0 }
 0xb9e   :  { %13867 = vst [vmem:[#allocation2 + $0x3a8] sm:$0xff] %v13595_v50  ;;  %v13612_v27 = vmax.f32 %v13340_v39, 0.0  ;;  %v12707_v53 = vpop.f32.mrb[240].mxu0 }
 0xb9f   :  { %13883 = vst [vmem:[#allocation2 + $0x428] sm:$0xff] %v13611_v32  ;;  %v12993_v62 = vadd.f32 %v18329_v56, %v12707_v53  ;;  %v12709_v31 = vpop.f32.mrb[241].mxu0 }
 0xba0   :  { %13884 = vst [vmem:[#allocation2 + $0x430] sm:$0xff] %v13612_v27  ;;  %v12994_v29 = vadd.f32 %v18330_v19, %v12709_v31  ;;  %v12711_v11 = vpop.f32.mrb[242].mxu0  ;;  %v18341_v27 = vld [vmem:[%s25787_s0 + $0x7e0] sm:$0xff] }
 0xba1   :  { %v13356_v13 = vadd.f32 %v25640_v41, %v12993_v62  ;;  %v13010_v33 = vadd.f32 %v18331_v59, %v12711_v11  ;;  %v12713_v17 = vpop.f32.mrb[243].mxu0  ;;  %v18342_v62 = vld [vmem:[%s25787_s0 + $0x7e8] sm:$0xff] }
 0xba2   :  { %v13357_v52 = vadd.f32 %v25645_v51, %v12994_v29  ;;  %v13011_v61 = vadd.f32 %v18332_v47, %v12713_v17  ;;  %v18343_v11 = vld [vmem:[%s25787_s0 + $0x868] sm:$0xff]  ;;  %v18344_v17 = vld [vmem:[%s25787_s0 + $0x870] sm:$0xff] }
 0xba3   :  { %v13628_v30 = vmax.f32 %v13356_v13, 0.0  ;;  %v13373_v43 = vadd.f32 %v25640_v41, %v13010_v33 }
 0xba4   :  { %v13629_v24 = vmax.f32 %v13357_v52, 0.0  ;;  %v13374_v46 = vadd.f32 %v25645_v51, %v13011_v61 }
 0xba5   :  { %13900 = vst [vmem:[#allocation2 + $0x4b0] sm:$0xff] %v13628_v30  ;;  %v13645_v37 = vmax.f32 %v13373_v43, 0.0 }
 0xba6   :  { %13901 = vst [vmem:[#allocation2 + $0x4b8] sm:$0xff] %v13629_v24  ;;  %v13646_v21 = vmax.f32 %v13374_v46, 0.0  ;;  %v12717_v26 = vpop.f32.mrb[244].mxu0 }
 0xba7   :  { %13917 = vst [vmem:[#allocation2 + $0x538] sm:$0xff] %v13645_v37  ;;  %v13027_v54 = vadd.f32 %v18333_v23, %v12717_v26  ;;  %v12719_v49 = vpop.f32.mrb[245].mxu0 }
 0xba8   :  { %13918 = vst [vmem:[#allocation2 + $0x540] sm:$0xff] %v13646_v21  ;;  %v13028_v18 = vadd.f32 %v18334_v45, %v12719_v49  ;;  %v12721_v4 = vpop.f32.mrb[246].mxu0 }
 0xba9   :  { %v13390_v55 = vadd.f32 %v25640_v41, %v13027_v54  ;;  %v13044_v38 = vadd.f32 %v18335_v28, %v12721_v4  ;;  %v12723_v34 = vpop.f32.mrb[247].mxu0 }
 0xbaa   :  { %v13391_v2 = vadd.f32 %v25645_v51, %v13028_v18  ;;  %v13045_v44 = vadd.f32 %v18336_v35, %v12723_v34 }
 0xbab   :  { %v13662_v7 = vmax.f32 %v13390_v55, 0.0  ;;  %v13407_v10 = vadd.f32 %v25640_v41, %v13044_v38 }
 0xbac   :  { %v13663_v22 = vmax.f32 %v13391_v2, 0.0  ;;  %v13408_v40 = vadd.f32 %v25645_v51, %v13045_v44 }
 0xbad   :  { %13934 = vst [vmem:[#allocation2 + $0x5c0] sm:$0xff] %v13662_v7  ;;  %v13679_v60 = vmax.f32 %v13407_v10, 0.0 }
 0xbae   :  { %13935 = vst [vmem:[#allocation2 + $0x5c8] sm:$0xff] %v13663_v22  ;;  %v13680_v42 = vmax.f32 %v13408_v40, 0.0  ;;  %v12727_v1 = vpop.f32.mrb[248].mxu0 }
 0xbaf   :  { %13951 = vst [vmem:[#allocation2 + $0x648] sm:$0xff] %v13679_v60  ;;  %v13061_v9 = vadd.f32 %v18337_v6, %v12727_v1  ;;  %v12729_v20 = vpop.f32.mrb[249].mxu0 }
 0xbb0   :  { %13952 = vst [vmem:[#allocation2 + $0x650] sm:$0xff] %v13680_v42  ;;  %v13062_v0 = vadd.f32 %v18338_v58, %v12729_v20  ;;  %v12731_v3 = vpop.f32.mrb[250].mxu0 }
 0xbb1   :  { %v13424_v8 = vadd.f32 %v25640_v41, %v13061_v9  ;;  %v13078_v36 = vadd.f32 %v18339_v5, %v12731_v3  ;;  %v12733_v63 = vpop.f32.mrb[251].mxu0 }
 0xbb2   :  { %v13425_v25 = vadd.f32 %v25645_v51, %v13062_v0  ;;  %v13079_v57 = vadd.f32 %v18340_v12, %v12733_v63 }
 0xbb3   :  { %v13696_v15 = vmax.f32 %v13424_v8, 0.0  ;;  %v13441_v14 = vadd.f32 %v25640_v41, %v13078_v36 }
 0xbb4   :  { %v13697_v16 = vmax.f32 %v13425_v25, 0.0  ;;  %v13442_v48 = vadd.f32 %v25645_v51, %v13079_v57 }
 0xbb5   :  { %13968 = vst [vmem:[#allocation2 + $0x6d0] sm:$0xff] %v13696_v15  ;;  %v13713_v50 = vmax.f32 %v13441_v14, 0.0 }
 0xbb6   :  { %13969 = vst [vmem:[#allocation2 + $0x6d8] sm:$0xff] %v13697_v16  ;;  %v13714_v39 = vmax.f32 %v13442_v48, 0.0  ;;  %v12737_v32 = vpop.f32.mrb[252].mxu0 }
 0xbb7   :  { %13985 = vst [vmem:[#allocation2 + $0x758] sm:$0xff] %v13713_v50  ;;  %v13095_v53 = vadd.f32 %v18341_v27, %v12737_v32  ;;  %v12739_v56 = vpop.f32.mrb[253].mxu0 }
 0xbb8   :  { %13986 = vst [vmem:[#allocation2 + $0x760] sm:$0xff] %v13714_v39  ;;  %v13096_v31 = vadd.f32 %v18342_v62, %v12739_v56  ;;  %v12741_v19 = vpop.f32.mrb[254].mxu0 }
 0xbb9   :  { %v13458_v29 = vadd.f32 %v25640_v41, %v13095_v53  ;;  %v13112_v13 = vadd.f32 %v18343_v11, %v12741_v19  ;;  %v12743_v59 = vpop.f32.mrb[255].mxu0 }
 0xbba   :  { %v13459_v33 = vadd.f32 %v25645_v51, %v13096_v31  ;;  %v13113_v52 = vadd.f32 %v18344_v17, %v12743_v59 }
 0xbbb   :  { %v13730_v47 = vmax.f32 %v13458_v29, 0.0  ;;  %v13475_v61 = vadd.f32 %v25640_v41, %v13112_v13 }
 0xbbc   :  { %v13731_v30 = vmax.f32 %v13459_v33, 0.0  ;;  %v13476_v43 = vadd.f32 %v25645_v51, %v13113_v52 }
 0xbbd   :  { %14002 = vst [vmem:[#allocation2 + $0x7e0] sm:$0xff] %v13730_v47  ;;  %v13747_v24 = vmax.f32 %v13475_v61, 0.0 }
 0xbbe   :  { %14003 = vst [vmem:[#allocation2 + $0x7e8] sm:$0xff] %v13731_v30  ;;  %v13748_v46 = vmax.f32 %v13476_v43, 0.0 }
 0xbbf   :  { %14019 = vst [vmem:[#allocation2 + $0x868] sm:$0xff] %v13747_v24 }
 0xbc0   :  { %14020 = vst [vmem:[#allocation2 + $0x870] sm:$0xff] %v13748_v46 }
 0xbc1   :  { %18356 = shalt.err (!%p18353_p4)
}
 0xbc2   :  { %s18357_s12 = scalar_lea.hbm %s25797_s10, 34816 }
 0xbc3   :  { %p18358_p5 = scmp.ne.s32.totalorder %s25797_s10, %s18357_s12  ;;  %p18361_p6 = scmp.lt.u32.totalorder %s18357_s12, %s25797_s10 }
 0xbc5   :  { %p18363_p7 = pnand %p18361_p6, %p18358_p5 }
 0xbc7   :  { %18366 = shalt.err (!%p18363_p7)
}
 0xbc8   :  { %s18372_s15 = smov 2176   ;;  %s18373_s16 = smov 136  }
 0xbc9   :  { %14033 = dma.vmem_to_hbm [thread:$0]  %s14028_s30, 34816, %s25797_s10, [#allocation3], %s18372_s15, %s18372_s15, %s18373_s16  }
 0xbca   :  { %18367 = dma.done.wait [#allocation3], 34816  }
 0xbcb   :  { %18368 = vsyncadd [#allocation3], 4294932480 }
 0xbcc   :  { %14037 = vsyncpa [#allocation3], 1 }

</bundles_post_ra>
